<compile_context>
chip_gen: v5e
topology: v5e:2x2
jax: 0.10.0
libtpu: 0.0.40
codegen_flags: <defaults>
</compile_context>

<pallas_src>
import jax
import jax.numpy as jnp
from jax.experimental import pallas as pl
from jax.experimental.pallas import tpu as pltpu


P_IN1 = 4       # conv1 input channels padded 3 -> 4   (lanes = 32*4 = 128)
P_MID = 16      # conv channels padded 12 -> 16        (lanes = 16*16 / 8*16)
N_FC_PAD = 256  # FC output padded 200 -> 256
BSUB = 16       # images per grid step; M = 8*BSUB = 128 rows per conv matmul


def _sigmoid_bf16(x):
    # exp and the approximate reciprocal both lower to the EUP slot.
    return pl.reciprocal(1.0 + jnp.exp(-x), approx=True).astype(jnp.bfloat16)


# ----------------------------------------------------------------------------
# The fused kernel: conv1..conv4 (+sigmoid) + FC for one sub-batch of BSUB
# images.  Activation layout: sublane row = image_row * BSUB + image,
# lanes = (w, c_pad).
# ----------------------------------------------------------------------------
def _alicenet2_kernel(
    xpoly_ref,            # (1, 4, 10*BSUB, 128) bf16  row-polyphase conv1 input
    w1_ref, b1_ref,       # (5, 128, 256) bf16, (1, 256) f32
    w2_ref, b2_ref,       # (5, 256, 128) bf16, (1, 128) f32
    w3_ref, b3_ref,       # (5, 128, 128) bf16, (1, 128) f32
    w4_ref, b4_ref,       # (5, 128, 128) bf16, (1, 128) f32
    wf_ref, bf_ref,       # (8, 128, 256) bf16, (1, 256) f32
    out_ref,              # (BSUB, 256) f32
    e2_ref, o2_ref,       # scratch (10*BSUB, 256) bf16: conv1 even/odd rows (+1-group halo)
    a3_ref, a4_ref,       # scratch (12*BSUB, 128) bf16: conv3/conv4 inputs (+2-group halo)
):
    Bs = BSUB
    M = 8 * Bs

    # Zero ONLY the halo row-groups (they are the convs' vertical zero pad);
    # the interior row-groups are fully overwritten every step.  Re-zeroed
    # every step because scratch is uninitialized on each core's first step.
    z256 = jnp.zeros((Bs, 256), jnp.bfloat16)
    z128 = jnp.zeros((2 * Bs, 128), jnp.bfloat16)
    e2_ref[0:Bs, :] = z256
    e2_ref[9 * Bs:10 * Bs, :] = z256
    o2_ref[0:Bs, :] = z256
    o2_ref[9 * Bs:10 * Bs, :] = z256
    a3_ref[0:2 * Bs, :] = z128
    a3_ref[10 * Bs:12 * Bs, :] = z128
    a4_ref[0:2 * Bs, :] = z128
    a4_ref[10 * Bs:12 * Bs, :] = z128

    # ---- conv1: 3->12, k5, s2, p2, 32x32 -> 16x16 ---------------------------
    # Output parity p (even/odd rows go to separate buffers so conv2's
    # stride-2 row taps stay contiguous).  Each vertical tap reads one
    # row-polyphase component at a BSUB-multiple offset.
    for parity, dst in ((0, e2_ref), (1, o2_ref)):
        acc = jnp.zeros((M, 256), jnp.float32)
        for kh in range(5):
            d = 2 * parity + kh - 2
            q, delta = d % 4, d // 4
            off = (delta + 1) * Bs
            acc = acc + jnp.dot(xpoly_ref[0, q, off:off + M, :], w1_ref[kh],
                                preferred_element_type=jnp.float32)
        dst[Bs:9 * Bs, :] = _sigmoid_bf16(acc + b1_ref[...])

    # ---- conv2: 12->12, k5, s2, p2, 16x16 -> 8x8 ----------------------------
    taps2 = ((e2_ref, 0), (o2_ref, 0), (e2_ref, Bs), (o2_ref, Bs), (e2_ref, 2 * Bs))
    acc = jnp.zeros((M, 128), jnp.float32)
    for kh, (src, off) in enumerate(taps2):
        acc = acc + jnp.dot(src[off:off + M, :], w2_ref[kh],
                            preferred_element_type=jnp.float32)
    a3_ref[2 * Bs:10 * Bs, :] = _sigmoid_bf16(acc + b2_ref[...])

    # ---- conv3: 12->12, k5, s1, p2, 8x8 -> 8x8 ------------------------------
    acc = jnp.zeros((M, 128), jnp.float32)
    for kh in range(5):
        acc = acc + jnp.dot(a3_ref[kh * Bs:kh * Bs + M, :], w3_ref[kh],
                            preferred_element_type=jnp.float32)
    a4_ref[2 * Bs:10 * Bs, :] = _sigmoid_bf16(acc + b3_ref[...])

    # ---- conv4: 12->12, k5, s1, p2, 8x8 -> 8x8 ------------------------------
    acc = jnp.zeros((M, 128), jnp.float32)
    for kh in range(5):
        acc = acc + jnp.dot(a4_ref[kh * Bs:kh * Bs + M, :], w4_ref[kh],
                            preferred_element_type=jnp.float32)
    feat = _sigmoid_bf16(acc + b4_ref[...])           # (M, 128) bf16, rows = h*Bs + b

    # ---- fc: 768 -> 200 (padded 256); flatten folded into wf row order ------
    # Each image-row h across the whole sub-batch is a contiguous (BSUB, 128)
    # slice, so every FC dot has M = BSUB.
    accf = jnp.zeros((Bs, 256), jnp.float32)
    for oh in range(8):
        accf = accf + jnp.dot(feat[oh * Bs:(oh + 1) * Bs, :], wf_ref[oh],
                              preferred_element_type=jnp.float32)
    out_ref[...] = accf + bf_ref[...]


# ----------------------------------------------------------------------------
# Parameter prep (runs once at init): fold im2col / stride / padding / flatten
# order into dense, lane-aligned weight matrices.
# ----------------------------------------------------------------------------
def _fold_conv_weight(w_oihw, w_in, w_out, stride, p_in, p_out):
    """Per-kh matrices W[kh][w'*p_in + ci, ow*p_out + co] = w[co,ci,kh,w'-s*ow+2]."""
    co_n, ci_n, kh_n, kw_n = w_oihw.shape
    wp = jnp.arange(w_in)
    ow = jnp.arange(w_out)
    kw_idx = wp[:, None] - stride * ow[None, :] + 2                  # (w_in, w_out)
    valid = ((kw_idx >= 0) & (kw_idx < kw_n)).astype(w_oihw.dtype)
    kw_c = jnp.clip(kw_idx, 0, kw_n - 1)
    mats = []
    for kh in range(kh_n):
        wk = w_oihw[:, :, kh, :]                                     # (co, ci, kw)
        g = wk[:, :, kw_c] * valid[None, None, :, :]                 # (co, ci, w_in, w_out)
        g = jnp.transpose(g, (2, 1, 3, 0))                           # (w_in, ci, w_out, co)
        g = jnp.pad(g, ((0, 0), (0, p_in - ci_n), (0, 0), (0, p_out - co_n)))
        mats.append(g.reshape(w_in * p_in, w_out * p_out))
    return jnp.stack(mats, axis=0)


def _fold_conv_bias(b, w_out, p_out):
    return jnp.tile(jnp.pad(b, (0, p_out - b.shape[0])), w_out).reshape(1, w_out * p_out)


def _fold_fc(wf, bf):
    # torch flatten order of (B, 12, 8, 8) is j = c*64 + h*8 + w (NCHW).
    g = wf.reshape(200, 12, 8, 8)                 # (n, c, h, w)
    g = jnp.transpose(g, (2, 3, 1, 0))            # (h, w, c, n)
    g = jnp.pad(g, ((0, 0), (0, 0), (0, P_MID - 12), (0, N_FC_PAD - 200)))
    wfold = g.reshape(8, 8 * P_MID, N_FC_PAD)     # (8, 128, 256)
    bfold = jnp.pad(bf, (0, N_FC_PAD - 200)).reshape(1, N_FC_PAD)
    return wfold, bfold


def init_params(key):
    """Deterministic synthetic params in the PyTorch layout."""
    keys = jax.random.split(key, 10)
    params = {
        "w1": jax.random.normal(keys[0], (12, 3, 5, 5), jnp.float32) * 0.1,
        "b1": jax.random.normal(keys[1], (12,), jnp.float32) * 0.1,
        "w2": jax.random.normal(keys[2], (12, 12, 5, 5), jnp.float32) * 0.1,
        "b2": jax.random.normal(keys[3], (12,), jnp.float32) * 0.1,
        "w3": jax.random.normal(keys[4], (12, 12, 5, 5), jnp.float32) * 0.1,
        "b3": jax.random.normal(keys[5], (12,), jnp.float32) * 0.1,
        "w4": jax.random.normal(keys[6], (12, 12, 5, 5), jnp.float32) * 0.1,
        "b4": jax.random.normal(keys[7], (12,), jnp.float32) * 0.1,
        "wf": jax.random.normal(keys[8], (200, 768), jnp.float32) * 0.05,
        "bf": jax.random.normal(keys[9], (200,), jnp.float32) * 0.05,
    }
    return params


def prepare_params(params, wdtype=jnp.bfloat16):
    """One-time folding of torch-layout params into kernel-layout matrices."""
    f = {}
    f["w1"] = _fold_conv_weight(params["w1"], 32, 16, 2, P_IN1, P_MID).astype(wdtype)
    f["b1"] = _fold_conv_bias(params["b1"], 16, P_MID).astype(jnp.float32)
    f["w2"] = _fold_conv_weight(params["w2"], 16, 8, 2, P_MID, P_MID).astype(wdtype)
    f["b2"] = _fold_conv_bias(params["b2"], 8, P_MID).astype(jnp.float32)
    f["w3"] = _fold_conv_weight(params["w3"], 8, 8, 1, P_MID, P_MID).astype(wdtype)
    f["b3"] = _fold_conv_bias(params["b3"], 8, P_MID).astype(jnp.float32)
    f["w4"] = _fold_conv_weight(params["w4"], 8, 8, 1, P_MID, P_MID).astype(wdtype)
    f["b4"] = _fold_conv_bias(params["b4"], 8, P_MID).astype(jnp.float32)
    wfold, bfold = _fold_fc(params["wf"], params["bf"])
    f["wf"] = wfold.astype(wdtype)
    f["bf"] = bfold.astype(jnp.float32)
    return f


# ----------------------------------------------------------------------------
# Forward pass (matches AliceNet2.forward).
# ----------------------------------------------------------------------------
def alicenet2_forward(folded, x_nchw):
    B, C, H, W = x_nchw.shape
    assert (C, H, W) == (3, 32, 32), (C, H, W)
    Bs = BSUB
    nchunks = (B + Bs - 1) // Bs
    Bp = nchunks * Bs

    # Cheap one-time XLA input prep: NCHW -> rows=h, lanes=(w, c_pad)=128,
    # pad 4 zero rows top/bottom, row-polyphase-4 split (for the two stride-2
    # layers), then interleave each sub-batch along the sublane axis as
    # row = image_row * BSUB + image.
    x = jnp.transpose(x_nchw, (0, 2, 3, 1))                           # (B,32,32,3)
    x = jnp.pad(x, ((0, Bp - B), (0, 0), (0, 0), (0, P_IN1 - 3)))     # (Bp,32,32,4)
    x = x.reshape(Bp, 32, 32 * P_IN1)                                 # (Bp,32,128)
    xp = jnp.pad(x, ((0, 0), (4, 4), (0, 0)))                         # (Bp,40,128)
    xpoly = jnp.stack([xp[:, q::4, :] for q in range(4)], axis=1)     # (Bp,4,10,128)
    xpoly = xpoly.reshape(nchunks, Bs, 4, 10, 128)
    xpoly = jnp.transpose(xpoly, (0, 2, 3, 1, 4))                     # (n,4,10,Bs,128)
    xpoly = xpoly.reshape(nchunks, 4, 10 * Bs, 128).astype(jnp.bfloat16)

    out = pl.pallas_call(
        _alicenet2_kernel,
        out_shape=jax.ShapeDtypeStruct((Bp, N_FC_PAD), jnp.float32),
        grid=(nchunks,),
        in_specs=[
            pl.BlockSpec((1, 4, 10 * Bs, 128), lambda c: (c, 0, 0, 0)),
            pl.BlockSpec((5, 128, 256), lambda c: (0, 0, 0)),
            pl.BlockSpec((1, 256), lambda c: (0, 0)),
            pl.BlockSpec((5, 256, 128), lambda c: (0, 0, 0)),
            pl.BlockSpec((1, 128), lambda c: (0, 0)),
            pl.BlockSpec((5, 128, 128), lambda c: (0, 0, 0)),
            pl.BlockSpec((1, 128), lambda c: (0, 0)),
            pl.BlockSpec((5, 128, 128), lambda c: (0, 0, 0)),
            pl.BlockSpec((1, 128), lambda c: (0, 0)),
            pl.BlockSpec((8, 128, 256), lambda c: (0, 0, 0)),
            pl.BlockSpec((1, 256), lambda c: (0, 0)),
        ],
        out_specs=pl.BlockSpec((Bs, N_FC_PAD), lambda c: (c, 0)),
        scratch_shapes=[
            pltpu.VMEM((10 * Bs, 256), jnp.bfloat16),   # conv1 even output rows
            pltpu.VMEM((10 * Bs, 256), jnp.bfloat16),   # conv1 odd output rows
            pltpu.VMEM((12 * Bs, 128), jnp.bfloat16),   # conv2 out / conv3 in
            pltpu.VMEM((12 * Bs, 128), jnp.bfloat16),   # conv3 out / conv4 in
        ],
        compiler_params=pltpu.CompilerParams(
            dimension_semantics=("parallel",),
        ),
    )(xpoly, folded["w1"], folded["b1"], folded["w2"], folded["b2"],
      folded["w3"], folded["b3"], folded["w4"], folded["b4"],
      folded["wf"], folded["bf"])

    return out[:B, :200]                                              # (B, 200)


if __name__ == "__main__":
    key = jax.random.PRNGKey(0)
    k_in, k_params = jax.random.split(key)
    # Input: NCHW, spatial 32x32 so that the flattened conv output is 768.
    x = jax.random.normal(k_in, (2, 3, 32, 32), jnp.float32)

    params = init_params(k_params)
    folded = prepare_params(params)          # one-time weight folding (not in hot path)

    fwd = jax.jit(alicenet2_forward)
    out = jax.block_until_ready(fwd(folded, x))
    assert out.shape == (2, 200), out.shape
    assert bool(jnp.all(jnp.isfinite(out)))
    print("KERNEL_OK")
</pallas_src>

<mosaic_0001>
module attributes {stable_mosaic.version = 11 : i64} {
  func.func @_alicenet2_kernel(%arg0: i32, %arg1: memref<1x4x160x128xbf16, #tpu.memory_space<vmem>>, %arg2: memref<5x128x256xbf16, #tpu.memory_space<vmem>>, %arg3: memref<1x256xf32, #tpu.memory_space<vmem>>, %arg4: memref<5x256x128xbf16, #tpu.memory_space<vmem>>, %arg5: memref<1x128xf32, #tpu.memory_space<vmem>>, %arg6: memref<5x128x128xbf16, #tpu.memory_space<vmem>>, %arg7: memref<1x128xf32, #tpu.memory_space<vmem>>, %arg8: memref<5x128x128xbf16, #tpu.memory_space<vmem>>, %arg9: memref<1x128xf32, #tpu.memory_space<vmem>>, %arg10: memref<8x128x256xbf16, #tpu.memory_space<vmem>>, %arg11: memref<1x256xf32, #tpu.memory_space<vmem>>, %arg12: memref<16x256xf32, #tpu.memory_space<vmem>>, %arg13: memref<160x256xbf16, #tpu.memory_space<vmem>>, %arg14: memref<160x256xbf16, #tpu.memory_space<vmem>>, %arg15: memref<192x128xbf16, #tpu.memory_space<vmem>>, %arg16: memref<192x128xbf16, #tpu.memory_space<vmem>>) attributes {dimension_semantics = [#tpu.dimension_semantics<parallel>], iteration_bounds = array<i64: 1>, scalar_prefetch = 0 : i64, scratch_operands = 4 : i64, tpu.core_type = #tpu.core_type<tc>, window_params = [{transform_indices = @transform_0, window_bounds = array<i64: 1, 4, 160, 128>}, {pipeline_mode = #tpu.pipeline_mode<synchronous>, transform_indices = @transform_1, window_bounds = array<i64: 5, 128, 256>}, {pipeline_mode = #tpu.pipeline_mode<synchronous>, transform_indices = @transform_2, window_bounds = array<i64: 1, 256>}, {pipeline_mode = #tpu.pipeline_mode<synchronous>, transform_indices = @transform_3, window_bounds = array<i64: 5, 256, 128>}, {pipeline_mode = #tpu.pipeline_mode<synchronous>, transform_indices = @transform_4, window_bounds = array<i64: 1, 128>}, {pipeline_mode = #tpu.pipeline_mode<synchronous>, transform_indices = @transform_5, window_bounds = array<i64: 5, 128, 128>}, {pipeline_mode = #tpu.pipeline_mode<synchronous>, transform_indices = @transform_6, window_bounds = array<i64: 1, 128>}, {pipeline_mode = #tpu.pipeline_mode<synchronous>, transform_indices = @transform_7, window_bounds = array<i64: 5, 128, 128>}, {pipeline_mode = #tpu.pipeline_mode<synchronous>, transform_indices = @transform_8, window_bounds = array<i64: 1, 128>}, {pipeline_mode = #tpu.pipeline_mode<synchronous>, transform_indices = @transform_9, window_bounds = array<i64: 8, 128, 256>}, {pipeline_mode = #tpu.pipeline_mode<synchronous>, transform_indices = @transform_10, window_bounds = array<i64: 1, 256>}, {transform_indices = @transform_11, window_bounds = array<i64: 16, 256>}]} {
    %cst = arith.constant 0.000000e+00 : bf16
    %0 = vector.broadcast %cst : bf16 to vector<16x256xbf16>
    %cst_0 = arith.constant 0.000000e+00 : bf16
    %1 = vector.broadcast %cst_0 : bf16 to vector<32x128xbf16>
    %c0 = arith.constant 0 : index
    %c0_1 = arith.constant 0 : index
    %2 = vector.load %arg13[%c0, %c0_1] : memref<160x256xbf16, #tpu.memory_space<vmem>>, vector<16x256xbf16>
    tpu.vector_store %arg13[%c0, %c0_1], %0 {strides = array<i32>} : memref<160x256xbf16, #tpu.memory_space<vmem>>, vector<16x256xbf16>,
    %c144 = arith.constant 144 : index
    %c0_2 = arith.constant 0 : index
    %3 = vector.load %arg13[%c144, %c0_2] : memref<160x256xbf16, #tpu.memory_space<vmem>>, vector<16x256xbf16>
    tpu.vector_store %arg13[%c144, %c0_2], %0 {strides = array<i32>} : memref<160x256xbf16, #tpu.memory_space<vmem>>, vector<16x256xbf16>,
    %c0_3 = arith.constant 0 : index
    %c0_4 = arith.constant 0 : index
    %4 = vector.load %arg14[%c0_3, %c0_4] : memref<160x256xbf16, #tpu.memory_space<vmem>>, vector<16x256xbf16>
    tpu.vector_store %arg14[%c0_3, %c0_4], %0 {strides = array<i32>} : memref<160x256xbf16, #tpu.memory_space<vmem>>, vector<16x256xbf16>,
    %c144_5 = arith.constant 144 : index
    %c0_6 = arith.constant 0 : index
    %5 = vector.load %arg14[%c144_5, %c0_6] : memref<160x256xbf16, #tpu.memory_space<vmem>>, vector<16x256xbf16>
    tpu.vector_store %arg14[%c144_5, %c0_6], %0 {strides = array<i32>} : memref<160x256xbf16, #tpu.memory_space<vmem>>, vector<16x256xbf16>,
    %c0_7 = arith.constant 0 : index
    %c0_8 = arith.constant 0 : index
    %6 = vector.load %arg15[%c0_7, %c0_8] : memref<192x128xbf16, #tpu.memory_space<vmem>>, vector<32x128xbf16>
    tpu.vector_store %arg15[%c0_7, %c0_8], %1 {strides = array<i32>} : memref<192x128xbf16, #tpu.memory_space<vmem>>, vector<32x128xbf16>,
    %c160 = arith.constant 160 : index
    %c0_9 = arith.constant 0 : index
    %7 = vector.load %arg15[%c160, %c0_9] : memref<192x128xbf16, #tpu.memory_space<vmem>>, vector<32x128xbf16>
    tpu.vector_store %arg15[%c160, %c0_9], %1 {strides = array<i32>} : memref<192x128xbf16, #tpu.memory_space<vmem>>, vector<32x128xbf16>,
    %c0_10 = arith.constant 0 : index
    %c0_11 = arith.constant 0 : index
    %8 = vector.load %arg16[%c0_10, %c0_11] : memref<192x128xbf16, #tpu.memory_space<vmem>>, vector<32x128xbf16>
    tpu.vector_store %arg16[%c0_10, %c0_11], %1 {strides = array<i32>} : memref<192x128xbf16, #tpu.memory_space<vmem>>, vector<32x128xbf16>,
    %c160_12 = arith.constant 160 : index
    %c0_13 = arith.constant 0 : index
    %9 = vector.load %arg16[%c160_12, %c0_13] : memref<192x128xbf16, #tpu.memory_space<vmem>>, vector<32x128xbf16>
    tpu.vector_store %arg16[%c160_12, %c0_13], %1 {strides = array<i32>} : memref<192x128xbf16, #tpu.memory_space<vmem>>, vector<32x128xbf16>,
    %cst_14 = arith.constant 0.000000e+00 : f32
    %10 = vector.broadcast %cst_14 : f32 to vector<128x256xf32>
    %c0_15 = arith.constant 0 : index
    %c2 = arith.constant 2 : index
    %c0_16 = arith.constant 0 : index
    %c0_17 = arith.constant 0 : index
    %11 = vector.load %arg1[%c0_15, %c2, %c0_16, %c0_17] : memref<1x4x160x128xbf16, #tpu.memory_space<vmem>>, vector<1x1x128x128xbf16>
    %12 = vector.shape_cast %11 : vector<1x1x128x128xbf16> to vector<128x128xbf16>
    %c0_18 = arith.constant 0 : index
    %c0_19 = arith.constant 0 : index
    %c0_20 = arith.constant 0 : index
    %13 = vector.load %arg2[%c0_18, %c0_19, %c0_20] : memref<5x128x256xbf16, #tpu.memory_space<vmem>>, vector<1x128x256xbf16>
    %14 = vector.shape_cast %13 : vector<1x128x256xbf16> to vector<128x256xbf16>
    %cst_21 = arith.constant dense<0.000000e+00> : vector<128x256xf32>
    %15 = tpu.matmul %12, %14, %cst_21 {dimension_numbers = #tpu.dot_dimension_numbers<[1], [0], [0], [1], [0, 0, 1, 1], [], []>} : vector<128x128xbf16>, vector<128x256xbf16>, vector<128x256xf32> -> vector<128x256xf32>
    %16 = arith.addf %10, %15 : vector<128x256xf32>
    %c0_22 = arith.constant 0 : index
    %c3 = arith.constant 3 : index
    %c0_23 = arith.constant 0 : index
    %c0_24 = arith.constant 0 : index
    %17 = vector.load %arg1[%c0_22, %c3, %c0_23, %c0_24] : memref<1x4x160x128xbf16, #tpu.memory_space<vmem>>, vector<1x1x128x128xbf16>
    %18 = vector.shape_cast %17 : vector<1x1x128x128xbf16> to vector<128x128xbf16>
    %c1 = arith.constant 1 : index
    %c0_25 = arith.constant 0 : index
    %c0_26 = arith.constant 0 : index
    %19 = vector.load %arg2[%c1, %c0_25, %c0_26] : memref<5x128x256xbf16, #tpu.memory_space<vmem>>, vector<1x128x256xbf16>
    %20 = vector.shape_cast %19 : vector<1x128x256xbf16> to vector<128x256xbf16>
    %cst_27 = arith.constant dense<0.000000e+00> : vector<128x256xf32>
    %21 = tpu.matmul %18, %20, %cst_27 {dimension_numbers = #tpu.dot_dimension_numbers<[1], [0], [0], [1], [0, 0, 1, 1], [], []>} : vector<128x128xbf16>, vector<128x256xbf16>, vector<128x256xf32> -> vector<128x256xf32>
    %22 = arith.addf %16, %21 : vector<128x256xf32>
    %c0_28 = arith.constant 0 : index
    %c0_29 = arith.constant 0 : index
    %c16 = arith.constant 16 : index
    %c0_30 = arith.constant 0 : index
    %23 = vector.load %arg1[%c0_28, %c0_29, %c16, %c0_30] : memref<1x4x160x128xbf16, #tpu.memory_space<vmem>>, vector<1x1x128x128xbf16>
    %24 = vector.shape_cast %23 : vector<1x1x128x128xbf16> to vector<128x128xbf16>
    %c2_31 = arith.constant 2 : index
    %c0_32 = arith.constant 0 : index
    %c0_33 = arith.constant 0 : index
    %25 = vector.load %arg2[%c2_31, %c0_32, %c0_33] : memref<5x128x256xbf16, #tpu.memory_space<vmem>>, vector<1x128x256xbf16>
    %26 = vector.shape_cast %25 : vector<1x128x256xbf16> to vector<128x256xbf16>
    %cst_34 = arith.constant dense<0.000000e+00> : vector<128x256xf32>
    %27 = tpu.matmul %24, %26, %cst_34 {dimension_numbers = #tpu.dot_dimension_numbers<[1], [0], [0], [1], [0, 0, 1, 1], [], []>} : vector<128x128xbf16>, vector<128x256xbf16>, vector<128x256xf32> -> vector<128x256xf32>
    %28 = arith.addf %22, %27 : vector<128x256xf32>
    %c0_35 = arith.constant 0 : index
    %c1_36 = arith.constant 1 : index
    %c16_37 = arith.constant 16 : index
    %c0_38 = arith.constant 0 : index
    %29 = vector.load %arg1[%c0_35, %c1_36, %c16_37, %c0_38] : memref<1x4x160x128xbf16, #tpu.memory_space<vmem>>, vector<1x1x128x128xbf16>
    %30 = vector.shape_cast %29 : vector<1x1x128x128xbf16> to vector<128x128xbf16>
    %c3_39 = arith.constant 3 : index
    %c0_40 = arith.constant 0 : index
    %c0_41 = arith.constant 0 : index
    %31 = vector.load %arg2[%c3_39, %c0_40, %c0_41] : memref<5x128x256xbf16, #tpu.memory_space<vmem>>, vector<1x128x256xbf16>
    %32 = vector.shape_cast %31 : vector<1x128x256xbf16> to vector<128x256xbf16>
    %cst_42 = arith.constant dense<0.000000e+00> : vector<128x256xf32>
    %33 = tpu.matmul %30, %32, %cst_42 {dimension_numbers = #tpu.dot_dimension_numbers<[1], [0], [0], [1], [0, 0, 1, 1], [], []>} : vector<128x128xbf16>, vector<128x256xbf16>, vector<128x256xf32> -> vector<128x256xf32>
    %34 = arith.addf %28, %33 : vector<128x256xf32>
    %c0_43 = arith.constant 0 : index
    %c2_44 = arith.constant 2 : index
    %c16_45 = arith.constant 16 : index
    %c0_46 = arith.constant 0 : index
    %35 = vector.load %arg1[%c0_43, %c2_44, %c16_45, %c0_46] : memref<1x4x160x128xbf16, #tpu.memory_space<vmem>>, vector<1x1x128x128xbf16>
    %36 = vector.shape_cast %35 : vector<1x1x128x128xbf16> to vector<128x128xbf16>
    %c4 = arith.constant 4 : index
    %c0_47 = arith.constant 0 : index
    %c0_48 = arith.constant 0 : index
    %37 = vector.load %arg2[%c4, %c0_47, %c0_48] : memref<5x128x256xbf16, #tpu.memory_space<vmem>>, vector<1x128x256xbf16>
    %38 = vector.shape_cast %37 : vector<1x128x256xbf16> to vector<128x256xbf16>
    %cst_49 = arith.constant dense<0.000000e+00> : vector<128x256xf32>
    %39 = tpu.matmul %36, %38, %cst_49 {dimension_numbers = #tpu.dot_dimension_numbers<[1], [0], [0], [1], [0, 0, 1, 1], [], []>} : vector<128x128xbf16>, vector<128x256xbf16>, vector<128x256xf32> -> vector<128x256xf32>
    %40 = arith.addf %34, %39 : vector<128x256xf32>
    %c0_50 = arith.constant 0 : index
    %c0_51 = arith.constant 0 : index
    %41 = vector.load %arg3[%c0_50, %c0_51] : memref<1x256xf32, #tpu.memory_space<vmem>>, vector<1x256xf32>
    %42 = vector.broadcast %41 : vector<1x256xf32> to vector<128x256xf32>
    %43 = arith.addf %40, %42 : vector<128x256xf32>
    %cst_52 = arith.constant 0.000000e+00 : f32
    %44 = vector.broadcast %cst_52 : f32 to vector<128x256xf32>
    %45 = arith.subf %44, %43 : vector<128x256xf32>
    %46 = math.exp %45 : vector<128x256xf32>
    %cst_53 = arith.constant 1.000000e+00 : f32
    %47 = vector.broadcast %cst_53 : f32 to vector<128x256xf32>
    %48 = arith.addf %47, %46 : vector<128x256xf32>
    %49 = tpu.reciprocal %48 {approx = true} : vector<128x256xf32> -> vector<128x256xf32>
    %50 = arith.truncf %49 : vector<128x256xf32> to vector<128x256xbf16>
    %c16_54 = arith.constant 16 : index
    %c0_55 = arith.constant 0 : index
    %51 = vector.load %arg13[%c16_54, %c0_55] : memref<160x256xbf16, #tpu.memory_space<vmem>>, vector<128x256xbf16>
    tpu.vector_store %arg13[%c16_54, %c0_55], %50 {strides = array<i32>} : memref<160x256xbf16, #tpu.memory_space<vmem>>, vector<128x256xbf16>,
    %cst_56 = arith.constant 0.000000e+00 : f32
    %52 = vector.broadcast %cst_56 : f32 to vector<128x256xf32>
    %c0_57 = arith.constant 0 : index
    %c0_58 = arith.constant 0 : index
    %c16_59 = arith.constant 16 : index
    %c0_60 = arith.constant 0 : index
    %53 = vector.load %arg1[%c0_57, %c0_58, %c16_59, %c0_60] : memref<1x4x160x128xbf16, #tpu.memory_space<vmem>>, vector<1x1x128x128xbf16>
    %54 = vector.shape_cast %53 : vector<1x1x128x128xbf16> to vector<128x128xbf16>
    %c0_61 = arith.constant 0 : index
    %c0_62 = arith.constant 0 : index
    %c0_63 = arith.constant 0 : index
    %55 = vector.load %arg2[%c0_61, %c0_62, %c0_63] : memref<5x128x256xbf16, #tpu.memory_space<vmem>>, vector<1x128x256xbf16>
    %56 = vector.shape_cast %55 : vector<1x128x256xbf16> to vector<128x256xbf16>
    %cst_64 = arith.constant dense<0.000000e+00> : vector<128x256xf32>
    %57 = tpu.matmul %54, %56, %cst_64 {dimension_numbers = #tpu.dot_dimension_numbers<[1], [0], [0], [1], [0, 0, 1, 1], [], []>} : vector<128x128xbf16>, vector<128x256xbf16>, vector<128x256xf32> -> vector<128x256xf32>
    %58 = arith.addf %52, %57 : vector<128x256xf32>
    %c0_65 = arith.constant 0 : index
    %c1_66 = arith.constant 1 : index
    %c16_67 = arith.constant 16 : index
    %c0_68 = arith.constant 0 : index
    %59 = vector.load %arg1[%c0_65, %c1_66, %c16_67, %c0_68] : memref<1x4x160x128xbf16, #tpu.memory_space<vmem>>, vector<1x1x128x128xbf16>
    %60 = vector.shape_cast %59 : vector<1x1x128x128xbf16> to vector<128x128xbf16>
    %c1_69 = arith.constant 1 : index
    %c0_70 = arith.constant 0 : index
    %c0_71 = arith.constant 0 : index
    %61 = vector.load %arg2[%c1_69, %c0_70, %c0_71] : memref<5x128x256xbf16, #tpu.memory_space<vmem>>, vector<1x128x256xbf16>
    %62 = vector.shape_cast %61 : vector<1x128x256xbf16> to vector<128x256xbf16>
    %cst_72 = arith.constant dense<0.000000e+00> : vector<128x256xf32>
    %63 = tpu.matmul %60, %62, %cst_72 {dimension_numbers = #tpu.dot_dimension_numbers<[1], [0], [0], [1], [0, 0, 1, 1], [], []>} : vector<128x128xbf16>, vector<128x256xbf16>, vector<128x256xf32> -> vector<128x256xf32>
    %64 = arith.addf %58, %63 : vector<128x256xf32>
    %c0_73 = arith.constant 0 : index
    %c2_74 = arith.constant 2 : index
    %c16_75 = arith.constant 16 : index
    %c0_76 = arith.constant 0 : index
    %65 = vector.load %arg1[%c0_73, %c2_74, %c16_75, %c0_76] : memref<1x4x160x128xbf16, #tpu.memory_space<vmem>>, vector<1x1x128x128xbf16>
    %66 = vector.shape_cast %65 : vector<1x1x128x128xbf16> to vector<128x128xbf16>
    %c2_77 = arith.constant 2 : index
    %c0_78 = arith.constant 0 : index
    %c0_79 = arith.constant 0 : index
    %67 = vector.load %arg2[%c2_77, %c0_78, %c0_79] : memref<5x128x256xbf16, #tpu.memory_space<vmem>>, vector<1x128x256xbf16>
    %68 = vector.shape_cast %67 : vector<1x128x256xbf16> to vector<128x256xbf16>
    %cst_80 = arith.constant dense<0.000000e+00> : vector<128x256xf32>
    %69 = tpu.matmul %66, %68, %cst_80 {dimension_numbers = #tpu.dot_dimension_numbers<[1], [0], [0], [1], [0, 0, 1, 1], [], []>} : vector<128x128xbf16>, vector<128x256xbf16>, vector<128x256xf32> -> vector<128x256xf32>
    %70 = arith.addf %64, %69 : vector<128x256xf32>
    %c0_81 = arith.constant 0 : index
    %c3_82 = arith.constant 3 : index
    %c16_83 = arith.constant 16 : index
    %c0_84 = arith.constant 0 : index
    %71 = vector.load %arg1[%c0_81, %c3_82, %c16_83, %c0_84] : memref<1x4x160x128xbf16, #tpu.memory_space<vmem>>, vector<1x1x128x128xbf16>
    %72 = vector.shape_cast %71 : vector<1x1x128x128xbf16> to vector<128x128xbf16>
    %c3_85 = arith.constant 3 : index
    %c0_86 = arith.constant 0 : index
    %c0_87 = arith.constant 0 : index
    %73 = vector.load %arg2[%c3_85, %c0_86, %c0_87] : memref<5x128x256xbf16, #tpu.memory_space<vmem>>, vector<1x128x256xbf16>
    %74 = vector.shape_cast %73 : vector<1x128x256xbf16> to vector<128x256xbf16>
    %cst_88 = arith.constant dense<0.000000e+00> : vector<128x256xf32>
    %75 = tpu.matmul %72, %74, %cst_88 {dimension_numbers = #tpu.dot_dimension_numbers<[1], [0], [0], [1], [0, 0, 1, 1], [], []>} : vector<128x128xbf16>, vector<128x256xbf16>, vector<128x256xf32> -> vector<128x256xf32>
    %76 = arith.addf %70, %75 : vector<128x256xf32>
    %c0_89 = arith.constant 0 : index
    %c0_90 = arith.constant 0 : index
    %c32 = arith.constant 32 : index
    %c0_91 = arith.constant 0 : index
    %77 = vector.load %arg1[%c0_89, %c0_90, %c32, %c0_91] : memref<1x4x160x128xbf16, #tpu.memory_space<vmem>>, vector<1x1x128x128xbf16>
    %78 = vector.shape_cast %77 : vector<1x1x128x128xbf16> to vector<128x128xbf16>
    %c4_92 = arith.constant 4 : index
    %c0_93 = arith.constant 0 : index
    %c0_94 = arith.constant 0 : index
    %79 = vector.load %arg2[%c4_92, %c0_93, %c0_94] : memref<5x128x256xbf16, #tpu.memory_space<vmem>>, vector<1x128x256xbf16>
    %80 = vector.shape_cast %79 : vector<1x128x256xbf16> to vector<128x256xbf16>
    %cst_95 = arith.constant dense<0.000000e+00> : vector<128x256xf32>
    %81 = tpu.matmul %78, %80, %cst_95 {dimension_numbers = #tpu.dot_dimension_numbers<[1], [0], [0], [1], [0, 0, 1, 1], [], []>} : vector<128x128xbf16>, vector<128x256xbf16>, vector<128x256xf32> -> vector<128x256xf32>
    %82 = arith.addf %76, %81 : vector<128x256xf32>
    %c0_96 = arith.constant 0 : index
    %c0_97 = arith.constant 0 : index
    %83 = vector.load %arg3[%c0_96, %c0_97] : memref<1x256xf32, #tpu.memory_space<vmem>>, vector<1x256xf32>
    %84 = vector.broadcast %83 : vector<1x256xf32> to vector<128x256xf32>
    %85 = arith.addf %82, %84 : vector<128x256xf32>
    %cst_98 = arith.constant 0.000000e+00 : f32
    %86 = vector.broadcast %cst_98 : f32 to vector<128x256xf32>
    %87 = arith.subf %86, %85 : vector<128x256xf32>
    %88 = math.exp %87 : vector<128x256xf32>
    %cst_99 = arith.constant 1.000000e+00 : f32
    %89 = vector.broadcast %cst_99 : f32 to vector<128x256xf32>
    %90 = arith.addf %89, %88 : vector<128x256xf32>
    %91 = tpu.reciprocal %90 {approx = true} : vector<128x256xf32> -> vector<128x256xf32>
    %92 = arith.truncf %91 : vector<128x256xf32> to vector<128x256xbf16>
    %c16_100 = arith.constant 16 : index
    %c0_101 = arith.constant 0 : index
    %93 = vector.load %arg14[%c16_100, %c0_101] : memref<160x256xbf16, #tpu.memory_space<vmem>>, vector<128x256xbf16>
    tpu.vector_store %arg14[%c16_100, %c0_101], %92 {strides = array<i32>} : memref<160x256xbf16, #tpu.memory_space<vmem>>, vector<128x256xbf16>,
    %cst_102 = arith.constant 0.000000e+00 : f32
    %94 = vector.broadcast %cst_102 : f32 to vector<128x128xf32>
    %c0_103 = arith.constant 0 : index
    %c0_104 = arith.constant 0 : index
    %95 = vector.load %arg13[%c0_103, %c0_104] : memref<160x256xbf16, #tpu.memory_space<vmem>>, vector<128x256xbf16>
    %c0_105 = arith.constant 0 : index
    %c0_106 = arith.constant 0 : index
    %c0_107 = arith.constant 0 : index
    %96 = vector.load %arg4[%c0_105, %c0_106, %c0_107] : memref<5x256x128xbf16, #tpu.memory_space<vmem>>, vector<1x256x128xbf16>
    %97 = vector.shape_cast %96 : vector<1x256x128xbf16> to vector<256x128xbf16>
    %cst_108 = arith.constant dense<0.000000e+00> : vector<128x128xf32>
    %98 = tpu.matmul %95, %97, %cst_108 {dimension_numbers = #tpu.dot_dimension_numbers<[1], [0], [0], [1], [0, 0, 1, 1], [], []>} : vector<128x256xbf16>, vector<256x128xbf16>, vector<128x128xf32> -> vector<128x128xf32>
    %99 = arith.addf %94, %98 : vector<128x128xf32>
    %c0_109 = arith.constant 0 : index
    %c0_110 = arith.constant 0 : index
    %100 = vector.load %arg14[%c0_109, %c0_110] : memref<160x256xbf16, #tpu.memory_space<vmem>>, vector<128x256xbf16>
    %c1_111 = arith.constant 1 : index
    %c0_112 = arith.constant 0 : index
    %c0_113 = arith.constant 0 : index
    %101 = vector.load %arg4[%c1_111, %c0_112, %c0_113] : memref<5x256x128xbf16, #tpu.memory_space<vmem>>, vector<1x256x128xbf16>
    %102 = vector.shape_cast %101 : vector<1x256x128xbf16> to vector<256x128xbf16>
    %cst_114 = arith.constant dense<0.000000e+00> : vector<128x128xf32>
    %103 = tpu.matmul %100, %102, %cst_114 {dimension_numbers = #tpu.dot_dimension_numbers<[1], [0], [0], [1], [0, 0, 1, 1], [], []>} : vector<128x256xbf16>, vector<256x128xbf16>, vector<128x128xf32> -> vector<128x128xf32>
    %104 = arith.addf %99, %103 : vector<128x128xf32>
    %c16_115 = arith.constant 16 : index
    %c0_116 = arith.constant 0 : index
    %105 = vector.load %arg13[%c16_115, %c0_116] : memref<160x256xbf16, #tpu.memory_space<vmem>>, vector<128x256xbf16>
    %c2_117 = arith.constant 2 : index
    %c0_118 = arith.constant 0 : index
    %c0_119 = arith.constant 0 : index
    %106 = vector.load %arg4[%c2_117, %c0_118, %c0_119] : memref<5x256x128xbf16, #tpu.memory_space<vmem>>, vector<1x256x128xbf16>
    %107 = vector.shape_cast %106 : vector<1x256x128xbf16> to vector<256x128xbf16>
    %cst_120 = arith.constant dense<0.000000e+00> : vector<128x128xf32>
    %108 = tpu.matmul %105, %107, %cst_120 {dimension_numbers = #tpu.dot_dimension_numbers<[1], [0], [0], [1], [0, 0, 1, 1], [], []>} : vector<128x256xbf16>, vector<256x128xbf16>, vector<128x128xf32> -> vector<128x128xf32>
    %109 = arith.addf %104, %108 : vector<128x128xf32>
    %c16_121 = arith.constant 16 : index
    %c0_122 = arith.constant 0 : index
    %110 = vector.load %arg14[%c16_121, %c0_122] : memref<160x256xbf16, #tpu.memory_space<vmem>>, vector<128x256xbf16>
    %c3_123 = arith.constant 3 : index
    %c0_124 = arith.constant 0 : index
    %c0_125 = arith.constant 0 : index
    %111 = vector.load %arg4[%c3_123, %c0_124, %c0_125] : memref<5x256x128xbf16, #tpu.memory_space<vmem>>, vector<1x256x128xbf16>
    %112 = vector.shape_cast %111 : vector<1x256x128xbf16> to vector<256x128xbf16>
    %cst_126 = arith.constant dense<0.000000e+00> : vector<128x128xf32>
    %113 = tpu.matmul %110, %112, %cst_126 {dimension_numbers = #tpu.dot_dimension_numbers<[1], [0], [0], [1], [0, 0, 1, 1], [], []>} : vector<128x256xbf16>, vector<256x128xbf16>, vector<128x128xf32> -> vector<128x128xf32>
    %114 = arith.addf %109, %113 : vector<128x128xf32>
    %c32_127 = arith.constant 32 : index
    %c0_128 = arith.constant 0 : index
    %115 = vector.load %arg13[%c32_127, %c0_128] : memref<160x256xbf16, #tpu.memory_space<vmem>>, vector<128x256xbf16>
    %c4_129 = arith.constant 4 : index
    %c0_130 = arith.constant 0 : index
    %c0_131 = arith.constant 0 : index
    %116 = vector.load %arg4[%c4_129, %c0_130, %c0_131] : memref<5x256x128xbf16, #tpu.memory_space<vmem>>, vector<1x256x128xbf16>
    %117 = vector.shape_cast %116 : vector<1x256x128xbf16> to vector<256x128xbf16>
    %cst_132 = arith.constant dense<0.000000e+00> : vector<128x128xf32>
    %118 = tpu.matmul %115, %117, %cst_132 {dimension_numbers = #tpu.dot_dimension_numbers<[1], [0], [0], [1], [0, 0, 1, 1], [], []>} : vector<128x256xbf16>, vector<256x128xbf16>, vector<128x128xf32> -> vector<128x128xf32>
    %119 = arith.addf %114, %118 : vector<128x128xf32>
    %c0_133 = arith.constant 0 : index
    %c0_134 = arith.constant 0 : index
    %120 = vector.load %arg5[%c0_133, %c0_134] : memref<1x128xf32, #tpu.memory_space<vmem>>, vector<1x128xf32>
    %121 = vector.broadcast %120 : vector<1x128xf32> to vector<128x128xf32>
    %122 = arith.addf %119, %121 : vector<128x128xf32>
    %cst_135 = arith.constant 0.000000e+00 : f32
    %123 = vector.broadcast %cst_135 : f32 to vector<128x128xf32>
    %124 = arith.subf %123, %122 : vector<128x128xf32>
    %125 = math.exp %124 : vector<128x128xf32>
    %cst_136 = arith.constant 1.000000e+00 : f32
    %126 = vector.broadcast %cst_136 : f32 to vector<128x128xf32>
    %127 = arith.addf %126, %125 : vector<128x128xf32>
    %128 = tpu.reciprocal %127 {approx = true} : vector<128x128xf32> -> vector<128x128xf32>
    %129 = arith.truncf %128 : vector<128x128xf32> to vector<128x128xbf16>
    %c32_137 = arith.constant 32 : index
    %c0_138 = arith.constant 0 : index
    %130 = vector.load %arg15[%c32_137, %c0_138] : memref<192x128xbf16, #tpu.memory_space<vmem>>, vector<128x128xbf16>
    tpu.vector_store %arg15[%c32_137, %c0_138], %129 {strides = array<i32>} : memref<192x128xbf16, #tpu.memory_space<vmem>>, vector<128x128xbf16>,
    %cst_139 = arith.constant 0.000000e+00 : f32
    %131 = vector.broadcast %cst_139 : f32 to vector<128x128xf32>
    %c0_140 = arith.constant 0 : index
    %c0_141 = arith.constant 0 : index
    %132 = vector.load %arg15[%c0_140, %c0_141] : memref<192x128xbf16, #tpu.memory_space<vmem>>, vector<128x128xbf16>
    %c0_142 = arith.constant 0 : index
    %c0_143 = arith.constant 0 : index
    %c0_144 = arith.constant 0 : index
    %133 = vector.load %arg6[%c0_142, %c0_143, %c0_144] : memref<5x128x128xbf16, #tpu.memory_space<vmem>>, vector<1x128x128xbf16>
    %134 = vector.shape_cast %133 : vector<1x128x128xbf16> to vector<128x128xbf16>
    %cst_145 = arith.constant dense<0.000000e+00> : vector<128x128xf32>
    %135 = tpu.matmul %132, %134, %cst_145 {dimension_numbers = #tpu.dot_dimension_numbers<[1], [0], [0], [1], [0, 0, 1, 1], [], []>} : vector<128x128xbf16>, vector<128x128xbf16>, vector<128x128xf32> -> vector<128x128xf32>
    %136 = arith.addf %131, %135 : vector<128x128xf32>
    %c16_146 = arith.constant 16 : index
    %c0_147 = arith.constant 0 : index
    %137 = vector.load %arg15[%c16_146, %c0_147] : memref<192x128xbf16, #tpu.memory_space<vmem>>, vector<128x128xbf16>
    %c1_148 = arith.constant 1 : index
    %c0_149 = arith.constant 0 : index
    %c0_150 = arith.constant 0 : index
    %138 = vector.load %arg6[%c1_148, %c0_149, %c0_150] : memref<5x128x128xbf16, #tpu.memory_space<vmem>>, vector<1x128x128xbf16>
    %139 = vector.shape_cast %138 : vector<1x128x128xbf16> to vector<128x128xbf16>
    %cst_151 = arith.constant dense<0.000000e+00> : vector<128x128xf32>
    %140 = tpu.matmul %137, %139, %cst_151 {dimension_numbers = #tpu.dot_dimension_numbers<[1], [0], [0], [1], [0, 0, 1, 1], [], []>} : vector<128x128xbf16>, vector<128x128xbf16>, vector<128x128xf32> -> vector<128x128xf32>
    %141 = arith.addf %136, %140 : vector<128x128xf32>
    %c32_152 = arith.constant 32 : index
    %c0_153 = arith.constant 0 : index
    %142 = vector.load %arg15[%c32_152, %c0_153] : memref<192x128xbf16, #tpu.memory_space<vmem>>, vector<128x128xbf16>
    %c2_154 = arith.constant 2 : index
    %c0_155 = arith.constant 0 : index
    %c0_156 = arith.constant 0 : index
    %143 = vector.load %arg6[%c2_154, %c0_155, %c0_156] : memref<5x128x128xbf16, #tpu.memory_space<vmem>>, vector<1x128x128xbf16>
    %144 = vector.shape_cast %143 : vector<1x128x128xbf16> to vector<128x128xbf16>
    %cst_157 = arith.constant dense<0.000000e+00> : vector<128x128xf32>
    %145 = tpu.matmul %142, %144, %cst_157 {dimension_numbers = #tpu.dot_dimension_numbers<[1], [0], [0], [1], [0, 0, 1, 1], [], []>} : vector<128x128xbf16>, vector<128x128xbf16>, vector<128x128xf32> -> vector<128x128xf32>
    %146 = arith.addf %141, %145 : vector<128x128xf32>
    %c48 = arith.constant 48 : index
    %c0_158 = arith.constant 0 : index
    %147 = vector.load %arg15[%c48, %c0_158] : memref<192x128xbf16, #tpu.memory_space<vmem>>, vector<128x128xbf16>
    %c3_159 = arith.constant 3 : index
    %c0_160 = arith.constant 0 : index
    %c0_161 = arith.constant 0 : index
    %148 = vector.load %arg6[%c3_159, %c0_160, %c0_161] : memref<5x128x128xbf16, #tpu.memory_space<vmem>>, vector<1x128x128xbf16>
    %149 = vector.shape_cast %148 : vector<1x128x128xbf16> to vector<128x128xbf16>
    %cst_162 = arith.constant dense<0.000000e+00> : vector<128x128xf32>
    %150 = tpu.matmul %147, %149, %cst_162 {dimension_numbers = #tpu.dot_dimension_numbers<[1], [0], [0], [1], [0, 0, 1, 1], [], []>} : vector<128x128xbf16>, vector<128x128xbf16>, vector<128x128xf32> -> vector<128x128xf32>
    %151 = arith.addf %146, %150 : vector<128x128xf32>
    %c64 = arith.constant 64 : index
    %c0_163 = arith.constant 0 : index
    %152 = vector.load %arg15[%c64, %c0_163] : memref<192x128xbf16, #tpu.memory_space<vmem>>, vector<128x128xbf16>
    %c4_164 = arith.constant 4 : index
    %c0_165 = arith.constant 0 : index
    %c0_166 = arith.constant 0 : index
    %153 = vector.load %arg6[%c4_164, %c0_165, %c0_166] : memref<5x128x128xbf16, #tpu.memory_space<vmem>>, vector<1x128x128xbf16>
    %154 = vector.shape_cast %153 : vector<1x128x128xbf16> to vector<128x128xbf16>
    %cst_167 = arith.constant dense<0.000000e+00> : vector<128x128xf32>
    %155 = tpu.matmul %152, %154, %cst_167 {dimension_numbers = #tpu.dot_dimension_numbers<[1], [0], [0], [1], [0, 0, 1, 1], [], []>} : vector<128x128xbf16>, vector<128x128xbf16>, vector<128x128xf32> -> vector<128x128xf32>
    %156 = arith.addf %151, %155 : vector<128x128xf32>
    %c0_168 = arith.constant 0 : index
    %c0_169 = arith.constant 0 : index
    %157 = vector.load %arg7[%c0_168, %c0_169] : memref<1x128xf32, #tpu.memory_space<vmem>>, vector<1x128xf32>
    %158 = vector.broadcast %157 : vector<1x128xf32> to vector<128x128xf32>
    %159 = arith.addf %156, %158 : vector<128x128xf32>
    %cst_170 = arith.constant 0.000000e+00 : f32
    %160 = vector.broadcast %cst_170 : f32 to vector<128x128xf32>
    %161 = arith.subf %160, %159 : vector<128x128xf32>
    %162 = math.exp %161 : vector<128x128xf32>
    %cst_171 = arith.constant 1.000000e+00 : f32
    %163 = vector.broadcast %cst_171 : f32 to vector<128x128xf32>
    %164 = arith.addf %163, %162 : vector<128x128xf32>
    %165 = tpu.reciprocal %164 {approx = true} : vector<128x128xf32> -> vector<128x128xf32>
    %166 = arith.truncf %165 : vector<128x128xf32> to vector<128x128xbf16>
    %c32_172 = arith.constant 32 : index
    %c0_173 = arith.constant 0 : index
    %167 = vector.load %arg16[%c32_172, %c0_173] : memref<192x128xbf16, #tpu.memory_space<vmem>>, vector<128x128xbf16>
    tpu.vector_store %arg16[%c32_172, %c0_173], %166 {strides = array<i32>} : memref<192x128xbf16, #tpu.memory_space<vmem>>, vector<128x128xbf16>,
    %cst_174 = arith.constant 0.000000e+00 : f32
    %168 = vector.broadcast %cst_174 : f32 to vector<128x128xf32>
    %c0_175 = arith.constant 0 : index
    %c0_176 = arith.constant 0 : index
    %169 = vector.load %arg16[%c0_175, %c0_176] : memref<192x128xbf16, #tpu.memory_space<vmem>>, vector<128x128xbf16>
    %c0_177 = arith.constant 0 : index
    %c0_178 = arith.constant 0 : index
    %c0_179 = arith.constant 0 : index
    %170 = vector.load %arg8[%c0_177, %c0_178, %c0_179] : memref<5x128x128xbf16, #tpu.memory_space<vmem>>, vector<1x128x128xbf16>
    %171 = vector.shape_cast %170 : vector<1x128x128xbf16> to vector<128x128xbf16>
    %cst_180 = arith.constant dense<0.000000e+00> : vector<128x128xf32>
    %172 = tpu.matmul %169, %171, %cst_180 {dimension_numbers = #tpu.dot_dimension_numbers<[1], [0], [0], [1], [0, 0, 1, 1], [], []>} : vector<128x128xbf16>, vector<128x128xbf16>, vector<128x128xf32> -> vector<128x128xf32>
    %173 = arith.addf %168, %172 : vector<128x128xf32>
    %c16_181 = arith.constant 16 : index
    %c0_182 = arith.constant 0 : index
    %174 = vector.load %arg16[%c16_181, %c0_182] : memref<192x128xbf16, #tpu.memory_space<vmem>>, vector<128x128xbf16>
    %c1_183 = arith.constant 1 : index
    %c0_184 = arith.constant 0 : index
    %c0_185 = arith.constant 0 : index
    %175 = vector.load %arg8[%c1_183, %c0_184, %c0_185] : memref<5x128x128xbf16, #tpu.memory_space<vmem>>, vector<1x128x128xbf16>
    %176 = vector.shape_cast %175 : vector<1x128x128xbf16> to vector<128x128xbf16>
    %cst_186 = arith.constant dense<0.000000e+00> : vector<128x128xf32>
    %177 = tpu.matmul %174, %176, %cst_186 {dimension_numbers = #tpu.dot_dimension_numbers<[1], [0], [0], [1], [0, 0, 1, 1], [], []>} : vector<128x128xbf16>, vector<128x128xbf16>, vector<128x128xf32> -> vector<128x128xf32>
    %178 = arith.addf %173, %177 : vector<128x128xf32>
    %c32_187 = arith.constant 32 : index
    %c0_188 = arith.constant 0 : index
    %179 = vector.load %arg16[%c32_187, %c0_188] : memref<192x128xbf16, #tpu.memory_space<vmem>>, vector<128x128xbf16>
    %c2_189 = arith.constant 2 : index
    %c0_190 = arith.constant 0 : index
    %c0_191 = arith.constant 0 : index
    %180 = vector.load %arg8[%c2_189, %c0_190, %c0_191] : memref<5x128x128xbf16, #tpu.memory_space<vmem>>, vector<1x128x128xbf16>
    %181 = vector.shape_cast %180 : vector<1x128x128xbf16> to vector<128x128xbf16>
    %cst_192 = arith.constant dense<0.000000e+00> : vector<128x128xf32>
    %182 = tpu.matmul %179, %181, %cst_192 {dimension_numbers = #tpu.dot_dimension_numbers<[1], [0], [0], [1], [0, 0, 1, 1], [], []>} : vector<128x128xbf16>, vector<128x128xbf16>, vector<128x128xf32> -> vector<128x128xf32>
    %183 = arith.addf %178, %182 : vector<128x128xf32>
    %c48_193 = arith.constant 48 : index
    %c0_194 = arith.constant 0 : index
    %184 = vector.load %arg16[%c48_193, %c0_194] : memref<192x128xbf16, #tpu.memory_space<vmem>>, vector<128x128xbf16>
    %c3_195 = arith.constant 3 : index
    %c0_196 = arith.constant 0 : index
    %c0_197 = arith.constant 0 : index
    %185 = vector.load %arg8[%c3_195, %c0_196, %c0_197] : memref<5x128x128xbf16, #tpu.memory_space<vmem>>, vector<1x128x128xbf16>
    %186 = vector.shape_cast %185 : vector<1x128x128xbf16> to vector<128x128xbf16>
    %cst_198 = arith.constant dense<0.000000e+00> : vector<128x128xf32>
    %187 = tpu.matmul %184, %186, %cst_198 {dimension_numbers = #tpu.dot_dimension_numbers<[1], [0], [0], [1], [0, 0, 1, 1], [], []>} : vector<128x128xbf16>, vector<128x128xbf16>, vector<128x128xf32> -> vector<128x128xf32>
    %188 = arith.addf %183, %187 : vector<128x128xf32>
    %c64_199 = arith.constant 64 : index
    %c0_200 = arith.constant 0 : index
    %189 = vector.load %arg16[%c64_199, %c0_200] : memref<192x128xbf16, #tpu.memory_space<vmem>>, vector<128x128xbf16>
    %c4_201 = arith.constant 4 : index
    %c0_202 = arith.constant 0 : index
    %c0_203 = arith.constant 0 : index
    %190 = vector.load %arg8[%c4_201, %c0_202, %c0_203] : memref<5x128x128xbf16, #tpu.memory_space<vmem>>, vector<1x128x128xbf16>
    %191 = vector.shape_cast %190 : vector<1x128x128xbf16> to vector<128x128xbf16>
    %cst_204 = arith.constant dense<0.000000e+00> : vector<128x128xf32>
    %192 = tpu.matmul %189, %191, %cst_204 {dimension_numbers = #tpu.dot_dimension_numbers<[1], [0], [0], [1], [0, 0, 1, 1], [], []>} : vector<128x128xbf16>, vector<128x128xbf16>, vector<128x128xf32> -> vector<128x128xf32>
    %193 = arith.addf %188, %192 : vector<128x128xf32>
    %c0_205 = arith.constant 0 : index
    %c0_206 = arith.constant 0 : index
    %194 = vector.load %arg9[%c0_205, %c0_206] : memref<1x128xf32, #tpu.memory_space<vmem>>, vector<1x128xf32>
    %195 = vector.broadcast %194 : vector<1x128xf32> to vector<128x128xf32>
    %196 = arith.addf %193, %195 : vector<128x128xf32>
    %cst_207 = arith.constant 0.000000e+00 : f32
    %197 = vector.broadcast %cst_207 : f32 to vector<128x128xf32>
    %198 = arith.subf %197, %196 : vector<128x128xf32>
    %199 = math.exp %198 : vector<128x128xf32>
    %cst_208 = arith.constant 1.000000e+00 : f32
    %200 = vector.broadcast %cst_208 : f32 to vector<128x128xf32>
    %201 = arith.addf %200, %199 : vector<128x128xf32>
    %202 = tpu.reciprocal %201 {approx = true} : vector<128x128xf32> -> vector<128x128xf32>
    %203 = arith.truncf %202 : vector<128x128xf32> to vector<128x128xbf16>
    %cst_209 = arith.constant 0.000000e+00 : f32
    %204 = vector.broadcast %cst_209 : f32 to vector<16x256xf32>
    %205 = vector.extract_strided_slice %203 {offsets = [0, 0], sizes = [16, 128], strides = [1, 1]} : vector<128x128xbf16> to vector<16x128xbf16>
    %c0_210 = arith.constant 0 : index
    %c0_211 = arith.constant 0 : index
    %c0_212 = arith.constant 0 : index
    %206 = vector.load %arg10[%c0_210, %c0_211, %c0_212] : memref<8x128x256xbf16, #tpu.memory_space<vmem>>, vector<1x128x256xbf16>
    %207 = vector.shape_cast %206 : vector<1x128x256xbf16> to vector<128x256xbf16>
    %cst_213 = arith.constant dense<0.000000e+00> : vector<16x256xf32>
    %208 = tpu.matmul %205, %207, %cst_213 {dimension_numbers = #tpu.dot_dimension_numbers<[1], [0], [0], [1], [0, 0, 1, 1], [], []>} : vector<16x128xbf16>, vector<128x256xbf16>, vector<16x256xf32> -> vector<16x256xf32>
    %209 = arith.addf %204, %208 : vector<16x256xf32>
    %210 = vector.extract_strided_slice %203 {offsets = [16, 0], sizes = [16, 128], strides = [1, 1]} : vector<128x128xbf16> to vector<16x128xbf16>
    %c1_214 = arith.constant 1 : index
    %c0_215 = arith.constant 0 : index
    %c0_216 = arith.constant 0 : index
    %211 = vector.load %arg10[%c1_214, %c0_215, %c0_216] : memref<8x128x256xbf16, #tpu.memory_space<vmem>>, vector<1x128x256xbf16>
    %212 = vector.shape_cast %211 : vector<1x128x256xbf16> to vector<128x256xbf16>
    %cst_217 = arith.constant dense<0.000000e+00> : vector<16x256xf32>
    %213 = tpu.matmul %210, %212, %cst_217 {dimension_numbers = #tpu.dot_dimension_numbers<[1], [0], [0], [1], [0, 0, 1, 1], [], []>} : vector<16x128xbf16>, vector<128x256xbf16>, vector<16x256xf32> -> vector<16x256xf32>
    %214 = arith.addf %209, %213 : vector<16x256xf32>
    %215 = vector.extract_strided_slice %203 {offsets = [32, 0], sizes = [16, 128], strides = [1, 1]} : vector<128x128xbf16> to vector<16x128xbf16>
    %c2_218 = arith.constant 2 : index
    %c0_219 = arith.constant 0 : index
    %c0_220 = arith.constant 0 : index
    %216 = vector.load %arg10[%c2_218, %c0_219, %c0_220] : memref<8x128x256xbf16, #tpu.memory_space<vmem>>, vector<1x128x256xbf16>
    %217 = vector.shape_cast %216 : vector<1x128x256xbf16> to vector<128x256xbf16>
    %cst_221 = arith.constant dense<0.000000e+00> : vector<16x256xf32>
    %218 = tpu.matmul %215, %217, %cst_221 {dimension_numbers = #tpu.dot_dimension_numbers<[1], [0], [0], [1], [0, 0, 1, 1], [], []>} : vector<16x128xbf16>, vector<128x256xbf16>, vector<16x256xf32> -> vector<16x256xf32>
    %219 = arith.addf %214, %218 : vector<16x256xf32>
    %220 = vector.extract_strided_slice %203 {offsets = [48, 0], sizes = [16, 128], strides = [1, 1]} : vector<128x128xbf16> to vector<16x128xbf16>
    %c3_222 = arith.constant 3 : index
    %c0_223 = arith.constant 0 : index
    %c0_224 = arith.constant 0 : index
    %221 = vector.load %arg10[%c3_222, %c0_223, %c0_224] : memref<8x128x256xbf16, #tpu.memory_space<vmem>>, vector<1x128x256xbf16>
    %222 = vector.shape_cast %221 : vector<1x128x256xbf16> to vector<128x256xbf16>
    %cst_225 = arith.constant dense<0.000000e+00> : vector<16x256xf32>
    %223 = tpu.matmul %220, %222, %cst_225 {dimension_numbers = #tpu.dot_dimension_numbers<[1], [0], [0], [1], [0, 0, 1, 1], [], []>} : vector<16x128xbf16>, vector<128x256xbf16>, vector<16x256xf32> -> vector<16x256xf32>
    %224 = arith.addf %219, %223 : vector<16x256xf32>
    %225 = vector.extract_strided_slice %203 {offsets = [64, 0], sizes = [16, 128], strides = [1, 1]} : vector<128x128xbf16> to vector<16x128xbf16>
    %c4_226 = arith.constant 4 : index
    %c0_227 = arith.constant 0 : index
    %c0_228 = arith.constant 0 : index
    %226 = vector.load %arg10[%c4_226, %c0_227, %c0_228] : memref<8x128x256xbf16, #tpu.memory_space<vmem>>, vector<1x128x256xbf16>
    %227 = vector.shape_cast %226 : vector<1x128x256xbf16> to vector<128x256xbf16>
    %cst_229 = arith.constant dense<0.000000e+00> : vector<16x256xf32>
    %228 = tpu.matmul %225, %227, %cst_229 {dimension_numbers = #tpu.dot_dimension_numbers<[1], [0], [0], [1], [0, 0, 1, 1], [], []>} : vector<16x128xbf16>, vector<128x256xbf16>, vector<16x256xf32> -> vector<16x256xf32>
    %229 = arith.addf %224, %228 : vector<16x256xf32>
    %230 = vector.extract_strided_slice %203 {offsets = [80, 0], sizes = [16, 128], strides = [1, 1]} : vector<128x128xbf16> to vector<16x128xbf16>
    %c5 = arith.constant 5 : index
    %c0_230 = arith.constant 0 : index
    %c0_231 = arith.constant 0 : index
    %231 = vector.load %arg10[%c5, %c0_230, %c0_231] : memref<8x128x256xbf16, #tpu.memory_space<vmem>>, vector<1x128x256xbf16>
    %232 = vector.shape_cast %231 : vector<1x128x256xbf16> to vector<128x256xbf16>
    %cst_232 = arith.constant dense<0.000000e+00> : vector<16x256xf32>
    %233 = tpu.matmul %230, %232, %cst_232 {dimension_numbers = #tpu.dot_dimension_numbers<[1], [0], [0], [1], [0, 0, 1, 1], [], []>} : vector<16x128xbf16>, vector<128x256xbf16>, vector<16x256xf32> -> vector<16x256xf32>
    %234 = arith.addf %229, %233 : vector<16x256xf32>
    %235 = vector.extract_strided_slice %203 {offsets = [96, 0], sizes = [16, 128], strides = [1, 1]} : vector<128x128xbf16> to vector<16x128xbf16>
    %c6 = arith.constant 6 : index
    %c0_233 = arith.constant 0 : index
    %c0_234 = arith.constant 0 : index
    %236 = vector.load %arg10[%c6, %c0_233, %c0_234] : memref<8x128x256xbf16, #tpu.memory_space<vmem>>, vector<1x128x256xbf16>
    %237 = vector.shape_cast %236 : vector<1x128x256xbf16> to vector<128x256xbf16>
    %cst_235 = arith.constant dense<0.000000e+00> : vector<16x256xf32>
    %238 = tpu.matmul %235, %237, %cst_235 {dimension_numbers = #tpu.dot_dimension_numbers<[1], [0], [0], [1], [0, 0, 1, 1], [], []>} : vector<16x128xbf16>, vector<128x256xbf16>, vector<16x256xf32> -> vector<16x256xf32>
    %239 = arith.addf %234, %238 : vector<16x256xf32>
    %240 = vector.extract_strided_slice %203 {offsets = [112, 0], sizes = [16, 128], strides = [1, 1]} : vector<128x128xbf16> to vector<16x128xbf16>
    %c7 = arith.constant 7 : index
    %c0_236 = arith.constant 0 : index
    %c0_237 = arith.constant 0 : index
    %241 = vector.load %arg10[%c7, %c0_236, %c0_237] : memref<8x128x256xbf16, #tpu.memory_space<vmem>>, vector<1x128x256xbf16>
    %242 = vector.shape_cast %241 : vector<1x128x256xbf16> to vector<128x256xbf16>
    %cst_238 = arith.constant dense<0.000000e+00> : vector<16x256xf32>
    %243 = tpu.matmul %240, %242, %cst_238 {dimension_numbers = #tpu.dot_dimension_numbers<[1], [0], [0], [1], [0, 0, 1, 1], [], []>} : vector<16x128xbf16>, vector<128x256xbf16>, vector<16x256xf32> -> vector<16x256xf32>
    %244 = arith.addf %239, %243 : vector<16x256xf32>
    %c0_239 = arith.constant 0 : index
    %c0_240 = arith.constant 0 : index
    %245 = vector.load %arg11[%c0_239, %c0_240] : memref<1x256xf32, #tpu.memory_space<vmem>>, vector<1x256xf32>
    %246 = vector.broadcast %245 : vector<1x256xf32> to vector<16x256xf32>
    %247 = arith.addf %244, %246 : vector<16x256xf32>
    %c0_241 = arith.constant 0 : index
    %c0_242 = arith.constant 0 : index
    %248 = vector.load %arg12[%c0_241, %c0_242] : memref<16x256xf32, #tpu.memory_space<vmem>>, vector<16x256xf32>
    tpu.vector_store %arg12[%c0_241, %c0_242], %247 {strides = array<i32>} : memref<16x256xf32, #tpu.memory_space<vmem>>, vector<16x256xf32>,
    return
  }
  func.func @transform_0(%arg0: i32) -> (i32, i32, i32, i32) {
    %c0_i32 = arith.constant 0 : i32
    %c0_i32_0 = arith.constant 0 : i32
    %c0_i32_1 = arith.constant 0 : i32
    %c0_i32_2 = arith.constant 0 : i32
    return %arg0, %c0_i32, %c0_i32_0, %c0_i32_1 : i32, i32, i32, i32
  }
  func.func @transform_1(%arg0: i32) -> (i32, i32, i32) {
    %c0_i32 = arith.constant 0 : i32
    %c0_i32_0 = arith.constant 0 : i32
    %c0_i32_1 = arith.constant 0 : i32
    %c0_i32_2 = arith.constant 0 : i32
    return %c0_i32, %c0_i32_0, %c0_i32_1 : i32, i32, i32
  }
  func.func @transform_2(%arg0: i32) -> (i32, i32) {
    %c0_i32 = arith.constant 0 : i32
    %c0_i32_0 = arith.constant 0 : i32
    %c0_i32_1 = arith.constant 0 : i32
    return %c0_i32, %c0_i32_0 : i32, i32
  }
  func.func @transform_3(%arg0: i32) -> (i32, i32, i32) {
    %c0_i32 = arith.constant 0 : i32
    %c0_i32_0 = arith.constant 0 : i32
    %c0_i32_1 = arith.constant 0 : i32
    %c0_i32_2 = arith.constant 0 : i32
    return %c0_i32, %c0_i32_0, %c0_i32_1 : i32, i32, i32
  }
  func.func @transform_4(%arg0: i32) -> (i32, i32) {
    %c0_i32 = arith.constant 0 : i32
    %c0_i32_0 = arith.constant 0 : i32
    %c0_i32_1 = arith.constant 0 : i32
    return %c0_i32, %c0_i32_0 : i32, i32
  }
  func.func @transform_5(%arg0: i32) -> (i32, i32, i32) {
    %c0_i32 = arith.constant 0 : i32
    %c0_i32_0 = arith.constant 0 : i32
    %c0_i32_1 = arith.constant 0 : i32
    %c0_i32_2 = arith.constant 0 : i32
    return %c0_i32, %c0_i32_0, %c0_i32_1 : i32, i32, i32
  }
  func.func @transform_6(%arg0: i32) -> (i32, i32) {
    %c0_i32 = arith.constant 0 : i32
    %c0_i32_0 = arith.constant 0 : i32
    %c0_i32_1 = arith.constant 0 : i32
    return %c0_i32, %c0_i32_0 : i32, i32
  }
  func.func @transform_7(%arg0: i32) -> (i32, i32, i32) {
    %c0_i32 = arith.constant 0 : i32
    %c0_i32_0 = arith.constant 0 : i32
    %c0_i32_1 = arith.constant 0 : i32
    %c0_i32_2 = arith.constant 0 : i32
    return %c0_i32, %c0_i32_0, %c0_i32_1 : i32, i32, i32
  }
  func.func @transform_8(%arg0: i32) -> (i32, i32) {
    %c0_i32 = arith.constant 0 : i32
    %c0_i32_0 = arith.constant 0 : i32
    %c0_i32_1 = arith.constant 0 : i32
    return %c0_i32, %c0_i32_0 : i32, i32
  }
  func.func @transform_9(%arg0: i32) -> (i32, i32, i32) {
    %c0_i32 = arith.constant 0 : i32
    %c0_i32_0 = arith.constant 0 : i32
    %c0_i32_1 = arith.constant 0 : i32
    %c0_i32_2 = arith.constant 0 : i32
    return %c0_i32, %c0_i32_0, %c0_i32_1 : i32, i32, i32
  }
  func.func @transform_10(%arg0: i32) -> (i32, i32) {
    %c0_i32 = arith.constant 0 : i32
    %c0_i32_0 = arith.constant 0 : i32
    %c0_i32_1 = arith.constant 0 : i32
    return %c0_i32, %c0_i32_0 : i32, i32
  }
  func.func @transform_11(%arg0: i32) -> (i32, i32) {
    %c0_i32 = arith.constant 0 : i32
    %c0_i32_0 = arith.constant 0 : i32
    return %arg0, %c0_i32 : i32, i32
  }
}

</mosaic_0001>

<bundles_post_ra>
// kernel: alicenet2_forward.1
= control target key start
LH: loop header
LB: loop body
LE: loop exit
PB: predicated region body
PF: predicated region fallthrough
CT: control target
= control target key end

     0   :  { %s16142_s1 = inlined_call_operand.vmem [shape: bf16[5,128,256], index: 1, kind: input, shape index: {}]   ;;  %s16143_s0 = inlined_call_operand.vmem [shape: bf16[1,4,160,128], index: 0, kind: input, shape index: {}]   ;;  %s16144_s2 = inlined_call_operand.vmem [shape: f32[1,256], index: 2, kind: input, shape index: {}]   ;;  %s16145_s3 = inlined_call_operand.vmem [shape: bf16[5,256,128], index: 3, kind: input, shape index: {}]   ;;  %s16146_s5 = inlined_call_operand.vmem [shape: bf16[5,128,128], index: 5, kind: input, shape index: {}]   ;;  %s16147_s4 = inlined_call_operand.vmem [shape: f32[1,128], index: 4, kind: input, shape index: {}]   ;;  %s16148_s7 = inlined_call_operand.vmem [shape: bf16[5,128,128], index: 7, kind: input, shape index: {}]   ;;  %s16149_s6 = inlined_call_operand.vmem [shape: f32[1,128], index: 6, kind: input, shape index: {}]   ;;  %s16150_s8 = inlined_call_operand.vmem [shape: f32[1,128], index: 8, kind: input, shape index: {}]   ;;  %s16151_s9 = inlined_call_operand.vmem [shape: bf16[8,128,256], index: 9, kind: input, shape index: {}]   ;;  %s16152_s10 = inlined_call_operand.vmem [shape: f32[1,256], index: 10, kind: input, shape index: {}]   ;;  %s16153_s11 = inlined_call_operand.vmem [shape: f32[16,256], index: 11, kind: output, shape index: {}]  }
   0x1   :  { %v8333_v0 = vld [vmem:[%s16142_s1 + $0xf0] sm:$0xf]  ;;  %v11546_v1 = vld [vmem:[%s16142_s1 + $0xf4] sm:$0xf0]  ;;  %v11545_v2 = vld [vmem:[%s16142_s1 + $0xf4] sm:$0xf] }
   0x2   :  { %v8334_v3 = vor.u32 %v11546_v1, %v8333_v0  ;;  %v8335_v4 = vld [vmem:[%s16142_s1 + $0xf8] sm:$0xf0]  ;;  %v8429_v5 = vld [vmem:[%s16142_s1 + $0x70] sm:$0xf]  ;;  %v11522_v6 = vld [vmem:[%s16142_s1 + $0x74] sm:$0xf0] }
   0x3   :  { %v8338_v7 = vor.u32 %v11545_v2, %v8335_v4  ;;  %v8430_v8 = vor.u32 %v11522_v6, %v8429_v5  ;;  %v11521_v9 = vld [vmem:[%s16142_s1 + $0x74] sm:$0xf]  ;;  %v8431_v10 = vld [vmem:[%s16142_s1 + $0x78] sm:$0xf0]  ;;  %v8325_v11 = vld [vmem:[%s16142_s1 + $0xe0] sm:$0xf] }
   0x4   :  { %258 = vmatpush.bf16.msra.mxu0 %v8334_v3  ;;  %v8434_v12 = vor.u32 %v11521_v9, %v8431_v10  ;;  %v11544_v13 = vld [vmem:[%s16142_s1 + $0xe4] sm:$0xf0]  ;;  %v11543_v14 = vld [vmem:[%s16142_s1 + $0xe4] sm:$0xf]  ;;  %v8327_v15 = vld [vmem:[%s16142_s1 + $0xe8] sm:$0xf0] }
   0x5   :  { %307 = vmatpush.bf16.msra.mxu1 %v8338_v7  ;;  %484 = vmatpush.bf16.msra.mxu2 %v8430_v8  ;;  %v8326_v16 = vor.u32 %v11544_v13, %v8325_v11  ;;  %v8330_v17 = vor.u32 %v11543_v14, %v8327_v15  ;;  %v8421_v18 = vld [vmem:[%s16142_s1 + $0x60] sm:$0xf]  ;;  %v11520_v19 = vld [vmem:[%s16142_s1 + $0x64] sm:$0xf0]  ;;  %v11519_v20 = vld [vmem:[%s16142_s1 + $0x64] sm:$0xf] }
   0x6   :  { %533 = vmatpush.bf16.msra.mxu3 %v8434_v12  ;;  %v8422_v21 = vor.u32 %v11520_v19, %v8421_v18  ;;  %v8423_v22 = vld [vmem:[%s16142_s1 + $0x68] sm:$0xf0]  ;;  %v8317_v23 = vld [vmem:[%s16142_s1 + $0xd0] sm:$0xf]  ;;  %v11542_v24 = vld [vmem:[%s16142_s1 + $0xd4] sm:$0xf0] }
   0x7   :  { %v8426_v25 = vor.u32 %v11519_v20, %v8423_v22  ;;  %v11541_v26 = vld [vmem:[%s16142_s1 + $0xd4] sm:$0xf]  ;;  %v8319_v27 = vld [vmem:[%s16142_s1 + $0xd8] sm:$0xf0]  ;;  %v8413_v28 = vld [vmem:[%s16142_s1 + $0x50] sm:$0xf]  ;;  %v8318_v29 = vor.u32 %v11542_v24, %v8317_v23 }
   0x8   :  { %259 = vmatpush.bf16.msra.mxu0 %v8326_v16  ;;  %v11518_v30 = vld [vmem:[%s16142_s1 + $0x54] sm:$0xf0]  ;;  %v11517_v31 = vld [vmem:[%s16142_s1 + $0x54] sm:$0xf]  ;;  %v8415_v32 = vld [vmem:[%s16142_s1 + $0x58] sm:$0xf0]  ;;  %v8322_v33 = vor.u32 %v11541_v26, %v8319_v27 }
   0x9   :  { %308 = vmatpush.bf16.msra.mxu1 %v8330_v17  ;;  %485 = vmatpush.bf16.msra.mxu2 %v8422_v21  ;;  %v8414_v34 = vor.u32 %v11518_v30, %v8413_v28  ;;  %v8309_v35 = vld [vmem:[%s16142_s1 + $0xc0] sm:$0xf]  ;;  %v11540_v36 = vld [vmem:[%s16142_s1 + $0xc4] sm:$0xf0]  ;;  %v11539_v37 = vld [vmem:[%s16142_s1 + $0xc4] sm:$0xf]  ;;  %v8418_v38 = vor.u32 %v11517_v31, %v8415_v32 }
   0xa   :  { %534 = vmatpush.bf16.msra.mxu3 %v8426_v25  ;;  %v8311_v39 = vld [vmem:[%s16142_s1 + $0xc8] sm:$0xf0]  ;;  %v8405_v40 = vld [vmem:[%s16142_s1 + $0x40] sm:$0xf]  ;;  %v11516_v41 = vld [vmem:[%s16142_s1 + $0x44] sm:$0xf0]  ;;  %v8310_v44 = vor.u32 %v11540_v36, %v8309_v35 }
   0xb   :  { %v11515_v42 = vld [vmem:[%s16142_s1 + $0x44] sm:$0xf]  ;;  %v8407_v43 = vld [vmem:[%s16142_s1 + $0x48] sm:$0xf0]  ;;  %v8314_v45 = vor.u32 %v11539_v37, %v8311_v39  ;;  %v8406_v46 = vor.u32 %v11516_v41, %v8405_v40  ;;  %v8301_v47 = vld [vmem:[%s16142_s1 + $0xb0] sm:$0xf] }
   0xc   :  { %260 = vmatpush.bf16.msra.mxu0 %v8318_v29  ;;  %v11538_v48 = vld [vmem:[%s16142_s1 + $0xb4] sm:$0xf0]  ;;  %v11537_v49 = vld [vmem:[%s16142_s1 + $0xb4] sm:$0xf]  ;;  %v8410_v50 = vor.u32 %v11515_v42, %v8407_v43  ;;  %v8303_v51 = vld [vmem:[%s16142_s1 + $0xb8] sm:$0xf0] }
   0xd   :  { %309 = vmatpush.bf16.msra.mxu1 %v8322_v33  ;;  %486 = vmatpush.bf16.msra.mxu2 %v8414_v34  ;;  %v8397_v52 = vld [vmem:[%s16142_s1 + $0x30] sm:$0xf]  ;;  %v11514_v53 = vld [vmem:[%s16142_s1 + $0x34] sm:$0xf0]  ;;  %v11513_v54 = vld [vmem:[%s16142_s1 + $0x34] sm:$0xf]  ;;  %v8302_v56 = vor.u32 %v11538_v48, %v8301_v47  ;;  %v8306_v57 = vor.u32 %v11537_v49, %v8303_v51 }
   0xe   :  { %535 = vmatpush.bf16.msra.mxu3 %v8418_v38  ;;  %v8399_v55 = vld [vmem:[%s16142_s1 + $0x38] sm:$0xf0]  ;;  %v8398_v58 = vor.u32 %v11514_v53, %v8397_v52  ;;  %v8293_v59 = vld [vmem:[%s16142_s1 + $0xa0] sm:$0xf]  ;;  %v11536_v60 = vld [vmem:[%s16142_s1 + $0xa4] sm:$0xf0] }
   0xf   :  { %v11535_v61 = vld [vmem:[%s16142_s1 + $0xa4] sm:$0xf]  ;;  %v8402_v62 = vor.u32 %v11513_v54, %v8399_v55  ;;  %v8295_v63 = vld [vmem:[%s16142_s1 + $0xa8] sm:$0xf0]  ;;  %v8389_v0 = vld [vmem:[%s16142_s1 + $0x20] sm:$0xf]  ;;  %v8294_v4 = vor.u32 %v11536_v60, %v8293_v59 }
  0x10   :  { %261 = vmatpush.bf16.msra.mxu0 %v8310_v44  ;;  %v11512_v1 = vld [vmem:[%s16142_s1 + $0x24] sm:$0xf0]  ;;  %v11511_v2 = vld [vmem:[%s16142_s1 + $0x24] sm:$0xf]  ;;  %v8391_v3 = vld [vmem:[%s16142_s1 + $0x28] sm:$0xf0]  ;;  %v8298_v5 = vor.u32 %v11535_v61, %v8295_v63 }
  0x11   :  { %310 = vmatpush.bf16.msra.mxu1 %v8314_v45  ;;  %487 = vmatpush.bf16.msra.mxu2 %v8406_v46  ;;  %v8390_v6 = vor.u32 %v11512_v1, %v8389_v0  ;;  %v8285_v7 = vld [vmem:[%s16142_s1 + $0x90] sm:$0xf]  ;;  %v11534_v8 = vld [vmem:[%s16142_s1 + $0x94] sm:$0xf0]  ;;  %v11533_v9 = vld [vmem:[%s16142_s1 + $0x94] sm:$0xf]  ;;  %v8394_v10 = vor.u32 %v11511_v2, %v8391_v3 }
  0x12   :  { %536 = vmatpush.bf16.msra.mxu3 %v8410_v50  ;;  %v8287_v11 = vld [vmem:[%s16142_s1 + $0x98] sm:$0xf0]  ;;  %v8381_v12 = vld [vmem:[%s16142_s1 + $0x10] sm:$0xf]  ;;  %v11510_v13 = vld [vmem:[%s16142_s1 + $0x14] sm:$0xf0]  ;;  %v8286_v16 = vor.u32 %v11534_v8, %v8285_v7 }
  0x13   :  { %v11509_v14 = vld [vmem:[%s16142_s1 + $0x14] sm:$0xf]  ;;  %v8383_v15 = vld [vmem:[%s16142_s1 + $0x18] sm:$0xf0]  ;;  %v8277_v17 = vld [vmem:[%s16142_s1 + $0x80] sm:$0xf]  ;;  %v8290_v18 = vor.u32 %v11533_v9, %v8287_v11  ;;  %v8382_v19 = vor.u32 %v11510_v13, %v8381_v12 }
  0x14   :  { %262 = vmatpush.bf16.msra.mxu0 %v8302_v56  ;;  %v11532_v20 = vld [vmem:[%s16142_s1 + $0x84] sm:$0xf0]  ;;  %v11531_v21 = vld [vmem:[%s16142_s1 + $0x84] sm:$0xf]  ;;  %v8279_v22 = vld [vmem:[%s16142_s1 + $0x88] sm:$0xf0]  ;;  %v8386_v23 = vor.u32 %v11509_v14, %v8383_v15 }
  0x15   :  { %311 = vmatpush.bf16.msra.mxu1 %v8306_v57  ;;  %488 = vmatpush.bf16.msra.mxu2 %v8398_v58  ;;  %v8373_v24 = vld [vmem:[%s16142_s1] sm:$0xf]  ;;  %v11508_v25 = vld [vmem:[%s16142_s1 + $0x4] sm:$0xf0]  ;;  %v11507_v26 = vld [vmem:[%s16142_s1 + $0x4] sm:$0xf]  ;;  %v8278_v30 = vor.u32 %v11532_v20, %v8277_v17  ;;  %v8282_v33 = vor.u32 %v11531_v21, %v8279_v22 }
  0x16   :  { %537 = vmatpush.bf16.msra.mxu3 %v8402_v62  ;;  %v8375_v27 = vld [vmem:[%s16142_s1 + $0x8] sm:$0xf0]  ;;  %v8669_v28 = vld [vmem:[%s16142_s1 + $0x1f0] sm:$0xf]  ;;  %v11594_v29 = vld [vmem:[%s16142_s1 + $0x1f4] sm:$0xf0]  ;;  %v8374_v34 = vor.u32 %v11508_v25, %v8373_v24 }
  0x17   :  { %v11593_v31 = vld [vmem:[%s16142_s1 + $0x1f4] sm:$0xf]  ;;  %v8671_v32 = vld [vmem:[%s16142_s1 + $0x1f8] sm:$0xf0]  ;;  %v8378_v36 = vor.u32 %v11507_v26, %v8375_v27  ;;  %v8670_v37 = vor.u32 %v11594_v29, %v8669_v28  ;;  %v8541_v38 = vld [vmem:[%s16142_s1 + $0x170] sm:$0xf] }
  0x18   :  { %263 = vmatpush.bf16.msra.mxu0 %v8294_v4  ;;  %v11523_v35 = vld [vmem:[%s16143_s0 + $0xf0] sm:$0xff]  ;;  %v11570_v39 = vld [vmem:[%s16142_s1 + $0x174] sm:$0xf0]  ;;  %v8674_v41 = vor.u32 %v11593_v31, %v8671_v32  ;;  %v8543_v42 = vld [vmem:[%s16142_s1 + $0x178] sm:$0xf0] }
  0x19   :  { %312 = vmatpush.bf16.msra.mxu1 %v8298_v5  ;;  %489 = vmatpush.bf16.msra.mxu2 %v8390_v6  ;;  %v11569_v40 = vld [vmem:[%s16142_s1 + $0x174] sm:$0xf]  ;;  %v8661_v43 = vld [vmem:[%s16142_s1 + $0x1e0] sm:$0xf]  ;;  %v11592_v44 = vld [vmem:[%s16142_s1 + $0x1e4] sm:$0xf0]  ;;  %v8542_v48 = vor.u32 %v11570_v39, %v8541_v38 }
  0x1a   :  { %538 = vmatpush.bf16.msra.mxu3 %v8394_v10  ;;  %v11499_v45 = vld [vmem:[%s16143_s0 + $0xa0] sm:$0xff]  ;;  %v8663_v47 = vld [vmem:[%s16142_s1 + $0x1e8] sm:$0xf0]  ;;  %v8546_v49 = vor.u32 %v11569_v40, %v8543_v42  ;;  %v8662_v50 = vor.u32 %v11592_v44, %v8661_v43  ;;  %v11568_v52 = vld [vmem:[%s16142_s1 + $0x164] sm:$0xf0] }
  0x1b   :  { %v11591_v46 = vld [vmem:[%s16142_s1 + $0x1e4] sm:$0xf]  ;;  %v8533_v51 = vld [vmem:[%s16142_s1 + $0x160] sm:$0xf]  ;;  %v8535_v55 = vld [vmem:[%s16142_s1 + $0x168] sm:$0xf0] }
  0x1c   :  { %264 = vmatpush.bf16.msra.mxu0 %v8286_v16  ;;  %v8666_v53 = vor.u32 %v11591_v46, %v8663_v47  ;;  %v11567_v54 = vld [vmem:[%s16142_s1 + $0x164] sm:$0xf]  ;;  %v8534_v56 = vor.u32 %v11568_v52, %v8533_v51  ;;  %v8653_v57 = vld [vmem:[%s16142_s1 + $0x1d0] sm:$0xf]  ;;  %v11590_v58 = vld [vmem:[%s16142_s1 + $0x1d4] sm:$0xf0] }
  0x1d   :  { %313 = vmatpush.bf16.msra.mxu1 %v8290_v18  ;;  %490 = vmatpush.bf16.msra.mxu2 %v8382_v19  ;;  %v11589_v59 = vld [vmem:[%s16142_s1 + $0x1d4] sm:$0xf]  ;;  %v8538_v60 = vor.u32 %v11567_v54, %v8535_v55  ;;  %v8654_v61 = vor.u32 %v11590_v58, %v8653_v57  ;;  %v8655_v62 = vld [vmem:[%s16142_s1 + $0x1d8] sm:$0xf0]  ;;  %v8525_v63 = vld [vmem:[%s16142_s1 + $0x150] sm:$0xf] }
  0x1e   :  { %539 = vmatpush.bf16.msra.mxu3 %v8386_v23  ;;  %v11566_v0 = vld [vmem:[%s16142_s1 + $0x154] sm:$0xf0]  ;;  %v8658_v1 = vor.u32 %v11589_v59, %v8655_v62  ;;  %v11565_v2 = vld [vmem:[%s16142_s1 + $0x154] sm:$0xf]  ;;  %v8527_v3 = vld [vmem:[%s16142_s1 + $0x158] sm:$0xf0] }
  0x1f   :  { %v8526_v4 = vor.u32 %v11566_v0, %v8525_v63  ;;  %v8530_v5 = vor.u32 %v11565_v2, %v8527_v3  ;;  %v11524_v6 = vld [vmem:[%s16143_s0 + $0xf8] sm:$0xff]  ;;  %v11500_v7 = vld [vmem:[%s16143_s0 + $0xa8] sm:$0xff]  ;;  %v8645_v8 = vld [vmem:[%s16142_s1 + $0x1c0] sm:$0xf] }
  0x20   :  { %265 = vmatpush.bf16.msra.mxu0 %v8278_v30  ;;  %v11588_v9 = vld [vmem:[%s16142_s1 + $0x1c4] sm:$0xf0]  ;;  %v11587_v10 = vld [vmem:[%s16142_s1 + $0x1c4] sm:$0xf]  ;;  %v8647_v12 = vld [vmem:[%s16142_s1 + $0x1c8] sm:$0xf0] }
  0x21   :  { %314 = vmatpush.bf16.msra.mxu1 %v8282_v33  ;;  %491 = vmatpush.bf16.msra.mxu2 %v8374_v34  ;;  %v8646_v11 = vor.u32 %v11588_v9, %v8645_v8  ;;  %v8517_v13 = vld [vmem:[%s16142_s1 + $0x140] sm:$0xf]  ;;  %v11564_v14 = vld [vmem:[%s16142_s1 + $0x144] sm:$0xf0]  ;;  %v8650_v15 = vor.u32 %v11587_v10, %v8647_v12  ;;  %v11563_v17 = vld [vmem:[%s16142_s1 + $0x144] sm:$0xf] }
  0x22   :  { %540 = vmatpush.bf16.msra.mxu3 %v8378_v36  ;;  %v8518_v16 = vor.u32 %v11564_v14, %v8517_v13  ;;  %v8519_v18 = vld [vmem:[%s16142_s1 + $0x148] sm:$0xf0]  ;;  %v11525_v20 = vld [vmem:[%s16143_s0 + $0x100] sm:$0xff]  ;;  %v11501_v21 = vld [vmem:[%s16143_s0 + $0xb0] sm:$0xff] }
  0x23   :  { %266 = vmatmul.bf16.vlgmr.msra.gmra.mxu0 %v11523_v35  ;;  %v8522_v19 = vor.u32 %v11563_v17, %v8519_v18  ;;  %v8637_v22 = vld [vmem:[%s16142_s1 + $0x1b0] sm:$0xf]  ;;  %v11586_v23 = vld [vmem:[%s16142_s1 + $0x1b4] sm:$0xf0]  ;;  %v11585_v24 = vld [vmem:[%s16142_s1 + $0x1b4] sm:$0xf] }
  0x24   :  { %315 = vmatmul.bf16.vlgmr.msra.gmra.mxu1 %v11523_v35  ;;  %492 = vmatmul.bf16.vlgmr.msra.gmra.mxu2 %v11499_v45  ;;  %v8638_v25 = vor.u32 %v11586_v23, %v8637_v22  ;;  %v8639_v26 = vld [vmem:[%s16142_s1 + $0x1b8] sm:$0xf0]  ;;  %v8509_v27 = vld [vmem:[%s16142_s1 + $0x130] sm:$0xf]  ;;  %v11562_v28 = vld [vmem:[%s16142_s1 + $0x134] sm:$0xf0] }
  0x25   :  { %1035 = vmatpush.bf16.msrb.mxu2 %v8670_v37  ;;  %541 = vmatmul.bf16.vlgmr.msra.gmra.mxu3 %v11499_v45  ;;  %v8642_v29 = vor.u32 %v11585_v24, %v8639_v26  ;;  %v8510_v30 = vor.u32 %v11562_v28, %v8509_v27  ;;  %v11561_v31 = vld [vmem:[%s16142_s1 + $0x134] sm:$0xf]  ;;  %v8511_v32 = vld [vmem:[%s16142_s1 + $0x138] sm:$0xf0]  ;;  %v11526_v34 = vld [vmem:[%s16143_s0 + $0x108] sm:$0xff] }
  0x26   :  { %1084 = vmatpush.bf16.msrb.mxu3 %v8674_v41  ;;  %743 = vmatpush.bf16.msrb.mxu0 %v8542_v48  ;;  %v8514_v33 = vor.u32 %v11561_v31, %v8511_v32  ;;  %v11502_v35 = vld [vmem:[%s16143_s0 + $0xb8] sm:$0xff]  ;;  %v8629_v36 = vld [vmem:[%s16142_s1 + $0x1a0] sm:$0xf]  ;;  %v11584_v37 = vld [vmem:[%s16142_s1 + $0x1a4] sm:$0xf0] }
  0x27   :  { %792 = vmatpush.bf16.msrb.mxu1 %v8546_v49  ;;  %v11583_v38 = vld [vmem:[%s16142_s1 + $0x1a4] sm:$0xf]  ;;  %v8630_v39 = vor.u32 %v11584_v37, %v8629_v36  ;;  %v8631_v40 = vld [vmem:[%s16142_s1 + $0x1a8] sm:$0xf0]  ;;  %v8501_v41 = vld [vmem:[%s16142_s1 + $0x120] sm:$0xf] }
  0x28   :  { %v11560_v42 = vld [vmem:[%s16142_s1 + $0x124] sm:$0xf0]  ;;  %v8634_v43 = vor.u32 %v11583_v38, %v8631_v40  ;;  %v11559_v45 = vld [vmem:[%s16142_s1 + $0x124] sm:$0xf]  ;;  %v8503_v46 = vld [vmem:[%s16142_s1 + $0x128] sm:$0xf0] }
  0x29   :  { %1036 = vmatpush.bf16.msrb.mxu2 %v8662_v50  ;;  %v8502_v44 = vor.u32 %v11560_v42, %v8501_v41  ;;  %v8506_v47 = vor.u32 %v11559_v45, %v8503_v46  ;;  %v11527_v48 = vld [vmem:[%s16143_s0 + $0x110] sm:$0xff]  ;;  %v11503_v49 = vld [vmem:[%s16143_s0 + $0xc0] sm:$0xff]  ;;  %v11582_v51 = vld [vmem:[%s16142_s1 + $0x194] sm:$0xf0] }
  0x2a   :  { %1085 = vmatpush.bf16.msrb.mxu3 %v8666_v53  ;;  %744 = vmatpush.bf16.msrb.mxu0 %v8534_v56  ;;  %v8621_v50 = vld [vmem:[%s16142_s1 + $0x190] sm:$0xf]  ;;  %v11581_v52 = vld [vmem:[%s16142_s1 + $0x194] sm:$0xf]  ;;  %v8623_v54 = vld [vmem:[%s16142_s1 + $0x198] sm:$0xf0] }
  0x2b   :  { %793 = vmatpush.bf16.msrb.mxu1 %v8538_v60  ;;  %v8622_v53 = vor.u32 %v11582_v51, %v8621_v50  ;;  %v8493_v55 = vld [vmem:[%s16142_s1 + $0x110] sm:$0xf]  ;;  %v11558_v56 = vld [vmem:[%s16142_s1 + $0x114] sm:$0xf0]  ;;  %v8626_v57 = vor.u32 %v11581_v52, %v8623_v54  ;;  %v11557_v59 = vld [vmem:[%s16142_s1 + $0x114] sm:$0xf] }
  0x2c   :  { %v8494_v58 = vor.u32 %v11558_v56, %v8493_v55  ;;  %v8495_v60 = vld [vmem:[%s16142_s1 + $0x118] sm:$0xf0]  ;;  %v11504_v63 = vld [vmem:[%s16143_s0 + $0xc8] sm:$0xff]  ;;  %v8613_v0 = vld [vmem:[%s16142_s1 + $0x180] sm:$0xf] }
  0x2d   :  { %1037 = vmatpush.bf16.msrb.mxu2 %v8654_v61  ;;  %v8498_v61 = vor.u32 %v11557_v59, %v8495_v60  ;;  %v11528_v62 = vld [vmem:[%s16143_s0 + $0x118] sm:$0xff]  ;;  %v11579_v2 = vld [vmem:[%s16142_s1 + $0x184] sm:$0xf]  ;;  %v8487_v10 = vld [vmem:[%s16142_s1 + $0x108] sm:$0xf0] }
  0x2e   :  { %1086 = vmatpush.bf16.msrb.mxu3 %v8658_v1  ;;  %745 = vmatpush.bf16.msrb.mxu0 %v8526_v4  ;;  %v11580_v1 = vld [vmem:[%s16142_s1 + $0x184] sm:$0xf0]  ;;  %v8615_v4 = vld [vmem:[%s16142_s1 + $0x188] sm:$0xf0]  ;;  %v11555_v9 = vld [vmem:[%s16142_s1 + $0x104] sm:$0xf] }
  0x2f   :  { %794 = vmatpush.bf16.msrb.mxu1 %v8530_v5  ;;  %v8614_v3 = vor.u32 %v11580_v1, %v8613_v0  ;;  %v8485_v5 = vld [vmem:[%s16142_s1 + $0x100] sm:$0xf]  ;;  %v11505_v13 = vld [vmem:[%s16143_s0 + $0xd0] sm:$0xff]  ;;  %v8927_v18 = vld [vmem:[%s16142_s1 + $0xf8] sm:$0xf0] }
  0x30   :  { %v11529_v12 = vld [vmem:[%s16143_s0 + $0x120] sm:$0xff]  ;;  %v8925_v14 = vld [vmem:[%s16142_s1 + $0xf0] sm:$0xf]  ;;  %v11617_v22 = vld [vmem:[%s16142_s1 + $0x274] sm:$0xf] }
  0x31   :  { %1038 = vmatpush.bf16.msrb.mxu2 %v8646_v11  ;;  %v8490_v11 = vor.u32 %v11555_v9, %v8487_v10  ;;  %v8799_v24 = vld [vmem:[%s16142_s1 + $0x278] sm:$0xf0]  ;;  %v11530_v26 = vld [vmem:[%s16143_s0 + $0x128] sm:$0xff]  ;;  %v8917_v28 = vld [vmem:[%s16142_s1 + $0xe0] sm:$0xf] }
  0x32   :  { %1087 = vmatpush.bf16.msrb.mxu3 %v8650_v15  ;;  %746 = vmatpush.bf16.msrb.mxu0 %v8518_v16  ;;  %v11666_v15 = vld [vmem:[%s16142_s1 + $0xf4] sm:$0xf0]  ;;  %v11665_v16 = vld [vmem:[%s16142_s1 + $0xf4] sm:$0xf]  ;;  %v8919_v32 = vld [vmem:[%s16142_s1 + $0xe8] sm:$0xf0] }
  0x33   :  { %271 = vmatmul.bf16.gmra.mxu0 %v11524_v6  ;;  %795 = vmatpush.bf16.msrb.mxu1 %v8522_v19  ;;  %v8926_v17 = vor.u32 %v11666_v15, %v8925_v14  ;;  %v8930_v19 = vor.u32 %v11665_v16, %v8927_v18  ;;  %v11506_v27 = vld [vmem:[%s16143_s0 + $0xd8] sm:$0xff]  ;;  %v11615_v36 = vld [vmem:[%s16142_s1 + $0x264] sm:$0xf]  ;;  %v8791_v38 = vld [vmem:[%s16142_s1 + $0x268] sm:$0xf0] }
  0x34   :  { %320 = vmatmul.bf16.gmra.mxu1 %v11524_v6  ;;  %497 = vmatmul.bf16.gmra.mxu2 %v11500_v7  ;;  %v11556_v6 = vld [vmem:[%s16142_s1 + $0x104] sm:$0xf0]  ;;  %v11571_v42 = vld [vmem:[%s16143_s0 + $0x58] sm:$0xff]  ;;  %v11661_v46 = vld [vmem:[%s16142_s1 + $0xd4] sm:$0xf] }
  0x35   :  { %546 = vmatmul.bf16.gmra.mxu3 %v11500_v7  ;;  %1039 = vmatpush.bf16.msrb.mxu2 %v8638_v25  ;;  %v8618_v7 = vor.u32 %v11579_v2, %v8615_v4  ;;  %v8486_v8 = vor.u32 %v11556_v6, %v8485_v5  ;;  %v8802_v25 = vor.u32 %v11617_v22, %v8799_v24  ;;  %v11547_v40 = vld [vmem:[%s16143_s0 + $0x8] sm:$0xff]  ;;  %v11662_v45 = vld [vmem:[%s16142_s1 + $0xd4] sm:$0xf0]  ;;  %v8781_v56 = vld [vmem:[%s16142_s1 + $0x250] sm:$0xf] }
  0x36   :  { %1088 = vmatpush.bf16.msrb.mxu3 %v8642_v29  ;;  %747 = vmatpush.bf16.msrb.mxu0 %v8510_v30  ;;  %v11664_v29 = vld [vmem:[%s16142_s1 + $0xe4] sm:$0xf0]  ;;  %v11663_v30 = vld [vmem:[%s16142_s1 + $0xe4] sm:$0xf]  ;;  %v8783_v60 = vld [vmem:[%s16142_s1 + $0x258] sm:$0xf0] }
  0x37   :  { %796 = vmatpush.bf16.msrb.mxu1 %v8514_v33  ;;  %v8918_v31 = vor.u32 %v11664_v29, %v8917_v28  ;;  %v8922_v33 = vor.u32 %v11663_v30, %v8919_v32  ;;  %v8901_v6 = vld [vmem:[%s16142_s1 + $0xc0] sm:$0xf]  ;;  %v8903_v10 = vld [vmem:[%s16142_s1 + $0xc8] sm:$0xf0]  ;;  %v8893_v32 = vld [vmem:[%s16142_s1 + $0xb0] sm:$0xf] }
  0x38   :  { %v8773_v18 = vld [vmem:[%s16142_s1 + $0x240] sm:$0xf]  ;;  %v8775_v22 = vld [vmem:[%s16142_s1 + $0x248] sm:$0xf0] }
  0x39   :  { %1040 = vmatpush.bf16.msrb.mxu2 %v8630_v39  ;;  %v8794_v39 = vor.u32 %v11615_v36, %v8791_v38  ;;  %v11573_v29 = vld [vmem:[%s16143_s0 + $0x68] sm:$0xff]  ;;  %v8895_v36 = vld [vmem:[%s16142_s1 + $0xb8] sm:$0xf0] }
  0x3a   :  { %1089 = vmatpush.bf16.msrb.mxu3 %v8634_v43  ;;  %748 = vmatpush.bf16.msrb.mxu0 %v8502_v44  ;;  %v8909_v44 = vld [vmem:[%s16142_s1 + $0xd0] sm:$0xf] }
  0x3b   :  { %797 = vmatpush.bf16.msrb.mxu1 %v8506_v47  ;;  %v8910_v47 = vor.u32 %v11662_v45, %v8909_v44  ;;  %v8765_v44 = vld [vmem:[%s16142_s1 + $0x230] sm:$0xf]  ;;  %v11610_v45 = vld [vmem:[%s16142_s1 + $0x234] sm:$0xf0] }
  0x3d   :  { %1041 = vmatpush.bf16.msrb.mxu2 %v8622_v53 }
  0x3e   :  { %1090 = vmatpush.bf16.msrb.mxu3 %v8626_v57  ;;  %749 = vmatpush.bf16.msrb.mxu0 %v8494_v58  ;;  %v11614_v57 = vld [vmem:[%s16142_s1 + $0x254] sm:$0xf0]  ;;  %v11613_v58 = vld [vmem:[%s16142_s1 + $0x254] sm:$0xf] }
  0x3f   :  { %798 = vmatpush.bf16.msrb.mxu1 %v8498_v61  ;;  %v8782_v59 = vor.u32 %v11614_v57, %v8781_v56  ;;  %v8786_v61 = vor.u32 %v11613_v58, %v8783_v60  ;;  %v11574_v57 = vld [vmem:[%s16143_s0 + $0x70] sm:$0xff]  ;;  %v8885_v60 = vld [vmem:[%s16142_s1 + $0xa0] sm:$0xf] }
  0x41   :  { %1042 = vmatpush.bf16.msrb.mxu2 %v8614_v3  ;;  %v11572_v3 = vld [vmem:[%s16143_s0 + $0x60] sm:$0xff] }
  0x42   :  { %1091 = vmatpush.bf16.msrb.mxu3 %v8618_v7  ;;  %750 = vmatpush.bf16.msrb.mxu0 %v8486_v8  ;;  %v11660_v7 = vld [vmem:[%s16142_s1 + $0xc4] sm:$0xf0]  ;;  %v11659_v8 = vld [vmem:[%s16142_s1 + $0xc4] sm:$0xf] }
  0x43   :  { %276 = vmatmul.bf16.gmra.mxu0 %v11525_v20  ;;  %799 = vmatpush.bf16.msrb.mxu1 %v8490_v11  ;;  %v8902_v9 = vor.u32 %v11660_v7, %v8901_v6 }
  0x44   :  { %325 = vmatmul.bf16.gmra.mxu1 %v11525_v20  ;;  %502 = vmatmul.bf16.gmra.mxu2 %v11501_v21  ;;  %v8797_v20 = vld [vmem:[%s16142_s1 + $0x270] sm:$0xf] }
  0x45   :  { %551 = vmatmul.bf16.gmra.mxu3 %v11501_v21  ;;  %1878 = vmatpush.bf16.msra.mxu2 %v8926_v17  ;;  %v11618_v21 = vld [vmem:[%s16142_s1 + $0x274] sm:$0xf0] }
  0x46   :  { %1927 = vmatpush.bf16.msra.mxu3 %v8930_v19  ;;  %v8798_v23 = vor.u32 %v11618_v21, %v8797_v20  ;;  %v11612_v19 = vld [vmem:[%s16142_s1 + $0x244] sm:$0xf0]  ;;  %v11611_v20 = vld [vmem:[%s16142_s1 + $0x244] sm:$0xf] }
  0x47   :  { %1375 = vmatpush.bf16.msra.mxu1 %v8802_v25  ;;  %v8774_v21 = vor.u32 %v11612_v19, %v8773_v18  ;;  %v11549_v25 = vld [vmem:[%s16143_s0 + $0x18] sm:$0xff]  ;;  %v11551_v19 = vld [vmem:[%s16143_s0 + $0x28] sm:$0xff] }
  0x48   :  { %1326 = vmatpush.bf16.msra.mxu0 %v8798_v23  ;;  %v8778_v23 = vor.u32 %v11611_v20, %v8775_v22 }
  0x49   :  { %1879 = vmatpush.bf16.msra.mxu2 %v8918_v31 }
  0x4a   :  { %1928 = vmatpush.bf16.msra.mxu3 %v8922_v33  ;;  %v11658_v33 = vld [vmem:[%s16142_s1 + $0xb4] sm:$0xf0] }
  0x4b   :  { %1376 = vmatpush.bf16.msra.mxu1 %v8794_v39 }
  0x4d   :  { %1880 = vmatpush.bf16.msra.mxu2 %v8910_v47  ;;  %v8766_v47 = vor.u32 %v11610_v45, %v8765_v44  ;;  %v11605_v44 = vld [vmem:[%s16142_s1 + $0x214] sm:$0xf] }
  0x4f   :  { %1377 = vmatpush.bf16.msra.mxu1 %v8786_v61  ;;  %v11656_v61 = vld [vmem:[%s16142_s1 + $0xa4] sm:$0xf0] }
  0x51   :  { %1881 = vmatpush.bf16.msra.mxu2 %v8902_v9 }
  0x53   :  { %281 = vmatmul.bf16.gmra.mxu0 %v11526_v34  ;;  %1378 = vmatpush.bf16.msra.mxu1 %v8778_v23  ;;  %v11575_v23 = vld [vmem:[%s16143_s0 + $0x78] sm:$0xff] }
  0x54   :  { %330 = vmatmul.bf16.gmra.mxu1 %v11526_v34  ;;  %507 = vmatmul.bf16.gmra.mxu2 %v11502_v35  ;;  %v8789_v34 = vld [vmem:[%s16142_s1 + $0x260] sm:$0xf] }
  0x55   :  { %556 = vmatmul.bf16.gmra.mxu3 %v11502_v35  ;;  %v11616_v35 = vld [vmem:[%s16142_s1 + $0x264] sm:$0xf0] }
  0x56   :  { %v8790_v37 = vor.u32 %v11616_v35, %v8789_v34  ;;  %v11657_v34 = vld [vmem:[%s16142_s1 + $0xb4] sm:$0xf]  ;;  %v8894_v35 = vor.u32 %v11658_v33, %v8893_v32  ;;  %v8879_v32 = vld [vmem:[%s16142_s1 + $0x98] sm:$0xf0] }
  0x57   :  { %v8898_v38 = vor.u32 %v11657_v34, %v8895_v36 }
  0x58   :  { %1327 = vmatpush.bf16.msra.mxu0 %v8790_v37  ;;  %1882 = vmatpush.bf16.msra.mxu2 %v8894_v35 }
  0x5c   :  { %1328 = vmatpush.bf16.msra.mxu0 %v8782_v59 }
  0x60   :  { %1329 = vmatpush.bf16.msra.mxu0 %v8774_v21 }
  0x63   :  { %286 = vmatmul.bf16.gmra.mxu0 %v11527_v48 }
  0x64   :  { %335 = vmatmul.bf16.gmra.mxu1 %v11527_v48  ;;  %512 = vmatmul.bf16.gmra.mxu2 %v11503_v49  ;;  %v8911_v48 = vld [vmem:[%s16142_s1 + $0xd8] sm:$0xf0] }
  0x65   :  { %561 = vmatmul.bf16.gmra.mxu3 %v11503_v49  ;;  %v8914_v50 = vor.u32 %v11661_v46, %v8911_v48  ;;  %v11609_v46 = vld [vmem:[%s16142_s1 + $0x234] sm:$0xf]  ;;  %v8767_v48 = vld [vmem:[%s16142_s1 + $0x238] sm:$0xf0]  ;;  %1330 = vmatpush.bf16.msra.mxu0 %v8766_v47 }
  0x67   :  { %1929 = vmatpush.bf16.msra.mxu3 %v8914_v50 }
  0x73   :  { %291 = vmatmul.bf16.gmra.mxu0 %v11528_v62 }
  0x74   :  { %340 = vmatmul.bf16.gmra.mxu1 %v11528_v62  ;;  %517 = vmatmul.bf16.gmra.mxu2 %v11504_v63 }
  0x75   :  { %566 = vmatmul.bf16.gmra.mxu3 %v11504_v63  ;;  %v11548_v63 = vld [vmem:[%s16143_s0 + $0x10] sm:$0xff] }
  0x83   :  { %296 = vmatmul.bf16.gmra.mxu0 %v11529_v12 }
  0x84   :  { %345 = vmatmul.bf16.gmra.mxu1 %v11529_v12  ;;  %522 = vmatmul.bf16.gmra.mxu2 %v11505_v13  ;;  %v8906_v12 = vor.u32 %v11659_v8, %v8903_v10  ;;  %v8757_v10 = vld [vmem:[%s16142_s1 + $0x220] sm:$0xf] }
  0x85   :  { %571 = vmatmul.bf16.gmra.mxu3 %v11505_v13 }
  0x86   :  { %1930 = vmatpush.bf16.msra.mxu3 %v8906_v12  ;;  %v11607_v12 = vld [vmem:[%s16142_s1 + $0x224] sm:$0xf] }
  0x8a   :  { %1931 = vmatpush.bf16.msra.mxu3 %v8898_v38 }
  0x93   :  { %301 = vmatmul.bf16.gmra.mxu0 %v11530_v26 }
  0x94   :  { %350 = vmatmul.bf16.gmra.mxu1 %v11530_v26  ;;  %527 = vmatmul.bf16.gmra.mxu2 %v11506_v27 }
  0x95   :  { %576 = vmatmul.bf16.gmra.mxu3 %v11506_v27 }
  0xa0   :  { %v267_v41 = vpop.f32.mrf.mxu0 }
  0xa1   :  { %v316_v43 = vpop.f32.mrf.mxu1 }
  0xa3   :  { %751 = vmatmul.bf16.vlgmr.msrb.gmra.mxu0 %v11547_v40 }
  0xa4   :  { %800 = vmatmul.bf16.vlgmr.msrb.gmra.mxu1 %v11547_v40  ;;  %1043 = vmatmul.bf16.vlgmr.msrb.gmra.mxu2 %v11571_v42 }
  0xa5   :  { %1092 = vmatmul.bf16.vlgmr.msrb.gmra.mxu3 %v11571_v42 }
  0xa7   :  { %v493_v49 = vpop.f32.mrf.mxu2 }
  0xa8   :  { %v13281_v51 = vadd.f32 %v493_v49, %v267_v41  ;;  %v542_v52 = vpop.f32.mrf.mxu3  ;;  %v269_v53 = vpop.f32.mrf.mxu0  ;;  %v8770_v49 = vor.u32 %v11609_v46, %v8767_v48  ;;  %v8751_v46 = vld [vmem:[%s16142_s1 + $0x218] sm:$0xf0] }
  0xa9   :  { %v13283_v54 = vadd.f32 %v542_v52, %v316_v43  ;;  %v318_v55 = vpop.f32.mrf.mxu1  ;;  %v11550_v52 = vld [vmem:[%s16143_s0 + $0x20] sm:$0xff]  ;;  %v8754_v47 = vor.u32 %v11605_v44, %v8751_v46 }
  0xaa   :  { %1379 = vmatpush.bf16.msra.mxu1 %v8770_v49  ;;  %v11552_v49 = vld [vmem:[%s16143_s0 + $0x30] sm:$0xff] }
  0xaf   :  { %v495_v62 = vpop.f32.mrf.mxu2 }
  0xb0   :  { %v13300_v0 = vadd.f32 %v495_v62, %v269_v53  ;;  %v544_v1 = vpop.f32.mrf.mxu3  ;;  %v272_v2 = vpop.f32.mrf.mxu0  ;;  %v11655_v62 = vld [vmem:[%s16142_s1 + $0xa4] sm:$0xf] }
  0xb1   :  { %v13305_v4 = vadd.f32 %v544_v1, %v318_v55  ;;  %v321_v5 = vpop.f32.mrf.mxu1  ;;  %v8887_v1 = vld [vmem:[%s16142_s1 + $0xa8] sm:$0xf0] }
  0xb3   :  { %756 = vmatmul.bf16.gmra.mxu0 %v11548_v63 }
  0xb4   :  { %805 = vmatmul.bf16.gmra.mxu1 %v11548_v63  ;;  %1048 = vmatmul.bf16.gmra.mxu2 %v11572_v3  ;;  %v8886_v63 = vor.u32 %v11656_v61, %v8885_v60  ;;  %v8869_v60 = vld [vmem:[%s16142_s1 + $0x80] sm:$0xf]  ;;  %v11652_v61 = vld [vmem:[%s16142_s1 + $0x84] sm:$0xf0] }
  0xb5   :  { %1097 = vmatmul.bf16.gmra.mxu3 %v11572_v3  ;;  %v8890_v3 = vor.u32 %v11655_v62, %v8887_v1  ;;  %v11651_v62 = vld [vmem:[%s16142_s1 + $0x84] sm:$0xf]  ;;  %v8871_v1 = vld [vmem:[%s16142_s1 + $0x88] sm:$0xf0] }
  0xb6   :  { %1883 = vmatpush.bf16.msra.mxu2 %v8886_v63  ;;  %v8870_v63 = vor.u32 %v11652_v61, %v8869_v60  ;;  %v11554_v61 = vld [vmem:[%s16143_s0 + $0x40] sm:$0xff] }
  0xb7   :  { %v498_v11 = vpop.f32.mrf.mxu2  ;;  %1932 = vmatpush.bf16.msra.mxu3 %v8890_v3  ;;  %v8874_v3 = vor.u32 %v11651_v62, %v8871_v1 }
  0xb8   :  { %v13319_v13 = vadd.f32 %v498_v11, %v272_v2  ;;  %v547_v14 = vpop.f32.mrf.mxu3  ;;  %v274_v15 = vpop.f32.mrf.mxu0  ;;  %v11608_v11 = vld [vmem:[%s16142_s1 + $0x224] sm:$0xf0] }
  0xb9   :  { %v13321_v16 = vadd.f32 %v547_v14, %v321_v5  ;;  %v323_v17 = vpop.f32.mrf.mxu1  ;;  %v8758_v14 = vor.u32 %v11608_v11, %v8757_v10 }
  0xbb   :  { %1331 = vmatpush.bf16.msra.mxu0 %v8758_v14  ;;  %v11604_v14 = vld [vmem:[%s16142_s1 + $0x204] sm:$0xf0] }
  0xbf   :  { %v500_v24 = vpop.f32.mrf.mxu2 }
  0xc0   :  { %v13338_v26 = vadd.f32 %v500_v24, %v274_v15  ;;  %v549_v27 = vpop.f32.mrf.mxu3  ;;  %v277_v28 = vpop.f32.mrf.mxu0  ;;  %v8759_v15 = vld [vmem:[%s16142_s1 + $0x228] sm:$0xf0] }
  0xc1   :  { %v13343_v30 = vadd.f32 %v549_v27, %v323_v17  ;;  %v326_v31 = vpop.f32.mrf.mxu1  ;;  %v8762_v17 = vor.u32 %v11607_v12, %v8759_v15  ;;  %v8877_v27 = vld [vmem:[%s16142_s1 + $0x90] sm:$0xf]  ;;  %v8741_v12 = vld [vmem:[%s16142_s1 + $0x200] sm:$0xf]  ;;  %v11603_v15 = vld [vmem:[%s16142_s1 + $0x204] sm:$0xf] }
  0xc3   :  { %761 = vmatmul.bf16.gmra.mxu0 %v11549_v25  ;;  %1380 = vmatpush.bf16.msra.mxu1 %v8762_v17  ;;  %v8742_v17 = vor.u32 %v11604_v14, %v8741_v12  ;;  %v11687_v12 = vld [vmem:[%s16142_s1 + $0x164] sm:$0xf] }
  0xc4   :  { %810 = vmatmul.bf16.gmra.mxu1 %v11549_v25  ;;  %1053 = vmatmul.bf16.gmra.mxu2 %v11573_v29 }
  0xc5   :  { %1102 = vmatmul.bf16.gmra.mxu3 %v11573_v29  ;;  %v11653_v29 = vld [vmem:[%s16142_s1 + $0x94] sm:$0xf] }
  0xc6   :  { %v8882_v34 = vor.u32 %v11653_v29, %v8879_v32  ;;  %v9149_v32 = vld [vmem:[%s16142_s1 + $0x170] sm:$0xf] }
  0xc7   :  { %v503_v37 = vpop.f32.mrf.mxu2  ;;  %1381 = vmatpush.bf16.msra.mxu1 %v8754_v47 }
  0xc8   :  { %v13357_v39 = vadd.f32 %v503_v37, %v277_v28  ;;  %v552_v40 = vpop.f32.mrf.mxu3  ;;  %v279_v41 = vpop.f32.mrf.mxu0  ;;  %v11654_v28 = vld [vmem:[%s16142_s1 + $0x94] sm:$0xf0]  ;;  %1933 = vmatpush.bf16.msra.mxu3 %v8882_v34  ;;  %v11689_v34 = vld [vmem:[%s16142_s1 + $0x174] sm:$0xf] }
  0xc9   :  { %v13359_v42 = vadd.f32 %v552_v40, %v326_v31  ;;  %v328_v43 = vpop.f32.mrf.mxu1  ;;  %v8878_v31 = vor.u32 %v11654_v28, %v8877_v27  ;;  %v11577_v28 = vld [vmem:[%s16143_s0 + $0x88] sm:$0xff] }
  0xcb   :  { %1884 = vmatpush.bf16.msra.mxu2 %v8878_v31 }
  0xcc   :  { %1934 = vmatpush.bf16.msra.mxu3 %v8874_v3 }
  0xcf   :  { %v505_v50 = vpop.f32.mrf.mxu2  ;;  %1885 = vmatpush.bf16.msra.mxu2 %v8870_v63 }
  0xd0   :  { %v13376_v53 = vadd.f32 %v505_v50, %v279_v41  ;;  %v554_v55 = vpop.f32.mrf.mxu3  ;;  %v282_v56 = vpop.f32.mrf.mxu0  ;;  %v8749_v41 = vld [vmem:[%s16142_s1 + $0x210] sm:$0xf] }
  0xd1   :  { %v13381_v58 = vadd.f32 %v554_v55, %v328_v43  ;;  %v331_v59 = vpop.f32.mrf.mxu1  ;;  %v11606_v43 = vld [vmem:[%s16142_s1 + $0x214] sm:$0xf0] }
  0xd2   :  { %v8750_v45 = vor.u32 %v11606_v43, %v8749_v41 }
  0xd3   :  { %766 = vmatmul.bf16.gmra.mxu0 %v11550_v52 }
  0xd4   :  { %815 = vmatmul.bf16.gmra.mxu1 %v11550_v52  ;;  %1058 = vmatmul.bf16.gmra.mxu2 %v11574_v57 }
  0xd5   :  { %1107 = vmatmul.bf16.gmra.mxu3 %v11574_v57  ;;  %1332 = vmatpush.bf16.msra.mxu0 %v8750_v45 }
  0xd7   :  { %v508_v2 = vpop.f32.mrf.mxu2 }
  0xd8   :  { %v13395_v5 = vadd.f32 %v508_v2, %v282_v56  ;;  %v557_v6 = vpop.f32.mrf.mxu3  ;;  %v284_v7 = vpop.f32.mrf.mxu0  ;;  %v11576_v56 = vld [vmem:[%s16143_s0 + $0x80] sm:$0xff] }
  0xd9   :  { %v13397_v8 = vadd.f32 %v557_v6, %v331_v59  ;;  %v333_v9 = vpop.f32.mrf.mxu1  ;;  %1333 = vmatpush.bf16.msra.mxu0 %v8742_v17 }
  0xdf   :  { %v510_v18 = vpop.f32.mrf.mxu2 }
  0xe0   :  { %v13414_v20 = vadd.f32 %v510_v18, %v284_v7  ;;  %v559_v21 = vpop.f32.mrf.mxu3  ;;  %v287_v22 = vpop.f32.mrf.mxu0  ;;  %v8743_v18 = vld [vmem:[%s16142_s1 + $0x208] sm:$0xf0] }
  0xe1   :  { %v13419_v24 = vadd.f32 %v559_v21, %v333_v9  ;;  %v336_v25 = vpop.f32.mrf.mxu1 }
  0xe3   :  { %771 = vmatmul.bf16.gmra.mxu0 %v11551_v19 }
  0xe4   :  { %820 = vmatmul.bf16.gmra.mxu1 %v11551_v19  ;;  %1063 = vmatmul.bf16.gmra.mxu2 %v11575_v23  ;;  %v8746_v19 = vor.u32 %v11603_v15, %v8743_v18  ;;  %v9143_v15 = vld [vmem:[%s16142_s1 + $0x168] sm:$0xf0] }
  0xe5   :  { %1112 = vmatmul.bf16.gmra.mxu3 %v11575_v23  ;;  %v9146_v18 = vor.u32 %v11687_v12, %v9143_v15  ;;  %v11638_v15 = vld [vmem:[%s16142_s1 + $0x54] sm:$0xf0] }
  0xe6   :  { %1382 = vmatpush.bf16.msra.mxu1 %v8746_v19 }
  0xe7   :  { %v513_v33 = vpop.f32.mrf.mxu2 }
  0xe8   :  { %v13433_v35 = vadd.f32 %v513_v33, %v287_v22  ;;  %v562_v36 = vpop.f32.mrf.mxu3  ;;  %v289_v37 = vpop.f32.mrf.mxu0  ;;  %v11553_v22 = vld [vmem:[%s16143_s0 + $0x38] sm:$0xff] }
  0xe9   :  { %v13435_v38 = vadd.f32 %v562_v36, %v336_v25  ;;  %v338_v40 = vpop.f32.mrf.mxu1  ;;  %v11690_v33 = vld [vmem:[%s16142_s1 + $0x174] sm:$0xf0] }
  0xea   :  { %v9150_v36 = vor.u32 %v11690_v33, %v9149_v32  ;;  %v11639_v32 = vld [vmem:[%s16142_s1 + $0x64] sm:$0xf] }
  0xec   :  { %2362 = vmatpush.bf16.msrb.mxu2 %v9150_v36 }
  0xef   :  { %v515_v48 = vpop.f32.mrf.mxu2 }
  0xf0   :  { %v13452_v50 = vadd.f32 %v515_v48, %v289_v37  ;;  %v564_v52 = vpop.f32.mrf.mxu3  ;;  %v292_v55 = vpop.f32.mrf.mxu0  ;;  %v9151_v37 = vld [vmem:[%s16142_s1 + $0x178] sm:$0xf0]  ;;  %v9021_v48 = vld [vmem:[%s16142_s1 + $0x70] sm:$0xf] }
  0xf1   :  { %v13457_v57 = vadd.f32 %v564_v52, %v338_v40  ;;  %v341_v59 = vpop.f32.mrf.mxu1  ;;  %v9154_v41 = vor.u32 %v11689_v34, %v9151_v37  ;;  %v11641_v52 = vld [vmem:[%s16142_s1 + $0x74] sm:$0xf]  ;;  %v9015_v34 = vld [vmem:[%s16142_s1 + $0x68] sm:$0xf0] }
  0xf2   :  { %v9018_v36 = vor.u32 %v11639_v32, %v9015_v34 }
  0xf3   :  { %776 = vmatmul.bf16.gmra.mxu0 %v11552_v49  ;;  %2411 = vmatpush.bf16.msrb.mxu3 %v9154_v41 }
  0xf4   :  { %825 = vmatmul.bf16.gmra.mxu1 %v11552_v49  ;;  %1068 = vmatmul.bf16.gmra.mxu2 %v11576_v56  ;;  %v11642_v49 = vld [vmem:[%s16142_s1 + $0x74] sm:$0xf0] }
  0xf5   :  { %1117 = vmatmul.bf16.gmra.mxu3 %v11576_v56  ;;  %v9023_v56 = vld [vmem:[%s16142_s1 + $0x78] sm:$0xf0] }
  0xf7   :  { %v518_v2 = vpop.f32.mrf.mxu2  ;;  %2412 = vmatpush.bf16.msrb.mxu3 %v9146_v18 }
  0xf8   :  { %v13471_v6 = vadd.f32 %v518_v2, %v292_v55  ;;  %v567_v7 = vpop.f32.mrf.mxu3  ;;  %v294_v9 = vpop.f32.mrf.mxu0  ;;  %v9022_v55 = vor.u32 %v11642_v49, %v9021_v48  ;;  %v11578_v2 = vld [vmem:[%s16143_s0 + $0x90] sm:$0xff] }
  0xf9   :  { %v13473_v10 = vadd.f32 %v567_v7, %v341_v59  ;;  %v343_v11 = vpop.f32.mrf.mxu1  ;;  %v9026_v59 = vor.u32 %v11641_v52, %v9023_v56  ;;  %v9133_v56 = vld [vmem:[%s16142_s1 + $0x150] sm:$0xf] }
  0xfa   :  { %2104 = vmatpush.bf16.msrb.mxu0 %v9022_v55 }
  0xfb   :  { %2153 = vmatpush.bf16.msrb.mxu1 %v9026_v59  ;;  %v11686_v59 = vld [vmem:[%s16142_s1 + $0x154] sm:$0xf0] }
  0xff   :  { %v520_v21 = vpop.f32.mrf.mxu2  ;;  %2154 = vmatpush.bf16.msrb.mxu1 %v9018_v36 }
 0x100   :  { %v13490_v23 = vadd.f32 %v520_v21, %v294_v9  ;;  %v569_v25 = vpop.f32.mrf.mxu3  ;;  %v297_v27 = vpop.f32.mrf.mxu0  ;;  %v9141_v9 = vld [vmem:[%s16142_s1 + $0x160] sm:$0xf] }
 0x101   :  { %v13495_v29 = vadd.f32 %v569_v25, %v343_v11  ;;  %v346_v31 = vpop.f32.mrf.mxu1  ;;  %v11688_v11 = vld [vmem:[%s16142_s1 + $0x164] sm:$0xf0] }
 0x102   :  { %v9142_v14 = vor.u32 %v11688_v11, %v9141_v9 }
 0x103   :  { %781 = vmatmul.bf16.gmra.mxu0 %v11553_v22 }
 0x104   :  { %830 = vmatmul.bf16.gmra.mxu1 %v11553_v22  ;;  %1073 = vmatmul.bf16.gmra.mxu2 %v11577_v28 }
 0x105   :  { %1122 = vmatmul.bf16.gmra.mxu3 %v11577_v28  ;;  %2363 = vmatpush.bf16.msrb.mxu2 %v9142_v14  ;;  %v9013_v28 = vld [vmem:[%s16142_s1 + $0x60] sm:$0xf]  ;;  %v9005_v14 = vld [vmem:[%s16142_s1 + $0x50] sm:$0xf] }
 0x107   :  { %v523_v40 = vpop.f32.mrf.mxu2 }
 0x108   :  { %v13509_v43 = vadd.f32 %v523_v40, %v297_v27  ;;  %v572_v44 = vpop.f32.mrf.mxu3  ;;  %v299_v45 = vpop.f32.mrf.mxu0  ;;  %v11595_v40 = vld [vmem:[%s16143_s0 + $0xa8] sm:$0xff] }
 0x109   :  { %v13511_v46 = vadd.f32 %v572_v44, %v346_v31  ;;  %v348_v47 = vpop.f32.mrf.mxu1  ;;  %v11640_v31 = vld [vmem:[%s16142_s1 + $0x64] sm:$0xf0] }
 0x10a   :  { %v9014_v33 = vor.u32 %v11640_v31, %v9013_v28  ;;  %v11596_v28 = vld [vmem:[%s16143_s0 + $0xb0] sm:$0xff] }
 0x10c   :  { %2105 = vmatpush.bf16.msrb.mxu0 %v9014_v33 }
 0x10f   :  { %v525_v60 = vpop.f32.mrf.mxu2 }
 0x110   :  { %v13528_v62 = vadd.f32 %v525_v60, %v299_v45  ;;  %v574_v63 = vpop.f32.mrf.mxu3  ;;  %v302_v1 = vpop.f32.mrf.mxu0  ;;  %v11685_v60 = vld [vmem:[%s16142_s1 + $0x154] sm:$0xf] }
 0x111   :  { %v13533_v3 = vadd.f32 %v574_v63, %v348_v47  ;;  %v351_v7 = vpop.f32.mrf.mxu1  ;;  %v11643_v47 = vld [vmem:[%s16143_s0 + $0x58] sm:$0xff] }
 0x113   :  { %786 = vmatmul.bf16.gmra.mxu0 %v11554_v61 }
 0x114   :  { %835 = vmatmul.bf16.gmra.mxu1 %v11554_v61  ;;  %1078 = vmatmul.bf16.gmra.mxu2 %v11578_v2 }
 0x115   :  { %1127 = vmatmul.bf16.gmra.mxu3 %v11578_v2 }
 0x117   :  { %v528_v17 = vpop.f32.mrf.mxu2 }
 0x118   :  { %v13547_v19 = vadd.f32 %v528_v17, %v302_v1  ;;  %v577_v21 = vpop.f32.mrf.mxu3  ;;  %v304_v22 = vpop.f32.mrf.mxu0  ;;  %v11637_v17 = vld [vmem:[%s16142_s1 + $0x54] sm:$0xf] }
 0x119   :  { %v13549_v25 = vadd.f32 %v577_v21, %v351_v7  ;;  %v353_v27 = vpop.f32.mrf.mxu1  ;;  %v9006_v21 = vor.u32 %v11638_v15, %v9005_v14  ;;  %v11597_v15 = vld [vmem:[%s16143_s0 + $0xb8] sm:$0xff] }
 0x11b   :  { %2106 = vmatpush.bf16.msrb.mxu0 %v9006_v21 }
 0x11f   :  { %v530_v37 = vpop.f32.mrf.mxu2 }
 0x120   :  { %v13566_v41 = vadd.f32 %v530_v37, %v304_v22  ;;  %v579_v44 = vpop.f32.mrf.mxu3  ;;  %v752_v45 = vpop.f32.mrf.mxu0 }
 0x121   :  { %v13571_v48 = vadd.f32 %v579_v44, %v353_v27  ;;  %v841_v49 = vadd.f32 %v752_v45, %v13281_v51  ;;  %v801_v52 = vpop.f32.mrf.mxu1  ;;  %v9134_v51 = vor.u32 %v11686_v59, %v9133_v56  ;;  %v9125_v44 = vld [vmem:[%s16142_s1 + $0x140] sm:$0xf]  ;;  %v11684_v45 = vld [vmem:[%s16142_s1 + $0x144] sm:$0xf0] }
 0x122   :  { %v842_v55 = vadd.f32 %v801_v52, %v13283_v54  ;;  %v9135_v54 = vld [vmem:[%s16142_s1 + $0x158] sm:$0xf0] }
 0x123   :  { %1334 = vmatmul.bf16.vlgmr.msra.gmra.mxu0 %v11595_v40  ;;  %v9138_v63 = vor.u32 %v11685_v60, %v9135_v54  ;;  %2364 = vmatpush.bf16.msrb.mxu2 %v9134_v51 }
 0x124   :  { %1383 = vmatmul.bf16.vlgmr.msra.gmra.mxu1 %v11595_v40  ;;  %1886 = vmatmul.bf16.vlgmr.msra.gmra.mxu2 %v11643_v47 }
 0x125   :  { %1935 = vmatmul.bf16.vlgmr.msra.gmra.mxu3 %v11643_v47  ;;  %v11683_v47 = vld [vmem:[%s16142_s1 + $0x144] sm:$0xf] }
 0x126   :  { %2413 = vmatpush.bf16.msrb.mxu3 %v9138_v63  ;;  %v11636_v63 = vld [vmem:[%s16142_s1 + $0x44] sm:$0xf0] }
 0x127   :  { %v1044_v61 = vpop.f32.mrf.mxu2 }
 0x128   :  { %v13587_v1 = vadd.f32 %v1044_v61, %v841_v49  ;;  %v1093_v2 = vpop.f32.mrf.mxu3  ;;  %v754_v7 = vpop.f32.mrf.mxu0  ;;  %v8997_v61 = vld [vmem:[%s16142_s1 + $0x40] sm:$0xf] }
 0x129   :  { %v13589_v9 = vadd.f32 %v1093_v2, %v842_v55  ;;  %v843_v11 = vadd.f32 %v754_v7, %v13300_v0  ;;  %v803_v12 = vpop.f32.mrf.mxu1  ;;  %v9007_v0 = vld [vmem:[%s16142_s1 + $0x58] sm:$0xf0]  ;;  %v11635_v2 = vld [vmem:[%s16142_s1 + $0x44] sm:$0xf] }
 0x12a   :  { %v844_v18 = vadd.f32 %v803_v12, %v13305_v4  ;;  %v9010_v22 = vor.u32 %v11637_v17, %v9007_v0  ;;  %v11644_v4 = vld [vmem:[%s16143_s0 + $0x60] sm:$0xff] }
 0x12c   :  { %2155 = vmatpush.bf16.msrb.mxu1 %v9010_v22 }
 0x12f   :  { %v1046_v27 = vpop.f32.mrf.mxu2 }
 0x130   :  { %v13608_v31 = vadd.f32 %v1046_v27, %v843_v11  ;;  %v1095_v32 = vpop.f32.mrf.mxu3  ;;  %v757_v33 = vpop.f32.mrf.mxu0  ;;  %v8998_v11 = vor.u32 %v11636_v63, %v8997_v61  ;;  %v11598_v63 = vld [vmem:[%s16143_s0 + $0xc0] sm:$0xff] }
 0x131   :  { %v13613_v34 = vadd.f32 %v1095_v32, %v844_v18  ;;  %v845_v36 = vadd.f32 %v757_v33, %v13319_v13  ;;  %v806_v37 = vpop.f32.mrf.mxu1  ;;  %v9126_v13 = vor.u32 %v11684_v45, %v9125_v44  ;;  %v9117_v32 = vld [vmem:[%s16142_s1 + $0x130] sm:$0xf]  ;;  %v11682_v33 = vld [vmem:[%s16142_s1 + $0x134] sm:$0xf0] }
 0x132   :  { %v846_v40 = vadd.f32 %v806_v37, %v13321_v16  ;;  %v9127_v16 = vld [vmem:[%s16142_s1 + $0x148] sm:$0xf0]  ;;  %2107 = vmatpush.bf16.msrb.mxu0 %v8998_v11 }
 0x133   :  { %1339 = vmatmul.bf16.gmra.mxu0 %v11596_v28  ;;  %v9130_v52 = vor.u32 %v11683_v47, %v9127_v16  ;;  %2365 = vmatpush.bf16.msrb.mxu2 %v9126_v13 }
 0x134   :  { %1388 = vmatmul.bf16.gmra.mxu1 %v11596_v28  ;;  %1891 = vmatmul.bf16.gmra.mxu2 %v11644_v4 }
 0x135   :  { %1940 = vmatmul.bf16.gmra.mxu3 %v11644_v4  ;;  %v11681_v4 = vld [vmem:[%s16142_s1 + $0x134] sm:$0xf] }
 0x136   :  { %2414 = vmatpush.bf16.msrb.mxu3 %v9130_v52  ;;  %v11634_v52 = vld [vmem:[%s16142_s1 + $0x34] sm:$0xf0] }
 0x137   :  { %v1049_v49 = vpop.f32.mrf.mxu2 }
 0x138   :  { %v13629_v55 = vadd.f32 %v1049_v49, %v845_v36  ;;  %v1098_v56 = vpop.f32.mrf.mxu3  ;;  %v759_v59 = vpop.f32.mrf.mxu0  ;;  %v8989_v49 = vld [vmem:[%s16142_s1 + $0x30] sm:$0xf] }
 0x139   :  { %v13631_v60 = vadd.f32 %v1098_v56, %v846_v40  ;;  %v847_v51 = vadd.f32 %v759_v59, %v13338_v26  ;;  %v808_v54 = vpop.f32.mrf.mxu1  ;;  %v8999_v26 = vld [vmem:[%s16142_s1 + $0x48] sm:$0xf0]  ;;  %v11633_v56 = vld [vmem:[%s16142_s1 + $0x34] sm:$0xf] }
 0x13a   :  { %v848_v7 = vadd.f32 %v808_v54, %v13343_v30  ;;  %v9002_v12 = vor.u32 %v11635_v2, %v8999_v26  ;;  %v11645_v30 = vld [vmem:[%s16143_s0 + $0x68] sm:$0xff] }
 0x13c   :  { %2156 = vmatpush.bf16.msrb.mxu1 %v9002_v12 }
 0x13f   :  { %v1051_v14 = vpop.f32.mrf.mxu2 }
 0x140   :  { %v13650_v17 = vadd.f32 %v1051_v14, %v847_v51  ;;  %v1100_v18 = vpop.f32.mrf.mxu3  ;;  %v762_v21 = vpop.f32.mrf.mxu0  ;;  %v8990_v51 = vor.u32 %v11634_v52, %v8989_v49  ;;  %v11599_v52 = vld [vmem:[%s16143_s0 + $0xc8] sm:$0xff] }
 0x141   :  { %v13655_v0 = vadd.f32 %v1100_v18, %v848_v7  ;;  %v849_v22 = vadd.f32 %v762_v21, %v13357_v39  ;;  %v811_v27 = vpop.f32.mrf.mxu1  ;;  %v9118_v39 = vor.u32 %v11682_v33, %v9117_v32  ;;  %v9109_v18 = vld [vmem:[%s16142_s1 + $0x120] sm:$0xf]  ;;  %v11680_v21 = vld [vmem:[%s16142_s1 + $0x124] sm:$0xf0] }
 0x142   :  { %v850_v28 = vadd.f32 %v811_v27, %v13359_v42  ;;  %v9119_v42 = vld [vmem:[%s16142_s1 + $0x138] sm:$0xf0]  ;;  %2108 = vmatpush.bf16.msrb.mxu0 %v8990_v51 }
 0x143   :  { %1344 = vmatmul.bf16.gmra.mxu0 %v11597_v15  ;;  %v9122_v37 = vor.u32 %v11681_v4, %v9119_v42  ;;  %2366 = vmatpush.bf16.msrb.mxu2 %v9118_v39 }
 0x144   :  { %1393 = vmatmul.bf16.gmra.mxu1 %v11597_v15  ;;  %1896 = vmatmul.bf16.gmra.mxu2 %v11645_v30 }
 0x145   :  { %1945 = vmatmul.bf16.gmra.mxu3 %v11645_v30  ;;  %v11679_v30 = vld [vmem:[%s16142_s1 + $0x124] sm:$0xf] }
 0x146   :  { %2415 = vmatpush.bf16.msrb.mxu3 %v9122_v37  ;;  %v11632_v37 = vld [vmem:[%s16142_s1 + $0x24] sm:$0xf0] }
 0x147   :  { %v1054_v36 = vpop.f32.mrf.mxu2 }
 0x148   :  { %v13671_v40 = vadd.f32 %v1054_v36, %v849_v22  ;;  %v1103_v44 = vpop.f32.mrf.mxu3  ;;  %v764_v45 = vpop.f32.mrf.mxu0  ;;  %v8981_v36 = vld [vmem:[%s16142_s1 + $0x20] sm:$0xf] }
 0x149   :  { %v13673_v47 = vadd.f32 %v1103_v44, %v850_v28  ;;  %v851_v13 = vadd.f32 %v764_v45, %v13376_v53  ;;  %v813_v16 = vpop.f32.mrf.mxu1  ;;  %v8991_v53 = vld [vmem:[%s16142_s1 + $0x38] sm:$0xf0]  ;;  %v11631_v44 = vld [vmem:[%s16142_s1 + $0x24] sm:$0xf] }
 0x14a   :  { %v852_v59 = vadd.f32 %v813_v16, %v13381_v58  ;;  %v8994_v54 = vor.u32 %v11633_v56, %v8991_v53  ;;  %v11646_v58 = vld [vmem:[%s16143_s0 + $0x70] sm:$0xff] }
 0x14c   :  { %2157 = vmatpush.bf16.msrb.mxu1 %v8994_v54 }
 0x14f   :  { %v1056_v61 = vpop.f32.mrf.mxu2 }
 0x150   :  { %v13692_v2 = vadd.f32 %v1056_v61, %v851_v13  ;;  %v1105_v7 = vpop.f32.mrf.mxu3  ;;  %v767_v11 = vpop.f32.mrf.mxu0  ;;  %v8982_v13 = vor.u32 %v11632_v37, %v8981_v36  ;;  %v11600_v37 = vld [vmem:[%s16143_s0 + $0xd0] sm:$0xff] }
 0x151   :  { %v13697_v26 = vadd.f32 %v1105_v7, %v852_v59  ;;  %v853_v12 = vadd.f32 %v767_v11, %v13395_v5  ;;  %v816_v14 = vpop.f32.mrf.mxu1  ;;  %v9110_v5 = vor.u32 %v11680_v21, %v9109_v18  ;;  %v9101_v7 = vld [vmem:[%s16142_s1 + $0x110] sm:$0xf]  ;;  %v11678_v11 = vld [vmem:[%s16142_s1 + $0x114] sm:$0xf0] }
 0x152   :  { %v854_v15 = vadd.f32 %v816_v14, %v13397_v8  ;;  %v9111_v8 = vld [vmem:[%s16142_s1 + $0x128] sm:$0xf0]  ;;  %2109 = vmatpush.bf16.msrb.mxu0 %v8982_v13 }
 0x153   :  { %1349 = vmatmul.bf16.gmra.mxu0 %v11598_v63  ;;  %v9114_v27 = vor.u32 %v11679_v30, %v9111_v8  ;;  %2367 = vmatpush.bf16.msrb.mxu2 %v9110_v5 }
 0x154   :  { %1398 = vmatmul.bf16.gmra.mxu1 %v11598_v63  ;;  %1901 = vmatmul.bf16.gmra.mxu2 %v11646_v58 }
 0x155   :  { %1950 = vmatmul.bf16.gmra.mxu3 %v11646_v58  ;;  %v11677_v58 = vld [vmem:[%s16142_s1 + $0x114] sm:$0xf] }
 0x156   :  { %2416 = vmatpush.bf16.msrb.mxu3 %v9114_v27  ;;  %v11630_v27 = vld [vmem:[%s16142_s1 + $0x14] sm:$0xf0] }
 0x157   :  { %v1059_v22 = vpop.f32.mrf.mxu2 }
 0x158   :  { %v13713_v28 = vadd.f32 %v1059_v22, %v853_v12  ;;  %v1108_v32 = vpop.f32.mrf.mxu3  ;;  %v769_v33 = vpop.f32.mrf.mxu0  ;;  %v8973_v22 = vld [vmem:[%s16142_s1 + $0x10] sm:$0xf] }
 0x159   :  { %v13715_v4 = vadd.f32 %v1108_v32, %v854_v15  ;;  %v855_v39 = vadd.f32 %v769_v33, %v13414_v20  ;;  %v818_v42 = vpop.f32.mrf.mxu1  ;;  %v8983_v20 = vld [vmem:[%s16142_s1 + $0x28] sm:$0xf0]  ;;  %v11629_v32 = vld [vmem:[%s16142_s1 + $0x14] sm:$0xf] }
 0x15a   :  { %v856_v45 = vadd.f32 %v818_v42, %v13419_v24  ;;  %v8986_v16 = vor.u32 %v11631_v44, %v8983_v20  ;;  %v11647_v24 = vld [vmem:[%s16143_s0 + $0x78] sm:$0xff] }
 0x15c   :  { %2158 = vmatpush.bf16.msrb.mxu1 %v8986_v16 }
 0x15f   :  { %v1061_v49 = vpop.f32.mrf.mxu2 }
 0x160   :  { %v13734_v56 = vadd.f32 %v1061_v49, %v855_v39  ;;  %v1110_v59 = vpop.f32.mrf.mxu3  ;;  %v772_v51 = vpop.f32.mrf.mxu0  ;;  %v8974_v39 = vor.u32 %v11630_v27, %v8973_v22  ;;  %v11601_v27 = vld [vmem:[%s16143_s0 + $0xd8] sm:$0xff] }
 0x161   :  { %v13739_v53 = vadd.f32 %v1110_v59, %v856_v45  ;;  %v857_v54 = vadd.f32 %v772_v51, %v13433_v35  ;;  %v821_v61 = vpop.f32.mrf.mxu1  ;;  %v9102_v35 = vor.u32 %v11678_v11, %v9101_v7  ;;  %v9093_v59 = vld [vmem:[%s16142_s1 + $0x100] sm:$0xf]  ;;  %v11676_v51 = vld [vmem:[%s16142_s1 + $0x104] sm:$0xf0] }
 0x162   :  { %v858_v63 = vadd.f32 %v821_v61, %v13435_v38  ;;  %v9103_v38 = vld [vmem:[%s16142_s1 + $0x118] sm:$0xf0]  ;;  %2110 = vmatpush.bf16.msrb.mxu0 %v8974_v39 }
 0x163   :  { %1354 = vmatmul.bf16.gmra.mxu0 %v11599_v52  ;;  %v9106_v14 = vor.u32 %v11677_v58, %v9103_v38  ;;  %2368 = vmatpush.bf16.msrb.mxu2 %v9102_v35 }
 0x164   :  { %1403 = vmatmul.bf16.gmra.mxu1 %v11599_v52  ;;  %1906 = vmatmul.bf16.gmra.mxu2 %v11647_v24 }
 0x165   :  { %1955 = vmatmul.bf16.gmra.mxu3 %v11647_v24  ;;  %v11675_v24 = vld [vmem:[%s16142_s1 + $0x104] sm:$0xf] }
 0x166   :  { %2417 = vmatpush.bf16.msrb.mxu3 %v9106_v14  ;;  %v11628_v14 = vld [vmem:[%s16142_s1 + $0x4] sm:$0xf0] }
 0x167   :  { %v1064_v12 = vpop.f32.mrf.mxu2 }
 0x168   :  { %v13755_v15 = vadd.f32 %v1064_v12, %v857_v54  ;;  %v1113_v18 = vpop.f32.mrf.mxu3  ;;  %v774_v21 = vpop.f32.mrf.mxu0  ;;  %v8965_v12 = vld [vmem:[%s16142_s1] sm:$0xf] }
 0x169   :  { %v13757_v30 = vadd.f32 %v1113_v18, %v858_v63  ;;  %v859_v5 = vadd.f32 %v774_v21, %v13452_v50  ;;  %v823_v8 = vpop.f32.mrf.mxu1  ;;  %v8975_v50 = vld [vmem:[%s16142_s1 + $0x18] sm:$0xf0]  ;;  %v11627_v18 = vld [vmem:[%s16142_s1 + $0x4] sm:$0xf] }
 0x16a   :  { %v860_v33 = vadd.f32 %v823_v8, %v13457_v57  ;;  %v8978_v42 = vor.u32 %v11629_v32, %v8975_v50  ;;  %v11648_v57 = vld [vmem:[%s16143_s0 + $0x80] sm:$0xff] }
 0x16c   :  { %2159 = vmatpush.bf16.msrb.mxu1 %v8978_v42 }
 0x16f   :  { %v1066_v36 = vpop.f32.mrf.mxu2 }
 0x170   :  { %v13776_v44 = vadd.f32 %v1066_v36, %v859_v5  ;;  %v1115_v45 = vpop.f32.mrf.mxu3  ;;  %v777_v13 = vpop.f32.mrf.mxu0  ;;  %v8966_v5 = vor.u32 %v11628_v14, %v8965_v12 }
 0x171   :  { %v13781_v20 = vadd.f32 %v1115_v45, %v860_v33  ;;  %v861_v16 = vadd.f32 %v777_v13, %v13471_v6  ;;  %v826_v49 = vpop.f32.mrf.mxu1  ;;  %v9094_v6 = vor.u32 %v11676_v51, %v9093_v59 }
 0x172   :  { %v862_v52 = vadd.f32 %v826_v49, %v13473_v10  ;;  %v9095_v10 = vld [vmem:[%s16142_s1 + $0x108] sm:$0xf0]  ;;  %2111 = vmatpush.bf16.msrb.mxu0 %v8966_v5 }
 0x173   :  { %1359 = vmatmul.bf16.gmra.mxu0 %v11600_v37  ;;  %v9098_v61 = vor.u32 %v11675_v24, %v9095_v10  ;;  %2369 = vmatpush.bf16.msrb.mxu2 %v9094_v6 }
 0x174   :  { %1408 = vmatmul.bf16.gmra.mxu1 %v11600_v37  ;;  %1911 = vmatmul.bf16.gmra.mxu2 %v11648_v57 }
 0x175   :  { %1960 = vmatmul.bf16.gmra.mxu3 %v11648_v57 }
 0x176   :  { %2418 = vmatpush.bf16.msrb.mxu3 %v9098_v61 }
 0x177   :  { %v1069_v54 = vpop.f32.mrf.mxu2 }
 0x178   :  { %v13797_v63 = vadd.f32 %v1069_v54, %v861_v16  ;;  %v1118_v7 = vpop.f32.mrf.mxu3  ;;  %v779_v11 = vpop.f32.mrf.mxu0  ;;  %v11650_v54 = vld [vmem:[%s16143_s0 + $0x90] sm:$0xff] }
 0x179   :  { %v13799_v58 = vadd.f32 %v1118_v7, %v862_v52  ;;  %v863_v35 = vadd.f32 %v779_v11, %v13490_v23  ;;  %v828_v38 = vpop.f32.mrf.mxu1  ;;  %v8967_v23 = vld [vmem:[%s16142_s1 + $0x8] sm:$0xf0] }
 0x17a   :  { %v864_v21 = vadd.f32 %v828_v38, %v13495_v29  ;;  %v8970_v8 = vor.u32 %v11627_v18, %v8967_v23  ;;  %v11649_v29 = vld [vmem:[%s16143_s0 + $0x88] sm:$0xff]  ;;  %v11738_v23 = vld [vmem:[%s16142_s1 + $0x274] sm:$0xf0] }
 0x17c   :  { %2160 = vmatpush.bf16.msrb.mxu1 %v8970_v8  ;;  %v11737_v8 = vld [vmem:[%s16142_s1 + $0x274] sm:$0xf] }
 0x17f   :  { %v1071_v22 = vpop.f32.mrf.mxu2 }
 0x180   :  { %v13818_v32 = vadd.f32 %v1071_v22, %v863_v35  ;;  %v1120_v33 = vpop.f32.mrf.mxu3  ;;  %v782_v39 = vpop.f32.mrf.mxu0  ;;  %v9277_v22 = vld [vmem:[%s16142_s1 + $0x1f0] sm:$0xf] }
 0x181   :  { %v13823_v50 = vadd.f32 %v1120_v33, %v864_v21  ;;  %v865_v42 = vadd.f32 %v782_v39, %v13509_v43  ;;  %v831_v36 = vpop.f32.mrf.mxu1 }
 0x182   :  { %v866_v37 = vadd.f32 %v831_v36, %v13511_v46  ;;  %v11602_v46 = vld [vmem:[%s16143_s0 + $0xe0] sm:$0xff] }
 0x183   :  { %1364 = vmatmul.bf16.gmra.mxu0 %v11601_v27 }
 0x184   :  { %1413 = vmatmul.bf16.gmra.mxu1 %v11601_v27  ;;  %1916 = vmatmul.bf16.gmra.mxu2 %v11649_v29  ;;  %v11714_v27 = vld [vmem:[%s16142_s1 + $0x1f4] sm:$0xf0] }
 0x185   :  { %1965 = vmatmul.bf16.gmra.mxu3 %v11649_v29  ;;  %v9278_v39 = vor.u32 %v11714_v27, %v9277_v22  ;;  %v11713_v29 = vld [vmem:[%s16142_s1 + $0x1f4] sm:$0xf] }
 0x187   :  { %v1074_v45 = vpop.f32.mrf.mxu2  ;;  %2652 = vmatpush.bf16.msra.mxu0 %v9278_v39 }
 0x188   :  { %v13827_v13 = vadd.f32 %v1074_v45, %v865_v42  ;;  %v1123_v57 = vpop.f32.mrf.mxu3  ;;  %v784_v16 = vpop.f32.mrf.mxu0  ;;  %v9279_v42 = vld [vmem:[%s16142_s1 + $0x1f8] sm:$0xf0]  ;;  %v11619_v45 = vld [vmem:[%s16143_s0 + $0x8] sm:$0xff] }
 0x189   :  { %v13829_v49 = vadd.f32 %v1123_v57, %v866_v37  ;;  %v867_v52 = vadd.f32 %v784_v16, %v13528_v62  ;;  %v833_v59 = vpop.f32.mrf.mxu1  ;;  %v9282_v57 = vor.u32 %v11713_v29, %v9279_v42 }
 0x18a   :  { %v868_v51 = vadd.f32 %v833_v59, %v13533_v3 }
 0x18b   :  { %2701 = vmatpush.bf16.msra.mxu1 %v9282_v57  ;;  %v11712_v57 = vld [vmem:[%s16142_s1 + $0x1e4] sm:$0xf0] }
 0x18f   :  { %v1076_v43 = vpop.f32.mrf.mxu2 }
 0x190   :  { %v13836_v24 = vadd.f32 %v1076_v43, %v867_v52  ;;  %v1125_v6 = vpop.f32.mrf.mxu3  ;;  %v787_v10 = vpop.f32.mrf.mxu0  ;;  %v11667_v43 = vld [vmem:[%s16143_s0 + $0xa8] sm:$0xff] }
 0x191   :  { %v13841_v61 = vadd.f32 %v1125_v6, %v868_v51  ;;  %v869_v62 = vadd.f32 %v787_v10, %v13547_v19  ;;  %v836_v7 = vpop.f32.mrf.mxu1  ;;  %v1456_v19 = vld [vmem:[%s16144_s2] sm:$0x3] }
 0x192   :  { %v870_v3 = vadd.f32 %v836_v7, %v13549_v25  ;;  %v9389_v25 = vld [vmem:[%s16142_s1 + $0x270] sm:$0xf]  ;;  %v13878_v37 = vperm.slane %v1456_v19, 0  ;;  %v13885_v51 = vperm.slane %v1456_v19, 1 }
 0x193   :  { %1369 = vmatmul.bf16.gmra.mxu0 %v11602_v46 }
 0x194   :  { %1418 = vmatmul.bf16.gmra.mxu1 %v11602_v46  ;;  %1921 = vmatmul.bf16.gmra.mxu2 %v11650_v54 }
 0x195   :  { %1970 = vmatmul.bf16.gmra.mxu3 %v11650_v54 }
 0x197   :  { %v1079_v11 = vpop.f32.mrf.mxu2 }
 0x198   :  { %v13845_v35 = vadd.f32 %v1079_v11, %v869_v62  ;;  %v1128_v38 = vpop.f32.mrf.mxu3  ;;  %v789_v12 = vpop.f32.mrf.mxu0 }
 0x199   :  { %v13847_v14 = vadd.f32 %v1128_v38, %v870_v3  ;;  %v871_v18 = vadd.f32 %v789_v12, %v13566_v41  ;;  %v838_v21 = vpop.f32.mrf.mxu1  ;;  %v9390_v41 = vor.u32 %v11738_v23, %v9389_v25 }
 0x19a   :  { %v872_v5 = vadd.f32 %v838_v21, %v13571_v48  ;;  %v9391_v48 = vld [vmem:[%s16142_s1 + $0x278] sm:$0xf0] }
 0x19b   :  { %v9394_v33 = vor.u32 %v11737_v8, %v9391_v48  ;;  %2942 = vmatpush.bf16.msra.mxu2 %v9390_v41  ;;  %v9381_v41 = vld [vmem:[%s16142_s1 + $0x260] sm:$0xf]  ;;  %v11736_v48 = vld [vmem:[%s16142_s1 + $0x264] sm:$0xf0] }
 0x19c   :  { %v9382_v27 = vor.u32 %v11736_v48, %v9381_v41 }
 0x19d   :  { %2991 = vmatpush.bf16.msra.mxu3 %v9394_v33  ;;  %v9383_v33 = vld [vmem:[%s16142_s1 + $0x268] sm:$0xf0] }
 0x19f   :  { %v1081_v36 = vpop.f32.mrf.mxu2  ;;  %2943 = vmatpush.bf16.msra.mxu2 %v9382_v27 }
 0x1a0   :  { %v13883_v16 = vadd.f32 %v1081_v36, %v871_v18  ;;  %v1130_v52 = vpop.f32.mrf.mxu3  ;;  %v1335_v59 = vpop.f32.mrf.mxu0 }
 0x1a1   :  { %v13890_v46 = vadd.f32 %v1130_v52, %v872_v5  ;;  %v1424_v6 = vadd.f32 %v1335_v59, %v13587_v1  ;;  %v1384_v10 = vpop.f32.mrf.mxu1 }
 0x1a2   :  { %v1425_v54 = vadd.f32 %v1384_v10, %v13589_v9 }
 0x1a3   :  { %v1462_v62 = vadd.f32 %v13878_v37, %v1424_v6  ;;  %2112 = vmatmul.bf16.vlgmr.msrb.gmra.mxu0 %v11619_v45 }
 0x1a4   :  { %v1463_v7 = vadd.f32 %v13885_v51, %v1425_v54  ;;  %2161 = vmatmul.bf16.vlgmr.msrb.gmra.mxu1 %v11619_v45  ;;  %2370 = vmatmul.bf16.vlgmr.msrb.gmra.mxu2 %v11667_v43  ;;  %v9269_v45 = vld [vmem:[%s16142_s1 + $0x1e0] sm:$0xf]  ;;  %v11668_v54 = vld [vmem:[%s16143_s0 + $0xb0] sm:$0xff] }
 0x1a5   :  { %v1494_v3 = vsub.f32 0.0, %v1462_v62  ;;  %2419 = vmatmul.bf16.vlgmr.msrb.gmra.mxu3 %v11667_v43  ;;  %v9270_v62 = vor.u32 %v11712_v57, %v9269_v45 }
 0x1a6   :  { %v1495_v11 = vsub.f32 0.0, %v1463_v7  ;;  %v11711_v7 = vld [vmem:[%s16142_s1 + $0x1e4] sm:$0xf] }
 0x1a7   :  { %v1526_v38 = vmul.f32 1.442695, %v1494_v3  ;;  %v13896_v12 = vpop.f32.mrf.mxu2  ;;  %2653 = vmatpush.bf16.msra.mxu0 %v9270_v62 }
 0x1a8   :  { %v1528_v18 = vmul.f32 1.442695, %v1495_v11  ;;  %v13898_v21 = vpop.f32.mrf.mxu3  ;;  %v1337_v1 = vpop.f32.mrf.mxu0 }
 0x1a9   :  { %12273 = vpow2.f32 %v1526_v38  ;;  %v1426_v9 = vadd.f32 %v1337_v1, %v13608_v31  ;;  %v1386_v5 = vpop.f32.mrf.mxu1  ;;  %v11620_v31 = vld [vmem:[%s16143_s0 + $0x10] sm:$0xff] }
 0x1aa   :  { %12275 = vpow2.f32 %v1528_v18  ;;  %v1427_v19 = vadd.f32 %v1386_v5, %v13613_v34  ;;  %v11735_v34 = vld [vmem:[%s16142_s1 + $0x264] sm:$0xf]  ;;  %v9271_v18 = vld [vmem:[%s16142_s1 + $0x1e8] sm:$0xf0] }
 0x1ab   :  { %v1464_v25 = vadd.f32 %v13878_v37, %v1426_v9  ;;  %v9386_v36 = vor.u32 %v11735_v34, %v9383_v33  ;;  %v9274_v9 = vor.u32 %v11711_v7, %v9271_v18  ;;  %v11733_v7 = vld [vmem:[%s16142_s1 + $0x254] sm:$0xf] }
 0x1ac   :  { %v1465_v23 = vadd.f32 %v13885_v51, %v1427_v19 }
 0x1ad   :  { %v1496_v8 = vsub.f32 0.0, %v1464_v25  ;;  %2992 = vmatpush.bf16.msra.mxu3 %v9386_v36  ;;  %2702 = vmatpush.bf16.msra.mxu1 %v9274_v9  ;;  %v9261_v9 = vld [vmem:[%s16142_s1 + $0x1d0] sm:$0xf] }
 0x1ae   :  { %v1497_v22 = vsub.f32 0.0, %v1465_v23 }
 0x1af   :  { %v12274_v39 = vpop.eup %12273  ;;  %v1530_v29 = vmul.f32 1.442695, %v1496_v8  ;;  %v13919_v42 = vpop.f32.mrf.mxu2 }
 0x1b0   :  { %v12276_v52 = vpop.eup %12275  ;;  %v1590_v59 = vadd.f32 1.0, %v12274_v39  ;;  %v1532_v43 = vmul.f32 1.442695, %v1497_v22  ;;  %v13927_v6 = vpop.f32.mrf.mxu3 }
 0x1b1   :  { %v1340_v10 = vpop.f32.mrf.mxu0  ;;  %v1591_v3 = vadd.f32 1.0, %v12276_v52  ;;  %12277 = vpow2.f32 %v1530_v29  ;;  %v1389_v38 = vpop.f32.mrf.mxu1 }
 0x1b2   :  { %v1428_v11 = vadd.f32 %v1340_v10, %v13629_v55  ;;  %12279 = vrcp.f32 %v1590_v59  ;;  %v1429_v1 = vadd.f32 %v1389_v38, %v13631_v60  ;;  %v9373_v10 = vld [vmem:[%s16142_s1 + $0x250] sm:$0xf] }
 0x1b3   :  { %12281 = vrcp.f32 %v1591_v3  ;;  %2117 = vmatmul.bf16.gmra.mxu0 %v11620_v31  ;;  %v9375_v3 = vld [vmem:[%s16142_s1 + $0x258] sm:$0xf0] }
 0x1b4   :  { %v1466_v5 = vadd.f32 %v13878_v37, %v1428_v11  ;;  %12283 = vpow2.f32 %v1532_v43  ;;  %v1467_v19 = vadd.f32 %v13885_v51, %v1429_v1  ;;  %2166 = vmatmul.bf16.gmra.mxu1 %v11620_v31  ;;  %2375 = vmatmul.bf16.gmra.mxu2 %v11668_v54  ;;  %v9378_v1 = vor.u32 %v11733_v7, %v9375_v3 }
 0x1b5   :  { %2424 = vmatmul.bf16.gmra.mxu3 %v11668_v54 }
 0x1b6   :  { %v1498_v55 = vsub.f32 0.0, %v1466_v5  ;;  %v1499_v25 = vsub.f32 0.0, %v1467_v19  ;;  %v11710_v5 = vld [vmem:[%s16142_s1 + $0x1d4] sm:$0xf0]  ;;  %2993 = vmatpush.bf16.msra.mxu3 %v9378_v1 }
 0x1b7   :  { %v12278_v23 = vpop.eup %12277  ;;  %v13942_v41 = vpop.f32.mrf.mxu2 }
 0x1b8   :  { %v1534_v8 = vmul.f32 1.442695, %v1498_v55  ;;  %v12280_v60 = vpop.eup %12279  ;;  %v1592_v48 = vadd.f32 1.0, %v12278_v23  ;;  %v1536_v22 = vmul.f32 1.442695, %v1499_v25  ;;  %v13944_v27 = vpop.f32.mrf.mxu3 }
 0x1b9   :  { %v1342_v34 = vpop.f32.mrf.mxu0  ;;  %v12282_v33 = vpop.eup %12281 }
 0x1ba   :  { %12285 = vpow2.f32 %v1534_v8  ;;  %v1430_v39 = vadd.f32 %v1342_v34, %v13650_v17  ;;  %v1391_v31 = vpop.f32.mrf.mxu1  ;;  %v12284_v29 = vpop.eup %12283  ;;  %v1654_v36 = vpack.c.bf16 %v12282_v33, %v12280_v60  ;;  %v11734_v17 = vld [vmem:[%s16142_s1 + $0x254] sm:$0xf0] }
 0x1bb   :  { %12287 = vrcp.f32 %v1592_v48  ;;  %v1431_v45 = vadd.f32 %v1391_v31, %v13655_v0  ;;  %v1593_v57 = vadd.f32 1.0, %v12284_v29  ;;  %v11621_v0 = vld [vmem:[%s16143_s0 + $0x18] sm:$0xff]  ;;  %v9374_v62 = vor.u32 %v11734_v17, %v9373_v10 }
 0x1bc   :  { %12289 = vpow2.f32 %v1536_v22  ;;  %v1468_v52 = vadd.f32 %v13878_v37, %v1430_v39  ;;  %1670 = vst [vmem:[#allocation2 + $0x10] sm:$0xff] %v1654_v36  ;;  %v11669_v60 = vld [vmem:[%s16143_s0 + $0xb8] sm:$0xff]  ;;  %v9262_v48 = vor.u32 %v11710_v5, %v9261_v9  ;;  %v11709_v22 = vld [vmem:[%s16142_s1 + $0x1d4] sm:$0xf] }
 0x1bd   :  { %v1469_v59 = vadd.f32 %v13885_v51, %v1431_v45  ;;  %12291 = vrcp.f32 %v1593_v57  ;;  %2944 = vmatpush.bf16.msra.mxu2 %v9374_v62  ;;  %v9263_v31 = vld [vmem:[%s16142_s1 + $0x1d8] sm:$0xf0] }
 0x1be   :  { %v1500_v43 = vsub.f32 0.0, %v1468_v52  ;;  %2654 = vmatpush.bf16.msra.mxu0 %v9262_v48  ;;  %v9266_v45 = vor.u32 %v11709_v22, %v9263_v31  ;;  %v9365_v22 = vld [vmem:[%s16142_s1 + $0x240] sm:$0xf]  ;;  %v9367_v31 = vld [vmem:[%s16142_s1 + $0x248] sm:$0xf0] }
 0x1bf   :  { %v1501_v54 = vsub.f32 0.0, %v1469_v59  ;;  %v13965_v18 = vpop.f32.mrf.mxu2 }
 0x1c0   :  { %v12286_v11 = vpop.eup %12285  ;;  %v1538_v38 = vmul.f32 1.442695, %v1500_v43  ;;  %v13973_v23 = vpop.f32.mrf.mxu3  ;;  %2703 = vmatpush.bf16.msra.mxu1 %v9266_v45 }
 0x1c1   :  { %v12288_v19 = vpop.eup %12287  ;;  %v1594_v55 = vadd.f32 1.0, %v12286_v11  ;;  %v1540_v25 = vmul.f32 1.442695, %v1501_v54  ;;  %v1345_v8 = vpop.f32.mrf.mxu0 }
 0x1c2   :  { %v12290_v34 = vpop.eup %12289  ;;  %12293 = vpow2.f32 %v1538_v38  ;;  %v1432_v33 = vadd.f32 %v1345_v8, %v13671_v40  ;;  %v1394_v39 = vpop.f32.mrf.mxu1 }
 0x1c3   :  { %12295 = vrcp.f32 %v1594_v55  ;;  %v1595_v29 = vadd.f32 1.0, %v12290_v34  ;;  %v1433_v36 = vadd.f32 %v1394_v39, %v13673_v47  ;;  %v12292_v57 = vpop.eup %12291  ;;  %2122 = vmatmul.bf16.gmra.mxu0 %v11621_v0  ;;  %v11731_v39 = vld [vmem:[%s16142_s1 + $0x244] sm:$0xf] }
 0x1c4   :  { %12297 = vpow2.f32 %v1540_v25  ;;  %v1470_v52 = vadd.f32 %v13878_v37, %v1432_v33  ;;  %v1655_v59 = vpack.c.bf16 %v12292_v57, %v12288_v19  ;;  %2171 = vmatmul.bf16.gmra.mxu1 %v11621_v0  ;;  %2380 = vmatmul.bf16.gmra.mxu2 %v11669_v60  ;;  %v9370_v57 = vor.u32 %v11731_v39, %v9367_v31 }
 0x1c5   :  { %12299 = vrcp.f32 %v1595_v29  ;;  %v1471_v40 = vadd.f32 %v13885_v51, %v1433_v36  ;;  %2429 = vmatmul.bf16.gmra.mxu3 %v11669_v60 }
 0x1c6   :  { %v1502_v43 = vsub.f32 0.0, %v1470_v52  ;;  %1671 = vst [vmem:[#allocation2 + $0x18] sm:$0xff] %v1655_v59  ;;  %v9253_v52 = vld [vmem:[%s16142_s1 + $0x1c0] sm:$0xf]  ;;  %v11708_v59 = vld [vmem:[%s16142_s1 + $0x1c4] sm:$0xf0]  ;;  %2994 = vmatpush.bf16.msra.mxu3 %v9370_v57 }
 0x1c7   :  { %v1503_v10 = vsub.f32 0.0, %v1471_v40  ;;  %v13988_v54 = vpop.f32.mrf.mxu2 }
 0x1c8   :  { %v12294_v17 = vpop.eup %12293  ;;  %v1542_v47 = vmul.f32 1.442695, %v1502_v43  ;;  %v13990_v11 = vpop.f32.mrf.mxu3 }
 0x1c9   :  { %v12296_v62 = vpop.eup %12295  ;;  %v1596_v7 = vadd.f32 1.0, %v12294_v17  ;;  %v1544_v3 = vmul.f32 1.442695, %v1503_v10  ;;  %v1347_v38 = vpop.f32.mrf.mxu0 }
 0x1ca   :  { %v12298_v1 = vpop.eup %12297  ;;  %12301 = vpow2.f32 %v1542_v47  ;;  %v1434_v0 = vadd.f32 %v1347_v38, %v13692_v2  ;;  %v1396_v9 = vpop.f32.mrf.mxu1  ;;  %v11732_v2 = vld [vmem:[%s16142_s1 + $0x244] sm:$0xf0] }
 0x1cb   :  { %v12300_v5 = vpop.eup %12299  ;;  %12303 = vrcp.f32 %v1596_v7  ;;  %v1597_v19 = vadd.f32 1.0, %v12298_v1  ;;  %v1435_v55 = vadd.f32 %v1396_v9, %v13697_v26  ;;  %v11622_v26 = vld [vmem:[%s16143_s0 + $0x20] sm:$0xff]  ;;  %v9366_v33 = vor.u32 %v11732_v2, %v9365_v22  ;;  %v9255_v9 = vld [vmem:[%s16142_s1 + $0x1c8] sm:$0xf0] }
 0x1cc   :  { %v1656_v25 = vpack.c.bf16 %v12300_v5, %v12296_v62  ;;  %12305 = vpow2.f32 %v1544_v3  ;;  %v1472_v8 = vadd.f32 %v13878_v37, %v1434_v0  ;;  %v11670_v62 = vld [vmem:[%s16143_s0 + $0xc0] sm:$0xff]  ;;  %v9254_v7 = vor.u32 %v11708_v59, %v9253_v52 }
 0x1cd   :  { %12307 = vrcp.f32 %v1597_v19  ;;  %v1473_v60 = vadd.f32 %v13885_v51, %v1435_v55  ;;  %2945 = vmatpush.bf16.msra.mxu2 %v9366_v33  ;;  %v11707_v3 = vld [vmem:[%s16142_s1 + $0x1c4] sm:$0xf] }
 0x1ce   :  { %1672 = vst [vmem:[#allocation2 + $0x20] sm:$0xff] %v1656_v25  ;;  %v1504_v48 = vsub.f32 0.0, %v1472_v8  ;;  %2655 = vmatpush.bf16.msra.mxu0 %v9254_v7  ;;  %v9258_v25 = vor.u32 %v11707_v3, %v9255_v9  ;;  %v9357_v3 = vld [vmem:[%s16142_s1 + $0x230] sm:$0xf]  ;;  %v9359_v9 = vld [vmem:[%s16142_s1 + $0x238] sm:$0xf0] }
 0x1cf   :  { %v1505_v34 = vsub.f32 0.0, %v1473_v60  ;;  %v14011_v45 = vpop.f32.mrf.mxu2 }
 0x1d0   :  { %v12302_v29 = vpop.eup %12301  ;;  %v1546_v36 = vmul.f32 1.442695, %v1504_v48  ;;  %v14019_v17 = vpop.f32.mrf.mxu3  ;;  %2704 = vmatpush.bf16.msra.mxu1 %v9258_v25 }
 0x1d1   :  { %v12304_v40 = vpop.eup %12303  ;;  %v1598_v43 = vadd.f32 1.0, %v12302_v29  ;;  %v1548_v10 = vmul.f32 1.442695, %v1505_v34  ;;  %v1350_v47 = vpop.f32.mrf.mxu0 }
 0x1d2   :  { %v12306_v38 = vpop.eup %12305  ;;  %12309 = vpow2.f32 %v1546_v36  ;;  %v1436_v1 = vadd.f32 %v1350_v47, %v13713_v28  ;;  %v1399_v0 = vpop.f32.mrf.mxu1 }
 0x1d3   :  { %v12308_v5 = vpop.eup %12307  ;;  %12311 = vrcp.f32 %v1598_v43  ;;  %v1599_v19 = vadd.f32 1.0, %v12306_v38  ;;  %v1437_v55 = vadd.f32 %v1399_v0, %v13715_v4  ;;  %2127 = vmatmul.bf16.gmra.mxu0 %v11622_v26  ;;  %v11729_v0 = vld [vmem:[%s16142_s1 + $0x234] sm:$0xf] }
 0x1d4   :  { %v1657_v8 = vpack.c.bf16 %v12308_v5, %v12304_v40  ;;  %12313 = vpow2.f32 %v1548_v10  ;;  %v1474_v60 = vadd.f32 %v13878_v37, %v1436_v1  ;;  %2176 = vmatmul.bf16.gmra.mxu1 %v11622_v26  ;;  %2385 = vmatmul.bf16.gmra.mxu2 %v11670_v62  ;;  %v9362_v25 = vor.u32 %v11729_v0, %v9359_v9 }
 0x1d5   :  { %12315 = vrcp.f32 %v1599_v19  ;;  %v1475_v28 = vadd.f32 %v13885_v51, %v1437_v55  ;;  %2434 = vmatmul.bf16.gmra.mxu3 %v11670_v62 }
 0x1d6   :  { %1673 = vst [vmem:[#allocation2 + $0x28] sm:$0xff] %v1657_v8  ;;  %v1506_v48 = vsub.f32 0.0, %v1474_v60  ;;  %v9245_v8 = vld [vmem:[%s16142_s1 + $0x1b0] sm:$0xf]  ;;  %v11706_v60 = vld [vmem:[%s16142_s1 + $0x1b4] sm:$0xf0]  ;;  %2995 = vmatpush.bf16.msra.mxu3 %v9362_v25 }
 0x1d7   :  { %v1507_v22 = vsub.f32 0.0, %v1475_v28  ;;  %v14034_v4 = vpop.f32.mrf.mxu2 }
 0x1d8   :  { %v12310_v2 = vpop.eup %12309  ;;  %v1550_v34 = vmul.f32 1.442695, %v1506_v48  ;;  %v14036_v29 = vpop.f32.mrf.mxu3 }
 0x1d9   :  { %v12312_v33 = vpop.eup %12311  ;;  %v1600_v39 = vadd.f32 1.0, %v12310_v2  ;;  %v1552_v31 = vmul.f32 1.442695, %v1507_v22  ;;  %v1352_v36 = vpop.f32.mrf.mxu0 }
 0x1da   :  { %v12314_v57 = vpop.eup %12313  ;;  %12317 = vpow2.f32 %v1550_v34  ;;  %v1438_v26 = vadd.f32 %v1352_v36, %v13734_v56  ;;  %v1401_v52 = vpop.f32.mrf.mxu1  ;;  %v11730_v56 = vld [vmem:[%s16142_s1 + $0x234] sm:$0xf0] }
 0x1db   :  { %v12316_v59 = vpop.eup %12315  ;;  %12319 = vrcp.f32 %v1600_v39  ;;  %v1601_v40 = vadd.f32 1.0, %v12314_v57  ;;  %v1439_v43 = vadd.f32 %v1401_v52, %v13739_v53  ;;  %v11623_v53 = vld [vmem:[%s16143_s0 + $0x28] sm:$0xff]  ;;  %v9358_v1 = vor.u32 %v11730_v56, %v9357_v3  ;;  %v9247_v52 = vld [vmem:[%s16142_s1 + $0x1b8] sm:$0xf0] }
 0x1dc   :  { %v1658_v10 = vpack.c.bf16 %v12316_v59, %v12312_v33  ;;  %12321 = vpow2.f32 %v1552_v31  ;;  %v1476_v47 = vadd.f32 %v13878_v37, %v1438_v26  ;;  %v11671_v33 = vld [vmem:[%s16143_s0 + $0xc8] sm:$0xff]  ;;  %v9246_v39 = vor.u32 %v11706_v60, %v9245_v8  ;;  %v11705_v31 = vld [vmem:[%s16142_s1 + $0x1b4] sm:$0xf] }
 0x1dd   :  { %12323 = vrcp.f32 %v1601_v40  ;;  %v1477_v62 = vadd.f32 %v13885_v51, %v1439_v43  ;;  %2946 = vmatpush.bf16.msra.mxu2 %v9358_v1 }
 0x1de   :  { %1674 = vst [vmem:[#allocation2 + $0x30] sm:$0xff] %v1658_v10  ;;  %v1508_v7 = vsub.f32 0.0, %v1476_v47  ;;  %2656 = vmatpush.bf16.msra.mxu0 %v9246_v39  ;;  %v9250_v10 = vor.u32 %v11705_v31, %v9247_v52  ;;  %v9349_v31 = vld [vmem:[%s16142_s1 + $0x220] sm:$0xf]  ;;  %v9351_v52 = vld [vmem:[%s16142_s1 + $0x228] sm:$0xf0] }
 0x1df   :  { %v1509_v38 = vsub.f32 0.0, %v1477_v62  ;;  %v14057_v55 = vpop.f32.mrf.mxu2 }
 0x1e0   :  { %v12318_v5 = vpop.eup %12317  ;;  %v1554_v19 = vmul.f32 1.442695, %v1508_v7  ;;  %v14065_v2 = vpop.f32.mrf.mxu3  ;;  %2705 = vmatpush.bf16.msra.mxu1 %v9250_v10 }
 0x1e1   :  { %v12320_v28 = vpop.eup %12319  ;;  %v1602_v48 = vadd.f32 1.0, %v12318_v5  ;;  %v1556_v22 = vmul.f32 1.442695, %v1509_v38  ;;  %v1355_v34 = vpop.f32.mrf.mxu0 }
 0x1e2   :  { %v12322_v36 = vpop.eup %12321  ;;  %12325 = vpow2.f32 %v1554_v19  ;;  %v1440_v57 = vadd.f32 %v1355_v34, %v13755_v15  ;;  %v1404_v26 = vpop.f32.mrf.mxu1 }
 0x1e3   :  { %v12324_v59 = vpop.eup %12323  ;;  %12327 = vrcp.f32 %v1602_v48  ;;  %v1603_v40 = vadd.f32 1.0, %v12322_v36  ;;  %v1441_v43 = vadd.f32 %v1404_v26, %v13757_v30  ;;  %2132 = vmatmul.bf16.gmra.mxu0 %v11623_v53  ;;  %v11727_v26 = vld [vmem:[%s16142_s1 + $0x224] sm:$0xf] }
 0x1e4   :  { %v1659_v47 = vpack.c.bf16 %v12324_v59, %v12320_v28  ;;  %12329 = vpow2.f32 %v1556_v22  ;;  %v1478_v62 = vadd.f32 %v13878_v37, %v1440_v57  ;;  %2181 = vmatmul.bf16.gmra.mxu1 %v11623_v53  ;;  %2390 = vmatmul.bf16.gmra.mxu2 %v11671_v33  ;;  %v9354_v10 = vor.u32 %v11727_v26, %v9351_v52 }
 0x1e5   :  { %12331 = vrcp.f32 %v1603_v40  ;;  %v1479_v15 = vadd.f32 %v13885_v51, %v1441_v43  ;;  %2439 = vmatmul.bf16.gmra.mxu3 %v11671_v33 }
 0x1e6   :  { %1675 = vst [vmem:[#allocation2 + $0x38] sm:$0xff] %v1659_v47  ;;  %v1510_v7 = vsub.f32 0.0, %v1478_v62  ;;  %v9237_v47 = vld [vmem:[%s16142_s1 + $0x1a0] sm:$0xf]  ;;  %v11704_v62 = vld [vmem:[%s16142_s1 + $0x1a4] sm:$0xf0]  ;;  %2996 = vmatpush.bf16.msra.mxu3 %v9354_v10 }
 0x1e7   :  { %v1511_v3 = vsub.f32 0.0, %v1479_v15  ;;  %v14080_v30 = vpop.f32.mrf.mxu2 }
 0x1e8   :  { %v12326_v56 = vpop.eup %12325  ;;  %v1558_v38 = vmul.f32 1.442695, %v1510_v7  ;;  %v14082_v5 = vpop.f32.mrf.mxu3 }
 0x1e9   :  { %v12328_v1 = vpop.eup %12327  ;;  %v1604_v0 = vadd.f32 1.0, %v12326_v56  ;;  %v1560_v9 = vmul.f32 1.442695, %v1511_v3  ;;  %v1357_v19 = vpop.f32.mrf.mxu0 }
 0x1ea   :  { %v12330_v25 = vpop.eup %12329  ;;  %12333 = vpow2.f32 %v1558_v38  ;;  %v1442_v53 = vadd.f32 %v1357_v19, %v13776_v44  ;;  %v1406_v8 = vpop.f32.mrf.mxu1  ;;  %v11728_v44 = vld [vmem:[%s16142_s1 + $0x224] sm:$0xf0] }
 0x1eb   :  { %v12332_v60 = vpop.eup %12331  ;;  %12335 = vrcp.f32 %v1604_v0  ;;  %v1605_v28 = vadd.f32 1.0, %v12330_v25  ;;  %v1443_v48 = vadd.f32 %v1406_v8, %v13781_v20  ;;  %v11624_v20 = vld [vmem:[%s16143_s0 + $0x30] sm:$0xff]  ;;  %v9350_v57 = vor.u32 %v11728_v44, %v9349_v31  ;;  %v9239_v8 = vld [vmem:[%s16142_s1 + $0x1a8] sm:$0xf0] }
 0x1ec   :  { %v1660_v22 = vpack.c.bf16 %v12332_v60, %v12328_v1  ;;  %12337 = vpow2.f32 %v1560_v9  ;;  %v1480_v34 = vadd.f32 %v13878_v37, %v1442_v53  ;;  %v11672_v1 = vld [vmem:[%s16143_s0 + $0xd0] sm:$0xff]  ;;  %v9238_v0 = vor.u32 %v11704_v62, %v9237_v47  ;;  %v11703_v9 = vld [vmem:[%s16142_s1 + $0x1a4] sm:$0xf] }
 0x1ed   :  { %12339 = vrcp.f32 %v1605_v28  ;;  %v1481_v33 = vadd.f32 %v13885_v51, %v1443_v48  ;;  %2947 = vmatpush.bf16.msra.mxu2 %v9350_v57 }
 0x1ee   :  { %1676 = vst [vmem:[#allocation2 + $0x40] sm:$0xff] %v1660_v22  ;;  %v1512_v39 = vsub.f32 0.0, %v1480_v34  ;;  %2657 = vmatpush.bf16.msra.mxu0 %v9238_v0  ;;  %v9242_v22 = vor.u32 %v11703_v9, %v9239_v8  ;;  %v9341_v0 = vld [vmem:[%s16142_s1 + $0x210] sm:$0xf]  ;;  %v11725_v9 = vld [vmem:[%s16142_s1 + $0x214] sm:$0xf] }
 0x1ef   :  { %v1513_v36 = vsub.f32 0.0, %v1481_v33  ;;  %v14103_v43 = vpop.f32.mrf.mxu2 }
 0x1f0   :  { %v12334_v59 = vpop.eup %12333  ;;  %v1562_v40 = vmul.f32 1.442695, %v1512_v39  ;;  %v14111_v56 = vpop.f32.mrf.mxu3  ;;  %2706 = vmatpush.bf16.msra.mxu1 %v9242_v22 }
 0x1f1   :  { %v12336_v15 = vpop.eup %12335  ;;  %v1606_v7 = vadd.f32 1.0, %v12334_v59  ;;  %v1564_v3 = vmul.f32 1.442695, %v1513_v36  ;;  %v1360_v38 = vpop.f32.mrf.mxu0 }
 0x1f2   :  { %v12338_v19 = vpop.eup %12337  ;;  %12341 = vpow2.f32 %v1562_v40  ;;  %v1444_v25 = vadd.f32 %v1360_v38, %v13797_v63  ;;  %v1409_v53 = vpop.f32.mrf.mxu1 }
 0x1f3   :  { %v12340_v60 = vpop.eup %12339  ;;  %12343 = vrcp.f32 %v1606_v7  ;;  %v1607_v28 = vadd.f32 1.0, %v12338_v19  ;;  %v1445_v48 = vadd.f32 %v1409_v53, %v13799_v58  ;;  %2137 = vmatmul.bf16.gmra.mxu0 %v11624_v20  ;;  %v9229_v53 = vld [vmem:[%s16142_s1 + $0x190] sm:$0xf] }
 0x1f4   :  { %v1661_v34 = vpack.c.bf16 %v12340_v60, %v12336_v15  ;;  %12345 = vpow2.f32 %v1564_v3  ;;  %v1482_v33 = vadd.f32 %v13878_v37, %v1444_v25  ;;  %2186 = vmatmul.bf16.gmra.mxu1 %v11624_v20  ;;  %2395 = vmatmul.bf16.gmra.mxu2 %v11672_v1  ;;  %v9343_v25 = vld [vmem:[%s16142_s1 + $0x218] sm:$0xf0] }
 0x1f5   :  { %12347 = vrcp.f32 %v1607_v28  ;;  %v1483_v63 = vadd.f32 %v13885_v51, %v1445_v48  ;;  %2444 = vmatmul.bf16.gmra.mxu3 %v11672_v1  ;;  %v9346_v60 = vor.u32 %v11725_v9, %v9343_v25  ;;  %v11702_v28 = vld [vmem:[%s16142_s1 + $0x194] sm:$0xf0]  ;;  %v11701_v48 = vld [vmem:[%s16142_s1 + $0x194] sm:$0xf]  ;;  %v9221_v9 = vld [vmem:[%s16142_s1 + $0x180] sm:$0xf] }
 0x1f6   :  { %1677 = vst [vmem:[#allocation2 + $0x48] sm:$0xff] %v1661_v34  ;;  %v1514_v39 = vsub.f32 0.0, %v1482_v33 }
 0x1f7   :  { %v1515_v31 = vsub.f32 0.0, %v1483_v63  ;;  %v14126_v58 = vpop.f32.mrf.mxu2  ;;  %v11625_v63 = vld [vmem:[%s16143_s0 + $0x38] sm:$0xff]  ;;  %2997 = vmatpush.bf16.msra.mxu3 %v9346_v60 }
 0x1f8   :  { %v12342_v44 = vpop.eup %12341  ;;  %v1566_v36 = vmul.f32 1.442695, %v1514_v39  ;;  %v14128_v59 = vpop.f32.mrf.mxu3  ;;  %v9230_v39 = vor.u32 %v11702_v28, %v9229_v53 }
 0x1f9   :  { %v12344_v57 = vpop.eup %12343  ;;  %v1608_v26 = vadd.f32 1.0, %v12342_v44  ;;  %v1568_v52 = vmul.f32 1.442695, %v1515_v31  ;;  %v1362_v40 = vpop.f32.mrf.mxu0  ;;  %v9231_v31 = vld [vmem:[%s16142_s1 + $0x198] sm:$0xf0] }
 0x1fa   :  { %v12346_v10 = vpop.eup %12345  ;;  %12349 = vpow2.f32 %v1566_v36  ;;  %v1446_v20 = vadd.f32 %v1362_v40, %v13818_v32  ;;  %v1411_v47 = vpop.f32.mrf.mxu1  ;;  %v11726_v32 = vld [vmem:[%s16142_s1 + $0x214] sm:$0xf0]  ;;  %2658 = vmatpush.bf16.msra.mxu0 %v9230_v39 }
 0x1fb   :  { %v12348_v62 = vpop.eup %12347  ;;  %12351 = vrcp.f32 %v1608_v26  ;;  %v1609_v15 = vadd.f32 1.0, %v12346_v10  ;;  %v1447_v7 = vadd.f32 %v1411_v47, %v13823_v50  ;;  %v9342_v19 = vor.u32 %v11726_v32, %v9341_v0  ;;  %v11673_v40 = vld [vmem:[%s16143_s0 + $0xd8] sm:$0xff] }
 0x1fc   :  { %v1662_v3 = vpack.c.bf16 %v12348_v62, %v12344_v57  ;;  %12353 = vpow2.f32 %v1568_v52  ;;  %v1484_v38 = vadd.f32 %v13878_v37, %v1446_v20  ;;  %v9234_v10 = vor.u32 %v11701_v48, %v9231_v31  ;;  %v9333_v20 = vld [vmem:[%s16142_s1 + $0x200] sm:$0xf] }
 0x1fd   :  { %12355 = vrcp.f32 %v1609_v15  ;;  %v1485_v1 = vadd.f32 %v13885_v51, %v1447_v7  ;;  %2948 = vmatpush.bf16.msra.mxu2 %v9342_v19  ;;  %v11724_v7 = vld [vmem:[%s16142_s1 + $0x204] sm:$0xf0] }
 0x1fe   :  { %1678 = vst [vmem:[#allocation2 + $0x50] sm:$0xff] %v1662_v3  ;;  %v1516_v50 = vsub.f32 0.0, %v1484_v38  ;;  %v11723_v3 = vld [vmem:[%s16142_s1 + $0x204] sm:$0xf]  ;;  %v9335_v38 = vld [vmem:[%s16142_s1 + $0x208] sm:$0xf0]  ;;  %2707 = vmatpush.bf16.msra.mxu1 %v9234_v10 }
 0x1ff   :  { %v1517_v8 = vsub.f32 0.0, %v1485_v1  ;;  %v14155_v33 = vpop.f32.mrf.mxu2  ;;  %v9338_v53 = vor.u32 %v11723_v3, %v9335_v38 }
 0x200   :  { %v12350_v22 = vpop.eup %12349  ;;  %v1570_v34 = vmul.f32 1.442695, %v1516_v50  ;;  %v14163_v26 = vpop.f32.mrf.mxu3  ;;  %v11700_v50 = vld [vmem:[%s16142_s1 + $0x184] sm:$0xf0] }
 0x201   :  { %v12352_v44 = vpop.eup %12351  ;;  %v1610_v36 = vadd.f32 1.0, %v12350_v22  ;;  %v1572_v57 = vmul.f32 1.442695, %v1517_v8  ;;  %v1365_v52 = vpop.f32.mrf.mxu0  ;;  %v9223_v8 = vld [vmem:[%s16142_s1 + $0x188] sm:$0xf0]  ;;  %v9222_v28 = vor.u32 %v11700_v50, %v9221_v9  ;;  %2998 = vmatpush.bf16.msra.mxu3 %v9338_v53 }
 0x202   :  { %v12354_v47 = vpop.eup %12353  ;;  %12357 = vpow2.f32 %v1570_v34  ;;  %v1448_v62 = vadd.f32 %v1365_v52, %v13827_v13  ;;  %v1414_v15 = vpop.f32.mrf.mxu1  ;;  %v9334_v13 = vor.u32 %v11724_v7, %v9333_v20 }
 0x203   :  { %v12356_v1 = vpop.eup %12355  ;;  %12359 = vrcp.f32 %v1610_v36  ;;  %v1611_v0 = vadd.f32 1.0, %v12354_v47  ;;  %v1449_v32 = vadd.f32 %v1414_v15, %v13829_v49  ;;  %2142 = vmatmul.bf16.gmra.mxu0 %v11625_v63  ;;  %v11699_v49 = vld [vmem:[%s16142_s1 + $0x184] sm:$0xf] }
 0x204   :  { %v1663_v19 = vpack.c.bf16 %v12356_v1, %v12352_v44  ;;  %12361 = vpow2.f32 %v1572_v57  ;;  %v1486_v25 = vadd.f32 %v13878_v37, %v1448_v62  ;;  %2191 = vmatmul.bf16.gmra.mxu1 %v11625_v63  ;;  %2400 = vmatmul.bf16.gmra.mxu2 %v11673_v40  ;;  %v9226_v48 = vor.u32 %v11699_v49, %v9223_v8  ;;  %v11674_v8 = vld [vmem:[%s16143_s0 + $0xe0] sm:$0xff] }
 0x205   :  { %12363 = vrcp.f32 %v1611_v0  ;;  %v1487_v60 = vadd.f32 %v13885_v51, %v1449_v32  ;;  %2449 = vmatmul.bf16.gmra.mxu3 %v11673_v40  ;;  %2949 = vmatpush.bf16.msra.mxu2 %v9334_v13 }
 0x206   :  { %1679 = vst [vmem:[#allocation2 + $0x58] sm:$0xff] %v1663_v19  ;;  %v1518_v22 = vsub.f32 0.0, %v1486_v25  ;;  %2659 = vmatpush.bf16.msra.mxu0 %v9222_v28  ;;  %2708 = vmatpush.bf16.msra.mxu1 %v9226_v48 }
 0x207   :  { %v1519_v34 = vsub.f32 0.0, %v1487_v60  ;;  %v14196_v44 = vpop.f32.mrf.mxu2 }
 0x208   :  { %v12358_v39 = vpop.eup %12357  ;;  %v1574_v31 = vmul.f32 1.442695, %v1518_v22  ;;  %v14198_v10 = vpop.f32.mrf.mxu3 }
 0x209   :  { %v12360_v36 = vpop.eup %12359  ;;  %v1612_v57 = vadd.f32 1.0, %v12358_v39  ;;  %v1576_v52 = vmul.f32 1.442695, %v1519_v34  ;;  %v1367_v63 = vpop.f32.mrf.mxu0 }
 0x20a   :  { %v12362_v20 = vpop.eup %12361  ;;  %12365 = vpow2.f32 %v1574_v31  ;;  %v1450_v47 = vadd.f32 %v1367_v63, %v13836_v24  ;;  %v1416_v40 = vpop.f32.mrf.mxu1  ;;  %v11626_v24 = vld [vmem:[%s16143_s0 + $0x40] sm:$0xff] }
 0x20b   :  { %v12364_v62 = vpop.eup %12363  ;;  %12367 = vrcp.f32 %v1612_v57  ;;  %v1613_v15 = vadd.f32 1.0, %v12362_v20  ;;  %v1451_v7 = vadd.f32 %v1416_v40, %v13841_v61 }
 0x20c   :  { %v1664_v3 = vpack.c.bf16 %v12364_v62, %v12360_v36  ;;  %12369 = vpow2.f32 %v1576_v52  ;;  %v1488_v38 = vadd.f32 %v13878_v37, %v1450_v47 }
 0x20d   :  { %12371 = vrcp.f32 %v1613_v15  ;;  %v1489_v1 = vadd.f32 %v13885_v51, %v1451_v7 }
 0x20e   :  { %1680 = vst [vmem:[#allocation2 + $0x60] sm:$0xff] %v1664_v3  ;;  %v1520_v0 = vsub.f32 0.0, %v1488_v38 }
 0x20f   :  { %v1521_v32 = vsub.f32 0.0, %v1489_v1  ;;  %v14204_v50 = vpop.f32.mrf.mxu2 }
 0x210   :  { %v12366_v13 = vpop.eup %12365  ;;  %v1578_v9 = vmul.f32 1.442695, %v1520_v0  ;;  %v14209_v53 = vpop.f32.mrf.mxu3 }
 0x211   :  { %v12368_v19 = vpop.eup %12367  ;;  %v1614_v61 = vadd.f32 1.0, %v12366_v13  ;;  %v1580_v25 = vmul.f32 1.442695, %v1521_v32  ;;  %v1370_v49 = vpop.f32.mrf.mxu0 }
 0x212   :  { %v12370_v60 = vpop.eup %12369  ;;  %12373 = vpow2.f32 %v1578_v9  ;;  %v1452_v28 = vadd.f32 %v1370_v49, %v13845_v35  ;;  %v1419_v48 = vpop.f32.mrf.mxu1 }
 0x213   :  { %v12372_v22 = vpop.eup %12371  ;;  %12375 = vrcp.f32 %v1614_v61  ;;  %v1615_v34 = vadd.f32 1.0, %v12370_v60  ;;  %v1453_v39 = vadd.f32 %v1419_v48, %v13847_v14  ;;  %2147 = vmatmul.bf16.gmra.mxu0 %v11626_v24 }
 0x214   :  { %v1665_v31 = vpack.c.bf16 %v12372_v22, %v12368_v19  ;;  %12377 = vpow2.f32 %v1580_v25  ;;  %v1490_v36 = vadd.f32 %v13878_v37, %v1452_v28  ;;  %2196 = vmatmul.bf16.gmra.mxu1 %v11626_v24  ;;  %2405 = vmatmul.bf16.gmra.mxu2 %v11674_v8 }
 0x215   :  { %12379 = vrcp.f32 %v1615_v34  ;;  %v1491_v57 = vadd.f32 %v13885_v51, %v1453_v39  ;;  %2454 = vmatmul.bf16.gmra.mxu3 %v11674_v8 }
 0x216   :  { %1681 = vst [vmem:[#allocation2 + $0x68] sm:$0xff] %v1665_v31  ;;  %v1522_v52 = vsub.f32 0.0, %v1490_v36 }
 0x217   :  { %v1523_v35 = vsub.f32 0.0, %v1491_v57  ;;  %v14218_v47 = vpop.f32.mrf.mxu2 }
 0x218   :  { %v12374_v63 = vpop.eup %12373  ;;  %v1582_v20 = vmul.f32 1.442695, %v1522_v52  ;;  %v14220_v15 = vpop.f32.mrf.mxu3  ;;  %v11794_v52 = vld [vmem:[%s16145_s3 + $0xb8] sm:$0xff] }
 0x219   :  { %v12376_v40 = vpop.eup %12375  ;;  %v1616_v14 = vadd.f32 1.0, %v12374_v63  ;;  %v1584_v62 = vmul.f32 1.442695, %v1523_v35  ;;  %v1372_v7 = vpop.f32.mrf.mxu0  ;;  %v11802_v35 = vld [vmem:[%s16145_s3 + $0xf8] sm:$0xff]  ;;  %3575 = vmatpush.bf16.msrb.mxu0 %v11794_v52 }
 0x21a   :  { %v12378_v3 = vpop.eup %12377  ;;  %12381 = vpow2.f32 %v1582_v20  ;;  %v1454_v38 = vadd.f32 %v1372_v7, %v13883_v16  ;;  %v1421_v1 = vpop.f32.mrf.mxu1  ;;  %v11691_v16 = vld [vmem:[%s16143_s0 + $0xf8] sm:$0xff]  ;;  %3624 = vmatpush.bf16.msrb.mxu1 %v11802_v35 }
 0x21b   :  { %v12380_v0 = vpop.eup %12379  ;;  %12383 = vrcp.f32 %v1616_v14  ;;  %v1617_v32 = vadd.f32 1.0, %v12378_v3  ;;  %v1455_v13 = vadd.f32 %v1421_v1, %v13890_v46 }
 0x21c   :  { %v1666_v9 = vpack.c.bf16 %v12380_v0, %v12376_v40  ;;  %12385 = vpow2.f32 %v1584_v62  ;;  %v1492_v24 = vadd.f32 %v13878_v37, %v1454_v38 }
 0x21d   :  { %12387 = vrcp.f32 %v1617_v32  ;;  %v1493_v19 = vadd.f32 %v13885_v51, %v1455_v13  ;;  %v11715_v51 = vld [vmem:[%s16143_s0 + $0x10] sm:$0xff] }
 0x21e   :  { %1682 = vst [vmem:[#allocation2 + $0x70] sm:$0xff] %v1666_v9  ;;  %v1524_v61 = vsub.f32 0.0, %v1492_v24 }
 0x21f   :  { %v1525_v25 = vsub.f32 0.0, %v1493_v19  ;;  %v14226_v60 = vpop.f32.mrf.mxu2 }
 0x220   :  { %v12382_v49 = vpop.eup %12381  ;;  %v1586_v8 = vmul.f32 1.442695, %v1524_v61  ;;  %v14231_v22 = vpop.f32.mrf.mxu3 }
 0x221   :  { %v12384_v28 = vpop.eup %12383  ;;  %v1618_v46 = vadd.f32 1.0, %v12382_v49  ;;  %v1588_v48 = vmul.f32 1.442695, %v1525_v25  ;;  %v2113_v37 = vpop.f32.mrf.mxu0  ;;  %v11692_v25 = vld [vmem:[%s16143_s0 + $0x100] sm:$0xff] }
 0x222   :  { %v12386_v34 = vpop.eup %12385  ;;  %12389 = vpow2.f32 %v1586_v8  ;;  %v2162_v39 = vpop.f32.mrf.mxu1  ;;  %v2114_v63 = vadd.f32 %v2113_v37, %v13896_v12 }
 0x223   :  { %v12388_v31 = vpop.eup %12387  ;;  %12391 = vrcp.f32 %v1618_v46  ;;  %v1619_v36 = vadd.f32 1.0, %v12386_v34  ;;  %2660 = vmatmul.bf16.vlgmr.msra.gmra.mxu0 %v11691_v16  ;;  %v2163_v40 = vadd.f32 %v2162_v39, %v13898_v21  ;;  %v11716_v46 = vld [vmem:[%s16143_s0 + $0x18] sm:$0xff]  ;;  %v11801_v34 = vld [vmem:[%s16145_s3 + $0xf0] sm:$0xff] }
 0x224   :  { %v1667_v57 = vpack.c.bf16 %v12388_v31, %v12384_v28  ;;  %12393 = vpow2.f32 %v1588_v48  ;;  %2709 = vmatmul.bf16.vlgmr.msra.gmra.mxu1 %v11691_v16  ;;  %2950 = vmatmul.bf16.vlgmr.msra.gmra.mxu2 %v11715_v51 }
 0x225   :  { %12395 = vrcp.f32 %v1619_v36  ;;  %2999 = vmatmul.bf16.vlgmr.msra.gmra.mxu3 %v11715_v51  ;;  %3625 = vmatpush.bf16.msrb.mxu1 %v11801_v34 }
 0x226   :  { %1683 = vst [vmem:[#allocation2 + $0x78] sm:$0xff] %v1667_v57 }
 0x227   :  { %v2371_v14 = vpop.f32.mrf.mxu2 }
 0x228   :  { %v12390_v20 = vpop.eup %12389  ;;  %v14244_v3 = vadd.f32 %v2371_v14, %v2114_v63  ;;  %v2420_v38 = vpop.f32.mrf.mxu3 }
 0x229   :  { %v12392_v62 = vpop.eup %12391  ;;  %v1620_v7 = vadd.f32 1.0, %v12390_v20  ;;  %v2115_v1 = vpop.f32.mrf.mxu0  ;;  %v14246_v32 = vadd.f32 %v2420_v38, %v2163_v40 }
 0x22a   :  { %v12394_v0 = vpop.eup %12393  ;;  %v2164_v13 = vpop.f32.mrf.mxu1  ;;  %v2116_v21 = vadd.f32 %v2115_v1, %v13919_v42  ;;  %v11717_v1 = vld [vmem:[%s16143_s0 + $0x20] sm:$0xff] }
 0x22b   :  { %v12396_v9 = vpop.eup %12395  ;;  %12397 = vrcp.f32 %v1620_v7  ;;  %v1621_v24 = vadd.f32 1.0, %v12394_v0  ;;  %v2165_v19 = vadd.f32 %v2164_v13, %v13927_v6  ;;  %v11793_v6 = vld [vmem:[%s16145_s3 + $0xb0] sm:$0xff] }
 0x22c   :  { %v1668_v12 = vpack.c.bf16 %v12396_v9, %v12392_v62  ;;  %3576 = vmatpush.bf16.msrb.mxu0 %v11793_v6 }
 0x22d   :  { %12399 = vrcp.f32 %v1621_v24 }
 0x22e   :  { %1684 = vst [vmem:[#allocation2 + $0x80] sm:$0xff] %v1668_v12 }
 0x22f   :  { %v2373_v61 = vpop.f32.mrf.mxu2 }
 0x230   :  { %v14253_v8 = vadd.f32 %v2373_v61, %v2116_v21  ;;  %v2422_v16 = vpop.f32.mrf.mxu3 }
 0x231   :  { %v12398_v49 = vpop.eup %12397  ;;  %v2118_v28 = vpop.f32.mrf.mxu0  ;;  %v14258_v48 = vadd.f32 %v2422_v16, %v2165_v19 }
 0x232   :  { %v2167_v37 = vpop.f32.mrf.mxu1  ;;  %v2119_v39 = vadd.f32 %v2118_v28, %v13942_v41  ;;  %v11693_v41 = vld [vmem:[%s16143_s0 + $0x108] sm:$0xff] }
 0x233   :  { %v12400_v42 = vpop.eup %12399  ;;  %2665 = vmatmul.bf16.gmra.mxu0 %v11692_v25  ;;  %v2168_v31 = vadd.f32 %v2167_v37, %v13944_v27 }
 0x234   :  { %v1669_v51 = vpack.c.bf16 %v12400_v42, %v12398_v49  ;;  %2714 = vmatmul.bf16.gmra.mxu1 %v11692_v25  ;;  %2955 = vmatmul.bf16.gmra.mxu2 %v11716_v46 }
 0x235   :  { %3004 = vmatmul.bf16.gmra.mxu3 %v11716_v46 }
 0x236   :  { %1685 = vst [vmem:[#allocation2 + $0x88] sm:$0xff] %v1669_v51  ;;  %v11718_v51 = vld [vmem:[%s16143_s0 + $0x28] sm:$0xff] }
 0x237   :  { %v2376_v36 = vpop.f32.mrf.mxu2 }
 0x238   :  { %v14268_v57 = vadd.f32 %v2376_v36, %v2119_v39  ;;  %v2425_v52 = vpop.f32.mrf.mxu3 }
 0x239   :  { %v2120_v35 = vpop.f32.mrf.mxu0  ;;  %v14270_v63 = vadd.f32 %v2425_v52, %v2168_v31 }
 0x23a   :  { %v2169_v20 = vpop.f32.mrf.mxu1  ;;  %v2121_v40 = vadd.f32 %v2120_v35, %v13965_v18  ;;  %v11792_v18 = vld [vmem:[%s16145_s3 + $0xa8] sm:$0xff] }
 0x23b   :  { %v2170_v14 = vadd.f32 %v2169_v20, %v13973_v23  ;;  %v11800_v23 = vld [vmem:[%s16145_s3 + $0xe8] sm:$0xff]  ;;  %3577 = vmatpush.bf16.msrb.mxu0 %v11792_v18 }
 0x23c   :  { %3626 = vmatpush.bf16.msrb.mxu1 %v11800_v23 }
 0x23f   :  { %v2378_v62 = vpop.f32.mrf.mxu2 }
 0x240   :  { %v14277_v27 = vadd.f32 %v2378_v62, %v2121_v40  ;;  %v2427_v7 = vpop.f32.mrf.mxu3 }
 0x241   :  { %v2123_v38 = vpop.f32.mrf.mxu0  ;;  %v14282_v0 = vadd.f32 %v2427_v7, %v2170_v14 }
 0x242   :  { %v2172_v13 = vpop.f32.mrf.mxu1  ;;  %v2124_v9 = vadd.f32 %v2123_v38, %v13988_v54  ;;  %v11694_v54 = vld [vmem:[%s16143_s0 + $0x110] sm:$0xff] }
 0x243   :  { %2670 = vmatmul.bf16.gmra.mxu0 %v11693_v41  ;;  %v2173_v24 = vadd.f32 %v2172_v13, %v13990_v11  ;;  %v11719_v13 = vld [vmem:[%s16143_s0 + $0x30] sm:$0xff] }
 0x244   :  { %2719 = vmatmul.bf16.gmra.mxu1 %v11693_v41  ;;  %2960 = vmatmul.bf16.gmra.mxu2 %v11717_v1 }
 0x245   :  { %3009 = vmatmul.bf16.gmra.mxu3 %v11717_v1 }
 0x247   :  { %v2381_v12 = vpop.f32.mrf.mxu2 }
 0x248   :  { %v14292_v21 = vadd.f32 %v2381_v12, %v2124_v9  ;;  %v2430_v19 = vpop.f32.mrf.mxu3  ;;  %v11762_v9 = vld [vmem:[%s16145_s3 + $0x38] sm:$0xff] }
 0x249   :  { %v2125_v61 = vpop.f32.mrf.mxu0  ;;  %v14294_v25 = vadd.f32 %v2430_v19, %v2173_v24  ;;  %v11770_v12 = vld [vmem:[%s16145_s3 + $0x78] sm:$0xff]  ;;  %3849 = vmatpush.bf16.msrb.mxu2 %v11762_v9 }
 0x24a   :  { %v2174_v49 = vpop.f32.mrf.mxu1  ;;  %v2126_v16 = vadd.f32 %v2125_v61, %v14011_v45  ;;  %v11791_v45 = vld [vmem:[%s16145_s3 + $0xa0] sm:$0xff]  ;;  %3898 = vmatpush.bf16.msrb.mxu3 %v11770_v12  ;;  %v12722_v12 = vmov 0  }
 0x24b   :  { %v2175_v28 = vadd.f32 %v2174_v49, %v14019_v17  ;;  %v11799_v17 = vld [vmem:[%s16145_s3 + $0xe0] sm:$0xff]  ;;  %3578 = vmatpush.bf16.msrb.mxu0 %v11791_v45  ;;  %39 = vst [vmem:[#allocation2] sm:$0xff] %v12722_v12 }
 0x24c   :  { %3627 = vmatpush.bf16.msrb.mxu1 %v11799_v17  ;;  %v11696_v17 = vld [vmem:[%s16143_s0 + $0x120] sm:$0xff]  ;;  %40 = vst [vmem:[#allocation2 + $0x8] sm:$0xff] %v12722_v12 }
 0x24d   :  { %41 = vst [vmem:[#allocation2 + $0x90] sm:$0xff] %v12722_v12 }
 0x24e   :  { %42 = vst [vmem:[#allocation2 + $0x98] sm:$0xff] %v12722_v12 }
 0x24f   :  { %v2383_v46 = vpop.f32.mrf.mxu2  ;;  %43 = vst [vmem:[#allocation3] sm:$0xff] %v12722_v12 }
 0x250   :  { %v14301_v11 = vadd.f32 %v2383_v46, %v2126_v16  ;;  %v2432_v37 = vpop.f32.mrf.mxu3  ;;  %44 = vst [vmem:[#allocation3 + $0x8] sm:$0xff] %v12722_v12 }
 0x251   :  { %v2128_v42 = vpop.f32.mrf.mxu0  ;;  %v14306_v6 = vadd.f32 %v2432_v37, %v2175_v28  ;;  %v11760_v37 = vld [vmem:[%s16145_s3 + $0x28] sm:$0xff]  ;;  %47 = vst [vmem:[#allocation4] sm:$0xf] %v12722_v12 }
 0x252   :  { %v2177_v34 = vpop.f32.mrf.mxu1  ;;  %v2129_v39 = vadd.f32 %v2128_v42, %v14034_v4  ;;  %v11695_v4 = vld [vmem:[%s16143_s0 + $0x118] sm:$0xff]  ;;  %v11768_v42 = vld [vmem:[%s16145_s3 + $0x68] sm:$0xff]  ;;  %48 = vst [vmem:[#allocation4 + $0x4] sm:$0xf] %v12722_v12 }
 0x253   :  { %2675 = vmatmul.bf16.gmra.mxu0 %v11694_v54  ;;  %v2178_v31 = vadd.f32 %v2177_v34, %v14036_v29  ;;  %49 = vst [vmem:[#allocation4 + $0x8] sm:$0xf] %v12722_v12 }
 0x254   :  { %2724 = vmatmul.bf16.gmra.mxu1 %v11694_v54  ;;  %2965 = vmatmul.bf16.gmra.mxu2 %v11718_v51  ;;  %50 = vst [vmem:[#allocation4 + $0xc] sm:$0xf] %v12722_v12 }
 0x255   :  { %3014 = vmatmul.bf16.gmra.mxu3 %v11718_v51  ;;  %51 = vst [vmem:[#allocation4 + $0x50] sm:$0xf] %v12722_v12 }
 0x256   :  { %52 = vst [vmem:[#allocation4 + $0x54] sm:$0xf] %v12722_v12 }
 0x257   :  { %v2386_v36 = vpop.f32.mrf.mxu2  ;;  %53 = vst [vmem:[#allocation4 + $0x58] sm:$0xf] %v12722_v12 }
 0x258   :  { %v14316_v52 = vadd.f32 %v2386_v36, %v2129_v39  ;;  %v2435_v35 = vpop.f32.mrf.mxu3  ;;  %54 = vst [vmem:[#allocation4 + $0x5c] sm:$0xf] %v12722_v12 }
 0x259   :  { %v2130_v20 = vpop.f32.mrf.mxu0  ;;  %v14318_v40 = vadd.f32 %v2435_v35, %v2178_v31  ;;  %v11720_v35 = vld [vmem:[%s16143_s0 + $0x38] sm:$0xff]  ;;  %55 = vst [vmem:[#allocation5] sm:$0xf] %v12722_v12 }
 0x25a   :  { %v2179_v14 = vpop.f32.mrf.mxu1  ;;  %v2131_v62 = vadd.f32 %v2130_v20, %v14057_v55  ;;  %v11790_v55 = vld [vmem:[%s16145_s3 + $0x98] sm:$0xff]  ;;  %56 = vst [vmem:[#allocation5 + $0x4] sm:$0xf] %v12722_v12 }
 0x25b   :  { %v2180_v41 = vadd.f32 %v2179_v14, %v14065_v2  ;;  %v11798_v2 = vld [vmem:[%s16145_s3 + $0xd8] sm:$0xff]  ;;  %3579 = vmatpush.bf16.msrb.mxu0 %v11790_v55  ;;  %v11767_v14 = vld [vmem:[%s16145_s3 + $0x60] sm:$0xff]  ;;  %57 = vst [vmem:[#allocation5 + $0x8] sm:$0xf] %v12722_v12 }
 0x25c   :  { %3628 = vmatpush.bf16.msrb.mxu1 %v11798_v2  ;;  %58 = vst [vmem:[#allocation5 + $0xc] sm:$0xf] %v12722_v12 }
 0x25d   :  { %59 = vst [vmem:[#allocation5 + $0x50] sm:$0xf] %v12722_v12 }
 0x25e   :  { %60 = vst [vmem:[#allocation5 + $0x54] sm:$0xf] %v12722_v12 }
 0x25f   :  { %v2388_v7 = vpop.f32.mrf.mxu2  ;;  %61 = vst [vmem:[#allocation5 + $0x58] sm:$0xf] %v12722_v12 }
 0x260   :  { %v14325_v29 = vadd.f32 %v2388_v7, %v2131_v62  ;;  %v2437_v38 = vpop.f32.mrf.mxu3  ;;  %v11789_v62 = vld [vmem:[%s16145_s3 + $0x90] sm:$0xff]  ;;  %v11758_v7 = vld [vmem:[%s16145_s3 + $0x18] sm:$0xff]  ;;  %62 = vst [vmem:[#allocation5 + $0x5c] sm:$0xf] %v12722_v12  ;;  %v11787_v12 = vld [vmem:[%s16145_s3 + $0x80] sm:$0xff] }
 0x261   :  { %v2133_v1 = vpop.f32.mrf.mxu0  ;;  %v14330_v18 = vadd.f32 %v2437_v38, %v2180_v41  ;;  %v11797_v41 = vld [vmem:[%s16145_s3 + $0xd0] sm:$0xff]  ;;  %v11766_v38 = vld [vmem:[%s16145_s3 + $0x58] sm:$0xff]  ;;  %3580 = vmatpush.bf16.msrb.mxu0 %v11789_v62 }
 0x262   :  { %v2182_v23 = vpop.f32.mrf.mxu1  ;;  %v2134_v24 = vadd.f32 %v2133_v1, %v14080_v30  ;;  %v11761_v30 = vld [vmem:[%s16145_s3 + $0x30] sm:$0xff]  ;;  %3629 = vmatpush.bf16.msrb.mxu1 %v11797_v41 }
 0x263   :  { %2680 = vmatmul.bf16.gmra.mxu0 %v11695_v4  ;;  %v2183_v19 = vadd.f32 %v2182_v23, %v14082_v5  ;;  %v11769_v5 = vld [vmem:[%s16145_s3 + $0x70] sm:$0xff]  ;;  %3850 = vmatpush.bf16.msrb.mxu2 %v11761_v30 }
 0x264   :  { %2729 = vmatmul.bf16.gmra.mxu1 %v11695_v4  ;;  %2970 = vmatmul.bf16.gmra.mxu2 %v11719_v13 }
 0x265   :  { %3019 = vmatmul.bf16.gmra.mxu3 %v11719_v13 }
 0x266   :  { %3899 = vmatpush.bf16.msrb.mxu3 %v11769_v5  ;;  %v11721_v5 = vld [vmem:[%s16143_s0 + $0x40] sm:$0xff] }
 0x267   :  { %v2391_v61 = vpop.f32.mrf.mxu2  ;;  %3851 = vmatpush.bf16.msrb.mxu2 %v11760_v37 }
 0x268   :  { %v14346_v49 = vadd.f32 %v2391_v61, %v2134_v24  ;;  %v2440_v16 = vpop.f32.mrf.mxu3  ;;  %v11764_v61 = vld [vmem:[%s16145_s3 + $0x48] sm:$0xff] }
 0x269   :  { %v2135_v28 = vpop.f32.mrf.mxu0  ;;  %v14348_v46 = vadd.f32 %v2440_v16, %v2183_v19  ;;  %v11756_v19 = vld [vmem:[%s16145_s3 + $0x8] sm:$0xff] }
 0x26a   :  { %v2184_v54 = vpop.f32.mrf.mxu1  ;;  %v2136_v51 = vadd.f32 %v2135_v28, %v14103_v43  ;;  %3900 = vmatpush.bf16.msrb.mxu3 %v11768_v42  ;;  %v11697_v28 = vld [vmem:[%s16143_s0 + $0x128] sm:$0xff]  ;;  %v11755_v42 = vld [vmem:[%s16145_s3] sm:$0xff] }
 0x26b   :  { %v2185_v34 = vadd.f32 %v2184_v54, %v14111_v56  ;;  %v11759_v56 = vld [vmem:[%s16145_s3 + $0x20] sm:$0xff] }
 0x26c   :  { %3852 = vmatpush.bf16.msrb.mxu2 %v11759_v56 }
 0x26e   :  { %3901 = vmatpush.bf16.msrb.mxu3 %v11767_v14 }
 0x26f   :  { %v2393_v45 = vpop.f32.mrf.mxu2 }
 0x270   :  { %v14367_v39 = vadd.f32 %v2393_v45, %v2136_v51  ;;  %v2442_v31 = vpop.f32.mrf.mxu3  ;;  %3853 = vmatpush.bf16.msrb.mxu2 %v11758_v7  ;;  %v11763_v51 = vld [vmem:[%s16145_s3 + $0x40] sm:$0xff]  ;;  %v11796_v45 = vld [vmem:[%s16145_s3 + $0xc8] sm:$0xff] }
 0x271   :  { %v2138_v36 = vpop.f32.mrf.mxu0  ;;  %v14372_v20 = vadd.f32 %v2442_v31, %v2185_v34  ;;  %v11788_v34 = vld [vmem:[%s16145_s3 + $0x88] sm:$0xff]  ;;  %3630 = vmatpush.bf16.msrb.mxu1 %v11796_v45 }
 0x272   :  { %v2187_v43 = vpop.f32.mrf.mxu1  ;;  %v2139_v4 = vadd.f32 %v2138_v36, %v14126_v58  ;;  %v11757_v58 = vld [vmem:[%s16145_s3 + $0x10] sm:$0xff]  ;;  %3902 = vmatpush.bf16.msrb.mxu3 %v11766_v38  ;;  %3581 = vmatpush.bf16.msrb.mxu0 %v11788_v34 }
 0x273   :  { %2685 = vmatmul.bf16.gmra.mxu0 %v11696_v17  ;;  %v2188_v1 = vadd.f32 %v2187_v43, %v14128_v59  ;;  %v11765_v59 = vld [vmem:[%s16145_s3 + $0x50] sm:$0xff] }
 0x274   :  { %2734 = vmatmul.bf16.gmra.mxu1 %v11696_v17  ;;  %2975 = vmatmul.bf16.gmra.mxu2 %v11720_v35 }
 0x275   :  { %3024 = vmatmul.bf16.gmra.mxu3 %v11720_v35  ;;  %3854 = vmatpush.bf16.msrb.mxu2 %v11757_v58 }
 0x276   :  { %3903 = vmatpush.bf16.msrb.mxu3 %v11765_v59  ;;  %3582 = vmatpush.bf16.msrb.mxu0 %v11787_v12 }
 0x277   :  { %v2396_v13 = vpop.f32.mrf.mxu2 }
 0x278   :  { %v14394_v23 = vadd.f32 %v2396_v13, %v2139_v4  ;;  %v2445_v55 = vpop.f32.mrf.mxu3  ;;  %v11722_v4 = vld [vmem:[%s16143_s0 + $0x48] sm:$0xff] }
 0x279   :  { %v14396_v2 = vpop.f32.mrf.mxu0  ;;  %v14398_v9 = vadd.f32 %v2445_v55, %v2188_v1  ;;  %3855 = vmatpush.bf16.msrb.mxu2 %v11756_v19 }
 0x27a   :  { %v14400_v24 = vpop.f32.mrf.mxu1  ;;  %3904 = vmatpush.bf16.msrb.mxu3 %v11764_v61 }
 0x27d   :  { %3856 = vmatpush.bf16.msrb.mxu2 %v11755_v42 }
 0x27e   :  { %3905 = vmatpush.bf16.msrb.mxu3 %v11763_v51 }
 0x27f   :  { %v14414_v16 = vpop.f32.mrf.mxu2 }
 0x280   :  { %v14419_v54 = vpop.f32.mrf.mxu3 }
 0x281   :  { %v2143_v30 = vpop.f32.mrf.mxu0 }
 0x282   :  { %v2192_v37 = vpop.f32.mrf.mxu1  ;;  %v2144_v17 = vadd.f32 %v2143_v30, %v14196_v44  ;;  %v11740_v30 = vld [vmem:[#allocation2 + $0x4] sm:$0xf0] }
 0x283   :  { %2690 = vmatmul.bf16.gmra.mxu0 %v11697_v28  ;;  %v2193_v31 = vadd.f32 %v2192_v37, %v14198_v10  ;;  %v11698_v10 = vld [vmem:[%s16143_s0 + $0x130] sm:$0xff]  ;;  %v9559_v37 = vld [vmem:[#allocation2 + $0x8] sm:$0xf0] }
 0x284   :  { %2739 = vmatmul.bf16.gmra.mxu1 %v11697_v28  ;;  %2980 = vmatmul.bf16.gmra.mxu2 %v11721_v5 }
 0x285   :  { %3029 = vmatmul.bf16.gmra.mxu3 %v11721_v5  ;;  %v11739_v5 = vld [vmem:[#allocation2 + $0x4] sm:$0xf] }
 0x287   :  { %v2401_v36 = vpop.f32.mrf.mxu2 }
 0x288   :  { %v14438_v35 = vadd.f32 %v2401_v36, %v2144_v17  ;;  %v2450_v43 = vpop.f32.mrf.mxu3  ;;  %v9429_v36 = vld [vmem:[#allocation3] sm:$0xf] }
 0x289   :  { %v14440_v56 = vpop.f32.mrf.mxu0  ;;  %v14442_v14 = vadd.f32 %v2450_v43, %v2193_v31  ;;  %v9562_v31 = vor.u32 %v11739_v5, %v9559_v37  ;;  %v11772_v43 = vld [vmem:[#allocation3 + $0x4] sm:$0xf0] }
 0x28a   :  { %v14444_v62 = vpop.f32.mrf.mxu1 }
 0x28f   :  { %v14446_v44 = vpop.f32.mrf.mxu2 }
 0x290   :  { %v14451_v41 = vpop.f32.mrf.mxu3 }
 0x291   :  { %v2148_v7 = vpop.f32.mrf.mxu0 }
 0x292   :  { %v2197_v38 = vpop.f32.mrf.mxu1  ;;  %v2149_v1 = vadd.f32 %v2148_v7, %v14218_v47  ;;  %v11795_v47 = vld [vmem:[%s16145_s3 + $0xc0] sm:$0xff]  ;;  %v9430_v7 = vor.u32 %v11772_v43, %v9429_v36 }
 0x293   :  { %2695 = vmatmul.bf16.gmra.mxu0 %v11698_v10  ;;  %v2198_v13 = vadd.f32 %v2197_v38, %v14220_v15  ;;  %3631 = vmatpush.bf16.msrb.mxu1 %v11795_v47  ;;  %v9557_v15 = vld [vmem:[#allocation2] sm:$0xf] }
 0x294   :  { %2744 = vmatmul.bf16.gmra.mxu1 %v11698_v10  ;;  %2985 = vmatmul.bf16.gmra.mxu2 %v11722_v4  ;;  %v9558_v45 = vor.u32 %v11740_v30, %v9557_v15  ;;  %v11771_v10 = vld [vmem:[#allocation3 + $0x4] sm:$0xf]  ;;  %v3072_v38 = vld [vmem:[%s16144_s2] sm:$0x3] }
 0x295   :  { %3034 = vmatmul.bf16.gmra.mxu3 %v11722_v4  ;;  %v9431_v4 = vld [vmem:[#allocation3 + $0x8] sm:$0xf0]  ;;  %v14483_v47 = vperm.slane %v3072_v38, 1 }
 0x297   :  { %v2406_v55 = vpop.f32.mrf.mxu2 }
 0x298   :  { %v14458_v58 = vadd.f32 %v2406_v55, %v2149_v1  ;;  %v2455_v59 = vpop.f32.mrf.mxu3  ;;  %v9434_v1 = vor.u32 %v11771_v10, %v9431_v4  ;;  %v14480_v55 = vperm.slane %v3072_v38, 0  ;;  %v11742_v4 = vld [vmem:[#allocation2 + $0x14] sm:$0xf0] }
 0x299   :  { %v14460_v19 = vpop.f32.mrf.mxu0  ;;  %v14462_v61 = vadd.f32 %v2455_v59, %v2198_v13 }
 0x29a   :  { %v14464_v28 = vpop.f32.mrf.mxu1 }
 0x29f   :  { %v14472_v42 = vpop.f32.mrf.mxu2 }
 0x2a0   :  { %v14474_v51 = vpop.f32.mrf.mxu3 }
 0x2a1   :  { %v2661_v34 = vpop.f32.mrf.mxu0 }
 0x2a2   :  { %v2710_v17 = vpop.f32.mrf.mxu1  ;;  %v2750_v13 = vadd.f32 %v2661_v34, %v14244_v3 }
 0x2a3   :  { %3583 = vmatmul.bf16.vlgmr.msrb.gmra.mxu0 %v9430_v7  ;;  %v2751_v59 = vadd.f32 %v2710_v17, %v14246_v32 }
 0x2a4   :  { %3857 = vmatmul.bf16.vlgmr.msrb.gmra.mxu2 %v9558_v45  ;;  %3632 = vmatmul.bf16.vlgmr.msrb.gmra.mxu1 %v9434_v1 }
 0x2a5   :  { %3906 = vmatmul.bf16.vlgmr.msrb.gmra.mxu3 %v9562_v31 }
 0x2a7   :  { %v2951_v12 = vpop.f32.mrf.mxu2 }
 0x2a8   :  { %v3040_v15 = vadd.f32 %v2951_v12, %v2750_v13  ;;  %v3000_v30 = vpop.f32.mrf.mxu3 }
 0x2a9   :  { %v2663_v5 = vpop.f32.mrf.mxu0  ;;  %v3041_v37 = vadd.f32 %v3000_v30, %v2751_v59  ;;  %v9567_v59 = vld [vmem:[#allocation2 + $0x18] sm:$0xf0]  ;;  %v9565_v30 = vld [vmem:[#allocation2 + $0x10] sm:$0xf] }
 0x2aa   :  { %v2712_v36 = vpop.f32.mrf.mxu1  ;;  %v3078_v43 = vadd.f32 %v14480_v55, %v3040_v15  ;;  %v2752_v3 = vadd.f32 %v2663_v5, %v14253_v8 }
 0x2ab   :  { %v3079_v45 = vadd.f32 %v14483_v47, %v3041_v37  ;;  %v2753_v32 = vadd.f32 %v2712_v36, %v14258_v48 }
 0x2ac   :  { %v3110_v31 = vsub.f32 0.0, %v3078_v43  ;;  %v9566_v43 = vor.u32 %v11742_v4, %v9565_v30 }
 0x2ad   :  { %v3111_v10 = vsub.f32 0.0, %v3079_v45  ;;  %v11741_v45 = vld [vmem:[#allocation2 + $0x14] sm:$0xf] }
 0x2ae   :  { %v3142_v7 = vmul.f32 1.442695, %v3110_v31  ;;  %v9570_v5 = vor.u32 %v11741_v45, %v9567_v59 }
 0x2af   :  { %v3144_v34 = vmul.f32 1.442695, %v3111_v10  ;;  %v2953_v17 = vpop.f32.mrf.mxu2 }
 0x2b0   :  { %12401 = vpow2.f32 %v3142_v7  ;;  %v3042_v38 = vadd.f32 %v2953_v17, %v2752_v3  ;;  %v3002_v1 = vpop.f32.mrf.mxu3 }
 0x2b1   :  { %v2666_v13 = vpop.f32.mrf.mxu0  ;;  %12403 = vpow2.f32 %v3144_v34  ;;  %v3043_v12 = vadd.f32 %v3002_v1, %v2753_v32 }
 0x2b2   :  { %v2715_v15 = vpop.f32.mrf.mxu1  ;;  %v3080_v37 = vadd.f32 %v14480_v55, %v3042_v38  ;;  %v2754_v7 = vadd.f32 %v2666_v13, %v14268_v57 }
 0x2b3   :  { %v3081_v8 = vadd.f32 %v14483_v47, %v3043_v12  ;;  %v2755_v17 = vadd.f32 %v2715_v15, %v14270_v63  ;;  %v11826_v63 = vld [vmem:[%s16145_s3 + $0x138] sm:$0xff] }
 0x2b4   :  { %v3112_v31 = vsub.f32 0.0, %v3080_v37  ;;  %3862 = vmatmul.bf16.gmra.mxu2 %v9566_v43  ;;  %v11834_v15 = vld [vmem:[%s16145_s3 + $0x178] sm:$0xff]  ;;  %4172 = vmatpush.bf16.msra.mxu0 %v11826_v63 }
 0x2b5   :  { %v3113_v48 = vsub.f32 0.0, %v3081_v8  ;;  %3911 = vmatmul.bf16.gmra.mxu3 %v9570_v5  ;;  %4221 = vmatpush.bf16.msra.mxu1 %v11834_v15 }
 0x2b6   :  { %v12402_v36 = vpop.eup %12401  ;;  %v3146_v10 = vmul.f32 1.442695, %v3112_v31 }
 0x2b7   :  { %v12404_v3 = vpop.eup %12403  ;;  %v3206_v34 = vadd.f32 1.0, %v12402_v36  ;;  %v3148_v32 = vmul.f32 1.442695, %v3113_v48  ;;  %v2956_v1 = vpop.f32.mrf.mxu2 }
 0x2b8   :  { %v3207_v38 = vadd.f32 1.0, %v12404_v3  ;;  %12405 = vpow2.f32 %v3146_v10  ;;  %v3044_v4 = vadd.f32 %v2956_v1, %v2754_v7  ;;  %v3005_v30 = vpop.f32.mrf.mxu3 }
 0x2b9   :  { %v2668_v12 = vpop.f32.mrf.mxu0  ;;  %12407 = vrcp.f32 %v3206_v34  ;;  %v3045_v59 = vadd.f32 %v3005_v30, %v2755_v17  ;;  %v11744_v34 = vld [vmem:[#allocation2 + $0x24] sm:$0xf0] }
 0x2ba   :  { %v2717_v37 = vpop.f32.mrf.mxu1  ;;  %12409 = vrcp.f32 %v3207_v38  ;;  %v3082_v43 = vadd.f32 %v14480_v55, %v3044_v4  ;;  %v2756_v31 = vadd.f32 %v2668_v12, %v14277_v27  ;;  %v9575_v4 = vld [vmem:[#allocation2 + $0x28] sm:$0xf0]  ;;  %v9573_v12 = vld [vmem:[#allocation2 + $0x20] sm:$0xf] }
 0x2bb   :  { %12411 = vpow2.f32 %v3148_v32  ;;  %v3083_v57 = vadd.f32 %v14483_v47, %v3045_v59  ;;  %v2757_v7 = vadd.f32 %v2717_v37, %v14282_v0  ;;  %v9574_v63 = vor.u32 %v11744_v34, %v9573_v12  ;;  %v11743_v0 = vld [vmem:[#allocation2 + $0x24] sm:$0xf] }
 0x2bc   :  { %v3114_v13 = vsub.f32 0.0, %v3082_v43  ;;  %v9578_v15 = vor.u32 %v11743_v0, %v9575_v4 }
 0x2bd   :  { %v3115_v45 = vsub.f32 0.0, %v3083_v57 }
 0x2be   :  { %v12406_v8 = vpop.eup %12405  ;;  %v3150_v5 = vmul.f32 1.442695, %v3114_v13 }
 0x2bf   :  { %v12408_v48 = vpop.eup %12407  ;;  %v3208_v36 = vadd.f32 1.0, %v12406_v8  ;;  %v3152_v10 = vmul.f32 1.442695, %v3115_v45  ;;  %v2958_v3 = vpop.f32.mrf.mxu2 }
 0x2c0   :  { %v12410_v32 = vpop.eup %12409  ;;  %12413 = vpow2.f32 %v3150_v5  ;;  %v3046_v17 = vadd.f32 %v2958_v3, %v2756_v31  ;;  %v3007_v1 = vpop.f32.mrf.mxu3 }
 0x2c1   :  { %v2671_v38 = vpop.f32.mrf.mxu0  ;;  %v12412_v30 = vpop.eup %12411  ;;  %v3270_v59 = vpack.c.bf16 %v12410_v32, %v12408_v48  ;;  %12415 = vrcp.f32 %v3208_v36  ;;  %v3047_v43 = vadd.f32 %v3007_v1, %v2757_v7 }
 0x2c2   :  { %v2720_v27 = vpop.f32.mrf.mxu1  ;;  %v3209_v57 = vadd.f32 1.0, %v12412_v30  ;;  %12417 = vpow2.f32 %v3152_v10  ;;  %v3084_v13 = vadd.f32 %v14480_v55, %v3046_v17  ;;  %v2758_v48 = vadd.f32 %v2671_v38, %v14292_v21 }
 0x2c3   :  { %3286 = vst [vmem:[#allocation3 + $0x10] sm:$0xff] %v3270_v59  ;;  %v3085_v37 = vadd.f32 %v14483_v47, %v3047_v43  ;;  %v2759_v3 = vadd.f32 %v2720_v27, %v14294_v25  ;;  %v11825_v25 = vld [vmem:[%s16145_s3 + $0x130] sm:$0xff] }
 0x2c4   :  { %12419 = vrcp.f32 %v3209_v57  ;;  %v3116_v45 = vsub.f32 0.0, %v3084_v13  ;;  %3867 = vmatmul.bf16.gmra.mxu2 %v9574_v63  ;;  %v11833_v27 = vld [vmem:[%s16145_s3 + $0x170] sm:$0xff]  ;;  %4173 = vmatpush.bf16.msra.mxu0 %v11825_v25 }
 0x2c5   :  { %v3117_v8 = vsub.f32 0.0, %v3085_v37  ;;  %3916 = vmatmul.bf16.gmra.mxu3 %v9578_v15  ;;  %4222 = vmatpush.bf16.msra.mxu1 %v11833_v27 }
 0x2c6   :  { %v12414_v5 = vpop.eup %12413  ;;  %v3154_v31 = vmul.f32 1.442695, %v3116_v45 }
 0x2c7   :  { %v12416_v36 = vpop.eup %12415  ;;  %v3210_v7 = vadd.f32 1.0, %v12414_v5  ;;  %v3156_v10 = vmul.f32 1.442695, %v3117_v8  ;;  %v2961_v34 = vpop.f32.mrf.mxu2 }
 0x2c8   :  { %v12418_v32 = vpop.eup %12417  ;;  %12421 = vpow2.f32 %v3154_v31  ;;  %v3048_v17 = vadd.f32 %v2961_v34, %v2758_v48  ;;  %v3010_v1 = vpop.f32.mrf.mxu3 }
 0x2c9   :  { %v2673_v4 = vpop.f32.mrf.mxu0  ;;  %12423 = vrcp.f32 %v3210_v7  ;;  %v3211_v30 = vadd.f32 1.0, %v12418_v32  ;;  %v3049_v59 = vadd.f32 %v3010_v1, %v2759_v3  ;;  %v9583_v32 = vld [vmem:[#allocation2 + $0x38] sm:$0xf0] }
 0x2ca   :  { %v2722_v43 = vpop.f32.mrf.mxu1  ;;  %v12420_v12 = vpop.eup %12419  ;;  %12425 = vpow2.f32 %v3156_v10  ;;  %v3086_v57 = vadd.f32 %v14480_v55, %v3048_v17  ;;  %v2760_v15 = vadd.f32 %v2673_v4, %v14301_v11  ;;  %v9581_v4 = vld [vmem:[#allocation2 + $0x30] sm:$0xf] }
 0x2cb   :  { %v3271_v21 = vpack.c.bf16 %v12420_v12, %v12416_v36  ;;  %12427 = vrcp.f32 %v3211_v30  ;;  %v3087_v38 = vadd.f32 %v14483_v47, %v3049_v59  ;;  %v2761_v31 = vadd.f32 %v2722_v43, %v14306_v6  ;;  %v11746_v36 = vld [vmem:[#allocation2 + $0x34] sm:$0xf0]  ;;  %v11745_v6 = vld [vmem:[#allocation2 + $0x34] sm:$0xf] }
 0x2cc   :  { %v3118_v13 = vsub.f32 0.0, %v3086_v57  ;;  %v9582_v57 = vor.u32 %v11746_v36, %v9581_v4 }
 0x2cd   :  { %3287 = vst [vmem:[#allocation3 + $0x18] sm:$0xff] %v3271_v21  ;;  %v3119_v63 = vsub.f32 0.0, %v3087_v38  ;;  %v9437_v21 = vld [vmem:[#allocation3 + $0x10] sm:$0xf]  ;;  %v11773_v38 = vld [vmem:[#allocation3 + $0x14] sm:$0xf] }
 0x2ce   :  { %v12422_v0 = vpop.eup %12421  ;;  %v3158_v37 = vmul.f32 1.442695, %v3118_v13  ;;  %v9586_v13 = vor.u32 %v11745_v6, %v9583_v32  ;;  %v11832_v6 = vld [vmem:[%s16145_s3 + $0x168] sm:$0xff] }
 0x2cf   :  { %v12424_v45 = vpop.eup %12423  ;;  %v3212_v8 = vadd.f32 1.0, %v12422_v0  ;;  %v3160_v5 = vmul.f32 1.442695, %v3119_v63  ;;  %v2963_v48 = vpop.f32.mrf.mxu2  ;;  %4223 = vmatpush.bf16.msra.mxu1 %v11832_v6 }
 0x2d0   :  { %v12426_v7 = vpop.eup %12425  ;;  %12429 = vpow2.f32 %v3158_v37  ;;  %v3050_v10 = vadd.f32 %v2963_v48, %v2760_v15  ;;  %v3012_v3 = vpop.f32.mrf.mxu3 }
 0x2d1   :  { %v2676_v34 = vpop.f32.mrf.mxu0  ;;  %v12428_v17 = vpop.eup %12427  ;;  %12431 = vrcp.f32 %v3212_v8  ;;  %v3213_v1 = vadd.f32 1.0, %v12426_v7  ;;  %v3051_v30 = vadd.f32 %v3012_v3, %v2761_v31 }
 0x2d2   :  { %v2725_v11 = vpop.f32.mrf.mxu1  ;;  %v3272_v59 = vpack.c.bf16 %v12428_v17, %v12424_v45  ;;  %12433 = vpow2.f32 %v3160_v5  ;;  %v3088_v12 = vadd.f32 %v14480_v55, %v3050_v10  ;;  %v2762_v5 = vadd.f32 %v2676_v34, %v14316_v52 }
 0x2d3   :  { %12435 = vrcp.f32 %v3213_v1  ;;  %v3089_v43 = vadd.f32 %v14483_v47, %v3051_v30  ;;  %v2763_v7 = vadd.f32 %v2725_v11, %v14318_v40  ;;  %v11824_v11 = vld [vmem:[%s16145_s3 + $0x128] sm:$0xff] }
 0x2d4   :  { %3288 = vst [vmem:[#allocation3 + $0x20] sm:$0xff] %v3272_v59  ;;  %v3120_v25 = vsub.f32 0.0, %v3088_v12  ;;  %v11774_v27 = vld [vmem:[#allocation3 + $0x14] sm:$0xf0]  ;;  %v9439_v63 = vld [vmem:[#allocation3 + $0x18] sm:$0xf0]  ;;  %3872 = vmatmul.bf16.gmra.mxu2 %v9582_v57  ;;  %4174 = vmatpush.bf16.msra.mxu0 %v11824_v11 }
 0x2d5   :  { %v3121_v0 = vsub.f32 0.0, %v3089_v43  ;;  %v9438_v37 = vor.u32 %v11774_v27, %v9437_v21  ;;  %v9442_v15 = vor.u32 %v11773_v38, %v9439_v63  ;;  %3921 = vmatmul.bf16.gmra.mxu3 %v9586_v13 }
 0x2d6   :  { %v12430_v45 = vpop.eup %12429  ;;  %v3162_v8 = vmul.f32 1.442695, %v3120_v25 }
 0x2d7   :  { %v12432_v31 = vpop.eup %12431  ;;  %v3214_v48 = vadd.f32 1.0, %v12430_v45  ;;  %v3164_v36 = vmul.f32 1.442695, %v3121_v0  ;;  %3588 = vmatmul.bf16.gmra.mxu0 %v9438_v37  ;;  %3637 = vmatmul.bf16.gmra.mxu1 %v9442_v15  ;;  %v2966_v10 = vpop.f32.mrf.mxu2  ;;  %v11748_v15 = vld [vmem:[#allocation2 + $0x44] sm:$0xf0] }
 0x2d8   :  { %v12434_v3 = vpop.eup %12433  ;;  %12437 = vpow2.f32 %v3162_v8  ;;  %v3052_v32 = vadd.f32 %v2966_v10, %v2762_v5  ;;  %v3015_v17 = vpop.f32.mrf.mxu3 }
 0x2d9   :  { %v2678_v1 = vpop.f32.mrf.mxu0  ;;  %v12436_v30 = vpop.eup %12435  ;;  %12439 = vrcp.f32 %v3214_v48  ;;  %v3215_v4 = vadd.f32 1.0, %v12434_v3  ;;  %v3053_v59 = vadd.f32 %v3015_v17, %v2763_v7  ;;  %v9591_v48 = vld [vmem:[#allocation2 + $0x48] sm:$0xf0]  ;;  %v9589_v3 = vld [vmem:[#allocation2 + $0x40] sm:$0xf] }
 0x2da   :  { %v2727_v12 = vpop.f32.mrf.mxu1  ;;  %v3273_v57 = vpack.c.bf16 %v12436_v30, %v12432_v31  ;;  %12441 = vpow2.f32 %v3164_v36  ;;  %v3090_v52 = vadd.f32 %v14480_v55, %v3052_v32  ;;  %v2764_v13 = vadd.f32 %v2678_v1, %v14325_v29  ;;  %v11747_v30 = vld [vmem:[#allocation2 + $0x44] sm:$0xf] }
 0x2db   :  { %12443 = vrcp.f32 %v3215_v4  ;;  %v3091_v40 = vadd.f32 %v14483_v47, %v3053_v59  ;;  %v2765_v0 = vadd.f32 %v2727_v12, %v14330_v18  ;;  %v9445_v1 = vld [vmem:[#allocation3 + $0x20] sm:$0xf]  ;;  %v9590_v18 = vor.u32 %v11748_v15, %v9589_v3  ;;  %v11775_v12 = vld [vmem:[#allocation3 + $0x24] sm:$0xf] }
 0x2dc   :  { %3289 = vst [vmem:[#allocation3 + $0x28] sm:$0xff] %v3273_v57  ;;  %v3122_v34 = vsub.f32 0.0, %v3090_v52  ;;  %v9594_v52 = vor.u32 %v11747_v30, %v9591_v48  ;;  %v11831_v3 = vld [vmem:[%s16145_s3 + $0x160] sm:$0xff] }
 0x2dd   :  { %v3123_v43 = vsub.f32 0.0, %v3091_v40  ;;  %4224 = vmatpush.bf16.msra.mxu1 %v11831_v3  ;;  %v11856_v3 = vld [vmem:[%s16145_s3 + $0x1a8] sm:$0xff] }
 0x2de   :  { %v12438_v21 = vpop.eup %12437  ;;  %v3166_v38 = vmul.f32 1.442695, %v3122_v34 }
 0x2df   :  { %v12440_v25 = vpop.eup %12439  ;;  %v3216_v27 = vadd.f32 1.0, %v12438_v21  ;;  %v3168_v63 = vmul.f32 1.442695, %v3123_v43  ;;  %v2968_v37 = vpop.f32.mrf.mxu2 }
 0x2e0   :  { %v12442_v45 = vpop.eup %12441  ;;  %12445 = vpow2.f32 %v3166_v38  ;;  %v3054_v8 = vadd.f32 %v2968_v37, %v2764_v13  ;;  %v3017_v5 = vpop.f32.mrf.mxu3 }
 0x2e1   :  { %v2681_v31 = vpop.f32.mrf.mxu0  ;;  %v12444_v36 = vpop.eup %12443  ;;  %12447 = vrcp.f32 %v3216_v27  ;;  %v3217_v7 = vadd.f32 1.0, %v12442_v45  ;;  %v3055_v10 = vadd.f32 %v3017_v5, %v2765_v0 }
 0x2e2   :  { %v2730_v29 = vpop.f32.mrf.mxu1  ;;  %v3274_v32 = vpack.c.bf16 %v12444_v36, %v12440_v25  ;;  %12449 = vpow2.f32 %v3168_v63  ;;  %v3092_v17 = vadd.f32 %v14480_v55, %v3054_v8  ;;  %v2766_v38 = vadd.f32 %v2681_v31, %v14346_v49 }
 0x2e3   :  { %12451 = vrcp.f32 %v3217_v7  ;;  %v3093_v4 = vadd.f32 %v14483_v47, %v3055_v10  ;;  %v11776_v59 = vld [vmem:[#allocation3 + $0x24] sm:$0xf0]  ;;  %v9447_v57 = vld [vmem:[#allocation3 + $0x28] sm:$0xf0]  ;;  %v2767_v63 = vadd.f32 %v2730_v29, %v14348_v46  ;;  %v11823_v29 = vld [vmem:[%s16145_s3 + $0x120] sm:$0xff] }
 0x2e4   :  { %3290 = vst [vmem:[#allocation3 + $0x30] sm:$0xff] %v3274_v32  ;;  %v3124_v40 = vsub.f32 0.0, %v3092_v17  ;;  %v9446_v34 = vor.u32 %v11776_v59, %v9445_v1  ;;  %v9450_v11 = vor.u32 %v11775_v12, %v9447_v57  ;;  %3877 = vmatmul.bf16.gmra.mxu2 %v9590_v18  ;;  %v11858_v32 = vld [vmem:[%s16145_s3 + $0x1b8] sm:$0xff]  ;;  %4175 = vmatpush.bf16.msra.mxu0 %v11823_v29 }
 0x2e5   :  { %v3125_v6 = vsub.f32 0.0, %v3093_v4  ;;  %3926 = vmatmul.bf16.gmra.mxu3 %v9594_v52  ;;  %v11866_v1 = vld [vmem:[%s16145_s3 + $0x1f8] sm:$0xff]  ;;  %4511 = vmatpush.bf16.msra.mxu2 %v11858_v32  ;;  %v11864_v32 = vld [vmem:[%s16145_s3 + $0x1e8] sm:$0xff] }
 0x2e6   :  { %v12446_v43 = vpop.eup %12445  ;;  %v3170_v21 = vmul.f32 1.442695, %v3124_v40  ;;  %4560 = vmatpush.bf16.msra.mxu3 %v11866_v1 }
 0x2e7   :  { %v12448_v13 = vpop.eup %12447  ;;  %v3218_v25 = vadd.f32 1.0, %v12446_v43  ;;  %v3172_v27 = vmul.f32 1.442695, %v3125_v6  ;;  %3593 = vmatmul.bf16.gmra.mxu0 %v9446_v34  ;;  %3642 = vmatmul.bf16.gmra.mxu1 %v9450_v11  ;;  %v2971_v0 = vpop.f32.mrf.mxu2  ;;  %v11750_v34 = vld [vmem:[#allocation2 + $0x54] sm:$0xf0] }
 0x2e8   :  { %v12450_v37 = vpop.eup %12449  ;;  %12453 = vpow2.f32 %v3170_v21  ;;  %v3056_v15 = vadd.f32 %v2971_v0, %v2766_v38  ;;  %v3020_v45 = vpop.f32.mrf.mxu3  ;;  %v9599_v38 = vld [vmem:[#allocation2 + $0x58] sm:$0xf0]  ;;  %v9597_v0 = vld [vmem:[#allocation2 + $0x50] sm:$0xf] }
 0x2e9   :  { %v2683_v8 = vpop.f32.mrf.mxu0  ;;  %v12452_v5 = vpop.eup %12451  ;;  %12455 = vrcp.f32 %v3218_v25  ;;  %v3219_v48 = vadd.f32 1.0, %v12450_v37  ;;  %v3057_v36 = vadd.f32 %v3020_v45, %v2767_v63 }
 0x2ea   :  { %v2732_v7 = vpop.f32.mrf.mxu1  ;;  %v3275_v10 = vpack.c.bf16 %v12452_v5, %v12448_v13  ;;  %12457 = vpow2.f32 %v3172_v27  ;;  %v3094_v49 = vadd.f32 %v14480_v55, %v3056_v15  ;;  %v2768_v4 = vadd.f32 %v2683_v8, %v14367_v39  ;;  %v11857_v39 = vld [vmem:[%s16145_s3 + $0x1b0] sm:$0xff] }
 0x2eb   :  { %12459 = vrcp.f32 %v3219_v48  ;;  %v3095_v46 = vadd.f32 %v14483_v47, %v3057_v36  ;;  %v2769_v52 = vadd.f32 %v2732_v7, %v14372_v20  ;;  %v11865_v13 = vld [vmem:[%s16145_s3 + $0x1f0] sm:$0xff]  ;;  %v9598_v8 = vor.u32 %v11750_v34, %v9597_v0  ;;  %4512 = vmatpush.bf16.msra.mxu2 %v11857_v39 }
 0x2ec   :  { %3291 = vst [vmem:[#allocation3 + $0x38] sm:$0xff] %v3275_v10  ;;  %v3126_v31 = vsub.f32 0.0, %v3094_v49  ;;  %v9453_v45 = vld [vmem:[#allocation3 + $0x30] sm:$0xf]  ;;  %v11749_v5 = vld [vmem:[#allocation2 + $0x54] sm:$0xf]  ;;  %4561 = vmatpush.bf16.msra.mxu3 %v11865_v13  ;;  %v2141_v13 = vadd.f32 %v14396_v2, %v14155_v33 }
 0x2ed   :  { %v3127_v17 = vsub.f32 0.0, %v3095_v46  ;;  %v11777_v7 = vld [vmem:[#allocation3 + $0x34] sm:$0xf]  ;;  %v9602_v49 = vor.u32 %v11749_v5, %v9599_v38  ;;  %v11830_v33 = vld [vmem:[%s16145_s3 + $0x158] sm:$0xff] }
 0x2ee   :  { %v12454_v18 = vpop.eup %12453  ;;  %v3174_v30 = vmul.f32 1.442695, %v3126_v31  ;;  %v2482_v0 = vadd.f32 %v14414_v16, %v2141_v13  ;;  %v11862_v16 = vld [vmem:[%s16145_s3 + $0x1d8] sm:$0xff]  ;;  %4225 = vmatpush.bf16.msra.mxu1 %v11830_v33 }
 0x2ef   :  { %v12456_v59 = vpop.eup %12455  ;;  %v3220_v12 = vadd.f32 1.0, %v12454_v18  ;;  %v3176_v57 = vmul.f32 1.442695, %v3127_v17  ;;  %v2973_v40 = vpop.f32.mrf.mxu2  ;;  %4513 = vmatpush.bf16.msra.mxu2 %v11856_v3 }
 0x2f0   :  { %v12458_v11 = vpop.eup %12457  ;;  %12461 = vpow2.f32 %v3174_v30  ;;  %v3058_v6 = vadd.f32 %v2973_v40, %v2768_v4  ;;  %v3022_v43 = vpop.f32.mrf.mxu3  ;;  %4562 = vmatpush.bf16.msra.mxu3 %v11864_v32  ;;  %v9607_v32 = vld [vmem:[#allocation2 + $0x68] sm:$0xf0] }
 0x2f1   :  { %v2686_v21 = vpop.f32.mrf.mxu0  ;;  %v12460_v25 = vpop.eup %12459  ;;  %12463 = vrcp.f32 %v3220_v12  ;;  %v3221_v20 = vadd.f32 1.0, %v12458_v11  ;;  %v3059_v27 = vadd.f32 %v3022_v43, %v2769_v52  ;;  %v11855_v43 = vld [vmem:[%s16145_s3 + $0x1a0] sm:$0xff] }
 0x2f2   :  { %v2735_v63 = vpop.f32.mrf.mxu1  ;;  %v3276_v37 = vpack.c.bf16 %v12460_v25, %v12456_v59  ;;  %12465 = vpow2.f32 %v3176_v57  ;;  %v3096_v15 = vadd.f32 %v14480_v55, %v3058_v6  ;;  %v2770_v30 = vadd.f32 %v2686_v21, %v14394_v23  ;;  %v11863_v23 = vld [vmem:[%s16145_s3 + $0x1e0] sm:$0xff] }
 0x2f3   :  { %12467 = vrcp.f32 %v3221_v20  ;;  %v3097_v48 = vadd.f32 %v14483_v47, %v3059_v27  ;;  %v11778_v36 = vld [vmem:[#allocation3 + $0x34] sm:$0xf0]  ;;  %v9455_v10 = vld [vmem:[#allocation3 + $0x38] sm:$0xf0]  ;;  %v2771_v57 = vadd.f32 %v2735_v63, %v14398_v9  ;;  %v2190_v27 = vadd.f32 %v14400_v24, %v14163_v26  ;;  %4514 = vmatpush.bf16.msra.mxu2 %v11855_v43 }
 0x2f4   :  { %3292 = vst [vmem:[#allocation3 + $0x40] sm:$0xff] %v3276_v37  ;;  %v3128_v46 = vsub.f32 0.0, %v3096_v15  ;;  %v9454_v31 = vor.u32 %v11778_v36, %v9453_v45  ;;  %v9458_v29 = vor.u32 %v11777_v7, %v9455_v10  ;;  %3882 = vmatmul.bf16.gmra.mxu2 %v9598_v8  ;;  %v11822_v15 = vld [vmem:[%s16145_s3 + $0x118] sm:$0xff]  ;;  %4563 = vmatpush.bf16.msra.mxu3 %v11863_v23 }
 0x2f5   :  { %v3129_v17 = vsub.f32 0.0, %v3097_v48  ;;  %3931 = vmatmul.bf16.gmra.mxu3 %v9602_v49  ;;  %v11854_v26 = vld [vmem:[%s16145_s3 + $0x198] sm:$0xff]  ;;  %v2483_v2 = vadd.f32 %v14419_v54, %v2190_v27  ;;  %4176 = vmatpush.bf16.msra.mxu0 %v11822_v15  ;;  %v11852_v27 = vld [vmem:[%s16145_s3 + $0x188] sm:$0xff] }
 0x2f6   :  { %v12462_v1 = vpop.eup %12461  ;;  %v3178_v18 = vmul.f32 1.442695, %v3128_v46  ;;  %v11752_v46 = vld [vmem:[#allocation2 + $0x64] sm:$0xf0] }
 0x2f7   :  { %v12464_v4 = vpop.eup %12463  ;;  %v3222_v59 = vadd.f32 1.0, %v12462_v1  ;;  %v3180_v12 = vmul.f32 1.442695, %v3129_v17  ;;  %3598 = vmatmul.bf16.gmra.mxu0 %v9454_v31  ;;  %3647 = vmatmul.bf16.gmra.mxu1 %v9458_v29  ;;  %v2976_v52 = vpop.f32.mrf.mxu2  ;;  %v11861_v17 = vld [vmem:[%s16145_s3 + $0x1d0] sm:$0xff] }
 0x2f8   :  { %v12466_v40 = vpop.eup %12465  ;;  %12469 = vpow2.f32 %v3178_v18  ;;  %v3060_v34 = vadd.f32 %v2976_v52, %v2770_v30  ;;  %v3025_v11 = vpop.f32.mrf.mxu3  ;;  %4515 = vmatpush.bf16.msra.mxu2 %v11854_v26  ;;  %4564 = vmatpush.bf16.msra.mxu3 %v11862_v16 }
 0x2f9   :  { %v2688_v6 = vpop.f32.mrf.mxu0  ;;  %v12468_v21 = vpop.eup %12467  ;;  %12471 = vrcp.f32 %v3222_v59  ;;  %v3223_v9 = vadd.f32 1.0, %v12466_v40  ;;  %v3061_v38 = vadd.f32 %v3025_v11, %v2771_v57  ;;  %v9605_v59 = vld [vmem:[#allocation2 + $0x60] sm:$0xf]  ;;  %v11751_v11 = vld [vmem:[#allocation2 + $0x64] sm:$0xf] }
 0x2fa   :  { %v2737_v39 = vpop.f32.mrf.mxu1  ;;  %v3277_v25 = vpack.c.bf16 %v12468_v21, %v12464_v4  ;;  %12473 = vpow2.f32 %v3180_v12  ;;  %v3098_v20 = vadd.f32 %v14480_v55, %v3060_v34  ;;  %v2772_v5 = vadd.f32 %v2688_v6, %v2482_v0  ;;  %v11853_v12 = vld [vmem:[%s16145_s3 + $0x190] sm:$0xff] }
 0x2fb   :  { %12475 = vrcp.f32 %v3223_v9  ;;  %v3099_v63 = vadd.f32 %v14483_v47, %v3061_v38  ;;  %v2773_v10 = vadd.f32 %v2737_v39, %v2483_v2  ;;  %v9461_v40 = vld [vmem:[#allocation3 + $0x40] sm:$0xf]  ;;  %v9606_v34 = vor.u32 %v11752_v46, %v9605_v59  ;;  %v11779_v23 = vld [vmem:[#allocation3 + $0x44] sm:$0xf] }
 0x2fc   :  { %3293 = vst [vmem:[#allocation3 + $0x48] sm:$0xff] %v3277_v25  ;;  %v3130_v37 = vsub.f32 0.0, %v3098_v20  ;;  %v9610_v9 = vor.u32 %v11751_v11, %v9607_v32  ;;  %4565 = vmatpush.bf16.msra.mxu3 %v11861_v17  ;;  %v11860_v25 = vld [vmem:[%s16145_s3 + $0x1c8] sm:$0xff]  ;;  %4516 = vmatpush.bf16.msra.mxu2 %v11853_v12  ;;  %v11821_v17 = vld [vmem:[%s16145_s3 + $0x110] sm:$0xff] }
 0x2fd   :  { %v3131_v24 = vsub.f32 0.0, %v3099_v63  ;;  %4177 = vmatpush.bf16.msra.mxu0 %v11821_v17  ;;  %v2200_v17 = vadd.f32 %v14464_v28, %v14231_v22 }
 0x2fe   :  { %v12470_v45 = vpop.eup %12469  ;;  %v3182_v8 = vmul.f32 1.442695, %v3130_v37 }
 0x2ff   :  { %v12472_v48 = vpop.eup %12471  ;;  %v3224_v36 = vadd.f32 1.0, %v12470_v45  ;;  %v3184_v7 = vmul.f32 1.442695, %v3131_v24  ;;  %v2978_v49 = vpop.f32.mrf.mxu2 }
 0x300   :  { %v12474_v31 = vpop.eup %12473  ;;  %12477 = vpow2.f32 %v3182_v8  ;;  %v3062_v29 = vadd.f32 %v2978_v49, %v2772_v5  ;;  %v3027_v54 = vpop.f32.mrf.mxu3  ;;  %4566 = vmatpush.bf16.msra.mxu3 %v11860_v25  ;;  %4517 = vmatpush.bf16.msra.mxu2 %v11852_v27  ;;  %v2146_v49 = vadd.f32 %v14440_v56, %v14204_v50  ;;  %v11829_v50 = vld [vmem:[%s16145_s3 + $0x150] sm:$0xff] }
 0x301   :  { %v2691_v3 = vpop.f32.mrf.mxu0  ;;  %v12476_v1 = vpop.eup %12475  ;;  %12479 = vrcp.f32 %v3224_v36  ;;  %v3225_v18 = vadd.f32 1.0, %v12474_v31  ;;  %v3063_v30 = vadd.f32 %v3027_v54, %v2773_v10  ;;  %4226 = vmatpush.bf16.msra.mxu1 %v11829_v50 }
 0x302   :  { %v2740_v4 = vpop.f32.mrf.mxu1  ;;  %v3278_v57 = vpack.c.bf16 %v12476_v1, %v12472_v48  ;;  %12481 = vpow2.f32 %v3184_v7  ;;  %v3100_v52 = vadd.f32 %v14480_v55, %v3062_v29  ;;  %v2774_v37 = vadd.f32 %v2691_v3, %v14438_v35  ;;  %v11859_v48 = vld [vmem:[%s16145_s3 + $0x1c0] sm:$0xff] }
 0x303   :  { %12483 = vrcp.f32 %v3225_v18  ;;  %v3101_v6 = vadd.f32 %v14483_v47, %v3063_v30  ;;  %v11780_v43 = vld [vmem:[#allocation3 + $0x44] sm:$0xf0]  ;;  %v9463_v21 = vld [vmem:[#allocation3 + $0x48] sm:$0xf0]  ;;  %v2775_v2 = vadd.f32 %v2740_v4, %v14442_v14  ;;  %v11851_v14 = vld [vmem:[%s16145_s3 + $0x180] sm:$0xff]  ;;  %v2195_v29 = vadd.f32 %v14444_v62, %v14209_v53 }
 0x304   :  { %3294 = vst [vmem:[#allocation3 + $0x50] sm:$0xff] %v3278_v57  ;;  %v3132_v38 = vsub.f32 0.0, %v3100_v52  ;;  %v9462_v39 = vor.u32 %v11780_v43, %v9461_v40  ;;  %v9466_v13 = vor.u32 %v11779_v23, %v9463_v21  ;;  %3887 = vmatmul.bf16.gmra.mxu2 %v9606_v34  ;;  %v2486_v3 = vadd.f32 %v14446_v44, %v2146_v49  ;;  %v11754_v57 = vld [vmem:[#allocation2 + $0x74] sm:$0xf0] }
 0x305   :  { %v3133_v20 = vsub.f32 0.0, %v3101_v6  ;;  %3936 = vmatmul.bf16.gmra.mxu3 %v9610_v9  ;;  %v2487_v56 = vadd.f32 %v14451_v41, %v2195_v29  ;;  %4518 = vmatpush.bf16.msra.mxu2 %v11851_v14  ;;  %v9615_v6 = vld [vmem:[#allocation2 + $0x78] sm:$0xf0]  ;;  %v9613_v9 = vld [vmem:[#allocation2 + $0x70] sm:$0xf] }
 0x306   :  { %v12478_v63 = vpop.eup %12477  ;;  %v3186_v0 = vmul.f32 1.442695, %v3132_v38  ;;  %4567 = vmatpush.bf16.msra.mxu3 %v11859_v48  ;;  %v9614_v25 = vor.u32 %v11754_v57, %v9613_v9 }
 0x307   :  { %v12480_v15 = vpop.eup %12479  ;;  %v3226_v33 = vadd.f32 1.0, %v12478_v63  ;;  %v3188_v26 = vmul.f32 1.442695, %v3133_v20  ;;  %3603 = vmatmul.bf16.gmra.mxu0 %v9462_v39  ;;  %3652 = vmatmul.bf16.gmra.mxu1 %v9466_v13  ;;  %v2981_v24 = vpop.f32.mrf.mxu2  ;;  %v11753_v20 = vld [vmem:[#allocation2 + $0x74] sm:$0xf] }
 0x308   :  { %v12482_v16 = vpop.eup %12481  ;;  %12485 = vpow2.f32 %v3186_v0  ;;  %v3064_v45 = vadd.f32 %v2981_v24, %v2774_v37  ;;  %v3030_v8 = vpop.f32.mrf.mxu3 }
 0x309   :  { %v2693_v5 = vpop.f32.mrf.mxu0  ;;  %v12484_v36 = vpop.eup %12483  ;;  %12487 = vrcp.f32 %v3226_v33  ;;  %v3227_v35 = vadd.f32 1.0, %v12482_v16  ;;  %v3065_v7 = vadd.f32 %v3030_v8, %v2775_v2 }
 0x30a   :  { %v2742_v10 = vpop.f32.mrf.mxu1  ;;  %v3279_v46 = vpack.c.bf16 %v12484_v36, %v12480_v15  ;;  %12489 = vpow2.f32 %v3188_v26  ;;  %v3102_v31 = vadd.f32 %v14480_v55, %v3064_v45  ;;  %v2776_v18 = vadd.f32 %v2693_v5, %v2486_v3 }
 0x30b   :  { %12491 = vrcp.f32 %v3227_v35  ;;  %v3103_v54 = vadd.f32 %v14483_v47, %v3065_v7  ;;  %v2777_v59 = vadd.f32 %v2742_v10, %v2487_v56  ;;  %v9469_v13 = vld [vmem:[#allocation3 + $0x50] sm:$0xf]  ;;  %v11781_v0 = vld [vmem:[#allocation3 + $0x54] sm:$0xf]  ;;  %v9618_v15 = vor.u32 %v11753_v20, %v9615_v6 }
 0x30c   :  { %3295 = vst [vmem:[#allocation3 + $0x58] sm:$0xff] %v3279_v46  ;;  %v3134_v32 = vsub.f32 0.0, %v3102_v31 }
 0x30d   :  { %v3135_v1 = vsub.f32 0.0, %v3103_v54 }
 0x30e   :  { %v12486_v53 = vpop.eup %12485  ;;  %v3190_v62 = vmul.f32 1.442695, %v3134_v32 }
 0x30f   :  { %v12488_v44 = vpop.eup %12487  ;;  %v3228_v30 = vadd.f32 1.0, %v12486_v53  ;;  %v3192_v4 = vmul.f32 1.442695, %v3135_v1  ;;  %v2983_v12 = vpop.f32.mrf.mxu2  ;;  %v11820_v53 = vld [vmem:[%s16145_s3 + $0x108] sm:$0xff] }
 0x310   :  { %v12490_v52 = vpop.eup %12489  ;;  %12493 = vpow2.f32 %v3190_v62  ;;  %v3066_v40 = vadd.f32 %v2983_v12, %v2776_v18  ;;  %v3032_v34 = vpop.f32.mrf.mxu3  ;;  %4178 = vmatpush.bf16.msra.mxu0 %v11820_v53 }
 0x311   :  { %v2696_v11 = vpop.f32.mrf.mxu0  ;;  %v12492_v41 = vpop.eup %12491  ;;  %12495 = vrcp.f32 %v3228_v30  ;;  %v3229_v43 = vadd.f32 1.0, %v12490_v52  ;;  %v3067_v23 = vadd.f32 %v3032_v34, %v2777_v59 }
 0x312   :  { %v2745_v21 = vpop.f32.mrf.mxu1  ;;  %v3280_v38 = vpack.c.bf16 %v12492_v41, %v12488_v44  ;;  %12497 = vpow2.f32 %v3192_v4  ;;  %v3104_v39 = vadd.f32 %v14480_v55, %v3066_v40  ;;  %v2778_v8 = vadd.f32 %v2696_v11, %v14458_v58  ;;  %v11827_v44 = vld [vmem:[%s16145_s3 + $0x140] sm:$0xff]  ;;  %v9879_v11 = vld [vmem:[#allocation3 + $0x18] sm:$0xf0] }
 0x313   :  { %12499 = vrcp.f32 %v3229_v43  ;;  %v3105_v27 = vadd.f32 %v14483_v47, %v3067_v23  ;;  %v11782_v63 = vld [vmem:[#allocation3 + $0x54] sm:$0xf0]  ;;  %v9471_v37 = vld [vmem:[#allocation3 + $0x58] sm:$0xf0]  ;;  %v2779_v35 = vadd.f32 %v2745_v21, %v14462_v61  ;;  %v2151_v58 = vadd.f32 %v14460_v19, %v14226_v60  ;;  %v11828_v60 = vld [vmem:[%s16145_s3 + $0x148] sm:$0xff] }
 0x314   :  { %3296 = vst [vmem:[#allocation3 + $0x60] sm:$0xff] %v3280_v38  ;;  %v3136_v33 = vsub.f32 0.0, %v3104_v39  ;;  %v9470_v26 = vor.u32 %v11782_v63, %v9469_v13  ;;  %v9474_v2 = vor.u32 %v11781_v0, %v9471_v37  ;;  %3892 = vmatmul.bf16.gmra.mxu2 %v9614_v25  ;;  %v2491_v19 = vadd.f32 %v14474_v51, %v2200_v17  ;;  %v11836_v51 = vld [vmem:[#allocation3 + $0x14] sm:$0xf0]  ;;  %v9877_v23 = vld [vmem:[#allocation3 + $0x10] sm:$0xf] }
 0x315   :  { %v3137_v24 = vsub.f32 0.0, %v3105_v27  ;;  %3941 = vmatmul.bf16.gmra.mxu3 %v9618_v15  ;;  %v2490_v56 = vadd.f32 %v14472_v42, %v2151_v58  ;;  %4227 = vmatpush.bf16.msra.mxu1 %v11828_v60  ;;  %v11819_v42 = vld [vmem:[%s16145_s3 + $0x100] sm:$0xff]  ;;  %v9878_v13 = vor.u32 %v11836_v51, %v9877_v23  ;;  %v11835_v25 = vld [vmem:[#allocation3 + $0x14] sm:$0xf] }
 0x316   :  { %v12494_v16 = vpop.eup %12493  ;;  %v3194_v45 = vmul.f32 1.442695, %v3136_v33  ;;  %4179 = vmatpush.bf16.msra.mxu0 %v11819_v42  ;;  %v9882_v15 = vor.u32 %v11835_v25, %v9879_v11  ;;  %v11889_v11 = vld [vmem:[%s16145_s3 + $0x230] sm:$0xff]  ;;  %v9719_v25 = vld [vmem:[#allocation2 + $0x18] sm:$0xf0] }
 0x317   :  { %v12496_v5 = vpop.eup %12495  ;;  %v3230_v48 = vadd.f32 1.0, %v12494_v16  ;;  %v3196_v36 = vmul.f32 1.442695, %v3137_v24  ;;  %3608 = vmatmul.bf16.gmra.mxu0 %v9470_v26  ;;  %3657 = vmatmul.bf16.gmra.mxu1 %v9474_v2  ;;  %v2986_v7 = vpop.f32.mrf.mxu2 }
 0x318   :  { %v12498_v10 = vpop.eup %12497  ;;  %12501 = vpow2.f32 %v3194_v45  ;;  %v3068_v14 = vadd.f32 %v2986_v7, %v2778_v8  ;;  %v3035_v49 = vpop.f32.mrf.mxu3 }
 0x319   :  { %v12500_v46 = vpop.eup %12499  ;;  %12503 = vrcp.f32 %v3230_v48  ;;  %v3231_v31 = vadd.f32 1.0, %v12498_v10  ;;  %v3069_v29 = vadd.f32 %v3035_v49, %v2779_v35  ;;  %v2698_v54 = vpop.f32.mrf.mxu0  ;;  %4228 = vmatpush.bf16.msra.mxu1 %v11827_v44  ;;  %v11898_v35 = vld [vmem:[%s16145_s3 + $0x278] sm:$0xff] }
 0x31a   :  { %v3281_v3 = vpack.c.bf16 %v12500_v46, %v12496_v5  ;;  %12505 = vpow2.f32 %v3196_v36  ;;  %v3106_v32 = vadd.f32 %v14480_v55, %v3068_v14  ;;  %v2747_v61 = vpop.f32.mrf.mxu1  ;;  %v2780_v28 = vadd.f32 %v2698_v54, %v2490_v56  ;;  %v11890_v36 = vld [vmem:[%s16145_s3 + $0x238] sm:$0xff] }
 0x31b   :  { %12507 = vrcp.f32 %v3231_v31  ;;  %v3107_v50 = vadd.f32 %v14483_v47, %v3069_v29  ;;  %v2781_v12 = vadd.f32 %v2747_v61, %v2491_v19  ;;  %v9477_v39 = vld [vmem:[#allocation3 + $0x60] sm:$0xf]  ;;  %v11783_v0 = vld [vmem:[#allocation3 + $0x64] sm:$0xf]  ;;  %4850 = vmatpush.bf16.msrb.mxu0 %v11890_v36 }
 0x31c   :  { %3297 = vst [vmem:[#allocation3 + $0x68] sm:$0xff] %v3281_v3  ;;  %v3138_v1 = vsub.f32 0.0, %v3106_v32 }
 0x31d   :  { %v3139_v62 = vsub.f32 0.0, %v3107_v50  ;;  %4899 = vmatpush.bf16.msrb.mxu1 %v11898_v35  ;;  %v11838_v50 = vld [vmem:[#allocation3 + $0x24] sm:$0xf0]  ;;  %v11841_v35 = vld [vmem:[#allocation3 + $0x44] sm:$0xf] }
 0x31e   :  { %v12502_v18 = vpop.eup %12501  ;;  %v3198_v22 = vmul.f32 1.442695, %v3138_v1  ;;  %v9887_v1 = vld [vmem:[#allocation3 + $0x28] sm:$0xf0] }
 0x31f   :  { %v12504_v30 = vpop.eup %12503  ;;  %v3232_v4 = vadd.f32 1.0, %v12502_v18  ;;  %v3200_v59 = vmul.f32 1.442695, %v3139_v62  ;;  %v2988_v57 = vpop.f32.mrf.mxu2  ;;  %v9885_v18 = vld [vmem:[#allocation3 + $0x20] sm:$0xf]  ;;  %4851 = vmatpush.bf16.msrb.mxu0 %v11889_v11 }
 0x320   :  { %v12506_v52 = vpop.eup %12505  ;;  %12509 = vpow2.f32 %v3198_v22  ;;  %v3070_v40 = vadd.f32 %v2988_v57, %v2780_v28  ;;  %v3037_v34 = vpop.f32.mrf.mxu3  ;;  %v9886_v44 = vor.u32 %v11838_v50, %v9885_v18  ;;  %v9911_v18 = vld [vmem:[#allocation3 + $0x58] sm:$0xf0] }
 0x321   :  { %v12508_v6 = vpop.eup %12507  ;;  %12511 = vrcp.f32 %v3232_v4  ;;  %v3233_v41 = vadd.f32 1.0, %v12506_v52  ;;  %v3071_v43 = vadd.f32 %v3037_v34, %v2781_v12  ;;  %v3584_v21 = vpop.f32.mrf.mxu0 }
 0x322   :  { %v3282_v9 = vpack.c.bf16 %v12508_v6, %v12504_v30  ;;  %12513 = vpow2.f32 %v3200_v59  ;;  %v3108_v38 = vadd.f32 %v14480_v55, %v3070_v40  ;;  %v3633_v20 = vpop.f32.mrf.mxu1  ;;  %v11837_v30 = vld [vmem:[#allocation3 + $0x24] sm:$0xf]  ;;  %v11897_v6 = vld [vmem:[%s16145_s3 + $0x270] sm:$0xff] }
 0x323   :  { %12515 = vrcp.f32 %v3233_v41  ;;  %v3109_v27 = vadd.f32 %v14483_v47, %v3071_v43  ;;  %v11784_v63 = vld [vmem:[#allocation3 + $0x64] sm:$0xf0]  ;;  %v9479_v37 = vld [vmem:[#allocation3 + $0x68] sm:$0xf0]  ;;  %v3634_v33 = vadd.f32 %v3633_v20, %v3584_v21  ;;  %v9890_v51 = vor.u32 %v11837_v30, %v9887_v1  ;;  %4900 = vmatpush.bf16.msrb.mxu1 %v11897_v6  ;;  %v9735_v30 = vld [vmem:[#allocation2 + $0x38] sm:$0xf0] }
 0x324   :  { %3298 = vst [vmem:[#allocation3 + $0x70] sm:$0xff] %v3282_v9  ;;  %v3140_v26 = vsub.f32 0.0, %v3108_v38  ;;  %v9478_v2 = vor.u32 %v11784_v63, %v9477_v39  ;;  %v9482_v24 = vor.u32 %v11783_v0, %v9479_v37  ;;  %4519 = vmatmul.bf16.vlgmr.msra.gmra.mxu2 %v9878_v13  ;;  %v11840_v9 = vld [vmem:[#allocation3 + $0x34] sm:$0xf0]  ;;  %v9895_v38 = vld [vmem:[#allocation3 + $0x38] sm:$0xf0] }
 0x325   :  { %v3141_v55 = vsub.f32 0.0, %v3109_v27  ;;  %4568 = vmatmul.bf16.vlgmr.msra.gmra.mxu3 %v9882_v15  ;;  %v9893_v39 = vld [vmem:[#allocation3 + $0x30] sm:$0xf]  ;;  %v11804_v13 = vld [vmem:[#allocation2 + $0x14] sm:$0xf0] }
 0x326   :  { %v12510_v16 = vpop.eup %12509  ;;  %v3202_v45 = vmul.f32 1.442695, %v3140_v26  ;;  %v9894_v20 = vor.u32 %v11840_v9, %v9893_v39  ;;  %v11839_v27 = vld [vmem:[#allocation3 + $0x34] sm:$0xf]  ;;  %v9717_v0 = vld [vmem:[#allocation2 + $0x10] sm:$0xf] }
 0x327   :  { %v12512_v8 = vpop.eup %12511  ;;  %v3234_v5 = vadd.f32 1.0, %v12510_v16  ;;  %v3204_v48 = vmul.f32 1.442695, %v3141_v55  ;;  %3613 = vmatmul.bf16.gmra.mxu0 %v9478_v2  ;;  %3662 = vmatmul.bf16.gmra.mxu1 %v9482_v24  ;;  %v3858_v47 = vpop.f32.mrf.mxu2  ;;  %v9898_v63 = vor.u32 %v11839_v27, %v9895_v38  ;;  %v11803_v37 = vld [vmem:[#allocation2 + $0x14] sm:$0xf]  ;;  %v9718_v15 = vor.u32 %v11804_v13, %v9717_v0  ;;  %v11888_v2 = vld [vmem:[%s16145_s3 + $0x228] sm:$0xff] }
 0x328   :  { %v12514_v7 = vpop.eup %12513  ;;  %12517 = vpow2.f32 %v3202_v45  ;;  %v3907_v10 = vpop.f32.mrf.mxu3  ;;  %v3859_v14 = vadd.f32 %v3858_v47, %v3634_v33  ;;  %v9722_v33 = vor.u32 %v11803_v37, %v9719_v25  ;;  %v11896_v24 = vld [vmem:[%s16145_s3 + $0x268] sm:$0xff]  ;;  %4852 = vmatpush.bf16.msrb.mxu0 %v11888_v2  ;;  %v11886_v9 = vld [vmem:[%s16145_s3 + $0x218] sm:$0xff] }
 0x329   :  { %v12516_v49 = vpop.eup %12515  ;;  %12519 = vrcp.f32 %v3234_v5  ;;  %v3235_v46 = vadd.f32 1.0, %v12514_v7  ;;  %v3586_v31 = vpop.f32.mrf.mxu0  ;;  %4901 = vmatpush.bf16.msrb.mxu1 %v11896_v24  ;;  %v11842_v16 = vld [vmem:[#allocation3 + $0x44] sm:$0xf0]  ;;  %v9903_v45 = vld [vmem:[#allocation3 + $0x48] sm:$0xf0]  ;;  %v11894_v38 = vld [vmem:[%s16145_s3 + $0x258] sm:$0xff] }
 0x32a   :  { %v3283_v29 = vpack.c.bf16 %v12516_v49, %v12512_v8  ;;  %12521 = vpow2.f32 %v3204_v48  ;;  %v3635_v54 = vpop.f32.mrf.mxu1  ;;  %v14661_v22 = vadd.f32 %v3907_v10, %v3859_v14  ;;  %v9901_v5 = vld [vmem:[#allocation3 + $0x40] sm:$0xf]  ;;  %v11806_v48 = vld [vmem:[#allocation2 + $0x24] sm:$0xf0]  ;;  %v9727_v47 = vld [vmem:[#allocation2 + $0x28] sm:$0xf0]  ;;  %v9906_v10 = vor.u32 %v11841_v35, %v9903_v45 }
 0x32b   :  { %12523 = vrcp.f32 %v3235_v46  ;;  %v3636_v58 = vadd.f32 %v3635_v54, %v3586_v31  ;;  %v9485_v42 = vld [vmem:[#allocation3 + $0x70] sm:$0xf]  ;;  %v11785_v12 = vld [vmem:[#allocation3 + $0x74] sm:$0xf]  ;;  %v9902_v36 = vor.u32 %v11842_v16, %v9901_v5  ;;  %v9725_v46 = vld [vmem:[#allocation2 + $0x20] sm:$0xf] }
 0x32c   :  { %3299 = vst [vmem:[#allocation3 + $0x78] sm:$0xff] %v3283_v29  ;;  %v11805_v31 = vld [vmem:[#allocation2 + $0x24] sm:$0xf]  ;;  %v9726_v54 = vor.u32 %v11806_v48, %v9725_v46  ;;  %v11846_v0 = vld [vmem:[#allocation3 + $0x64] sm:$0xf0] }
 0x32d   :  { %v9919_v37 = vld [vmem:[#allocation3 + $0x68] sm:$0xf0]  ;;  %v11810_v2 = vld [vmem:[#allocation2 + $0x44] sm:$0xf0]  ;;  %v11845_v16 = vld [vmem:[#allocation3 + $0x64] sm:$0xf] }
 0x32e   :  { %v12518_v3 = vpop.eup %12517  ;;  %v9743_v24 = vld [vmem:[#allocation2 + $0x48] sm:$0xf0]  ;;  %v9922_v45 = vor.u32 %v11845_v16, %v9919_v37  ;;  %v9741_v48 = vld [vmem:[#allocation2 + $0x40] sm:$0xf] }
 0x32f   :  { %v12520_v32 = vpop.eup %12519  ;;  %v3236_v61 = vadd.f32 1.0, %v12518_v3  ;;  %v3860_v17 = vpop.f32.mrf.mxu2  ;;  %v9742_v35 = vor.u32 %v11810_v2, %v9741_v48 }
 0x330   :  { %v12522_v56 = vpop.eup %12521  ;;  %v3861_v53 = vadd.f32 %v3860_v17, %v3636_v58  ;;  %v3909_v62 = vpop.f32.mrf.mxu3  ;;  %v9730_v58 = vor.u32 %v11805_v31, %v9727_v47  ;;  %v11809_v47 = vld [vmem:[#allocation2 + $0x44] sm:$0xf] }
 0x331   :  { %v12524_v60 = vpop.eup %12523  ;;  %12525 = vrcp.f32 %v3236_v61  ;;  %v3237_v19 = vadd.f32 1.0, %v12522_v56  ;;  %v11895_v61 = vld [vmem:[%s16145_s3 + $0x260] sm:$0xff] }
 0x332   :  { %v3284_v28 = vpack.c.bf16 %v12524_v60, %v12520_v32  ;;  %v14663_v4 = vadd.f32 %v3909_v62, %v3861_v53  ;;  %v11887_v32 = vld [vmem:[%s16145_s3 + $0x220] sm:$0xff]  ;;  %4902 = vmatpush.bf16.msrb.mxu1 %v11895_v61  ;;  %v11844_v62 = vld [vmem:[#allocation3 + $0x54] sm:$0xf0] }
 0x333   :  { %12527 = vrcp.f32 %v3237_v19  ;;  %v11786_v59 = vld [vmem:[#allocation3 + $0x74] sm:$0xf0]  ;;  %v9487_v57 = vld [vmem:[#allocation3 + $0x78] sm:$0xf0]  ;;  %4853 = vmatpush.bf16.msrb.mxu0 %v11887_v32 }
 0x334   :  { %3300 = vst [vmem:[#allocation3 + $0x80] sm:$0xff] %v3284_v28  ;;  %v9486_v52 = vor.u32 %v11786_v59, %v9485_v42  ;;  %v9490_v40 = vor.u32 %v11785_v12, %v9487_v57  ;;  %4524 = vmatmul.bf16.gmra.mxu2 %v9886_v44  ;;  %v9909_v28 = vld [vmem:[#allocation3 + $0x50] sm:$0xf]  ;;  %v11808_v44 = vld [vmem:[#allocation2 + $0x34] sm:$0xf0] }
 0x335   :  { %4573 = vmatmul.bf16.gmra.mxu3 %v9890_v51  ;;  %v9910_v59 = vor.u32 %v11844_v62, %v9909_v28  ;;  %v11843_v12 = vld [vmem:[#allocation3 + $0x54] sm:$0xf]  ;;  %v11848_v61 = vld [vmem:[#allocation3 + $0x74] sm:$0xf0] }
 0x336   :  { %v9914_v57 = vor.u32 %v11843_v12, %v9911_v18  ;;  %4903 = vmatpush.bf16.msrb.mxu1 %v11894_v38  ;;  %v11847_v62 = vld [vmem:[#allocation3 + $0x74] sm:$0xf] }
 0x337   :  { %v12526_v34 = vpop.eup %12525  ;;  %3618 = vmatmul.bf16.gmra.mxu0 %v9486_v52  ;;  %3667 = vmatmul.bf16.gmra.mxu1 %v9490_v40  ;;  %v3863_v23 = vpop.f32.mrf.mxu2  ;;  %v9733_v40 = vld [vmem:[#allocation2 + $0x30] sm:$0xf]  ;;  %v11811_v12 = vld [vmem:[#allocation2 + $0x54] sm:$0xf] }
 0x338   :  { %v3912_v21 = vpop.f32.mrf.mxu3  ;;  %4854 = vmatpush.bf16.msrb.mxu0 %v11886_v9 }
 0x339   :  { %v12528_v41 = vpop.eup %12527 }
 0x33a   :  { %v3285_v43 = vpack.c.bf16 %v12528_v41, %v12526_v34  ;;  %v11807_v34 = vld [vmem:[#allocation2 + $0x34] sm:$0xf]  ;;  %v9734_v41 = vor.u32 %v11808_v44, %v9733_v40 }
 0x33b   :  { %v11849_v37 = vld [vmem:[#allocation3 + $0x84] sm:$0xf] }
 0x33c   :  { %3301 = vst [vmem:[#allocation3 + $0x88] sm:$0xff] %v3285_v43  ;;  %v9738_v43 = vor.u32 %v11807_v34, %v9735_v30 }
 0x33f   :  { %v3865_v26 = vpop.f32.mrf.mxu2 }
 0x340   :  { %v3914_v55 = vpop.f32.mrf.mxu3 }
 0x344   :  { %4529 = vmatmul.bf16.gmra.mxu2 %v9894_v20 }
 0x345   :  { %4578 = vmatmul.bf16.gmra.mxu3 %v9898_v63 }
 0x347   :  { %4180 = vmatmul.bf16.vlgmr.msra.gmra.mxu0 %v9718_v15  ;;  %4229 = vmatmul.bf16.vlgmr.msra.gmra.mxu1 %v9722_v33  ;;  %v3868_v8 = vpop.f32.mrf.mxu2  ;;  %v9917_v33 = vld [vmem:[#allocation3 + $0x60] sm:$0xf] }
 0x348   :  { %v3917_v7 = vpop.f32.mrf.mxu3 }
 0x34f   :  { %v3870_v50 = vpop.f32.mrf.mxu2 }
 0x350   :  { %v3919_v53 = vpop.f32.mrf.mxu3 }
 0x354   :  { %v3589_v14 = vpop.f32.mrf.mxu0  ;;  %v3638_v49 = vpop.f32.mrf.mxu1  ;;  %4534 = vmatmul.bf16.gmra.mxu2 %v9902_v36 }
 0x355   :  { %v3639_v29 = vadd.f32 %v3638_v49, %v3589_v14  ;;  %4583 = vmatmul.bf16.gmra.mxu3 %v9906_v10  ;;  %v11885_v14 = vld [vmem:[%s16145_s3 + $0x210] sm:$0xff] }
 0x356   :  { %v11893_v49 = vld [vmem:[%s16145_s3 + $0x250] sm:$0xff]  ;;  %4855 = vmatpush.bf16.msrb.mxu0 %v11885_v14 }
 0x357   :  { %v3864_v3 = vadd.f32 %v3863_v23, %v3639_v29  ;;  %4185 = vmatmul.bf16.gmra.mxu0 %v9726_v54  ;;  %4234 = vmatmul.bf16.gmra.mxu1 %v9730_v58  ;;  %v3873_v11 = vpop.f32.mrf.mxu2 }
 0x358   :  { %v3922_v23 = vpop.f32.mrf.mxu3  ;;  %4904 = vmatpush.bf16.msrb.mxu1 %v11893_v49 }
 0x359   :  { %v14683_v17 = vadd.f32 %v3912_v21, %v3864_v3 }
 0x35c   :  { %v3591_v56 = vpop.f32.mrf.mxu0  ;;  %v3640_v1 = vpop.f32.mrf.mxu1 }
 0x35d   :  { %v3641_v60 = vadd.f32 %v3640_v1, %v3591_v56  ;;  %v9925_v56 = vld [vmem:[#allocation3 + $0x70] sm:$0xf] }
 0x35f   :  { %v3866_v19 = vadd.f32 %v3865_v26, %v3641_v60  ;;  %v3875_v27 = vpop.f32.mrf.mxu2  ;;  %v9751_v60 = vld [vmem:[#allocation2 + $0x58] sm:$0xf0] }
 0x360   :  { %v3924_v15 = vpop.f32.mrf.mxu3  ;;  %v9754_v40 = vor.u32 %v11811_v12, %v9751_v60 }
 0x361   :  { %v14685_v42 = vadd.f32 %v3914_v55, %v3866_v19  ;;  %v9918_v55 = vor.u32 %v11846_v0, %v9917_v33  ;;  %v9926_v19 = vor.u32 %v11848_v61, %v9925_v56  ;;  %v9765_v61 = vld [vmem:[#allocation2 + $0x70] sm:$0xf] }
 0x364   :  { %v3594_v51 = vpop.f32.mrf.mxu0  ;;  %v3643_v52 = vpop.f32.mrf.mxu1  ;;  %4539 = vmatmul.bf16.gmra.mxu2 %v9910_v59  ;;  %v9749_v59 = vld [vmem:[#allocation2 + $0x50] sm:$0xf] }
 0x365   :  { %v3644_v6 = vadd.f32 %v3643_v52, %v3594_v51  ;;  %4588 = vmatmul.bf16.gmra.mxu3 %v9914_v57 }
 0x367   :  { %v3869_v21 = vadd.f32 %v3868_v8, %v3644_v6  ;;  %4190 = vmatmul.bf16.gmra.mxu0 %v9734_v41  ;;  %4239 = vmatmul.bf16.gmra.mxu1 %v9738_v43  ;;  %v3878_v46 = vpop.f32.mrf.mxu2  ;;  %v11892_v6 = vld [vmem:[%s16145_s3 + $0x248] sm:$0xff] }
 0x368   :  { %v3927_v29 = vpop.f32.mrf.mxu3  ;;  %4905 = vmatpush.bf16.msrb.mxu1 %v11892_v6  ;;  %v11817_v6 = vld [vmem:[#allocation2 + $0x84] sm:$0xf] }
 0x369   :  { %v14693_v39 = vadd.f32 %v3917_v7, %v3869_v21  ;;  %v9746_v7 = vor.u32 %v11809_v47, %v9743_v24  ;;  %v9757_v24 = vld [vmem:[#allocation2 + $0x60] sm:$0xf] }
 0x36a   :  { %v11883_v47 = vld [vmem:[%s16145_s3 + $0x200] sm:$0xff] }
 0x36c   :  { %v3596_v13 = vpop.f32.mrf.mxu0  ;;  %v3645_v25 = vpop.f32.mrf.mxu1 }
 0x36d   :  { %v3646_v20 = vadd.f32 %v3645_v25, %v3596_v13  ;;  %v11850_v13 = vld [vmem:[#allocation3 + $0x84] sm:$0xf0]  ;;  %v9935_v25 = vld [vmem:[#allocation3 + $0x88] sm:$0xf0] }
 0x36f   :  { %v3871_v63 = vadd.f32 %v3870_v50, %v3646_v20  ;;  %v9927_v50 = vld [vmem:[#allocation3 + $0x78] sm:$0xf0]  ;;  %v14707_v18 = vpop.f32.mrf.mxu2  ;;  %v9933_v20 = vld [vmem:[#allocation3 + $0x80] sm:$0xf] }
 0x370   :  { %v9930_v28 = vor.u32 %v11847_v62, %v9927_v50  ;;  %v14709_v57 = vpop.f32.mrf.mxu3  ;;  %v9934_v0 = vor.u32 %v11850_v13, %v9933_v20  ;;  %v11815_v50 = vld [vmem:[#allocation2 + $0x74] sm:$0xf] }
 0x371   :  { %v14695_v26 = vadd.f32 %v3919_v53, %v3871_v63  ;;  %v11812_v53 = vld [vmem:[#allocation2 + $0x54] sm:$0xf0]  ;;  %v9759_v63 = vld [vmem:[#allocation2 + $0x68] sm:$0xf0] }
 0x372   :  { %v9750_v52 = vor.u32 %v11812_v53, %v9749_v59 }
 0x374   :  { %v3599_v8 = vpop.f32.mrf.mxu0  ;;  %v3648_v5 = vpop.f32.mrf.mxu1  ;;  %4544 = vmatmul.bf16.gmra.mxu2 %v9918_v55  ;;  %v11813_v55 = vld [vmem:[#allocation2 + $0x64] sm:$0xf] }
 0x375   :  { %v3649_v36 = vadd.f32 %v3648_v5, %v3599_v8  ;;  %4593 = vmatmul.bf16.gmra.mxu3 %v9922_v45  ;;  %v9762_v8 = vor.u32 %v11813_v55, %v9759_v63  ;;  %v10037_v55 = vld [vmem:[#allocation2 + $0x20] sm:$0xf] }
 0x377   :  { %v3874_v10 = vadd.f32 %v3873_v11, %v3649_v36  ;;  %4195 = vmatmul.bf16.gmra.mxu0 %v9742_v35  ;;  %4244 = vmatmul.bf16.gmra.mxu1 %v9746_v7  ;;  %v11884_v11 = vld [vmem:[%s16145_s3 + $0x208] sm:$0xff]  ;;  %v3883_v21 = vpop.f32.mrf.mxu2  ;;  %v11891_v36 = vld [vmem:[%s16145_s3 + $0x240] sm:$0xff] }
 0x378   :  { %4856 = vmatpush.bf16.msrb.mxu0 %v11884_v11  ;;  %v3932_v38 = vpop.f32.mrf.mxu3  ;;  %4906 = vmatpush.bf16.msrb.mxu1 %v11891_v36  ;;  %v9773_v11 = vld [vmem:[#allocation2 + $0x80] sm:$0xf] }
 0x379   :  { %v14703_v31 = vadd.f32 %v3922_v23, %v3874_v10 }
 0x37c   :  { %v3601_v54 = vpop.f32.mrf.mxu0  ;;  %v3650_v58 = vpop.f32.mrf.mxu1  ;;  %4857 = vmatpush.bf16.msrb.mxu0 %v11883_v47 }
 0x37d   :  { %v3651_v3 = vadd.f32 %v3650_v58, %v3601_v54  ;;  %v9767_v54 = vld [vmem:[#allocation2 + $0x78] sm:$0xf0] }
 0x37e   :  { %v9770_v60 = vor.u32 %v11815_v50, %v9767_v54  ;;  %v11870_v54 = vld [vmem:[#allocation2 + $0x34] sm:$0xf0] }
 0x37f   :  { %v3876_v32 = vadd.f32 %v3875_v27, %v3651_v3  ;;  %v11814_v27 = vld [vmem:[#allocation2 + $0x64] sm:$0xf0]  ;;  %v14721_v5 = vpop.f32.mrf.mxu2 }
 0x380   :  { %v9758_v45 = vor.u32 %v11814_v27, %v9757_v24  ;;  %v14729_v35 = vpop.f32.mrf.mxu3 }
 0x381   :  { %v14705_v1 = vadd.f32 %v3924_v15, %v3876_v32  ;;  %v9938_v15 = vor.u32 %v11849_v37, %v9935_v25  ;;  %v11923_v37 = vld [vmem:[%s16146_s5 + $0x78] sm:$0xff] }
 0x382   :  { %5243 = vmatpush.bf16.msrb.mxu2 %v11923_v37  ;;  %v11874_v37 = vld [vmem:[#allocation2 + $0x54] sm:$0xf0] }
 0x384   :  { %v3604_v44 = vpop.f32.mrf.mxu0  ;;  %v3653_v30 = vpop.f32.mrf.mxu1  ;;  %4549 = vmatmul.bf16.gmra.mxu2 %v9926_v19 }
 0x385   :  { %v3654_v51 = vadd.f32 %v3653_v30, %v3604_v44  ;;  %4598 = vmatmul.bf16.gmra.mxu3 %v9930_v28 }
 0x387   :  { %v3879_v34 = vadd.f32 %v3878_v46, %v3654_v51  ;;  %4200 = vmatmul.bf16.gmra.mxu0 %v9750_v52  ;;  %4249 = vmatmul.bf16.gmra.mxu1 %v9754_v40  ;;  %v3888_v46 = vpop.f32.mrf.mxu2  ;;  %v11818_v51 = vld [vmem:[#allocation2 + $0x84] sm:$0xf0]  ;;  %v9775_v52 = vld [vmem:[#allocation2 + $0x88] sm:$0xf0] }
 0x388   :  { %v3937_v58 = vpop.f32.mrf.mxu3 }
 0x389   :  { %v14717_v41 = vadd.f32 %v3927_v29, %v3879_v34  ;;  %v11816_v29 = vld [vmem:[#allocation2 + $0x74] sm:$0xf0] }
 0x38a   :  { %v9766_v53 = vor.u32 %v11816_v29, %v9765_v61  ;;  %v11922_v29 = vld [vmem:[%s16146_s5 + $0x70] sm:$0xff] }
 0x38b   :  { %5244 = vmatpush.bf16.msrb.mxu2 %v11922_v29  ;;  %v10045_v61 = vld [vmem:[#allocation2 + $0x30] sm:$0xf]  ;;  %v11876_v29 = vld [vmem:[#allocation2 + $0x64] sm:$0xf0] }
 0x38c   :  { %v3606_v43 = vpop.f32.mrf.mxu0  ;;  %v3655_v23 = vpop.f32.mrf.mxu1 }
 0x38d   :  { %v14719_v9 = vadd.f32 %v3655_v23, %v3606_v43  ;;  %v9774_v23 = vor.u32 %v11818_v51, %v9773_v11  ;;  %v11921_v51 = vld [vmem:[%s16146_s5 + $0x68] sm:$0xff] }
 0x38f   :  { %v14737_v28 = vpop.f32.mrf.mxu2  ;;  %5245 = vmatpush.bf16.msrb.mxu2 %v11921_v51 }
 0x390   :  { %v14741_v12 = vpop.f32.mrf.mxu3 }
 0x394   :  { %v3609_v33 = vpop.f32.mrf.mxu0  ;;  %v3658_v2 = vpop.f32.mrf.mxu1  ;;  %4554 = vmatmul.bf16.gmra.mxu2 %v9934_v0 }
 0x395   :  { %v3659_v16 = vadd.f32 %v3658_v2, %v3609_v33  ;;  %4603 = vmatmul.bf16.gmra.mxu3 %v9938_v15  ;;  %v11868_v15 = vld [vmem:[#allocation2 + $0x24] sm:$0xf0]  ;;  %v10039_v33 = vld [vmem:[#allocation2 + $0x28] sm:$0xf0] }
 0x397   :  { %v3884_v48 = vadd.f32 %v3883_v21, %v3659_v16  ;;  %4205 = vmatmul.bf16.gmra.mxu0 %v9758_v45  ;;  %4254 = vmatmul.bf16.gmra.mxu1 %v9762_v8  ;;  %v9778_v21 = vor.u32 %v11817_v6, %v9775_v52  ;;  %v11867_v16 = vld [vmem:[#allocation2 + $0x24] sm:$0xf]  ;;  %v10038_v8 = vor.u32 %v11868_v15, %v10037_v55  ;;  %v11872_v52 = vld [vmem:[#allocation2 + $0x44] sm:$0xf0]  ;;  %v10053_v6 = vld [vmem:[#allocation2 + $0x40] sm:$0xf] }
 0x398   :  { %v3942_v25 = vpop.f32.mrf.mxu3  ;;  %v10063_v15 = vld [vmem:[#allocation2 + $0x58] sm:$0xf0] }
 0x399   :  { %v14731_v7 = vadd.f32 %v3932_v38, %v3884_v48  ;;  %v3893_v38 = vpop.f32.mrf.mxu2  ;;  %v10042_v48 = vor.u32 %v11867_v16, %v10039_v33 }
 0x39c   :  { %v3611_v10 = vpop.f32.mrf.mxu0  ;;  %v3660_v14 = vpop.f32.mrf.mxu1 }
 0x39d   :  { %v14733_v49 = vadd.f32 %v3660_v14, %v3611_v10 }
 0x3a4   :  { %v3614_v3 = vpop.f32.mrf.mxu0  ;;  %v3663_v32 = vpop.f32.mrf.mxu1 }
 0x3a5   :  { %v3664_v56 = vadd.f32 %v3663_v32, %v3614_v3 }
 0x3a7   :  { %v3889_v19 = vadd.f32 %v3888_v46, %v3664_v56  ;;  %4210 = vmatmul.bf16.gmra.mxu0 %v9766_v53  ;;  %4259 = vmatmul.bf16.gmra.mxu1 %v9770_v60  ;;  %v10046_v56 = vor.u32 %v11870_v54, %v10045_v61  ;;  %v10071_v54 = vld [vmem:[#allocation2 + $0x68] sm:$0xf0] }
 0x3a9   :  { %v14735_v62 = vadd.f32 %v3937_v58, %v3889_v19  ;;  %v10047_v58 = vld [vmem:[#allocation2 + $0x38] sm:$0xf0] }
 0x3ac   :  { %v3616_v44 = vpop.f32.mrf.mxu0  ;;  %v3665_v30 = vpop.f32.mrf.mxu1 }
 0x3ad   :  { %v14739_v59 = vadd.f32 %v3665_v30, %v3616_v44 }
 0x3b4   :  { %v3619_v40 = vpop.f32.mrf.mxu0  ;;  %v3668_v34 = vpop.f32.mrf.mxu1 }
 0x3b5   :  { %v3669_v43 = vadd.f32 %v3668_v34, %v3619_v40  ;;  %v10055_v40 = vld [vmem:[#allocation2 + $0x48] sm:$0xf0] }
 0x3b7   :  { %v3894_v13 = vadd.f32 %v3893_v38, %v3669_v43  ;;  %4215 = vmatmul.bf16.gmra.mxu0 %v9774_v23  ;;  %4264 = vmatmul.bf16.gmra.mxu1 %v9778_v21  ;;  %v10054_v23 = vor.u32 %v11872_v52, %v10053_v6 }
 0x3b9   :  { %v14743_v20 = vadd.f32 %v3942_v25, %v3894_v13 }
 0x3bc   :  { %v3621_v27 = vpop.f32.mrf.mxu0  ;;  %v3670_v63 = vpop.f32.mrf.mxu1 }
 0x3bd   :  { %v14745_v0 = vadd.f32 %v3670_v63, %v3621_v27  ;;  %v11920_v63 = vld [vmem:[%s16146_s5 + $0x60] sm:$0xff] }
 0x3be   :  { %5246 = vmatpush.bf16.msrb.mxu2 %v11920_v63  ;;  %v11917_v63 = vld [vmem:[%s16146_s5 + $0x48] sm:$0xff] }
 0x3c4   :  { %v4181_v2 = vpop.f32.mrf.mxu0  ;;  %v4230_v24 = vpop.f32.mrf.mxu1 }
 0x3c5   :  { %v4231_v45 = vadd.f32 %v4230_v24, %v4181_v2  ;;  %v10061_v24 = vld [vmem:[#allocation2 + $0x50] sm:$0xf] }
 0x3c6   :  { %v10062_v16 = vor.u32 %v11874_v37, %v10061_v24  ;;  %v10087_v24 = vld [vmem:[#allocation2 + $0x88] sm:$0xf0] }
 0x3c7   :  { %v14751_v47 = vadd.f32 %v4231_v45, %v14661_v22  ;;  %4858 = vmatmul.bf16.vlgmr.msrb.gmra.mxu0 %v10038_v8  ;;  %4907 = vmatmul.bf16.vlgmr.msrb.gmra.mxu1 %v10042_v48  ;;  %v11869_v22 = vld [vmem:[#allocation2 + $0x34] sm:$0xf] }
 0x3c8   :  { %v10050_v53 = vor.u32 %v11869_v22, %v10047_v58 }
 0x3cc   :  { %v4183_v36 = vpop.f32.mrf.mxu0  ;;  %v4232_v10 = vpop.f32.mrf.mxu1 }
 0x3cd   :  { %v4233_v14 = vadd.f32 %v4232_v10, %v4183_v36 }
 0x3cf   :  { %v14754_v46 = vadd.f32 %v4233_v14, %v14663_v4  ;;  %v11919_v14 = vld [vmem:[%s16146_s5 + $0x58] sm:$0xff] }
 0x3d0   :  { %5247 = vmatpush.bf16.msrb.mxu2 %v11919_v14 }
 0x3d4   :  { %v4186_v3 = vpop.f32.mrf.mxu0  ;;  %v4235_v32 = vpop.f32.mrf.mxu1 }
 0x3d5   :  { %v4236_v50 = vadd.f32 %v4235_v32, %v4186_v3  ;;  %v10069_v32 = vld [vmem:[#allocation2 + $0x60] sm:$0xf] }
 0x3d6   :  { %v10070_v22 = vor.u32 %v11876_v29, %v10069_v32 }
 0x3d7   :  { %v14760_v60 = vadd.f32 %v4236_v50, %v14683_v17  ;;  %4863 = vmatmul.bf16.gmra.mxu0 %v10046_v56  ;;  %4912 = vmatmul.bf16.gmra.mxu1 %v10050_v53  ;;  %v11871_v17 = vld [vmem:[#allocation2 + $0x44] sm:$0xf] }
 0x3d8   :  { %v10058_v21 = vor.u32 %v11871_v17, %v10055_v40  ;;  %v10077_v40 = vld [vmem:[#allocation2 + $0x70] sm:$0xf]  ;;  %v14796_v17 = vpop.f32.mrf.mxu2 }
 0x3dc   :  { %v4188_v4 = vpop.f32.mrf.mxu0  ;;  %v4237_v19 = vpop.f32.mrf.mxu1 }
 0x3dd   :  { %v4238_v44 = vadd.f32 %v4237_v19, %v4188_v4  ;;  %v11918_v4 = vld [vmem:[%s16146_s5 + $0x50] sm:$0xff]  ;;  %v11878_v19 = vld [vmem:[#allocation2 + $0x74] sm:$0xf0] }
 0x3de   :  { %5248 = vmatpush.bf16.msrb.mxu2 %v11918_v4 }
 0x3df   :  { %v14763_v30 = vadd.f32 %v4238_v44, %v14685_v42  ;;  %v10079_v44 = vld [vmem:[#allocation2 + $0x78] sm:$0xf0] }
 0x3e0   :  { %v4520_v37 = vpop.f32.mrf.mxu2 }
 0x3e2   :  { %5249 = vmatpush.bf16.msrb.mxu2 %v11917_v63 }
 0x3e4   :  { %v4191_v34 = vpop.f32.mrf.mxu0  ;;  %v4240_v11 = vpop.f32.mrf.mxu1 }
 0x3e5   :  { %v4241_v43 = vadd.f32 %v4240_v11, %v4191_v34  ;;  %v11877_v34 = vld [vmem:[#allocation2 + $0x74] sm:$0xf] }
 0x3e6   :  { %v10082_v6 = vor.u32 %v11877_v34, %v10079_v44  ;;  %v11908_v44 = vld [vmem:[%s16146_s5 + $0x8] sm:$0xff] }
 0x3e7   :  { %v14769_v38 = vadd.f32 %v4241_v43, %v14693_v39  ;;  %4868 = vmatmul.bf16.gmra.mxu0 %v10054_v23  ;;  %4917 = vmatmul.bf16.gmra.mxu1 %v10058_v21  ;;  %v11873_v39 = vld [vmem:[#allocation2 + $0x54] sm:$0xf]  ;;  %v14798_v43 = vpop.f32.mrf.mxu3  ;;  %v11914_v21 = vld [vmem:[%s16146_s5 + $0x38] sm:$0xff] }
 0x3e8   :  { %v10066_v45 = vor.u32 %v11873_v39, %v10063_v15  ;;  %5346 = vmatpush.bf16.msrb.mxu3 %v11914_v21  ;;  %v4522_v29 = vpop.f32.mrf.mxu2  ;;  %v11899_v21 = vld [vmem:[#allocation4] sm:$0xff] }
 0x3ec   :  { %v4193_v42 = vpop.f32.mrf.mxu0  ;;  %v4242_v13 = vpop.f32.mrf.mxu1 }
 0x3ed   :  { %v4243_v25 = vadd.f32 %v4242_v13, %v4193_v42  ;;  %v11913_v42 = vld [vmem:[%s16146_s5 + $0x30] sm:$0xff] }
 0x3ee   :  { %5347 = vmatpush.bf16.msrb.mxu3 %v11913_v42  ;;  %v11939_v42 = vld [vmem:[%s16146_s5 + $0xb8] sm:$0xff] }
 0x3ef   :  { %v14772_v27 = vadd.f32 %v4243_v25, %v14695_v26  ;;  %v4569_v15 = vpop.f32.mrf.mxu3  ;;  %5524 = vmatpush.bf16.msra.mxu0 %v11939_v42 }
 0x3f4   :  { %v4196_v33 = vpop.f32.mrf.mxu0  ;;  %v4245_v2 = vpop.f32.mrf.mxu1 }
 0x3f5   :  { %v4246_v55 = vadd.f32 %v4245_v2, %v4196_v33  ;;  %v11911_v33 = vld [vmem:[%s16146_s5 + $0x20] sm:$0xff]  ;;  %v11880_v2 = vld [vmem:[#allocation2 + $0x84] sm:$0xf0] }
 0x3f7   :  { %v14778_v8 = vadd.f32 %v4246_v55, %v14703_v31  ;;  %4873 = vmatmul.bf16.gmra.mxu0 %v10062_v16  ;;  %4922 = vmatmul.bf16.gmra.mxu1 %v10066_v45  ;;  %v11875_v31 = vld [vmem:[#allocation2 + $0x64] sm:$0xf]  ;;  %v10085_v16 = vld [vmem:[#allocation2 + $0x80] sm:$0xf] }
 0x3f8   :  { %v10074_v50 = vor.u32 %v11875_v31, %v10071_v54  ;;  %v11879_v45 = vld [vmem:[#allocation2 + $0x84] sm:$0xf]  ;;  %v4571_v54 = vpop.f32.mrf.mxu3  ;;  %v10093_v31 = vld [vmem:[#allocation2 + $0x90] sm:$0xf] }
 0x3fc   :  { %v4198_v26 = vpop.f32.mrf.mxu0  ;;  %v4247_v48 = vpop.f32.mrf.mxu1 }
 0x3fd   :  { %v4248_v36 = vadd.f32 %v4247_v48, %v4198_v26  ;;  %v10086_v48 = vor.u32 %v11880_v2, %v10085_v16  ;;  %v11916_v2 = vld [vmem:[%s16146_s5 + $0x40] sm:$0xff]  ;;  %v11937_v16 = vld [vmem:[%s16146_s5 + $0xa8] sm:$0xff] }
 0x3fe   :  { %5250 = vmatpush.bf16.msrb.mxu2 %v11916_v2 }
 0x3ff   :  { %v14781_v10 = vadd.f32 %v4248_v36, %v14705_v1  ;;  %v10090_v36 = vor.u32 %v11879_v45, %v10087_v24  ;;  %v11938_v24 = vld [vmem:[%s16146_s5 + $0xb0] sm:$0xff] }
 0x400   :  { %v4574_v34 = vpop.f32.mrf.mxu3  ;;  %5525 = vmatpush.bf16.msra.mxu0 %v11938_v24 }
 0x404   :  { %v4201_v58 = vpop.f32.mrf.mxu0  ;;  %v4250_v3 = vpop.f32.mrf.mxu1  ;;  %5526 = vmatpush.bf16.msra.mxu0 %v11937_v16 }
 0x405   :  { %v4251_v61 = vadd.f32 %v4250_v3, %v4201_v58  ;;  %v11910_v58 = vld [vmem:[%s16146_s5 + $0x18] sm:$0xff] }
 0x407   :  { %v14787_v56 = vadd.f32 %v4251_v61, %v14717_v41  ;;  %4878 = vmatmul.bf16.gmra.mxu0 %v10070_v22  ;;  %4927 = vmatmul.bf16.gmra.mxu1 %v10074_v50  ;;  %v10078_v41 = vor.u32 %v11878_v19, %v10077_v40  ;;  %v11909_v61 = vld [vmem:[%s16146_s5 + $0x10] sm:$0xff]  ;;  %v10095_v50 = vld [vmem:[#allocation2 + $0x98] sm:$0xf0]  ;;  %v4525_v40 = vpop.f32.mrf.mxu2 }
 0x408   :  { %v11881_v22 = vld [vmem:[#allocation2 + $0x94] sm:$0xf]  ;;  %v4575_v42 = vadd.f32 %v4574_v34, %v4525_v40  ;;  %v11932_v34 = vld [vmem:[%s16146_s5 + $0x80] sm:$0xff] }
 0x409   :  { %v10098_v19 = vor.u32 %v11881_v22, %v10095_v50  ;;  %v11935_v50 = vld [vmem:[%s16146_s5 + $0x98] sm:$0xff] }
 0x40c   :  { %v14789_v1 = vpop.f32.mrf.mxu0  ;;  %v14791_v53 = vpop.f32.mrf.mxu1 }
 0x414   :  { %v4206_v51 = vpop.f32.mrf.mxu0  ;;  %v4255_v52 = vpop.f32.mrf.mxu1 }
 0x415   :  { %v4256_v11 = vadd.f32 %v4255_v52, %v4206_v51 }
 0x417   :  { %v14801_v23 = vadd.f32 %v4256_v11, %v14731_v7  ;;  %4883 = vmatmul.bf16.gmra.mxu0 %v10078_v41  ;;  %4932 = vmatmul.bf16.gmra.mxu1 %v10082_v6  ;;  %v11912_v7 = vld [vmem:[%s16146_s5 + $0x28] sm:$0xff]  ;;  %v11907_v6 = vld [vmem:[%s16146_s5] sm:$0xff] }
 0x418   :  { %5348 = vmatpush.bf16.msrb.mxu3 %v11912_v7 }
 0x41c   :  { %v14809_v13 = vpop.f32.mrf.mxu0  ;;  %v14811_v25 = vpop.f32.mrf.mxu1  ;;  %5349 = vmatpush.bf16.msrb.mxu3 %v11911_v33 }
 0x41d   :  { %v4576_v33 = vpop.f32.mrf.mxu3 }
 0x420   :  { %5350 = vmatpush.bf16.msrb.mxu3 %v11910_v58  ;;  %v14866_v58 = vld [vmem:[%s16147_s4] ss:$0 sm:$0xff] }
 0x424   :  { %v4211_v39 = vpop.f32.mrf.mxu0  ;;  %v4260_v55 = vpop.f32.mrf.mxu1  ;;  %5351 = vmatpush.bf16.msrb.mxu3 %v11909_v61 }
 0x425   :  { %v4261_v26 = vadd.f32 %v4260_v55, %v4211_v39  ;;  %v11900_v39 = vld [vmem:[#allocation4 + $0x8] sm:$0xff]  ;;  %v4570_v55 = vadd.f32 %v4569_v15, %v4520_v37  ;;  %v11936_v37 = vld [vmem:[%s16146_s5 + $0xa0] sm:$0xff]  ;;  %v14873_v61 = vpop.f32.mrf.mxu3 }
 0x426   :  { %5251 = vmatmul.bf16.vlgmr.msrb.gmra.mxu2 %v11900_v39  ;;  %5527 = vmatpush.bf16.msra.mxu0 %v11936_v37 }
 0x427   :  { %v14823_v14 = vadd.f32 %v4261_v26, %v14735_v62  ;;  %4888 = vmatmul.bf16.gmra.mxu0 %v10086_v48  ;;  %4937 = vmatmul.bf16.gmra.mxu1 %v10090_v36  ;;  %v11882_v62 = vld [vmem:[#allocation2 + $0x94] sm:$0xf0]  ;;  %v4609_v48 = vadd.f32 %v4570_v55, %v14751_v47  ;;  %v4572_v47 = vadd.f32 %v4571_v54, %v4522_v29  ;;  %v11934_v29 = vld [vmem:[%s16146_s5 + $0x90] sm:$0xff]  ;;  %v11953_v55 = vld [vmem:[%s16146_s5 + $0xe8] sm:$0xff] }
 0x428   :  { %v10094_v4 = vor.u32 %v11882_v62, %v10093_v31  ;;  %5352 = vmatpush.bf16.msrb.mxu3 %v11908_v44  ;;  %v11954_v54 = vld [vmem:[%s16146_s5 + $0xf0] sm:$0xff] }
 0x42a   :  { %5528 = vmatpush.bf16.msra.mxu0 %v11935_v50 }
 0x42c   :  { %v14828_v3 = vpop.f32.mrf.mxu0  ;;  %v14830_v32 = vpop.f32.mrf.mxu1  ;;  %5353 = vmatpush.bf16.msrb.mxu3 %v11907_v6 }
 0x42d   :  { %v14892_v2 = vpop.f32.mrf.mxu3 }
 0x42e   :  { %5529 = vmatpush.bf16.msra.mxu0 %v11934_v29 }
 0x42f   :  { %5354 = vmatmul.bf16.vlgmr.msrb.gmra.mxu3 %v11899_v21 }
 0x434   :  { %v4216_v51 = vpop.f32.mrf.mxu0  ;;  %v4265_v52 = vpop.f32.mrf.mxu1 }
 0x435   :  { %v4266_v11 = vadd.f32 %v4265_v52, %v4216_v51  ;;  %v4610_v51 = vadd.f32 %v4572_v47, %v14754_v46 }
 0x437   :  { %v14839_v41 = vadd.f32 %v4266_v11, %v14743_v20  ;;  %4893 = vmatmul.bf16.gmra.mxu0 %v10094_v4  ;;  %4942 = vmatmul.bf16.gmra.mxu1 %v10098_v19  ;;  %v14851_v20 = vpop.f32.mrf.mxu2  ;;  %v11955_v4 = vld [vmem:[%s16146_s5 + $0xf8] sm:$0xff] }
 0x438   :  { %5718 = vmatpush.bf16.msra.mxu1 %v11955_v4  ;;  %v4577_v47 = vadd.f32 %v4576_v33, %v14851_v20  ;;  %v11951_v4 = vld [vmem:[%s16146_s5 + $0xd8] sm:$0xff]  ;;  %v11950_v33 = vld [vmem:[%s16146_s5 + $0xd0] sm:$0xff] }
 0x43c   :  { %v14847_v7 = vpop.f32.mrf.mxu0  ;;  %v14849_v63 = vpop.f32.mrf.mxu1  ;;  %5719 = vmatpush.bf16.msra.mxu1 %v11954_v54 }
 0x43f   :  { %v14871_v15 = vpop.f32.mrf.mxu2  ;;  %5359 = vmatmul.bf16.gmra.mxu3 %v11900_v39  ;;  %v11933_v39 = vld [vmem:[%s16146_s5 + $0x88] sm:$0xff] }
 0x440   :  { %5530 = vmatpush.bf16.msra.mxu0 %v11933_v39  ;;  %5720 = vmatpush.bf16.msra.mxu1 %v11953_v55 }
 0x444   :  { %v4859_v45 = vpop.f32.mrf.mxu0  ;;  %v4908_v26 = vpop.f32.mrf.mxu1  ;;  %5531 = vmatpush.bf16.msra.mxu0 %v11932_v34 }
 0x445   :  { %v4909_v36 = vadd.f32 %v4908_v26, %v4859_v45 }
 0x447   :  { %v4948_v31 = vadd.f32 %v4909_v36, %v4609_v48  ;;  %v14890_v46 = vpop.f32.mrf.mxu2  ;;  %v4611_v48 = vadd.f32 %v4575_v42, %v14760_v60  ;;  %v11971_v60 = vld [vmem:[%s16146_s5 + $0x138] sm:$0xff] }
 0x448   :  { %5912 = vmatpush.bf16.msra.mxu2 %v11971_v60 }
 0x449   :  { %v4968_v62 = vadd.f32 %v14866_v58, %v4948_v31  ;;  %v11952_v31 = vld [vmem:[%s16146_s5 + $0xe0] sm:$0xff] }
 0x44a   :  { %5721 = vmatpush.bf16.msra.mxu1 %v11952_v31 }
 0x44b   :  { %v4984_v22 = vsub.f32 0.0, %v4968_v62 }
 0x44c   :  { %v4861_v19 = vpop.f32.mrf.mxu0  ;;  %v4910_v44 = vpop.f32.mrf.mxu1 }
 0x44d   :  { %v4911_v52 = vadd.f32 %v4910_v44, %v4861_v19  ;;  %v5000_v11 = vmul.f32 1.442695, %v4984_v22 }
 0x44e   :  { %5722 = vmatpush.bf16.msra.mxu1 %v11951_v4 }
 0x44f   :  { %v4949_v6 = vadd.f32 %v4911_v52, %v4610_v51  ;;  %12529 = vpow2.f32 %v5000_v11  ;;  %v4535_v52 = vpop.f32.mrf.mxu2  ;;  %v4584_v11 = vpop.f32.mrf.mxu3 }
 0x451   :  { %v4969_v21 = vadd.f32 %v14866_v58, %v4949_v6  ;;  %v4612_v6 = vadd.f32 %v4577_v47, %v14763_v30  ;;  %v11949_v30 = vld [vmem:[%s16146_s5 + $0xc8] sm:$0xff]  ;;  %v4582_v47 = vadd.f32 %v14892_v2, %v14890_v46  ;;  %v4585_v2 = vadd.f32 %v4584_v11, %v4535_v52 }
 0x452   :  { %5723 = vmatpush.bf16.msra.mxu1 %v11950_v33  ;;  %v11969_v52 = vld [vmem:[%s16146_s5 + $0x128] sm:$0xff] }
 0x453   :  { %v4985_v24 = vsub.f32 0.0, %v4969_v21 }
 0x454   :  { %v4864_v16 = vpop.f32.mrf.mxu0  ;;  %v4913_v45 = vpop.f32.mrf.mxu1 }
 0x455   :  { %v5002_v26 = vmul.f32 1.442695, %v4985_v24  ;;  %v4914_v36 = vadd.f32 %v4913_v45, %v4864_v16  ;;  %v12530_v37 = vpop.eup %12529  ;;  %v4580_v24 = vadd.f32 %v14873_v61, %v14871_v15  ;;  %v11948_v15 = vld [vmem:[%s16146_s5 + $0xc0] sm:$0xff] }
 0x456   :  { %v5032_v22 = vadd.f32 1.0, %v12530_v37  ;;  %5724 = vmatpush.bf16.msra.mxu1 %v11949_v30 }
 0x457   :  { %12531 = vpow2.f32 %v5002_v26  ;;  %v4950_v40 = vadd.f32 %v4914_v36, %v4611_v48  ;;  %v4613_v48 = vadd.f32 %v4580_v24, %v14769_v38  ;;  %v4537_v34 = vpop.f32.mrf.mxu2  ;;  %v4586_v31 = vpop.f32.mrf.mxu3  ;;  %v11970_v38 = vld [vmem:[%s16146_s5 + $0x130] sm:$0xff] }
 0x458   :  { %12533 = vrcp.f32 %v5032_v22  ;;  %5913 = vmatpush.bf16.msra.mxu2 %v11970_v38  ;;  %v4587_v11 = vadd.f32 %v4586_v31, %v4537_v34  ;;  %v3881_v31 = vadd.f32 %v14707_v18, %v14719_v9 }
 0x459   :  { %v4970_v62 = vadd.f32 %v14866_v58, %v4950_v40 }
 0x45a   :  { %5725 = vmatpush.bf16.msra.mxu1 %v11948_v15 }
 0x45b   :  { %v4986_v50 = vsub.f32 0.0, %v4970_v62 }
 0x45c   :  { %v4866_v19 = vpop.f32.mrf.mxu0  ;;  %v4915_v44 = vpop.f32.mrf.mxu1  ;;  %5914 = vmatpush.bf16.msra.mxu2 %v11969_v52 }
 0x45d   :  { %v12532_v51 = vpop.eup %12531  ;;  %v4916_v29 = vadd.f32 %v4915_v44, %v4866_v19  ;;  %v5004_v21 = vmul.f32 1.442695, %v4986_v50 }
 0x45e   :  { %v5033_v54 = vadd.f32 1.0, %v12532_v51  ;;  %v12534_v45 = vpop.eup %12533  ;;  %v4614_v51 = vadd.f32 %v4582_v47, %v14772_v27 }
 0x45f   :  { %v4951_v20 = vadd.f32 %v4916_v29, %v4612_v6  ;;  %v4589_v24 = vpop.f32.mrf.mxu3 }
 0x460   :  { %12535 = vrcp.f32 %v5033_v54 }
 0x461   :  { %v4971_v42 = vadd.f32 %v14866_v58, %v4951_v20  ;;  %12537 = vpow2.f32 %v5004_v21 }
 0x463   :  { %v4987_v39 = vsub.f32 0.0, %v4971_v42  ;;  %v4540_v42 = vpop.f32.mrf.mxu2 }
 0x464   :  { %v4869_v55 = vpop.f32.mrf.mxu0  ;;  %v4918_v16 = vpop.f32.mrf.mxu1 }
 0x465   :  { %v5006_v26 = vmul.f32 1.442695, %v4987_v39  ;;  %v4919_v36 = vadd.f32 %v4918_v16, %v4869_v55 }
 0x466   :  { %v12536_v40 = vpop.eup %12535 }
 0x467   :  { %v12176_v37 = vpack.c.bf16 %v12536_v40, %v12534_v45  ;;  %12539 = vpow2.f32 %v5006_v26  ;;  %v4952_v62 = vadd.f32 %v4919_v36, %v4613_v48  ;;  %v12538_v61 = vpop.eup %12537  ;;  %v4615_v45 = vadd.f32 %v4585_v2, %v14778_v8 }
 0x468   :  { %v5034_v22 = vadd.f32 1.0, %v12538_v61  ;;  %v4591_v61 = vpop.f32.mrf.mxu3 }
 0x469   :  { %12253 = vst [vmem:[#allocation4 + $0x10] sm:$0xff] %v12176_v37   ;;  %v4972_v60 = vadd.f32 %v14866_v58, %v4952_v62 }
 0x46a   :  { %12541 = vrcp.f32 %v5034_v22 }
 0x46b   :  { %v4988_v50 = vsub.f32 0.0, %v4972_v60  ;;  %v4542_v15 = vpop.f32.mrf.mxu2 }
 0x46c   :  { %v4871_v4 = vpop.f32.mrf.mxu0  ;;  %v4920_v19 = vpop.f32.mrf.mxu1 }
 0x46d   :  { %v12540_v44 = vpop.eup %12539  ;;  %v4921_v6 = vadd.f32 %v4920_v19, %v4871_v4  ;;  %v5008_v54 = vmul.f32 1.442695, %v4988_v50  ;;  %v4616_v50 = vadd.f32 %v4587_v11, %v14781_v10 }
 0x46e   :  { %v5035_v29 = vadd.f32 1.0, %v12540_v44 }
 0x46f   :  { %v4953_v21 = vadd.f32 %v4921_v6, %v4614_v51 }
 0x470   :  { %12543 = vrcp.f32 %v5035_v29  ;;  %v11901_v20 = vld [vmem:[#allocation4 + $0x10] sm:$0xff]  ;;  %v12542_v55 = vpop.eup %12541 }
 0x471   :  { %v11924_v33 = vld [vmem:[#allocation4 + $0x10] sm:$0xff]  ;;  %v4973_v46 = vadd.f32 %v14866_v58, %v4953_v21  ;;  %12545 = vpow2.f32 %v5008_v54  ;;  %5256 = vmatmul.bf16.gmra.mxu2 %v11901_v20  ;;  %5364 = vmatmul.bf16.gmra.mxu3 %v11901_v20  ;;  %v4590_v21 = vadd.f32 %v4589_v24, %v4540_v42 }
 0x472   :  { %5532 = vmatmul.bf16.vlgmr.msra.gmra.mxu0 %v11924_v33 }
 0x473   :  { %v4989_v39 = vsub.f32 0.0, %v4973_v46  ;;  %v4545_v2 = vpop.f32.mrf.mxu2 }
 0x474   :  { %v4874_v30 = vpop.f32.mrf.mxu0  ;;  %v4923_v27 = vpop.f32.mrf.mxu1 }
 0x475   :  { %v5010_v16 = vmul.f32 1.442695, %v4989_v39  ;;  %v4924_v26 = vadd.f32 %v4923_v27, %v4874_v30  ;;  %v4594_v39 = vpop.f32.mrf.mxu3  ;;  %v4253_v30 = vadd.f32 %v14791_v53, %v14789_v1  ;;  %v4592_v1 = vadd.f32 %v4591_v61, %v4542_v15 }
 0x476   :  { %v12544_v48 = vpop.eup %12543  ;;  %v3886_v61 = vadd.f32 %v14721_v5, %v14733_v49 }
 0x477   :  { %v12181_v36 = vpack.c.bf16 %v12544_v48, %v12542_v55  ;;  %12547 = vpow2.f32 %v5010_v16  ;;  %v4954_v40 = vadd.f32 %v4924_v26, %v4615_v45  ;;  %v12546_v37 = vpop.eup %12545  ;;  %v4617_v55 = vadd.f32 %v4590_v21, %v14787_v56 }
 0x478   :  { %v5036_v60 = vadd.f32 1.0, %v12546_v37  ;;  %v3930_v26 = vadd.f32 %v14709_v57, %v3881_v31 }
 0x479   :  { %12254 = vst [vmem:[#allocation4 + $0x18] sm:$0xff] %v12181_v36   ;;  %v4974_v62 = vadd.f32 %v14866_v58, %v4954_v40  ;;  %v11968_v36 = vld [vmem:[%s16146_s5 + $0x120] sm:$0xff] }
 0x47a   :  { %12549 = vrcp.f32 %v5036_v60  ;;  %v4279_v24 = vadd.f32 %v4253_v30, %v3930_v26  ;;  %5915 = vmatpush.bf16.msra.mxu2 %v11968_v36 }
 0x47b   :  { %v4990_v38 = vsub.f32 0.0, %v4974_v62 }
 0x47c   :  { %v4876_v8 = vpop.f32.mrf.mxu0  ;;  %v4925_v47 = vpop.f32.mrf.mxu1  ;;  %v4618_v57 = vadd.f32 %v4592_v1, %v4279_v24 }
 0x47d   :  { %v12548_v22 = vpop.eup %12547  ;;  %v4926_v4 = vadd.f32 %v4925_v47, %v4876_v8  ;;  %v5012_v44 = vmul.f32 1.442695, %v4990_v38  ;;  %v4547_v38 = vpop.f32.mrf.mxu2 }
 0x47e   :  { %v5037_v19 = vadd.f32 1.0, %v12548_v22  ;;  %v4596_v8 = vpop.f32.mrf.mxu3 }
 0x47f   :  { %v4955_v51 = vadd.f32 %v4926_v4, %v4616_v50 }
 0x480   :  { %12551 = vrcp.f32 %v5037_v19  ;;  %v11902_v6 = vld [vmem:[#allocation4 + $0x18] sm:$0xff]  ;;  %v12550_v46 = vpop.eup %12549  ;;  %v4595_v19 = vadd.f32 %v4594_v39, %v4545_v2 }
 0x481   :  { %v11925_v29 = vld [vmem:[#allocation4 + $0x18] sm:$0xff]  ;;  %v4975_v34 = vadd.f32 %v14866_v58, %v4955_v51  ;;  %12553 = vpow2.f32 %v5012_v44  ;;  %5261 = vmatmul.bf16.gmra.mxu2 %v11902_v6  ;;  %5369 = vmatmul.bf16.gmra.mxu3 %v11902_v6 }
 0x482   :  { %v11940_v54 = vld [vmem:[#allocation4 + $0x18] sm:$0xff]  ;;  %5537 = vmatmul.bf16.gmra.mxu0 %v11925_v29  ;;  %v4619_v31 = vadd.f32 %v4595_v19, %v14801_v23  ;;  %v11966_v19 = vld [vmem:[%s16146_s5 + $0x110] sm:$0xff] }
 0x483   :  { %v4991_v20 = vsub.f32 0.0, %v4975_v34  ;;  %5726 = vmatmul.bf16.vlgmr.msra.gmra.mxu1 %v11940_v54  ;;  %v4258_v54 = vadd.f32 %v14811_v25, %v14809_v13  ;;  %v11967_v13 = vld [vmem:[%s16146_s5 + $0x118] sm:$0xff]  ;;  %v4597_v25 = vadd.f32 %v4596_v8, %v4547_v38 }
 0x484   :  { %v4879_v10 = vpop.f32.mrf.mxu0  ;;  %v4928_v33 = vpop.f32.mrf.mxu1  ;;  %5916 = vmatpush.bf16.msra.mxu2 %v11967_v13 }
 0x485   :  { %v5014_v27 = vmul.f32 1.442695, %v4991_v20  ;;  %v4929_v16 = vadd.f32 %v4928_v33, %v4879_v10  ;;  %v3935_v10 = vadd.f32 %v14729_v35, %v3886_v61 }
 0x486   :  { %v12552_v45 = vpop.eup %12551  ;;  %v4599_v2 = vpop.f32.mrf.mxu3 }
 0x487   :  { %v12186_v18 = vpack.c.bf16 %v12552_v45, %v12550_v46  ;;  %12555 = vpow2.f32 %v5014_v27  ;;  %v4956_v9 = vadd.f32 %v4929_v16, %v4617_v55  ;;  %v12554_v42 = vpop.eup %12553  ;;  %v4550_v46 = vpop.f32.mrf.mxu2  ;;  %v4281_v39 = vadd.f32 %v4258_v54, %v3935_v10 }
 0x488   :  { %v5038_v53 = vadd.f32 1.0, %v12554_v42  ;;  %5917 = vmatpush.bf16.msra.mxu2 %v11966_v19 }
 0x489   :  { %12255 = vst [vmem:[#allocation4 + $0x20] sm:$0xff] %v12186_v18   ;;  %v4976_v48 = vadd.f32 %v14866_v58, %v4956_v9  ;;  %v4620_v45 = vadd.f32 %v4597_v25, %v4281_v39 }
 0x48a   :  { %12557 = vrcp.f32 %v5038_v53  ;;  %v3891_v53 = vadd.f32 %v14737_v28, %v14739_v59 }
 0x48b   :  { %v4992_v40 = vsub.f32 0.0, %v4976_v48 }
 0x48c   :  { %v4881_v56 = vpop.f32.mrf.mxu0  ;;  %v4930_v37 = vpop.f32.mrf.mxu1 }
 0x48d   :  { %v12556_v62 = vpop.eup %12555  ;;  %v4931_v52 = vadd.f32 %v4930_v37, %v4881_v56  ;;  %v5016_v60 = vmul.f32 1.442695, %v4992_v40  ;;  %v4600_v40 = vadd.f32 %v4599_v2, %v4550_v46  ;;  %v3896_v46 = vadd.f32 %v14796_v17, %v14745_v0 }
 0x48e   :  { %v5039_v11 = vadd.f32 1.0, %v12556_v62  ;;  %v4601_v37 = vpop.f32.mrf.mxu3 }
 0x48f   :  { %v4957_v47 = vadd.f32 %v4931_v52, %v4618_v57  ;;  %v4552_v56 = vpop.f32.mrf.mxu2  ;;  %v4621_v8 = vadd.f32 %v4600_v40, %v14823_v14 }
 0x490   :  { %12559 = vrcp.f32 %v5039_v11  ;;  %v11903_v22 = vld [vmem:[#allocation4 + $0x20] sm:$0xff]  ;;  %v12558_v29 = vpop.eup %12557 }
 0x491   :  { %v11926_v50 = vld [vmem:[#allocation4 + $0x20] sm:$0xff]  ;;  %v4977_v15 = vadd.f32 %v14866_v58, %v4957_v47  ;;  %12561 = vpow2.f32 %v5016_v60  ;;  %5266 = vmatmul.bf16.gmra.mxu2 %v11903_v22  ;;  %5374 = vmatmul.bf16.gmra.mxu3 %v11903_v22  ;;  %v4263_v60 = vadd.f32 %v14830_v32, %v14828_v3  ;;  %v4602_v3 = vadd.f32 %v4601_v37, %v4552_v56 }
 0x492   :  { %v11941_v4 = vld [vmem:[#allocation4 + $0x20] sm:$0xff]  ;;  %5542 = vmatmul.bf16.gmra.mxu0 %v11926_v50  ;;  %v3940_v50 = vadd.f32 %v14741_v12, %v3891_v53 }
 0x493   :  { %v4993_v44 = vsub.f32 0.0, %v4977_v15  ;;  %5731 = vmatmul.bf16.gmra.mxu1 %v11941_v4 }
 0x494   :  { %v4884_v51 = vpop.f32.mrf.mxu0  ;;  %v4933_v6 = vpop.f32.mrf.mxu1  ;;  %v4283_v15 = vadd.f32 %v4263_v60, %v3940_v50 }
 0x495   :  { %v5018_v34 = vmul.f32 1.442695, %v4993_v44  ;;  %v4934_v21 = vadd.f32 %v4933_v6, %v4884_v51 }
 0x496   :  { %v12560_v20 = vpop.eup %12559  ;;  %v4622_v12 = vadd.f32 %v4602_v3, %v4283_v15 }
 0x497   :  { %v12191_v33 = vpack.c.bf16 %v12560_v20, %v12558_v29  ;;  %12563 = vpow2.f32 %v5018_v34  ;;  %v4958_v5 = vadd.f32 %v4934_v21, %v4619_v31  ;;  %v12562_v49 = vpop.eup %12561  ;;  %v4555_v54 = vpop.f32.mrf.mxu2 }
 0x498   :  { %v5040_v23 = vadd.f32 1.0, %v12562_v49  ;;  %v4604_v34 = vpop.f32.mrf.mxu3 }
 0x499   :  { %12256 = vst [vmem:[#allocation4 + $0x28] sm:$0xff] %v12191_v33   ;;  %v4978_v30 = vadd.f32 %v14866_v58, %v4958_v5  ;;  %v4605_v2 = vadd.f32 %v4604_v34, %v4555_v54 }
 0x49a   :  { %12565 = vrcp.f32 %v5040_v23  ;;  %v4268_v23 = vadd.f32 %v14849_v63, %v14847_v7  ;;  %v11965_v7 = vld [vmem:[%s16146_s5 + $0x108] sm:$0xff] }
 0x49b   :  { %v4994_v27 = vsub.f32 0.0, %v4978_v30  ;;  %5918 = vmatpush.bf16.msra.mxu2 %v11965_v7 }
 0x49c   :  { %v4886_v55 = vpop.f32.mrf.mxu0  ;;  %v4935_v35 = vpop.f32.mrf.mxu1 }
 0x49d   :  { %v12564_v16 = vpop.eup %12563  ;;  %v4936_v26 = vadd.f32 %v4935_v35, %v4886_v55  ;;  %v5020_v9 = vmul.f32 1.442695, %v4994_v27  ;;  %v4623_v55 = vadd.f32 %v4605_v2, %v14839_v41 }
 0x49e   :  { %v5041_v18 = vadd.f32 1.0, %v12564_v16 }
 0x49f   :  { %v4959_v42 = vadd.f32 %v4936_v26, %v4620_v45  ;;  %v3945_v45 = vadd.f32 %v14798_v43, %v3896_v46  ;;  %v11964_v43 = vld [vmem:[%s16146_s5 + $0x100] sm:$0xff] }
 0x4a0   :  { %12567 = vrcp.f32 %v5041_v18  ;;  %v11904_v24 = vld [vmem:[#allocation4 + $0x28] sm:$0xff]  ;;  %v12566_v11 = vpop.eup %12565  ;;  %v4557_v18 = vpop.f32.mrf.mxu2  ;;  %5919 = vmatpush.bf16.msra.mxu2 %v11964_v43  ;;  %v11983_v43 = vld [vmem:[%s16148_s7 + $0x18] sm:$0xff] }
 0x4a1   :  { %v11927_v48 = vld [vmem:[#allocation4 + $0x28] sm:$0xff]  ;;  %v4979_v1 = vadd.f32 %v14866_v58, %v4959_v42  ;;  %12569 = vpow2.f32 %v5020_v9  ;;  %5271 = vmatmul.bf16.gmra.mxu2 %v11904_v24  ;;  %5379 = vmatmul.bf16.gmra.mxu3 %v11904_v24  ;;  %v4606_v9 = vpop.f32.mrf.mxu3  ;;  %v4285_v42 = vadd.f32 %v4268_v23, %v3945_v45  ;;  %v11991_v45 = vld [vmem:[%s16148_s7 + $0x50] sm:$0xff] }
 0x4a2   :  { %v11942_v36 = vld [vmem:[#allocation4 + $0x28] sm:$0xff]  ;;  %5547 = vmatmul.bf16.gmra.mxu0 %v11927_v48  ;;  %v4607_v63 = vadd.f32 %v4606_v9, %v4557_v18 }
 0x4a3   :  { %v4995_v62 = vsub.f32 0.0, %v4979_v1  ;;  %5736 = vmatmul.bf16.gmra.mxu1 %v11942_v36  ;;  %v11985_v18 = vld [vmem:[%s16148_s7 + $0x28] sm:$0xff] }
 0x4a4   :  { %v4889_v57 = vpop.f32.mrf.mxu0  ;;  %v4938_v52 = vpop.f32.mrf.mxu1  ;;  %v4624_v40 = vadd.f32 %v4607_v63, %v4285_v42  ;;  %v11962_v42 = vld [vmem:[#allocation4 + $0x50] sm:$0xff]  ;;  %v11984_v63 = vld [vmem:[%s16148_s7 + $0x20] sm:$0xff] }
 0x4a5   :  { %v5022_v38 = vmul.f32 1.442695, %v4995_v62  ;;  %v4939_v47 = vadd.f32 %v4938_v52, %v4889_v57 }
 0x4a6   :  { %v12568_v22 = vpop.eup %12567 }
 0x4a7   :  { %v12196_v28 = vpack.c.bf16 %v12568_v22, %v12566_v11  ;;  %12571 = vpow2.f32 %v5022_v38  ;;  %v4960_v59 = vadd.f32 %v4939_v47, %v4621_v8  ;;  %v12570_v4 = vpop.eup %12569 }
 0x4a8   :  { %v5042_v32 = vadd.f32 1.0, %v12570_v4 }
 0x4a9   :  { %12257 = vst [vmem:[#allocation4 + $0x30] sm:$0xff] %v12196_v28   ;;  %v4980_v61 = vadd.f32 %v14866_v58, %v4960_v59  ;;  %v14994_v54 = vpop.f32.mrf.mxu2 }
 0x4aa   :  { %12573 = vrcp.f32 %v5042_v32 }
 0x4ab   :  { %v4996_v44 = vsub.f32 0.0, %v4980_v61 }
 0x4ac   :  { %v4891_v14 = vpop.f32.mrf.mxu0  ;;  %v4940_v51 = vpop.f32.mrf.mxu1 }
 0x4ad   :  { %v12572_v6 = vpop.eup %12571  ;;  %v4941_v29 = vadd.f32 %v4940_v51, %v4891_v14  ;;  %v5024_v21 = vmul.f32 1.442695, %v4996_v44 }
 0x4ae   :  { %v5043_v31 = vadd.f32 1.0, %v12572_v6 }
 0x4af   :  { %v4961_v20 = vadd.f32 %v4941_v29, %v4622_v12  ;;  %v11956_v12 = vld [vmem:[#allocation4 + $0x20] sm:$0xff]  ;;  %v11996_v29 = vld [vmem:[%s16148_s7 + $0x78] sm:$0xff] }
 0x4b0   :  { %12575 = vrcp.f32 %v5043_v31  ;;  %v11905_v10 = vld [vmem:[#allocation4 + $0x30] sm:$0xff]  ;;  %v12574_v25 = vpop.eup %12573  ;;  %6256 = vmatpush.bf16.msra.mxu3 %v11996_v29 }
 0x4b1   :  { %v11928_v33 = vld [vmem:[#allocation4 + $0x30] sm:$0xff]  ;;  %v4981_v49 = vadd.f32 %v14866_v58, %v4961_v20  ;;  %12577 = vpow2.f32 %v5024_v21  ;;  %5276 = vmatmul.bf16.gmra.mxu2 %v11905_v10  ;;  %5384 = vmatmul.bf16.gmra.mxu3 %v11905_v10  ;;  %v14996_v34 = vpop.f32.mrf.mxu2  ;;  %v11957_v21 = vld [vmem:[#allocation4 + $0x28] sm:$0xff] }
 0x4b2   :  { %v11943_v5 = vld [vmem:[#allocation4 + $0x30] sm:$0xff]  ;;  %5552 = vmatmul.bf16.gmra.mxu0 %v11928_v33 }
 0x4b3   :  { %v4997_v39 = vsub.f32 0.0, %v4981_v49  ;;  %5741 = vmatmul.bf16.gmra.mxu1 %v11943_v5  ;;  %v11947_v31 = vld [vmem:[#allocation4 + $0x50] sm:$0xff]  ;;  %v11994_v49 = vld [vmem:[%s16148_s7 + $0x68] sm:$0xff] }
 0x4b4   :  { %v4894_v30 = vpop.f32.mrf.mxu0  ;;  %v4943_v13 = vpop.f32.mrf.mxu1  ;;  %v11995_v20 = vld [vmem:[%s16148_s7 + $0x70] sm:$0xff] }
 0x4b5   :  { %v5026_v27 = vmul.f32 1.442695, %v4997_v39  ;;  %v4944_v35 = vadd.f32 %v4943_v13, %v4894_v30  ;;  %6257 = vmatpush.bf16.msra.mxu3 %v11995_v20  ;;  %v11958_v5 = vld [vmem:[#allocation4 + $0x30] sm:$0xff]  ;;  %v11993_v30 = vld [vmem:[%s16148_s7 + $0x60] sm:$0xff] }
 0x4b6   :  { %v12576_v16 = vpop.eup %12575 }
 0x4b7   :  { %v12201_v26 = vpack.c.bf16 %v12576_v16, %v12574_v25  ;;  %12579 = vpow2.f32 %v5026_v27  ;;  %v4962_v0 = vadd.f32 %v4944_v35, %v4623_v55  ;;  %v12578_v17 = vpop.eup %12577  ;;  %v11992_v27 = vld [vmem:[%s16148_s7 + $0x58] sm:$0xff] }
 0x4b8   :  { %v5044_v41 = vadd.f32 1.0, %v12578_v17  ;;  %v11986_v17 = vld [vmem:[%s16148_s7 + $0x30] sm:$0xff] }
 0x4b9   :  { %12258 = vst [vmem:[#allocation4 + $0x38] sm:$0xff] %v12201_v26   ;;  %v4982_v24 = vadd.f32 %v14866_v58, %v4962_v0  ;;  %6258 = vmatpush.bf16.msra.mxu3 %v11994_v49  ;;  %v11987_v26 = vld [vmem:[%s16148_s7 + $0x38] sm:$0xff] }
 0x4ba   :  { %12581 = vrcp.f32 %v5044_v41  ;;  %6359 = vmatpush.bf16.msrb.mxu0 %v11987_v26  ;;  %v11990_v41 = vld [vmem:[%s16148_s7 + $0x48] sm:$0xff]  ;;  %v12028_v49 = vld [vmem:[%s16148_s7 + $0xf8] sm:$0xff]  ;;  %v12027_v26 = vld [vmem:[%s16148_s7 + $0xf0] sm:$0xff] }
 0x4bb   :  { %v4998_v48 = vsub.f32 0.0, %v4982_v24  ;;  %v5355_v24 = vpop.f32.mrf.mxu3  ;;  %6731 = vmatpush.bf16.msrb.mxu2 %v12028_v49 }
 0x4bc   :  { %v4896_v36 = vpop.f32.mrf.mxu0  ;;  %v4945_v1 = vpop.f32.mrf.mxu1 }
 0x4bd   :  { %v12580_v53 = vpop.eup %12579  ;;  %v4946_v56 = vadd.f32 %v4945_v1, %v4896_v36  ;;  %v5028_v62 = vmul.f32 1.442695, %v4998_v48  ;;  %6259 = vmatpush.bf16.msra.mxu3 %v11993_v30 }
 0x4be   :  { %v5045_v37 = vadd.f32 1.0, %v12580_v53  ;;  %6360 = vmatpush.bf16.msrb.mxu0 %v11986_v17 }
 0x4bf   :  { %v4963_v57 = vadd.f32 %v4946_v56, %v4624_v40  ;;  %6732 = vmatpush.bf16.msrb.mxu2 %v12027_v26 }
 0x4c0   :  { %12583 = vrcp.f32 %v5045_v37  ;;  %v11906_v52 = vld [vmem:[#allocation4 + $0x38] sm:$0xff]  ;;  %v12582_v47 = vpop.eup %12581 }
 0x4c1   :  { %v11929_v11 = vld [vmem:[#allocation4 + $0x38] sm:$0xff]  ;;  %v4983_v38 = vadd.f32 %v14866_v58, %v4963_v57  ;;  %12585 = vpow2.f32 %v5028_v62  ;;  %5281 = vmatmul.bf16.gmra.mxu2 %v11906_v52  ;;  %5389 = vmatmul.bf16.gmra.mxu3 %v11906_v52  ;;  %v11982_v62 = vld [vmem:[%s16148_s7 + $0x10] sm:$0xff]  ;;  %v11981_v57 = vld [vmem:[%s16148_s7 + $0x8] sm:$0xff] }
 0x4c2   :  { %v11944_v60 = vld [vmem:[#allocation4 + $0x38] sm:$0xff]  ;;  %5557 = vmatmul.bf16.gmra.mxu0 %v11929_v11  ;;  %6260 = vmatpush.bf16.msra.mxu3 %v11992_v27 }
 0x4c3   :  { %v4999_v8 = vsub.f32 0.0, %v4983_v38  ;;  %5746 = vmatmul.bf16.gmra.mxu1 %v11944_v60  ;;  %v11959_v39 = vld [vmem:[#allocation4 + $0x38] sm:$0xff]  ;;  %6361 = vmatpush.bf16.msrb.mxu0 %v11985_v18  ;;  %v5357_v1 = vpop.f32.mrf.mxu3  ;;  %v11980_v38 = vld [vmem:[%s16148_s7] sm:$0xff] }
 0x4c4   :  { %v11963_v37 = vld [vmem:[#allocation4 + $0x58] sm:$0xff]  ;;  %v5358_v29 = vadd.f32 %v5357_v1, %v14996_v34 }
 0x4c5   :  { %v5030_v22 = vmul.f32 1.442695, %v4999_v8 }
 0x4c6   :  { %v12584_v50 = vpop.eup %12583  ;;  %6261 = vmatpush.bf16.msra.mxu3 %v11991_v45  ;;  %v12007_v45 = vld [vmem:[%s16148_s7 + $0x90] sm:$0xff] }
 0x4c7   :  { %v12206_v28 = vpack.c.bf16 %v12584_v50, %v12582_v47  ;;  %12587 = vpow2.f32 %v5030_v22  ;;  %v12586_v59 = vpop.eup %12585  ;;  %6362 = vmatpush.bf16.msrb.mxu0 %v11984_v63  ;;  %v11972_v47 = vld [vmem:[#allocation5] sm:$0xff]  ;;  %v12012_v22 = vld [vmem:[%s16148_s7 + $0xb8] sm:$0xff]  ;;  %v12006_v63 = vld [vmem:[%s16148_s7 + $0x88] sm:$0xff] }
 0x4c8   :  { %v5046_v4 = vadd.f32 1.0, %v12586_v59  ;;  %6537 = vmatpush.bf16.msrb.mxu1 %v12012_v22  ;;  %v11989_v59 = vld [vmem:[%s16148_s7 + $0x40] sm:$0xff] }
 0x4c9   :  { %12259 = vst [vmem:[#allocation4 + $0x40] sm:$0xff] %v12206_v28  }
 0x4ca   :  { %12589 = vrcp.f32 %v5046_v4  ;;  %6262 = vmatpush.bf16.msra.mxu3 %v11990_v41  ;;  %v12011_v4 = vld [vmem:[%s16148_s7 + $0xb0] sm:$0xff]  ;;  %v12026_v41 = vld [vmem:[%s16148_s7 + $0xe8] sm:$0xff] }
 0x4cb   :  { %6363 = vmatpush.bf16.msrb.mxu0 %v11983_v43  ;;  %v5360_v52 = vpop.f32.mrf.mxu3  ;;  %6733 = vmatpush.bf16.msrb.mxu2 %v12026_v41 }
 0x4cc   :  { %6538 = vmatpush.bf16.msrb.mxu1 %v12011_v4 }
 0x4cd   :  { %v12588_v15 = vpop.eup %12587 }
 0x4ce   :  { %v5047_v61 = vadd.f32 1.0, %v12588_v15  ;;  %6263 = vmatpush.bf16.msra.mxu3 %v11989_v59  ;;  %v12024_v59 = vld [vmem:[%s16148_s7 + $0xd8] sm:$0xff] }
 0x4cf   :  { %6364 = vmatpush.bf16.msrb.mxu0 %v11982_v62  ;;  %v12025_v62 = vld [vmem:[%s16148_s7 + $0xe0] sm:$0xff] }
 0x4d0   :  { %12591 = vrcp.f32 %v5047_v61  ;;  %v11915_v19 = vld [vmem:[#allocation4 + $0x40] sm:$0xff]  ;;  %v12590_v32 = vpop.eup %12589  ;;  %v5356_v61 = vadd.f32 %v5355_v24, %v14994_v54  ;;  %6734 = vmatpush.bf16.msrb.mxu2 %v12025_v62 }
 0x4d1   :  { %v11930_v58 = vld [vmem:[#allocation4 + $0x40] sm:$0xff]  ;;  %5286 = vmatmul.bf16.gmra.mxu2 %v11915_v19 }
 0x4d2   :  { %v11945_v3 = vld [vmem:[#allocation4 + $0x40] sm:$0xff]  ;;  %5562 = vmatmul.bf16.gmra.mxu0 %v11930_v58  ;;  %v11973_v58 = vld [vmem:[#allocation5 + $0x8] sm:$0xff] }
 0x4d3   :  { %5751 = vmatmul.bf16.gmra.mxu1 %v11945_v3  ;;  %v11960_v23 = vld [vmem:[#allocation4 + $0x40] sm:$0xff]  ;;  %6365 = vmatpush.bf16.msrb.mxu0 %v11981_v57  ;;  %v5362_v28 = vpop.f32.mrf.mxu3 }
 0x4d4   :  { %6264 = vmatmul.bf16.vlgmr.msra.gmra.mxu3 %v11973_v58  ;;  %6735 = vmatpush.bf16.msrb.mxu2 %v12024_v59 }
 0x4d6   :  { %v12592_v44 = vpop.eup %12591 }
 0x4d7   :  { %v12211_v14 = vpack.c.bf16 %v12592_v44, %v12590_v32  ;;  %6366 = vmatpush.bf16.msrb.mxu0 %v11980_v38  ;;  %v12010_v32 = vld [vmem:[%s16148_s7 + $0xa8] sm:$0xff]  ;;  %v12044_v38 = vld [vmem:[%s16148_s7 + $0x138] sm:$0xff] }
 0x4d8   :  { %6539 = vmatpush.bf16.msrb.mxu1 %v12010_v32  ;;  %6925 = vmatpush.bf16.msrb.mxu3 %v12044_v38 }
 0x4d9   :  { %12260 = vst [vmem:[#allocation4 + $0x48] sm:$0xff] %v12211_v14   ;;  %v15086_v14 = vld [vmem:[%s16149_s6] ss:$0 sm:$0xff] }
 0x4e0   :  { %v11931_v51 = vld [vmem:[#allocation4 + $0x48] sm:$0xff] }
 0x4e1   :  { %v11946_v6 = vld [vmem:[#allocation4 + $0x48] sm:$0xff]  ;;  %5920 = vmatmul.bf16.vlgmr.msra.gmra.mxu2 %v11956_v12  ;;  %v12009_v12 = vld [vmem:[%s16148_s7 + $0xa0] sm:$0xff] }
 0x4e2   :  { %5567 = vmatmul.bf16.gmra.mxu0 %v11931_v51  ;;  %v11961_v16 = vld [vmem:[#allocation4 + $0x48] sm:$0xff]  ;;  %6540 = vmatpush.bf16.msrb.mxu1 %v12009_v12 }
 0x4e3   :  { %5756 = vmatmul.bf16.gmra.mxu1 %v11946_v6 }
 0x4ef   :  { %v5533_v7 = vpop.f32.mrf.mxu0 }
 0x4f0   :  { %v5573_v3 = vadd.f32 %v5533_v7, %v5356_v61 }
 0x4f1   :  { %5925 = vmatmul.bf16.gmra.mxu2 %v11957_v21 }
 0x4f2   :  { %6367 = vmatmul.bf16.vlgmr.msrb.gmra.mxu0 %v11972_v47 }
 0x4f3   :  { %5761 = vmatmul.bf16.gmra.mxu1 %v11947_v31 }
 0x4f4   :  { %v15001_v10 = vpop.f32.mrf.mxu2  ;;  %v15092_v54 = vpop.f32.mrf.mxu3 }
 0x4f5   :  { %v5361_v17 = vadd.f32 %v5360_v52, %v15001_v10 }
 0x4f7   :  { %v5535_v53 = vpop.f32.mrf.mxu0 }
 0x4f8   :  { %v5574_v20 = vadd.f32 %v5535_v53, %v5358_v29 }
 0x4fc   :  { %v15003_v33 = vpop.f32.mrf.mxu2 }
 0x4fd   :  { %v5363_v52 = vadd.f32 %v5362_v28, %v15003_v33 }
 0x4ff   :  { %v5538_v11 = vpop.f32.mrf.mxu0 }
 0x500   :  { %v5727_v48 = vpop.f32.mrf.mxu1  ;;  %v5575_v24 = vadd.f32 %v5538_v11, %v5361_v17 }
 0x501   :  { %5930 = vmatmul.bf16.gmra.mxu2 %v11958_v5  ;;  %v5767_v44 = vadd.f32 %v5727_v48, %v5573_v3 }
 0x502   :  { %6372 = vmatmul.bf16.gmra.mxu0 %v11973_v58 }
 0x504   :  { %v15008_v46 = vpop.f32.mrf.mxu2 }
 0x507   :  { %v5540_v15 = vpop.f32.mrf.mxu0 }
 0x508   :  { %v5729_v40 = vpop.f32.mrf.mxu1 }
 0x509   :  { %v5768_v34 = vadd.f32 %v5729_v40, %v5574_v20 }
 0x50c   :  { %v15010_v2 = vpop.f32.mrf.mxu2 }
 0x50f   :  { %v15095_v21 = vpop.f32.mrf.mxu0 }
 0x510   :  { %v5732_v8 = vpop.f32.mrf.mxu1 }
 0x511   :  { %5935 = vmatmul.bf16.gmra.mxu2 %v11959_v39  ;;  %v12008_v39 = vld [vmem:[%s16148_s7 + $0x98] sm:$0xff]  ;;  %v5769_v43 = vadd.f32 %v5732_v8, %v5575_v24  ;;  %v5576_v8 = vadd.f32 %v5540_v15, %v5363_v52  ;;  %v12023_v15 = vld [vmem:[%s16148_s7 + $0xd0] sm:$0xff] }
 0x512   :  { %6541 = vmatpush.bf16.msrb.mxu1 %v12008_v39  ;;  %6736 = vmatpush.bf16.msrb.mxu2 %v12023_v15 }
 0x514   :  { %v15015_v13 = vpop.f32.mrf.mxu2 }
 0x516   :  { %6542 = vmatpush.bf16.msrb.mxu1 %v12007_v45 }
 0x517   :  { %v5545_v48 = vpop.f32.mrf.mxu0 }
 0x518   :  { %v15078_v19 = vpop.f32.mrf.mxu1 }
 0x519   :  { %v5770_v33 = vadd.f32 %v15078_v19, %v5576_v8 }
 0x51a   :  { %6543 = vmatpush.bf16.msrb.mxu1 %v12006_v63 }
 0x51c   :  { %v15017_v25 = vpop.f32.mrf.mxu2 }
 0x51f   :  { %v5548_v28 = vpop.f32.mrf.mxu0 }
 0x520   :  { %v15103_v30 = vpop.f32.mrf.mxu1 }
 0x521   :  { %5940 = vmatmul.bf16.gmra.mxu2 %v11960_v23 }
 0x524   :  { %v15022_v55 = vpop.f32.mrf.mxu2 }
 0x528   :  { %v5739_v10 = vpop.f32.mrf.mxu1 }
 0x52c   :  { %v15024_v35 = vpop.f32.mrf.mxu2 }
 0x531   :  { %5945 = vmatmul.bf16.gmra.mxu2 %v11961_v16 }
 0x534   :  { %v15032_v0 = vpop.f32.mrf.mxu2 }
 0x53c   :  { %v15040_v9 = vpop.f32.mrf.mxu2 }
 0x541   :  { %5950 = vmatmul.bf16.gmra.mxu2 %v11962_v42  ;;  %v5367_v42 = vpop.f32.mrf.mxu3 }
 0x542   :  { %v5368_v45 = vadd.f32 %v5367_v42, %v15010_v2 }
 0x544   :  { %v15051_v36 = vpop.f32.mrf.mxu2 }
 0x549   :  { %v5370_v61 = vpop.f32.mrf.mxu3 }
 0x54c   :  { %v15053_v56 = vpop.f32.mrf.mxu2 }
 0x551   :  { %5955 = vmatmul.bf16.gmra.mxu2 %v11963_v37  ;;  %v12005_v37 = vld [vmem:[%s16148_s7 + $0x80] sm:$0xff] }
 0x552   :  { %6544 = vmatpush.bf16.msrb.mxu1 %v12005_v37  ;;  %v5371_v37 = vadd.f32 %v5370_v61, %v15015_v13 }
 0x554   :  { %v15061_v60 = vpop.f32.mrf.mxu2 }
 0x55c   :  { %v15069_v50 = vpop.f32.mrf.mxu2 }
 0x564   :  { %v5921_v51 = vpop.f32.mrf.mxu2 }
 0x565   :  { %v5961_v6 = vadd.f32 %v5921_v51, %v5767_v44  ;;  %v5742_v51 = vpop.f32.mrf.mxu1 }
 0x567   :  { %v5981_v31 = vadd.f32 %v15086_v14, %v5961_v6  ;;  %v5366_v6 = vadd.f32 %v15092_v54, %v15008_v46 }
 0x569   :  { %v5997_v5 = vsub.f32 0.0, %v5981_v31  ;;  %v5577_v19 = vadd.f32 %v15095_v21, %v5366_v6  ;;  %v12022_v31 = vld [vmem:[%s16148_s7 + $0xc8] sm:$0xff]  ;;  %v12021_v21 = vld [vmem:[%s16148_s7 + $0xc0] sm:$0xff] }
 0x56a   :  { %6737 = vmatpush.bf16.msrb.mxu2 %v12022_v31 }
 0x56b   :  { %v6013_v23 = vmul.f32 1.442695, %v5997_v5  ;;  %v5771_v5 = vadd.f32 %v15103_v30, %v5577_v19  ;;  %v12043_v30 = vld [vmem:[%s16148_s7 + $0x130] sm:$0xff] }
 0x56c   :  { %v5923_v27 = vpop.f32.mrf.mxu2  ;;  %6926 = vmatpush.bf16.msrb.mxu3 %v12043_v30 }
 0x56d   :  { %v5962_v16 = vadd.f32 %v5923_v27, %v5768_v34  ;;  %12593 = vpow2.f32 %v6013_v23  ;;  %v5372_v23 = vpop.f32.mrf.mxu3  ;;  %v5744_v17 = vpop.f32.mrf.mxu1 }
 0x56e   :  { %6738 = vmatpush.bf16.msrb.mxu2 %v12021_v21  ;;  %v5373_v61 = vadd.f32 %v5372_v23, %v15017_v25 }
 0x56f   :  { %v5982_v18 = vadd.f32 %v15086_v14, %v5962_v16  ;;  %v5550_v16 = vpop.f32.mrf.mxu0 }
 0x571   :  { %v5998_v7 = vsub.f32 0.0, %v5982_v18  ;;  %v5578_v18 = vadd.f32 %v5545_v48, %v5368_v45  ;;  %v5579_v48 = vadd.f32 %v5548_v28, %v5371_v37  ;;  %v12042_v28 = vld [vmem:[%s16148_s7 + $0x128] sm:$0xff] }
 0x572   :  { %6927 = vmatpush.bf16.msrb.mxu3 %v12042_v28 }
 0x573   :  { %v6015_v1 = vmul.f32 1.442695, %v5998_v7  ;;  %v12594_v57 = vpop.eup %12593  ;;  %v5772_v41 = vadd.f32 %v5739_v10, %v5578_v18  ;;  %v5773_v8 = vadd.f32 %v5742_v51, %v5579_v48 }
 0x574   :  { %v5926_v53 = vpop.f32.mrf.mxu2  ;;  %v6045_v47 = vadd.f32 1.0, %v12594_v57 }
 0x575   :  { %12595 = vpow2.f32 %v6015_v1  ;;  %v5963_v40 = vadd.f32 %v5926_v53, %v5769_v43  ;;  %v5375_v62 = vpop.f32.mrf.mxu3  ;;  %v5747_v10 = vpop.f32.mrf.mxu1 }
 0x576   :  { %12597 = vrcp.f32 %v6045_v47 }
 0x577   :  { %v5983_v11 = vadd.f32 %v15086_v14, %v5963_v40  ;;  %v5553_v52 = vpop.f32.mrf.mxu0 }
 0x579   :  { %v5999_v22 = vsub.f32 0.0, %v5983_v11 }
 0x57b   :  { %v12596_v4 = vpop.eup %12595  ;;  %v6017_v3 = vmul.f32 1.442695, %v5999_v22 }
 0x57c   :  { %v6046_v58 = vadd.f32 1.0, %v12596_v4  ;;  %v5928_v32 = vpop.f32.mrf.mxu2  ;;  %v12598_v20 = vpop.eup %12597 }
 0x57d   :  { %v5964_v44 = vadd.f32 %v5928_v32, %v5770_v33  ;;  %v5580_v32 = vadd.f32 %v5550_v16, %v5373_v61  ;;  %v5749_v19 = vpop.f32.mrf.mxu1 }
 0x57e   :  { %12599 = vrcp.f32 %v6046_v58 }
 0x57f   :  { %v5984_v12 = vadd.f32 %v15086_v14, %v5964_v44  ;;  %12601 = vpow2.f32 %v6017_v3  ;;  %v5377_v3 = vpop.f32.mrf.mxu3  ;;  %v5555_v51 = vpop.f32.mrf.mxu0 }
 0x581   :  { %v6000_v29 = vsub.f32 0.0, %v5984_v12  ;;  %v5774_v12 = vadd.f32 %v5744_v17, %v5580_v32 }
 0x583   :  { %v6019_v49 = vmul.f32 1.442695, %v6000_v29 }
 0x584   :  { %v12600_v39 = vpop.eup %12599  ;;  %v5931_v34 = vpop.f32.mrf.mxu2 }
 0x585   :  { %v12216_v46 = vpack.c.bf16 %v12600_v39, %v12598_v20  ;;  %12603 = vpow2.f32 %v6019_v49  ;;  %v5965_v54 = vadd.f32 %v5931_v34, %v5771_v5  ;;  %v12602_v27 = vpop.eup %12601  ;;  %v5376_v34 = vadd.f32 %v5375_v62, %v15022_v55 }
 0x586   :  { %v6047_v24 = vadd.f32 1.0, %v12602_v27 }
 0x587   :  { %12261 = vst [vmem:[#allocation5 + $0x10] sm:$0xff] %v12216_v46   ;;  %v5985_v26 = vadd.f32 %v15086_v14, %v5965_v54  ;;  %v5581_v46 = vadd.f32 %v5553_v52, %v5376_v34  ;;  %v5380_v27 = vpop.f32.mrf.mxu3  ;;  %v5558_v30 = vpop.f32.mrf.mxu0 }
 0x588   :  { %12605 = vrcp.f32 %v6047_v24 }
 0x589   :  { %v6001_v7 = vsub.f32 0.0, %v5985_v26  ;;  %v5775_v16 = vadd.f32 %v5747_v10, %v5581_v46 }
 0x58b   :  { %v12604_v63 = vpop.eup %12603  ;;  %v6021_v1 = vmul.f32 1.442695, %v6001_v7  ;;  %v5752_v7 = vpop.f32.mrf.mxu1 }
 0x58c   :  { %v6048_v43 = vadd.f32 1.0, %v12604_v63  ;;  %v5933_v53 = vpop.f32.mrf.mxu2  ;;  %v5378_v63 = vadd.f32 %v5377_v3, %v15024_v35 }
 0x58d   :  { %v5966_v2 = vadd.f32 %v5933_v53, %v5772_v41 }
 0x58e   :  { %12607 = vrcp.f32 %v6048_v43  ;;  %v11974_v42 = vld [vmem:[#allocation5 + $0x10] sm:$0xff]  ;;  %v12606_v38 = vpop.eup %12605  ;;  %v12041_v43 = vld [vmem:[%s16148_s7 + $0x120] sm:$0xff] }
 0x58f   :  { %v11997_v40 = vld [vmem:[#allocation5 + $0x10] sm:$0xff]  ;;  %v5986_v57 = vadd.f32 %v15086_v14, %v5966_v2  ;;  %12609 = vpow2.f32 %v6021_v1  ;;  %6269 = vmatmul.bf16.gmra.mxu3 %v11974_v42  ;;  %6377 = vmatmul.bf16.gmra.mxu0 %v11974_v42  ;;  %v5582_v1 = vadd.f32 %v5555_v51, %v5378_v63  ;;  %v5382_v52 = vpop.f32.mrf.mxu3  ;;  %v5560_v35 = vpop.f32.mrf.mxu0 }
 0x590   :  { %6545 = vmatmul.bf16.vlgmr.msrb.gmra.mxu1 %v11997_v40  ;;  %6928 = vmatpush.bf16.msrb.mxu3 %v12041_v43 }
 0x591   :  { %v6002_v11 = vsub.f32 0.0, %v5986_v57  ;;  %v5776_v40 = vadd.f32 %v5749_v19, %v5582_v1 }
 0x593   :  { %v6023_v47 = vmul.f32 1.442695, %v6002_v11 }
 0x594   :  { %v12608_v22 = vpop.eup %12607  ;;  %v5936_v59 = vpop.f32.mrf.mxu2 }
 0x595   :  { %v12221_v4 = vpack.c.bf16 %v12608_v22, %v12606_v38  ;;  %12611 = vpow2.f32 %v6023_v47  ;;  %v5967_v33 = vadd.f32 %v5936_v59, %v5773_v8  ;;  %v12610_v13 = vpop.eup %12609  ;;  %v5381_v8 = vadd.f32 %v5380_v27, %v15032_v0  ;;  %v5754_v22 = vpop.f32.mrf.mxu1 }
 0x596   :  { %v6049_v44 = vadd.f32 1.0, %v12610_v13 }
 0x597   :  { %12262 = vst [vmem:[#allocation5 + $0x18] sm:$0xff] %v12221_v4   ;;  %v5987_v58 = vadd.f32 %v15086_v14, %v5967_v33  ;;  %v5583_v59 = vadd.f32 %v5558_v30, %v5381_v8  ;;  %v5385_v0 = vpop.f32.mrf.mxu3 }
 0x598   :  { %12613 = vrcp.f32 %v6049_v44 }
 0x599   :  { %v6003_v15 = vsub.f32 0.0, %v5987_v58  ;;  %v5777_v13 = vadd.f32 %v5752_v7, %v5583_v59 }
 0x59b   :  { %v12612_v6 = vpop.eup %12611  ;;  %v6025_v31 = vmul.f32 1.442695, %v6003_v15  ;;  %v5383_v15 = vadd.f32 %v5382_v52, %v15040_v9 }
 0x59c   :  { %v6050_v29 = vadd.f32 1.0, %v12612_v6  ;;  %v5938_v20 = vpop.f32.mrf.mxu2  ;;  %v12040_v6 = vld [vmem:[%s16148_s7 + $0x118] sm:$0xff] }
 0x59d   :  { %v5968_v25 = vadd.f32 %v5938_v20, %v5774_v12  ;;  %v5563_v12 = vpop.f32.mrf.mxu0  ;;  %v5584_v19 = vadd.f32 %v5560_v35, %v5383_v15  ;;  %6929 = vmatpush.bf16.msrb.mxu3 %v12040_v6  ;;  %v5757_v20 = vpop.f32.mrf.mxu1 }
 0x59e   :  { %12615 = vrcp.f32 %v6050_v29  ;;  %v11975_v5 = vld [vmem:[#allocation5 + $0x18] sm:$0xff]  ;;  %v12614_v21 = vpop.eup %12613 }
 0x59f   :  { %v11998_v49 = vld [vmem:[#allocation5 + $0x18] sm:$0xff]  ;;  %v5988_v23 = vadd.f32 %v15086_v14, %v5968_v25  ;;  %12617 = vpow2.f32 %v6025_v31  ;;  %6274 = vmatmul.bf16.gmra.mxu3 %v11975_v5  ;;  %6382 = vmatmul.bf16.gmra.mxu0 %v11975_v5  ;;  %v5778_v5 = vadd.f32 %v5754_v22, %v5584_v19  ;;  %v12038_v19 = vld [vmem:[%s16148_s7 + $0x108] sm:$0xff] }
 0x5a0   :  { %v12013_v39 = vld [vmem:[#allocation5 + $0x18] sm:$0xff]  ;;  %6550 = vmatmul.bf16.gmra.mxu1 %v11998_v49 }
 0x5a1   :  { %v6004_v54 = vsub.f32 0.0, %v5988_v23  ;;  %6739 = vmatmul.bf16.vlgmr.msrb.gmra.mxu2 %v12013_v39 }
 0x5a3   :  { %v6027_v45 = vmul.f32 1.442695, %v6004_v54 }
 0x5a4   :  { %v12616_v26 = vpop.eup %12615  ;;  %v5941_v17 = vpop.f32.mrf.mxu2 }
 0x5a5   :  { %v12226_v18 = vpack.c.bf16 %v12616_v26, %v12614_v21  ;;  %12619 = vpow2.f32 %v6027_v45  ;;  %v5969_v24 = vadd.f32 %v5941_v17, %v5775_v16  ;;  %v12618_v55 = vpop.eup %12617  ;;  %v5386_v21 = vadd.f32 %v5385_v0, %v15051_v36  ;;  %v5387_v16 = vpop.f32.mrf.mxu3 }
 0x5a6   :  { %v6051_v53 = vadd.f32 1.0, %v12618_v55  ;;  %v5565_v30 = vpop.f32.mrf.mxu0  ;;  %v5759_v7 = vpop.f32.mrf.mxu1  ;;  %v5388_v1 = vadd.f32 %v5387_v16, %v15053_v56 }
 0x5a7   :  { %12263 = vst [vmem:[#allocation5 + $0x20] sm:$0xff] %v12226_v18   ;;  %v5989_v41 = vadd.f32 %v15086_v14, %v5969_v24  ;;  %v5585_v45 = vadd.f32 %v5563_v12, %v5386_v21 }
 0x5a8   :  { %12621 = vrcp.f32 %v6051_v53 }
 0x5a9   :  { %v6005_v2 = vsub.f32 0.0, %v5989_v41  ;;  %v5779_v18 = vadd.f32 %v5757_v20, %v5585_v45 }
 0x5ab   :  { %v12620_v42 = vpop.eup %12619  ;;  %v6029_v62 = vmul.f32 1.442695, %v6005_v2  ;;  %v12039_v2 = vld [vmem:[%s16148_s7 + $0x110] sm:$0xff] }
 0x5ac   :  { %v6052_v37 = vadd.f32 1.0, %v12620_v42  ;;  %v5943_v57 = vpop.f32.mrf.mxu2  ;;  %v5586_v42 = vadd.f32 %v5565_v30, %v5388_v1  ;;  %6930 = vmatpush.bf16.msrb.mxu3 %v12039_v2 }
 0x5ad   :  { %v5970_v48 = vadd.f32 %v5943_v57, %v5776_v40  ;;  %v5390_v57 = vpop.f32.mrf.mxu3 }
 0x5ae   :  { %12623 = vrcp.f32 %v6052_v37  ;;  %v11976_v11 = vld [vmem:[#allocation5 + $0x20] sm:$0xff]  ;;  %v12622_v33 = vpop.eup %12621  ;;  %v5780_v52 = vadd.f32 %v5759_v7, %v5586_v42  ;;  %v5391_v59 = vadd.f32 %v5390_v57, %v15061_v60 }
 0x5af   :  { %v11999_v10 = vld [vmem:[#allocation5 + $0x20] sm:$0xff]  ;;  %v5990_v47 = vadd.f32 %v15086_v14, %v5970_v48  ;;  %12625 = vpow2.f32 %v6029_v62  ;;  %6279 = vmatmul.bf16.gmra.mxu3 %v11976_v11  ;;  %6387 = vmatmul.bf16.gmra.mxu0 %v11976_v11  ;;  %v5568_v48 = vpop.f32.mrf.mxu0 }
 0x5b0   :  { %v12014_v38 = vld [vmem:[#allocation5 + $0x20] sm:$0xff]  ;;  %6555 = vmatmul.bf16.gmra.mxu1 %v11999_v10  ;;  %6931 = vmatpush.bf16.msrb.mxu3 %v12038_v19  ;;  %v12058_v19 = vld [vmem:[%s16151_s9 + $0x64] sm:$0xf0] }
 0x5b1   :  { %v6006_v4 = vsub.f32 0.0, %v5990_v47  ;;  %6744 = vmatmul.bf16.gmra.mxu2 %v12014_v38  ;;  %v5762_v38 = vpop.f32.mrf.mxu1  ;;  %v12029_v42 = vld [vmem:[#allocation5 + $0x20] sm:$0xff] }
 0x5b3   :  { %v6031_v61 = vmul.f32 1.442695, %v6006_v4 }
 0x5b4   :  { %v12624_v58 = vpop.eup %12623  ;;  %v5946_v28 = vpop.f32.mrf.mxu2 }
 0x5b5   :  { %v12231_v3 = vpack.c.bf16 %v12624_v58, %v12622_v33  ;;  %12627 = vpow2.f32 %v6031_v61  ;;  %v5971_v32 = vadd.f32 %v5946_v28, %v5777_v13  ;;  %v12626_v44 = vpop.eup %12625  ;;  %v5587_v33 = vadd.f32 %v5568_v48, %v5391_v59  ;;  %v11013_v59 = vld [vmem:[%s16151_s9 + $0x70] sm:$0xf] }
 0x5b6   :  { %v6053_v29 = vadd.f32 1.0, %v12626_v44 }
 0x5b7   :  { %12264 = vst [vmem:[#allocation5 + $0x28] sm:$0xff] %v12231_v3   ;;  %v5991_v51 = vadd.f32 %v15086_v14, %v5971_v32  ;;  %v5781_v58 = vadd.f32 %v5762_v38, %v5587_v33  ;;  %v5570_v60 = vpop.f32.mrf.mxu0  ;;  %v12059_v33 = vld [vmem:[%s16151_s9 + $0x74] sm:$0xf] }
 0x5b8   :  { %12629 = vrcp.f32 %v6053_v29 }
 0x5b9   :  { %v6007_v31 = vsub.f32 0.0, %v5991_v51  ;;  %v5392_v51 = vpop.f32.mrf.mxu3  ;;  %v5764_v29 = vpop.f32.mrf.mxu1 }
 0x5ba   :  { %v5393_v6 = vadd.f32 %v5392_v51, %v15069_v50  ;;  %v10951_v51 = vld [vmem:[%s16151_s9 + $0xf8] sm:$0xf0] }
 0x5bb   :  { %v12628_v25 = vpop.eup %12627  ;;  %v6033_v39 = vmul.f32 1.442695, %v6007_v31 }
 0x5bc   :  { %v6054_v49 = vadd.f32 1.0, %v12628_v25  ;;  %v5948_v34 = vpop.f32.mrf.mxu2  ;;  %v5588_v31 = vadd.f32 %v5570_v60, %v5393_v6 }
 0x5bd   :  { %v5972_v9 = vadd.f32 %v5948_v34, %v5778_v5  ;;  %v12037_v5 = vld [vmem:[%s16148_s7 + $0x100] sm:$0xff] }
 0x5be   :  { %12631 = vrcp.f32 %v6054_v49  ;;  %v11977_v23 = vld [vmem:[#allocation5 + $0x28] sm:$0xff]  ;;  %v12630_v17 = vpop.eup %12629  ;;  %6932 = vmatpush.bf16.msrb.mxu3 %v12037_v5 }
 0x5bf   :  { %v12000_v46 = vld [vmem:[#allocation5 + $0x28] sm:$0xff]  ;;  %v5992_v27 = vadd.f32 %v15086_v14, %v5972_v9  ;;  %12633 = vpow2.f32 %v6033_v39  ;;  %6284 = vmatmul.bf16.gmra.mxu3 %v11977_v23  ;;  %6392 = vmatmul.bf16.gmra.mxu0 %v11977_v23  ;;  %v5782_v39 = vadd.f32 %v5764_v29, %v5588_v31  ;;  %v12057_v29 = vld [vmem:[%s16151_s9 + $0x64] sm:$0xf] }
 0x5c0   :  { %v12015_v54 = vld [vmem:[#allocation5 + $0x28] sm:$0xff]  ;;  %6560 = vmatmul.bf16.gmra.mxu1 %v12000_v46 }
 0x5c1   :  { %v6008_v26 = vsub.f32 0.0, %v5992_v27  ;;  %6749 = vmatmul.bf16.gmra.mxu2 %v12015_v54  ;;  %v12030_v57 = vld [vmem:[#allocation5 + $0x28] sm:$0xff] }
 0x5c3   :  { %v6035_v24 = vmul.f32 1.442695, %v6008_v26 }
 0x5c4   :  { %v12632_v55 = vpop.eup %12631  ;;  %v5951_v63 = vpop.f32.mrf.mxu2 }
 0x5c5   :  { %v12236_v41 = vpack.c.bf16 %v12632_v55, %v12630_v17  ;;  %12635 = vpow2.f32 %v6035_v24  ;;  %v5973_v36 = vadd.f32 %v5951_v63, %v5779_v18  ;;  %v12634_v43 = vpop.eup %12633 }
 0x5c6   :  { %v6055_v40 = vadd.f32 1.0, %v12634_v43 }
 0x5c7   :  { %12265 = vst [vmem:[#allocation5 + $0x30] sm:$0xff] %v12236_v41   ;;  %v5993_v53 = vadd.f32 %v15086_v14, %v5973_v36 }
 0x5c8   :  { %12637 = vrcp.f32 %v6055_v40  ;;  %v15192_v40 = vpop.f32.mrf.mxu3 }
 0x5c9   :  { %v6009_v37 = vsub.f32 0.0, %v5993_v53 }
 0x5cb   :  { %v12636_v62 = vpop.eup %12635  ;;  %v6037_v11 = vmul.f32 1.442695, %v6009_v37 }
 0x5cc   :  { %v6056_v35 = vadd.f32 1.0, %v12636_v62  ;;  %v5953_v10 = vpop.f32.mrf.mxu2  ;;  %v12020_v62 = vld [vmem:[#allocation5 + $0x50] sm:$0xff] }
 0x5cd   :  { %v5974_v56 = vadd.f32 %v5953_v10, %v5780_v52 }
 0x5ce   :  { %12639 = vrcp.f32 %v6056_v35  ;;  %v11978_v8 = vld [vmem:[#allocation5 + $0x30] sm:$0xff]  ;;  %v12638_v61 = vpop.eup %12637 }
 0x5cf   :  { %v12001_v47 = vld [vmem:[#allocation5 + $0x30] sm:$0xff]  ;;  %v5994_v4 = vadd.f32 %v15086_v14, %v5974_v56  ;;  %12641 = vpow2.f32 %v6037_v11  ;;  %6289 = vmatmul.bf16.gmra.mxu3 %v11978_v8  ;;  %6397 = vmatmul.bf16.gmra.mxu0 %v11978_v8 }
 0x5d0   :  { %v12016_v22 = vld [vmem:[#allocation5 + $0x30] sm:$0xff]  ;;  %6565 = vmatmul.bf16.gmra.mxu1 %v12001_v47  ;;  %v15194_v37 = vpop.f32.mrf.mxu3 }
 0x5d1   :  { %v6010_v13 = vsub.f32 0.0, %v5994_v4  ;;  %6754 = vmatmul.bf16.gmra.mxu2 %v12016_v22  ;;  %v12031_v35 = vld [vmem:[#allocation5 + $0x30] sm:$0xff]  ;;  %v12060_v4 = vld [vmem:[%s16151_s9 + $0x74] sm:$0xf0] }
 0x5d3   :  { %v6039_v28 = vmul.f32 1.442695, %v6010_v13  ;;  %v11014_v13 = vor.u32 %v12060_v4, %v11013_v59  ;;  %v10935_v4 = vld [vmem:[%s16151_s9 + $0xd8] sm:$0xf0] }
 0x5d4   :  { %v12640_v3 = vpop.eup %12639  ;;  %v5956_v32 = vpop.f32.mrf.mxu2 }
 0x5d5   :  { %v12241_v44 = vpack.c.bf16 %v12640_v3, %v12638_v61  ;;  %12643 = vpow2.f32 %v6039_v28  ;;  %v5975_v0 = vadd.f32 %v5956_v32, %v5781_v58  ;;  %v12642_v15 = vpop.eup %12641  ;;  %v11015_v61 = vld [vmem:[%s16151_s9 + $0x78] sm:$0xf0]  ;;  %7339 = vmatpush.bf16.msra.mxu2 %v11014_v13  ;;  %v10949_v32 = vld [vmem:[%s16151_s9 + $0xf0] sm:$0xf]  ;;  %v12054_v13 = vld [vmem:[%s16151_s9 + $0x44] sm:$0xf0] }
 0x5d6   :  { %v6057_v20 = vadd.f32 1.0, %v12642_v15  ;;  %v11018_v58 = vor.u32 %v12059_v33, %v11015_v61  ;;  %v10989_v33 = vld [vmem:[%s16151_s9 + $0x40] sm:$0xf] }
 0x5d7   :  { %12266 = vst [vmem:[#allocation5 + $0x38] sm:$0xff] %v12241_v44   ;;  %v5995_v12 = vadd.f32 %v15086_v14, %v5975_v0  ;;  %v12076_v44 = vld [vmem:[%s16151_s9 + $0xf4] sm:$0xf0]  ;;  %v12075_v0 = vld [vmem:[%s16151_s9 + $0xf4] sm:$0xf] }
 0x5d8   :  { %12645 = vrcp.f32 %v6057_v20  ;;  %7353 = vmatpush.bf16.msra.mxu3 %v11018_v58  ;;  %v10950_v15 = vor.u32 %v12076_v44, %v10949_v32  ;;  %v10954_v60 = vor.u32 %v12075_v0, %v10951_v51  ;;  %v11007_v20 = vld [vmem:[%s16151_s9 + $0x68] sm:$0xf0]  ;;  %v15328_v0 = vld [vmem:[%s16150_s8] ss:$0 sm:$0xff] }
 0x5d9   :  { %v6011_v25 = vsub.f32 0.0, %v5995_v12  ;;  %v11005_v12 = vld [vmem:[%s16151_s9 + $0x60] sm:$0xf]  ;;  %v10991_v32 = vld [vmem:[%s16151_s9 + $0x48] sm:$0xf0] }
 0x5da   :  { %7225 = vmatpush.bf16.msra.mxu0 %v10950_v15  ;;  %7239 = vmatpush.bf16.msra.mxu1 %v10954_v60  ;;  %v11006_v31 = vor.u32 %v12058_v19, %v11005_v12  ;;  %v10925_v51 = vld [vmem:[%s16151_s9 + $0xc0] sm:$0xf]  ;;  %v12070_v60 = vld [vmem:[%s16151_s9 + $0xc4] sm:$0xf0]  ;;  %v12069_v12 = vld [vmem:[%s16151_s9 + $0xc4] sm:$0xf] }
 0x5db   :  { %v12644_v49 = vpop.eup %12643  ;;  %v6041_v50 = vmul.f32 1.442695, %v6011_v25  ;;  %v11010_v25 = vor.u32 %v12057_v29, %v11007_v20  ;;  %v10926_v29 = vor.u32 %v12070_v60, %v10925_v51  ;;  %v10981_v20 = vld [vmem:[%s16151_s9 + $0x30] sm:$0xf] }
 0x5dc   :  { %v6058_v34 = vadd.f32 1.0, %v12644_v49  ;;  %v5958_v9 = vpop.f32.mrf.mxu2  ;;  %7340 = vmatpush.bf16.msra.mxu2 %v11006_v31  ;;  %v12035_v49 = vld [vmem:[#allocation5 + $0x50] sm:$0xff]  ;;  %v10927_v31 = vld [vmem:[%s16151_s9 + $0xc8] sm:$0xf0] }
 0x5dd   :  { %v5976_v23 = vadd.f32 %v5958_v9, %v5782_v39  ;;  %7354 = vmatpush.bf16.msra.mxu3 %v11010_v25  ;;  %v6368_v39 = vpop.f32.mrf.mxu0  ;;  %v12074_v9 = vld [vmem:[%s16151_s9 + $0xe4] sm:$0xf0]  ;;  %v12052_v25 = vld [vmem:[%s16151_s9 + $0x34] sm:$0xf0] }
 0x5de   :  { %12647 = vrcp.f32 %v6058_v34  ;;  %v11979_v46 = vld [vmem:[#allocation5 + $0x38] sm:$0xff]  ;;  %v12646_v45 = vpop.eup %12645 }
 0x5df   :  { %v12002_v54 = vld [vmem:[#allocation5 + $0x38] sm:$0xff]  ;;  %v5996_v27 = vadd.f32 %v15086_v14, %v5976_v23  ;;  %12649 = vpow2.f32 %v6041_v50  ;;  %6294 = vmatmul.bf16.gmra.mxu3 %v11979_v46  ;;  %6402 = vmatmul.bf16.gmra.mxu0 %v11979_v46  ;;  %v10941_v50 = vld [vmem:[%s16151_s9 + $0xe0] sm:$0xf]  ;;  %v12073_v23 = vld [vmem:[%s16151_s9 + $0xe4] sm:$0xf] }
 0x5e0   :  { %v12017_v21 = vld [vmem:[#allocation5 + $0x38] sm:$0xff]  ;;  %6570 = vmatmul.bf16.gmra.mxu1 %v12002_v54  ;;  %v10942_v46 = vor.u32 %v12074_v9, %v10941_v50  ;;  %v10943_v54 = vld [vmem:[%s16151_s9 + $0xe8] sm:$0xf0]  ;;  %v12051_v50 = vld [vmem:[%s16151_s9 + $0x34] sm:$0xf] }
 0x5e1   :  { %v6012_v16 = vsub.f32 0.0, %v5996_v27  ;;  %6759 = vmatmul.bf16.gmra.mxu2 %v12017_v21  ;;  %v12032_v56 = vld [vmem:[#allocation5 + $0x38] sm:$0xff]  ;;  %v10946_v27 = vor.u32 %v12073_v23, %v10943_v54  ;;  %v10917_v54 = vld [vmem:[%s16151_s9 + $0xb0] sm:$0xf] }
 0x5e2   :  { %7226 = vmatpush.bf16.msra.mxu0 %v10942_v46  ;;  %v10983_v9 = vld [vmem:[%s16151_s9 + $0x38] sm:$0xf0] }
 0x5e3   :  { %v6043_v26 = vmul.f32 1.442695, %v6012_v16  ;;  %7240 = vmatpush.bf16.msra.mxu1 %v10946_v27  ;;  %v10986_v46 = vor.u32 %v12051_v50, %v10983_v9  ;;  %v12067_v27 = vld [vmem:[%s16151_s9 + $0xb4] sm:$0xf] }
 0x5e4   :  { %v12648_v30 = vpop.eup %12647 }
 0x5e5   :  { %v12246_v17 = vpack.c.bf16 %v12648_v30, %v12646_v45  ;;  %12651 = vpow2.f32 %v6043_v26  ;;  %v12650_v18 = vpop.eup %12649  ;;  %v6370_v45 = vpop.f32.mrf.mxu0 }
 0x5e6   :  { %v6059_v24 = vadd.f32 1.0, %v12650_v18  ;;  %v12036_v18 = vld [vmem:[#allocation5 + $0x58] sm:$0xff] }
 0x5e7   :  { %12267 = vst [vmem:[#allocation5 + $0x40] sm:$0xff] %v12246_v17  }
 0x5e8   :  { %12653 = vrcp.f32 %v6059_v24 }
 0x5eb   :  { %v12652_v55 = vpop.eup %12651 }
 0x5ec   :  { %v6060_v7 = vadd.f32 1.0, %v12652_v55 }
 0x5ed   :  { %v15272_v24 = vpop.f32.mrf.mxu0 }
 0x5ee   :  { %12655 = vrcp.f32 %v6060_v7  ;;  %v11988_v63 = vld [vmem:[#allocation5 + $0x40] sm:$0xff]  ;;  %v12654_v36 = vpop.eup %12653 }
 0x5ef   :  { %v12003_v14 = vld [vmem:[#allocation5 + $0x40] sm:$0xff]  ;;  %6299 = vmatmul.bf16.gmra.mxu3 %v11988_v63 }
 0x5f0   :  { %v12018_v41 = vld [vmem:[#allocation5 + $0x40] sm:$0xff]  ;;  %6575 = vmatmul.bf16.gmra.mxu1 %v12003_v14  ;;  %v10997_v14 = vld [vmem:[%s16151_s9 + $0x50] sm:$0xf] }
 0x5f1   :  { %6764 = vmatmul.bf16.gmra.mxu2 %v12018_v41  ;;  %v12033_v47 = vld [vmem:[#allocation5 + $0x40] sm:$0xff]  ;;  %v12056_v41 = vld [vmem:[%s16151_s9 + $0x54] sm:$0xf0] }
 0x5f4   :  { %v12656_v43 = vpop.eup %12655 }
 0x5f5   :  { %v12251_v1 = vpack.c.bf16 %v12656_v43, %v12654_v36  ;;  %v12055_v36 = vld [vmem:[%s16151_s9 + $0x54] sm:$0xf] }
 0x5f7   :  { %12268 = vst [vmem:[#allocation5 + $0x48] sm:$0xff] %v12251_v1   ;;  %v10998_v1 = vor.u32 %v12056_v41, %v10997_v14 }
 0x5f9   :  { %7341 = vmatpush.bf16.msra.mxu2 %v10998_v1  ;;  %v10919_v1 = vld [vmem:[%s16151_s9 + $0xb8] sm:$0xf0] }
 0x5fe   :  { %v12004_v53 = vld [vmem:[#allocation5 + $0x48] sm:$0xff] }
 0x5ff   :  { %v12019_v2 = vld [vmem:[#allocation5 + $0x48] sm:$0xff]  ;;  %6933 = vmatmul.bf16.vlgmr.msrb.gmra.mxu3 %v12029_v42 }
 0x600   :  { %6580 = vmatmul.bf16.gmra.mxu1 %v12004_v53  ;;  %v12034_v3 = vld [vmem:[#allocation5 + $0x48] sm:$0xff]  ;;  %v10999_v53 = vld [vmem:[%s16151_s9 + $0x58] sm:$0xf0] }
 0x601   :  { %6769 = vmatmul.bf16.gmra.mxu2 %v12019_v2  ;;  %v15294_v2 = vpop.f32.mrf.mxu0  ;;  %v11002_v42 = vor.u32 %v12055_v36, %v10999_v53  ;;  %v10973_v53 = vld [vmem:[%s16151_s9 + $0x20] sm:$0xf] }
 0x603   :  { %7355 = vmatpush.bf16.msra.mxu3 %v11002_v42  ;;  %v12050_v42 = vld [vmem:[%s16151_s9 + $0x24] sm:$0xf0] }
 0x60c   :  { %v15364_v14 = vpop.f32.mrf.mxu0 }
 0x60d   :  { %v6546_v34 = vpop.f32.mrf.mxu1 }
 0x60f   :  { %6938 = vmatmul.bf16.gmra.mxu3 %v12030_v57  ;;  %v10933_v57 = vld [vmem:[%s16151_s9 + $0xd0] sm:$0xf] }
 0x611   :  { %6774 = vmatmul.bf16.gmra.mxu2 %v12020_v62 }
 0x612   :  { %v15196_v52 = vpop.f32.mrf.mxu3 }
 0x615   :  { %v15266_v26 = vpop.f32.mrf.mxu1 }
 0x61a   :  { %v15198_v48 = vpop.f32.mrf.mxu3 }
 0x61d   :  { %v15274_v55 = vpop.f32.mrf.mxu1 }
 0x61f   :  { %6943 = vmatmul.bf16.gmra.mxu3 %v12031_v35  ;;  %v12072_v35 = vld [vmem:[%s16151_s9 + $0xd4] sm:$0xf0] }
 0x620   :  { %v10934_v59 = vor.u32 %v12072_v35, %v10933_v57  ;;  %v12049_v35 = vld [vmem:[%s16151_s9 + $0x24] sm:$0xf] }
 0x622   :  { %v15200_v11 = vpop.f32.mrf.mxu3  ;;  %7227 = vmatpush.bf16.msra.mxu0 %v10934_v59 }
 0x624   :  { %v6740_v21 = vpop.f32.mrf.mxu2 }
 0x625   :  { %v15296_v62 = vpop.f32.mrf.mxu1 }
 0x626   :  { %7228 = vmatpush.bf16.msra.mxu0 %v10926_v29 }
 0x62a   :  { %v15202_v10 = vpop.f32.mrf.mxu3 }
 0x62c   :  { %v15268_v30 = vpop.f32.mrf.mxu2 }
 0x62d   :  { %v15376_v57 = vpop.f32.mrf.mxu1 }
 0x62f   :  { %6948 = vmatmul.bf16.gmra.mxu3 %v12032_v56  ;;  %v12071_v56 = vld [vmem:[%s16151_s9 + $0xd4] sm:$0xf] }
 0x630   :  { %v10938_v58 = vor.u32 %v12071_v56, %v10935_v4  ;;  %v10975_v56 = vld [vmem:[%s16151_s9 + $0x28] sm:$0xf0] }
 0x631   :  { %v10978_v4 = vor.u32 %v12049_v35, %v10975_v56 }
 0x632   :  { %v15204_v38 = vpop.f32.mrf.mxu3  ;;  %7241 = vmatpush.bf16.msra.mxu1 %v10938_v58  ;;  %v12066_v58 = vld [vmem:[%s16151_s9 + $0xa4] sm:$0xf0] }
 0x634   :  { %v15278_v63 = vpop.f32.mrf.mxu2 }
 0x63a   :  { %v15206_v8 = vpop.f32.mrf.mxu3 }
 0x63c   :  { %v15317_v61 = vpop.f32.mrf.mxu2 }
 0x63f   :  { %6953 = vmatmul.bf16.gmra.mxu3 %v12033_v47  ;;  %v6369_v47 = vadd.f32 %v6368_v39, %v15192_v40  ;;  %v12053_v40 = vld [vmem:[%s16151_s9 + $0x44] sm:$0xf]  ;;  %v10930_v39 = vor.u32 %v12069_v12, %v10927_v31  ;;  %v12048_v12 = vld [vmem:[%s16151_s9 + $0x14] sm:$0xf0] }
 0x640   :  { %v10994_v15 = vor.u32 %v12053_v40, %v10991_v32 }
 0x641   :  { %v6586_v44 = vadd.f32 %v6546_v34, %v6369_v47  ;;  %v10982_v34 = vor.u32 %v12052_v25, %v10981_v20  ;;  %7242 = vmatpush.bf16.msra.mxu1 %v10930_v39  ;;  %v10901_v25 = vld [vmem:[%s16151_s9 + $0x90] sm:$0xf]  ;;  %v12063_v39 = vld [vmem:[%s16151_s9 + $0x94] sm:$0xf] }
 0x642   :  { %v15208_v22 = vpop.f32.mrf.mxu3  ;;  %7356 = vmatpush.bf16.msra.mxu3 %v10994_v15  ;;  %v10965_v15 = vld [vmem:[%s16151_s9 + $0x10] sm:$0xf] }
 0x643   :  { %v6780_v19 = vadd.f32 %v6740_v21, %v6586_v44  ;;  %v12068_v21 = vld [vmem:[%s16151_s9 + $0xb4] sm:$0xf0]  ;;  %v10911_v44 = vld [vmem:[%s16151_s9 + $0xa8] sm:$0xf0]  ;;  %v10966_v31 = vor.u32 %v12048_v12, %v10965_v15 }
 0x644   :  { %v10918_v36 = vor.u32 %v12068_v21, %v10917_v54  ;;  %v12046_v54 = vld [vmem:[%s16151_s9 + $0x4] sm:$0xf0] }
 0x646   :  { %7357 = vmatpush.bf16.msra.mxu3 %v10986_v46  ;;  %7229 = vmatpush.bf16.msra.mxu0 %v10918_v36  ;;  %v10957_v46 = vld [vmem:[%s16151_s9] sm:$0xf] }
 0x64a   :  { %v15222_v28 = vpop.f32.mrf.mxu3  ;;  %7358 = vmatpush.bf16.msra.mxu3 %v10978_v4  ;;  %v11093_v4 = vld [vmem:[%s16151_s9 + $0x170] sm:$0xf] }
 0x64f   :  { %6958 = vmatmul.bf16.gmra.mxu3 %v12034_v3  ;;  %v10990_v3 = vor.u32 %v12054_v13, %v10989_v33  ;;  %v15385_v33 = vpop.f32.mrf.mxu2  ;;  %v10909_v13 = vld [vmem:[%s16151_s9 + $0xa0] sm:$0xf] }
 0x650   :  { %v10910_v32 = vor.u32 %v12066_v58, %v10909_v13 }
 0x651   :  { %7342 = vmatpush.bf16.msra.mxu2 %v10990_v3  ;;  %v12065_v3 = vld [vmem:[%s16151_s9 + $0xa4] sm:$0xf] }
 0x652   :  { %v15236_v6 = vpop.f32.mrf.mxu3  ;;  %v10914_v60 = vor.u32 %v12065_v3, %v10911_v44  ;;  %7230 = vmatpush.bf16.msra.mxu0 %v10910_v32  ;;  %v11095_v44 = vld [vmem:[%s16151_s9 + $0x178] sm:$0xf0] }
 0x655   :  { %7343 = vmatpush.bf16.msra.mxu2 %v10982_v34  ;;  %v6374_v34 = vadd.f32 %v15272_v24, %v15196_v52  ;;  %v12045_v52 = vld [vmem:[%s16151_s9 + $0x4] sm:$0xf]  ;;  %v10959_v24 = vld [vmem:[%s16151_s9 + $0x8] sm:$0xf0] }
 0x657   :  { %v15460_v13 = vpop.f32.mrf.mxu2 }
 0x65a   :  { %v15250_v5 = vpop.f32.mrf.mxu3 }
 0x65f   :  { %6963 = vmatmul.bf16.gmra.mxu3 %v12035_v49 }
 0x662   :  { %v15264_v16 = vpop.f32.mrf.mxu3 }
 0x66a   :  { %v15270_v17 = vpop.f32.mrf.mxu3 }
 0x66f   :  { %6968 = vmatmul.bf16.gmra.mxu3 %v12036_v18  ;;  %v6371_v18 = vadd.f32 %v6370_v45, %v15194_v37  ;;  %v10922_v37 = vor.u32 %v12067_v27, %v10919_v1  ;;  %v10974_v45 = vor.u32 %v12050_v42, %v10973_v53  ;;  %v10958_v27 = vor.u32 %v12046_v54, %v10957_v46  ;;  %v15442_v53 = vpop.f32.mrf.mxu1  ;;  %v10893_v42 = vld [vmem:[%s16151_s9 + $0x80] sm:$0xf] }
 0x670   :  { %v10962_v1 = vor.u32 %v12045_v52, %v10959_v24 }
 0x671   :  { %v6587_v47 = vadd.f32 %v15266_v26, %v6371_v18  ;;  %7243 = vmatpush.bf16.msra.mxu1 %v10922_v37  ;;  %7344 = vmatpush.bf16.msra.mxu2 %v10974_v45  ;;  %v15439_v18 = vpop.f32.mrf.mxu0  ;;  %v12062_v37 = vld [vmem:[%s16151_s9 + $0x84] sm:$0xf0]  ;;  %v12061_v45 = vld [vmem:[%s16151_s9 + $0x84] sm:$0xf] }
 0x672   :  { %v15276_v7 = vpop.f32.mrf.mxu3 }
 0x673   :  { %v6781_v26 = vadd.f32 %v15268_v30, %v6587_v47  ;;  %v12047_v30 = vld [vmem:[%s16151_s9 + $0x14] sm:$0xf]  ;;  %v10894_v47 = vor.u32 %v12062_v37, %v10893_v42  ;;  %v11069_v42 = vld [vmem:[%s16151_s9 + $0x140] sm:$0xf]  ;;  %v12086_v37 = vld [vmem:[%s16151_s9 + $0x144] sm:$0xf0] }
 0x675   :  { %7244 = vmatpush.bf16.msra.mxu1 %v10914_v60  ;;  %7345 = vmatpush.bf16.msra.mxu2 %v10966_v31  ;;  %v6376_v60 = vadd.f32 %v15294_v2, %v15198_v48  ;;  %v11087_v48 = vld [vmem:[%s16151_s9 + $0x168] sm:$0xf0] }
 0x677   :  { %v6589_v2 = vadd.f32 %v15296_v62, %v6376_v60  ;;  %v15496_v46 = vpop.f32.mrf.mxu1 }
 0x679   :  { %7346 = vmatpush.bf16.msra.mxu2 %v10958_v27  ;;  %v11079_v27 = vld [vmem:[%s16151_s9 + $0x158] sm:$0xf0] }
 0x67a   :  { %v15289_v43 = vpop.f32.mrf.mxu3 }
 0x682   :  { %v6934_v49 = vpop.f32.mrf.mxu3 }
 0x683   :  { %v6974_v23 = vadd.f32 %v6934_v49, %v6780_v19  ;;  %v10967_v19 = vld [vmem:[%s16151_s9 + $0x18] sm:$0xf0]  ;;  %v12064_v49 = vld [vmem:[%s16151_s9 + $0x94] sm:$0xf0] }
 0x684   :  { %v10970_v20 = vor.u32 %v12047_v30, %v10967_v19  ;;  %v10902_v9 = vor.u32 %v12064_v49, %v10901_v25  ;;  %v11085_v30 = vld [vmem:[%s16151_s9 + $0x160] sm:$0xf]  ;;  %v12090_v19 = vld [vmem:[%s16151_s9 + $0x164] sm:$0xf0] }
 0x685   :  { %v6994_v41 = vadd.f32 %v15328_v0, %v6974_v23  ;;  %v10903_v23 = vld [vmem:[%s16151_s9 + $0x98] sm:$0xf0]  ;;  %v11086_v31 = vor.u32 %v12090_v19, %v11085_v30  ;;  %v11173_v30 = vld [vmem:[%s16151_s9 + $0x1f0] sm:$0xf]  ;;  %v12108_v19 = vld [vmem:[%s16151_s9 + $0x1f4] sm:$0xf0] }
 0x686   :  { %7359 = vmatpush.bf16.msra.mxu3 %v10970_v20  ;;  %v10906_v21 = vor.u32 %v12063_v39, %v10903_v23  ;;  %7231 = vmatpush.bf16.msra.mxu0 %v10902_v9  ;;  %v15487_v39 = vpop.f32.mrf.mxu0  ;;  %v11077_v9 = vld [vmem:[%s16151_s9 + $0x150] sm:$0xf]  ;;  %v12088_v23 = vld [vmem:[%s16151_s9 + $0x154] sm:$0xf0] }
 0x687   :  { %v7010_v59 = vsub.f32 0.0, %v6994_v41  ;;  %v6588_v41 = vadd.f32 %v15274_v55, %v6374_v34  ;;  %v6783_v34 = vadd.f32 %v15317_v61, %v6589_v2  ;;  %v12087_v61 = vld [vmem:[%s16151_s9 + $0x154] sm:$0xf] }
 0x688   :  { %7245 = vmatpush.bf16.msra.mxu1 %v10906_v21  ;;  %v11078_v21 = vor.u32 %v12088_v23, %v11077_v9  ;;  %v11082_v24 = vor.u32 %v12087_v61, %v11079_v27  ;;  %v11053_v23 = vld [vmem:[%s16151_s9 + $0x120] sm:$0xf]  ;;  %v11055_v61 = vld [vmem:[%s16151_s9 + $0x128] sm:$0xf0] }
 0x689   :  { %v7026_v40 = vmul.f32 1.442695, %v7010_v59  ;;  %v6782_v55 = vadd.f32 %v15278_v63, %v6588_v41  ;;  %v10895_v59 = vld [vmem:[%s16151_s9 + $0x88] sm:$0xf0]  ;;  %v12092_v63 = vld [vmem:[%s16151_s9 + $0x174] sm:$0xf0]  ;;  %v15504_v41 = vpop.f32.mrf.mxu2 }
 0x68a   :  { %v6936_v51 = vpop.f32.mrf.mxu3  ;;  %7360 = vmatpush.bf16.msra.mxu3 %v10962_v1  ;;  %v10898_v3 = vor.u32 %v12061_v45, %v10895_v59  ;;  %7232 = vmatpush.bf16.msra.mxu0 %v10894_v47  ;;  %v11094_v32 = vor.u32 %v12092_v63, %v11093_v4  ;;  %v12085_v45 = vld [vmem:[%s16151_s9 + $0x144] sm:$0xf]  ;;  %v11061_v63 = vld [vmem:[%s16151_s9 + $0x130] sm:$0xf]  ;;  %v11165_v27 = vld [vmem:[%s16151_s9 + $0x1e0] sm:$0xf] }
 0x68b   :  { %12657 = vpow2.f32 %v7026_v40  ;;  %v6975_v29 = vadd.f32 %v6936_v51, %v6781_v26  ;;  %v12091_v26 = vld [vmem:[%s16151_s9 + $0x174] sm:$0xf] }
 0x68c   :  { %7246 = vmatpush.bf16.msra.mxu1 %v10898_v3  ;;  %v11098_v51 = vor.u32 %v12091_v26, %v11095_v44  ;;  %v12084_v26 = vld [vmem:[%s16151_s9 + $0x134] sm:$0xf0]  ;;  %v12083_v44 = vld [vmem:[%s16151_s9 + $0x134] sm:$0xf] }
 0x68d   :  { %v6995_v50 = vadd.f32 %v15328_v0, %v6975_v29  ;;  %v12089_v29 = vld [vmem:[%s16151_s9 + $0x164] sm:$0xf] }
 0x68e   :  { %7470 = vmatpush.bf16.msrb.mxu0 %v11094_v32  ;;  %v11090_v25 = vor.u32 %v12089_v29, %v11087_v48  ;;  %v12107_v29 = vld [vmem:[%s16151_s9 + $0x1f4] sm:$0xf]  ;;  %v15548_v48 = vpop.f32.mrf.mxu1 }
 0x68f   :  { %v7011_v36 = vsub.f32 0.0, %v6995_v50 }
 0x690   :  { %7484 = vmatpush.bf16.msrb.mxu1 %v11098_v51 }
 0x691   :  { %v12658_v35 = vpop.eup %12657  ;;  %v7028_v56 = vmul.f32 1.442695, %v7011_v36  ;;  %v6379_v36 = vadd.f32 %v15364_v14, %v15200_v11  ;;  %v11071_v11 = vld [vmem:[%s16151_s9 + $0x148] sm:$0xf0] }
 0x692   :  { %v6939_v58 = vpop.f32.mrf.mxu3  ;;  %v7058_v15 = vadd.f32 1.0, %v12658_v35  ;;  %7471 = vmatpush.bf16.msrb.mxu0 %v11086_v31  ;;  %v11074_v47 = vor.u32 %v12085_v45, %v11071_v11  ;;  %v6381_v31 = vadd.f32 %v15439_v18, %v15202_v10  ;;  %v12082_v10 = vld [vmem:[%s16151_s9 + $0x124] sm:$0xf0]  ;;  %v12081_v18 = vld [vmem:[%s16151_s9 + $0x124] sm:$0xf] }
 0x693   :  { %12659 = vpow2.f32 %v7028_v56  ;;  %v6976_v40 = vadd.f32 %v6939_v58, %v6782_v55  ;;  %v11070_v55 = vor.u32 %v12086_v37, %v11069_v42  ;;  %v6590_v14 = vadd.f32 %v15376_v57, %v6379_v36  ;;  %v12105_v42 = vld [vmem:[%s16151_s9 + $0x1e4] sm:$0xf]  ;;  %v11167_v37 = vld [vmem:[%s16151_s9 + $0x1e8] sm:$0xf0] }
 0x694   :  { %12661 = vrcp.f32 %v7058_v15  ;;  %7485 = vmatpush.bf16.msrb.mxu1 %v11090_v25  ;;  %v11062_v57 = vor.u32 %v12084_v26, %v11061_v63  ;;  %v15535_v15 = vpop.f32.mrf.mxu0  ;;  %v11175_v25 = vld [vmem:[%s16151_s9 + $0x1f8] sm:$0xf0]  ;;  %v11170_v45 = vor.u32 %v12105_v42, %v11167_v37  ;;  %v11157_v26 = vld [vmem:[%s16151_s9 + $0x1d0] sm:$0xf]  ;;  %v12099_v42 = vld [vmem:[%s16151_s9 + $0x1b4] sm:$0xf] }
 0x695   :  { %v6996_v12 = vadd.f32 %v15328_v0, %v6976_v40  ;;  %v6784_v4 = vadd.f32 %v15385_v33, %v6590_v14  ;;  %v11063_v33 = vld [vmem:[%s16151_s9 + $0x138] sm:$0xf0]  ;;  %v11178_v9 = vor.u32 %v12107_v29, %v11175_v25  ;;  %v11045_v14 = vld [vmem:[%s16151_s9 + $0x110] sm:$0xf]  ;;  %v12077_v29 = vld [vmem:[%s16151_s9 + $0x104] sm:$0xf] }
 0x696   :  { %7472 = vmatpush.bf16.msrb.mxu0 %v11078_v21  ;;  %v11054_v21 = vor.u32 %v12082_v10, %v11053_v23  ;;  %v12102_v25 = vld [vmem:[%s16151_s9 + $0x1c4] sm:$0xf0]  ;;  %v12101_v23 = vld [vmem:[%s16151_s9 + $0x1c4] sm:$0xf]  ;;  %v11151_v10 = vld [vmem:[%s16151_s9 + $0x1c8] sm:$0xf0] }
 0x697   :  { %v7012_v20 = vsub.f32 0.0, %v6996_v12  ;;  %v11066_v12 = vor.u32 %v12083_v44, %v11063_v33  ;;  %7619 = vmatpush.bf16.msrb.mxu3 %v11178_v9  ;;  %v11159_v44 = vld [vmem:[%s16151_s9 + $0x1d8] sm:$0xf0] }
 0x698   :  { %7486 = vmatpush.bf16.msrb.mxu1 %v11082_v24 }
 0x699   :  { %v12660_v49 = vpop.eup %12659  ;;  %v7030_v50 = vmul.f32 1.442695, %v7012_v20  ;;  %v11174_v20 = vor.u32 %v12108_v19, %v11173_v30  ;;  %v11037_v30 = vld [vmem:[%s16151_s9 + $0x100] sm:$0xf]  ;;  %v12078_v19 = vld [vmem:[%s16151_s9 + $0x104] sm:$0xf0] }
 0x69a   :  { %v7059_v62 = vadd.f32 1.0, %v12660_v49  ;;  %v6941_v54 = vpop.f32.mrf.mxu3  ;;  %v12662_v35 = vpop.eup %12661  ;;  %7473 = vmatpush.bf16.msrb.mxu0 %v11070_v55 }
 0x69b   :  { %12663 = vpow2.f32 %v7030_v50  ;;  %v6977_v52 = vadd.f32 %v6941_v54, %v6783_v34  ;;  %v7090_v58 = vpack.c.bf16 %v12662_v35, %v12662_v35  ;;  %v15564_v54 = vpop.f32.mrf.mxu2  ;;  %7605 = vmatpush.bf16.msrb.mxu2 %v11174_v20  ;;  %7620 = vmatpush.bf16.msrb.mxu3 %v11170_v45  ;;  %v11149_v20 = vld [vmem:[%s16151_s9 + $0x1c0] sm:$0xf] }
 0x69c   :  { %12665 = vrcp.f32 %v7059_v62  ;;  %7487 = vmatpush.bf16.msrb.mxu1 %v11074_v47  ;;  %v6591_v62 = vadd.f32 %v15442_v53, %v6381_v31  ;;  %v11058_v53 = vor.u32 %v12081_v18, %v11055_v61  ;;  %v15606_v33 = vpop.f32.mrf.mxu0  ;;  %v11150_v9 = vor.u32 %v12102_v25, %v11149_v20  ;;  %v11125_v25 = vld [vmem:[%s16151_s9 + $0x190] sm:$0xf] }
 0x69d   :  { %v6997_v1 = vadd.f32 %v15328_v0, %v6977_v52  ;;  %v7255_v49 = vunpack.c.l.b16 %v7090_v58  ;;  %v12106_v52 = vld [vmem:[%s16151_s9 + $0x1e4] sm:$0xf0]  ;;  %v11047_v58 = vld [vmem:[%s16151_s9 + $0x118] sm:$0xf0] }
 0x69e   :  { %7474 = vmatpush.bf16.msrb.mxu0 %v11062_v57  ;;  %v6785_v55 = vadd.f32 %v15460_v13, %v6591_v62  ;;  %v12079_v13 = vld [vmem:[%s16151_s9 + $0x114] sm:$0xf]  ;;  %v11154_v62 = vor.u32 %v12101_v23, %v11151_v10 }
 0x69f   :  { %v7013_v56 = vsub.f32 0.0, %v6997_v1  ;;  %v11166_v1 = vor.u32 %v12106_v52, %v11165_v27  ;;  %v11050_v63 = vor.u32 %v12079_v13, %v11047_v58  ;;  %v11141_v52 = vld [vmem:[%s16151_s9 + $0x1b0] sm:$0xf] }
 0x6a0   :  { %7488 = vmatpush.bf16.msrb.mxu1 %v11066_v12 }
 0x6a1   :  { %v12664_v59 = vpop.eup %12663  ;;  %v7032_v3 = vmul.f32 1.442695, %v7013_v56  ;;  %v12080_v56 = vld [vmem:[%s16151_s9 + $0x114] sm:$0xf0]  ;;  %7606 = vmatpush.bf16.msrb.mxu2 %v11166_v1 }
 0x6a2   :  { %v12666_v40 = vpop.eup %12665  ;;  %v6944_v32 = vpop.f32.mrf.mxu3  ;;  %v7060_v2 = vadd.f32 1.0, %v12664_v59  ;;  %7475 = vmatpush.bf16.msrb.mxu0 %v11054_v21 }
 0x6a3   :  { %v7091_v51 = vpack.c.bf16 %v12666_v40, %v12666_v40  ;;  %12667 = vpow2.f32 %v7032_v3  ;;  %v6978_v60 = vadd.f32 %v6944_v32, %v6784_v4  ;;  %v11046_v4 = vor.u32 %v12080_v56, %v11045_v14  ;;  %v12104_v40 = vld [vmem:[%s16151_s9 + $0x1d4] sm:$0xf0]  ;;  %v12103_v32 = vld [vmem:[%s16151_s9 + $0x1d4] sm:$0xf]  ;;  %v15638_v18 = vpop.f32.mrf.mxu2 }
 0x6a4   :  { %12669 = vrcp.f32 %v7060_v2  ;;  %7489 = vmatpush.bf16.msrb.mxu1 %v11058_v53  ;;  %v11158_v57 = vor.u32 %v12104_v40, %v11157_v26  ;;  %v11162_v12 = vor.u32 %v12103_v32, %v11159_v44  ;;  %v15620_v2 = vpop.f32.mrf.mxu1  ;;  %v12123_v14 = vld [vmem:[%s16151_s9 + $0x274] sm:$0xf]  ;;  %v6386_v56 = vadd.f32 %v15535_v15, %v15206_v8  ;;  %v12097_v8 = vld [vmem:[%s16151_s9 + $0x1a4] sm:$0xf]  ;;  %v11135_v32 = vld [vmem:[%s16151_s9 + $0x1a8] sm:$0xf0] }
 0x6a5   :  { %v7256_v34 = vunpack.c.l.b16 %v7091_v51  ;;  %v6998_v50 = vadd.f32 %v15328_v0, %v6978_v60  ;;  %v6384_v51 = vadd.f32 %v15487_v39, %v15204_v38  ;;  %v11038_v38 = vor.u32 %v12078_v19, %v11037_v30  ;;  %v11039_v39 = vld [vmem:[%s16151_s9 + $0x108] sm:$0xf0]  ;;  %v12122_v44 = vld [vmem:[%s16151_s9 + $0x264] sm:$0xf0]  ;;  %v12121_v19 = vld [vmem:[%s16151_s9 + $0x264] sm:$0xf] }
 0x6a6   :  { %7476 = vmatpush.bf16.msrb.mxu0 %v11046_v4  ;;  %7607 = vmatpush.bf16.msrb.mxu2 %v11158_v57  ;;  %v6593_v15 = vadd.f32 %v15548_v48, %v6386_v56  ;;  %v11245_v57 = vld [vmem:[%s16151_s9 + $0x260] sm:$0xf]  ;;  %v11138_v30 = vor.u32 %v12097_v8, %v11135_v32 }
 0x6a7   :  { %v7257_v24 = vpack.c.b16 %v7256_v34, %v7255_v49  ;;  %v7014_v36 = vsub.f32 0.0, %v6998_v50  ;;  %v6592_v49 = vadd.f32 %v15496_v46, %v6384_v51  ;;  %7621 = vmatpush.bf16.msrb.mxu3 %v11162_v12  ;;  %v11042_v50 = vor.u32 %v12077_v29, %v11039_v39  ;;  %v15687_v51 = vpop.f32.mrf.mxu0  ;;  %v11247_v29 = vld [vmem:[%s16151_s9 + $0x268] sm:$0xf0] }
 0x6a8   :  { %7490 = vmatpush.bf16.msrb.mxu1 %v11050_v63  ;;  %v12098_v63 = vld [vmem:[%s16151_s9 + $0x1a4] sm:$0xf0]  ;;  %v6787_v39 = vadd.f32 %v15564_v54, %v6593_v15  ;;  %v11246_v23 = vor.u32 %v12122_v44, %v11245_v57  ;;  %v11250_v10 = vor.u32 %v12121_v19, %v11247_v29  ;;  %v12095_v54 = vld [vmem:[%s16151_s9 + $0x194] sm:$0xf]  ;;  %v11221_v15 = vld [vmem:[%s16151_s9 + $0x230] sm:$0xf] }
 0x6a9   :  { %v12668_v35 = vpop.eup %12667  ;;  %v7034_v11 = vmul.f32 1.442695, %v7014_v36  ;;  %7347 = vmatmul.bf16.vlgmr.msra.gmra.mxu2 %v7257_v24  ;;  %7361 = vmatmul.bf16.vlgmr.msra.gmra.mxu3 %v7257_v24  ;;  %v6786_v61 = vadd.f32 %v15504_v41, %v6592_v49  ;;  %v12100_v24 = vld [vmem:[%s16151_s9 + $0x1b4] sm:$0xf0]  ;;  %v11143_v41 = vld [vmem:[%s16151_s9 + $0x1b8] sm:$0xf0] }
 0x6aa   :  { %v7061_v47 = vadd.f32 1.0, %v12668_v35  ;;  %v6946_v59 = vpop.f32.mrf.mxu3  ;;  %v12670_v31 = vpop.eup %12669  ;;  %7477 = vmatpush.bf16.msrb.mxu0 %v11038_v38  ;;  %v11142_v1 = vor.u32 %v12100_v24, %v11141_v52  ;;  %7608 = vmatpush.bf16.msrb.mxu2 %v11150_v9  ;;  %v11146_v35 = vor.u32 %v12099_v42, %v11143_v41  ;;  %v12096_v49 = vld [vmem:[%s16151_s9 + $0x194] sm:$0xf0]  ;;  %v12119_v24 = vld [vmem:[%s16151_s9 + $0x254] sm:$0xf] }
 0x6ab   :  { %12671 = vpow2.f32 %v7034_v11  ;;  %v6979_v3 = vadd.f32 %v6946_v59, %v6785_v55  ;;  %v7092_v46 = vpack.c.bf16 %v12670_v31, %v12670_v31  ;;  %7622 = vmatpush.bf16.msrb.mxu3 %v11154_v62  ;;  %v11253_v55 = vld [vmem:[%s16151_s9 + $0x270] sm:$0xf]  ;;  %v12124_v11 = vld [vmem:[%s16151_s9 + $0x274] sm:$0xf0]  ;;  %v11255_v59 = vld [vmem:[%s16151_s9 + $0x278] sm:$0xf0] }
 0x6ac   :  { %12673 = vrcp.f32 %v7061_v47  ;;  %7491 = vmatpush.bf16.msrb.mxu1 %v11042_v50  ;;  %v11254_v26 = vor.u32 %v12124_v11, %v11253_v55  ;;  %v11258_v40 = vor.u32 %v12123_v14, %v11255_v59  ;;  %v15695_v31 = vpop.f32.mrf.mxu1  ;;  %v11127_v62 = vld [vmem:[%s16151_s9 + $0x198] sm:$0xf0]  ;;  %v12120_v52 = vld [vmem:[%s16151_s9 + $0x254] sm:$0xf0]  ;;  %v11117_v42 = vld [vmem:[%s16151_s9 + $0x180] sm:$0xf] }
 0x6ad   :  { %v6999_v60 = vadd.f32 %v15328_v0, %v6979_v3  ;;  %v7141_v4 = vunpack.c.l.b16 %v7092_v46  ;;  %v11133_v3 = vld [vmem:[%s16151_s9 + $0x1a0] sm:$0xf]  ;;  %v11130_v46 = vor.u32 %v12095_v54, %v11127_v62  ;;  %v12094_v41 = vld [vmem:[%s16151_s9 + $0x184] sm:$0xf0]  ;;  %v11333_v19 = vld [vmem:[%s16151_s9 + $0x2f0] sm:$0xf] }
 0x6ae   :  { %7609 = vmatpush.bf16.msrb.mxu2 %v11142_v1  ;;  %v11134_v48 = vor.u32 %v12098_v63, %v11133_v3  ;;  %v12118_v11 = vld [vmem:[%s16151_s9 + $0x244] sm:$0xf0]  ;;  %v12140_v29 = vld [vmem:[%s16151_s9 + $0x2f4] sm:$0xf0]  ;;  %v11213_v62 = vld [vmem:[%s16151_s9 + $0x220] sm:$0xf] }
 0x6af   :  { %v7015_v34 = vsub.f32 0.0, %v6999_v60  ;;  %7623 = vmatpush.bf16.msrb.mxu3 %v11146_v35  ;;  %v15752_v3 = vpop.f32.mrf.mxu0 }
 0x6b1   :  { %v12672_v21 = vpop.eup %12671  ;;  %v7036_v27 = vmul.f32 1.442695, %v7015_v34  ;;  %v15704_v34 = vpop.f32.mrf.mxu2 }
 0x6b2   :  { %v12674_v36 = vpop.eup %12673  ;;  %v6949_v53 = vpop.f32.mrf.mxu3  ;;  %v7062_v47 = vadd.f32 1.0, %v12672_v21  ;;  %7610 = vmatpush.bf16.msrb.mxu2 %v11134_v48 }
 0x6b3   :  { %v7093_v37 = vpack.c.bf16 %v12674_v36, %v12674_v36  ;;  %12675 = vpow2.f32 %v7036_v27  ;;  %v6980_v45 = vadd.f32 %v6949_v53, %v6786_v61  ;;  %7624 = vmatpush.bf16.msrb.mxu3 %v11138_v30  ;;  %v11126_v61 = vor.u32 %v12096_v49, %v11125_v25  ;;  %v11237_v27 = vld [vmem:[%s16151_s9 + $0x250] sm:$0xf]  ;;  %v11239_v36 = vld [vmem:[%s16151_s9 + $0x258] sm:$0xf0] }
 0x6b4   :  { %12677 = vrcp.f32 %v7062_v47  ;;  %v6389_v53 = vadd.f32 %v15606_v33, %v15208_v22  ;;  %v11238_v35 = vor.u32 %v12120_v52, %v11237_v27  ;;  %v11242_v55 = vor.u32 %v12119_v24, %v11239_v36  ;;  %v11119_v22 = vld [vmem:[%s16151_s9 + $0x188] sm:$0xf0]  ;;  %v11229_v33 = vld [vmem:[%s16151_s9 + $0x240] sm:$0xf]  ;;  %v12138_v52 = vld [vmem:[%s16151_s9 + $0x2e4] sm:$0xf0] }
 0x6b5   :  { %v7142_v13 = vunpack.c.l.b16 %v7093_v37  ;;  %v7000_v58 = vadd.f32 %v15328_v0, %v6980_v45  ;;  %v12093_v37 = vld [vmem:[%s16151_s9 + $0x184] sm:$0xf]  ;;  %v11118_v47 = vor.u32 %v12094_v41, %v11117_v42  ;;  %v11230_v57 = vor.u32 %v12118_v11, %v11229_v33  ;;  %v11325_v27 = vld [vmem:[%s16151_s9 + $0x2e0] sm:$0xf]  ;;  %v11327_v41 = vld [vmem:[%s16151_s9 + $0x2e8] sm:$0xf0] }
 0x6b6   :  { %v6594_v14 = vadd.f32 %v15620_v2, %v6389_v53  ;;  %7611 = vmatpush.bf16.msrb.mxu2 %v11126_v61  ;;  %v11122_v59 = vor.u32 %v12093_v37, %v11119_v22  ;;  %v11334_v49 = vor.u32 %v12140_v29, %v11333_v19  ;;  %v12137_v42 = vld [vmem:[%s16151_s9 + $0x2e4] sm:$0xf]  ;;  %v12112_v22 = vld [vmem:[%s16151_s9 + $0x214] sm:$0xf0]  ;;  %v11309_v19 = vld [vmem:[%s16151_s9 + $0x2c0] sm:$0xf] }
 0x6b7   :  { %v7143_v60 = vpack.c.b16 %v7142_v13, %v7141_v4  ;;  %v7016_v12 = vsub.f32 0.0, %v7000_v58  ;;  %7625 = vmatpush.bf16.msrb.mxu3 %v11130_v46  ;;  %v12117_v4 = vld [vmem:[%s16151_s9 + $0x244] sm:$0xf]  ;;  %v11231_v13 = vld [vmem:[%s16151_s9 + $0x248] sm:$0xf0]  ;;  %v11330_v37 = vor.u32 %v12137_v42, %v11327_v41 }
 0x6b8   :  { %v6788_v63 = vadd.f32 %v15638_v18, %v6594_v14  ;;  %v11234_v44 = vor.u32 %v12117_v4, %v11231_v13  ;;  %v12115_v18 = vld [vmem:[%s16151_s9 + $0x234] sm:$0xf]  ;;  %v11215_v46 = vld [vmem:[%s16151_s9 + $0x228] sm:$0xf0]  ;;  %v11317_v13 = vld [vmem:[%s16151_s9 + $0x2d0] sm:$0xf] }
 0x6b9   :  { %v12676_v38 = vpop.eup %12675  ;;  %v7038_v20 = vmul.f32 1.442695, %v7016_v12  ;;  %7233 = vmatmul.bf16.vlgmr.msra.gmra.mxu0 %v7143_v60  ;;  %7247 = vmatmul.bf16.vlgmr.msra.gmra.mxu1 %v7143_v60  ;;  %v12116_v60 = vld [vmem:[%s16151_s9 + $0x234] sm:$0xf0]  ;;  %v11223_v12 = vld [vmem:[%s16151_s9 + $0x238] sm:$0xf0] }
 0x6ba   :  { %v7063_v50 = vadd.f32 1.0, %v12676_v38  ;;  %v6951_v9 = vpop.f32.mrf.mxu3  ;;  %7740 = vmatpush.bf16.msra.mxu0 %v11254_v26  ;;  %7754 = vmatpush.bf16.msra.mxu1 %v11258_v40  ;;  %v12678_v45 = vpop.eup %12677  ;;  %v12139_v38 = vld [vmem:[%s16151_s9 + $0x2f4] sm:$0xf]  ;;  %v11226_v61 = vor.u32 %v12115_v18, %v11223_v12  ;;  %v12109_v18 = vld [vmem:[%s16151_s9 + $0x204] sm:$0xf] }
 0x6bb   :  { %12679 = vpow2.f32 %v7038_v20  ;;  %v6981_v21 = vadd.f32 %v6951_v9, %v6787_v39  ;;  %v7094_v8 = vpack.c.bf16 %v12678_v45, %v12678_v45  ;;  %v15758_v40 = vpop.f32.mrf.mxu1  ;;  %7612 = vmatpush.bf16.msrb.mxu2 %v11118_v47  ;;  %7626 = vmatpush.bf16.msrb.mxu3 %v11122_v59  ;;  %v6391_v39 = vadd.f32 %v15687_v51, %v15222_v28  ;;  %v15780_v20 = vpop.f32.mrf.mxu2  ;;  %v12114_v28 = vld [vmem:[%s16151_s9 + $0x224] sm:$0xf0]  ;;  %v12113_v51 = vld [vmem:[%s16151_s9 + $0x224] sm:$0xf]  ;;  %v11207_v47 = vld [vmem:[%s16151_s9 + $0x218] sm:$0xf0] }
 0x6bc   :  { %12681 = vrcp.f32 %v7063_v50  ;;  %v11335_v50 = vld [vmem:[%s16151_s9 + $0x2f8] sm:$0xf0]  ;;  %v11214_v14 = vor.u32 %v12114_v28, %v11213_v62  ;;  %v6395_v59 = vpop.f32.mrf.mxu0  ;;  %v12134_v29 = vld [vmem:[%s16151_s9 + $0x2c4] sm:$0xf0]  ;;  %v12132_v28 = vld [vmem:[%s16151_s9 + $0x2b4] sm:$0xf0] }
 0x6bd   :  { %v7001_v1 = vadd.f32 %v15328_v0, %v6981_v21  ;;  %v7386_v9 = vunpack.c.l.b16 %v7094_v8  ;;  %v11338_v54 = vor.u32 %v12139_v38, %v11335_v50  ;;  %v11222_v21 = vor.u32 %v12116_v60, %v11221_v15  ;;  %v11319_v15 = vld [vmem:[%s16151_s9 + $0x2d8] sm:$0xf0]  ;;  %v12110_v60 = vld [vmem:[%s16151_s9 + $0x204] sm:$0xf0]  ;;  %v11311_v50 = vld [vmem:[%s16151_s9 + $0x2c8] sm:$0xf0] }
 0x6be   :  { %7741 = vmatpush.bf16.msra.mxu0 %v11246_v23  ;;  %7755 = vmatpush.bf16.msra.mxu1 %v11250_v10  ;;  %v6595_v24 = vadd.f32 %v15695_v31, %v6391_v39  ;;  %v11205_v31 = vld [vmem:[%s16151_s9 + $0x210] sm:$0xf]  ;;  %v12156_v42 = vld [vmem:[%s16151_s9 + $0x374] sm:$0xf0]  ;;  %v12155_v41 = vld [vmem:[%s16151_s9 + $0x374] sm:$0xf] }
 0x6bf   :  { %v7017_v56 = vsub.f32 0.0, %v7001_v1  ;;  %7875 = vmatpush.bf16.msra.mxu2 %v11334_v49  ;;  %7889 = vmatpush.bf16.msra.mxu3 %v11338_v54  ;;  %v11326_v1 = vor.u32 %v12138_v52, %v11325_v27  ;;  %v12133_v49 = vld [vmem:[%s16151_s9 + $0x2c4] sm:$0xf]  ;;  %v11303_v52 = vld [vmem:[%s16151_s9 + $0x2b8] sm:$0xf0] }
 0x6c1   :  { %v12680_v58 = vpop.eup %12679  ;;  %v7040_v2 = vmul.f32 1.442695, %v7017_v56  ;;  %v11218_v56 = vor.u32 %v12113_v51, %v11215_v46 }
 0x6c2   :  { %v12682_v26 = vpop.eup %12681  ;;  %v6954_v32 = vpop.f32.mrf.mxu3  ;;  %7742 = vmatpush.bf16.msra.mxu0 %v11238_v35  ;;  %7756 = vmatpush.bf16.msra.mxu1 %v11242_v55  ;;  %v7064_v25 = vadd.f32 1.0, %v12680_v58  ;;  %v6789_v35 = vadd.f32 %v15704_v34, %v6595_v24  ;;  %v12111_v34 = vld [vmem:[%s16151_s9 + $0x214] sm:$0xf]  ;;  %v12136_v58 = vld [vmem:[%s16151_s9 + $0x2d4] sm:$0xf0] }
 0x6c3   :  { %v7095_v48 = vpack.c.bf16 %v12682_v26, %v12682_v26  ;;  %12683 = vpow2.f32 %v7040_v2  ;;  %v6982_v30 = vadd.f32 %v6954_v32, %v6788_v63  ;;  %7876 = vmatpush.bf16.msra.mxu2 %v11326_v1  ;;  %7890 = vmatpush.bf16.msra.mxu3 %v11330_v37  ;;  %v12135_v63 = vld [vmem:[%s16151_s9 + $0x2d4] sm:$0xf]  ;;  %v15833_v8 = vpop.f32.mrf.mxu1  ;;  %v11318_v2 = vor.u32 %v12136_v58, %v11317_v13  ;;  %v11413_v1 = vld [vmem:[%s16151_s9 + $0x370] sm:$0xf]  ;;  %v12154_v13 = vld [vmem:[%s16151_s9 + $0x364] sm:$0xf0] }
 0x6c4   :  { %12685 = vrcp.f32 %v7064_v25  ;;  %v6394_v26 = vadd.f32 %v15752_v3, %v15236_v6  ;;  %v11206_v6 = vor.u32 %v12112_v22, %v11205_v31  ;;  %v11210_v3 = vor.u32 %v12111_v34, %v11207_v47  ;;  %v6398_v31 = vpop.f32.mrf.mxu0  ;;  %v12129_v34 = vld [vmem:[%s16151_s9 + $0x2a4] sm:$0xf] }
 0x6c5   :  { %v7387_v23 = vunpack.c.l.b16 %v7095_v48  ;;  %v7002_v10 = vadd.f32 %v15328_v0, %v6982_v30  ;;  %v15850_v48 = vpop.f32.mrf.mxu2  ;;  %v11199_v30 = vld [vmem:[%s16151_s9 + $0x208] sm:$0xf0]  ;;  %v11310_v25 = vor.u32 %v12134_v29, %v11309_v19  ;;  %v6396_v37 = vadd.f32 %v6395_v59, %v15250_v5  ;;  %v12130_v5 = vld [vmem:[%s16151_s9 + $0x2a4] sm:$0xf0]  ;;  %v12127_v29 = vld [vmem:[%s16151_s9 + $0x294] sm:$0xf] }
 0x6c6   :  { %7743 = vmatpush.bf16.msra.mxu0 %v11230_v57  ;;  %7757 = vmatpush.bf16.msra.mxu1 %v11234_v44  ;;  %v11322_v57 = vor.u32 %v12135_v63, %v11319_v15  ;;  %v11197_v44 = vld [vmem:[%s16151_s9 + $0x200] sm:$0xf]  ;;  %v6596_v38 = vadd.f32 %v15758_v40, %v6394_v26  ;;  %v11301_v40 = vld [vmem:[%s16151_s9 + $0x2b0] sm:$0xf]  ;;  %v11202_v46 = vor.u32 %v12109_v18, %v11199_v30  ;;  %v12153_v15 = vld [vmem:[%s16151_s9 + $0x364] sm:$0xf] }
 0x6c7   :  { %v7388_v36 = vpack.c.b16 %v7387_v23, %v7386_v9  ;;  %v7018_v53 = vsub.f32 0.0, %v7002_v10  ;;  %7877 = vmatpush.bf16.msra.mxu2 %v11318_v2  ;;  %v11314_v9 = vor.u32 %v12133_v49, %v11311_v50  ;;  %v11302_v27 = vor.u32 %v12132_v28, %v11301_v40  ;;  %v11407_v26 = vld [vmem:[%s16151_s9 + $0x368] sm:$0xf0]  ;;  %v11397_v49 = vld [vmem:[%s16151_s9 + $0x350] sm:$0xf] }
 0x6c8   :  { %7891 = vmatpush.bf16.msra.mxu3 %v11322_v57  ;;  %v6790_v10 = vadd.f32 %v15780_v20, %v6596_v38  ;;  %v12131_v20 = vld [vmem:[%s16151_s9 + $0x2b4] sm:$0xf]  ;;  %v6597_v47 = vadd.f32 %v15833_v8, %v6396_v37  ;;  %v12152_v50 = vld [vmem:[%s16151_s9 + $0x354] sm:$0xf0] }
 0x6c9   :  { %v12684_v45 = vpop.eup %12683  ;;  %v7042_v55 = vmul.f32 1.442695, %v7018_v53  ;;  %7478 = vmatmul.bf16.vlgmr.msrb.gmra.mxu0 %v7388_v36  ;;  %7492 = vmatmul.bf16.vlgmr.msrb.gmra.mxu1 %v7388_v36  ;;  %v11306_v53 = vor.u32 %v12131_v20, %v11303_v52  ;;  %v12150_v20 = vld [vmem:[%s16151_s9 + $0x344] sm:$0xf0] }
 0x6ca   :  { %v7065_v33 = vadd.f32 1.0, %v12684_v45  ;;  %v6956_v11 = vpop.f32.mrf.mxu3  ;;  %7744 = vmatpush.bf16.msra.mxu0 %v11222_v21  ;;  %7758 = vmatpush.bf16.msra.mxu1 %v11226_v61  ;;  %v12686_v12 = vpop.eup %12685  ;;  %v11198_v61 = vor.u32 %v12110_v60, %v11197_v44  ;;  %v11410_v44 = vor.u32 %v12153_v15, %v11407_v26  ;;  %v6791_v18 = vadd.f32 %v15850_v48, %v6597_v47  ;;  %v11287_v48 = vld [vmem:[%s16151_s9 + $0x298] sm:$0xf0]  ;;  %v12147_v47 = vld [vmem:[%s16151_s9 + $0x334] sm:$0xf] }
 0x6cb   :  { %12687 = vpow2.f32 %v7042_v55  ;;  %v6983_v4 = vadd.f32 %v6956_v11, %v6789_v35  ;;  %v7096_v54 = vpack.c.bf16 %v12686_v12, %v12686_v12  ;;  %7878 = vmatpush.bf16.msra.mxu2 %v11310_v25  ;;  %v11414_v35 = vor.u32 %v12156_v42, %v11413_v1  ;;  %v11415_v55 = vld [vmem:[%s16151_s9 + $0x378] sm:$0xf0]  ;;  %v6576_v59 = vpop.f32.mrf.mxu1  ;;  %v12149_v42 = vld [vmem:[%s16151_s9 + $0x344] sm:$0xf] }
 0x6cc   :  { %12689 = vrcp.f32 %v7065_v33  ;;  %7892 = vmatpush.bf16.msra.mxu3 %v11314_v9  ;;  %v11290_v25 = vor.u32 %v12127_v29, %v11287_v48  ;;  %v12151_v9 = vld [vmem:[%s16151_s9 + $0x354] sm:$0xf]  ;;  %v6400_v52 = vpop.f32.mrf.mxu0  ;;  %v12170_v29 = vld [vmem:[%s16151_s9 + $0x3e4] sm:$0xf0] }
 0x6cd   :  { %v7003_v32 = vadd.f32 %v15328_v0, %v6983_v4  ;;  %v7521_v22 = vunpack.c.l.b16 %v7096_v54  ;;  %v11405_v4 = vld [vmem:[%s16151_s9 + $0x360] sm:$0xf]  ;;  %v6399_v54 = vadd.f32 %v6398_v31, %v15264_v16  ;;  %v12125_v16 = vld [vmem:[%s16151_s9 + $0x284] sm:$0xf] }
 0x6ce   :  { %7745 = vmatpush.bf16.msra.mxu0 %v11214_v14  ;;  %7759 = vmatpush.bf16.msra.mxu1 %v11218_v56  ;;  %v11418_v14 = vor.u32 %v12155_v41, %v11415_v55  ;;  %v11293_v56 = vld [vmem:[%s16151_s9 + $0x2a0] sm:$0xf]  ;;  %v11406_v57 = vor.u32 %v12154_v13, %v11405_v4  ;;  %v11391_v41 = vld [vmem:[%s16151_s9 + $0x348] sm:$0xf0] }
 0x6cf   :  { %v7019_v39 = vsub.f32 0.0, %v7003_v32  ;;  %7879 = vmatpush.bf16.msra.mxu2 %v11302_v27  ;;  %v11294_v8 = vor.u32 %v12130_v5, %v11293_v56  ;;  %v6770_v32 = vpop.f32.mrf.mxu2  ;;  %v11389_v27 = vld [vmem:[%s16151_s9 + $0x340] sm:$0xf] }
 0x6d0   :  { %7893 = vmatpush.bf16.msra.mxu3 %v11306_v53 }
 0x6d1   :  { %v12688_v23 = vpop.eup %12687  ;;  %v7044_v62 = vmul.f32 1.442695, %v7019_v39 }
 0x6d2   :  { %v12690_v51 = vpop.eup %12689  ;;  %v6959_v21 = vpop.f32.mrf.mxu3  ;;  %7746 = vmatpush.bf16.msra.mxu0 %v11206_v6  ;;  %7760 = vmatpush.bf16.msra.mxu1 %v11210_v3  ;;  %v7066_v45 = vadd.f32 1.0, %v12688_v23  ;;  %v11285_v6 = vld [vmem:[%s16151_s9 + $0x290] sm:$0xf]  ;;  %v12128_v3 = vld [vmem:[%s16151_s9 + $0x294] sm:$0xf0]  ;;  %v11398_v23 = vor.u32 %v12152_v50, %v11397_v49 }
 0x6d3   :  { %v7097_v24 = vpack.c.bf16 %v12690_v51, %v12690_v51  ;;  %12691 = vpow2.f32 %v7044_v62  ;;  %v6984_v36 = vadd.f32 %v6959_v21, %v6790_v10  ;;  %7880 = vmatpush.bf16.msra.mxu2 %v11294_v8  ;;  %v11286_v39 = vor.u32 %v12128_v3, %v11285_v6  ;;  %v11399_v10 = vld [vmem:[%s16151_s9 + $0x358] sm:$0xf0]  ;;  %v15949_v62 = vld [vmem:[%s16150_s8] ss:$0 sm:$0xff]  ;;  %v12126_v21 = vld [vmem:[%s16151_s9 + $0x284] sm:$0xf0]  ;;  %v6578_v37 = vpop.f32.mrf.mxu1 }
 0x6d4   :  { %12693 = vrcp.f32 %v7066_v45  ;;  %v11402_v28 = vor.u32 %v12151_v9, %v11399_v10  ;;  %v11277_v51 = vld [vmem:[%s16151_s9 + $0x280] sm:$0xf]  ;;  %v11390_v45 = vor.u32 %v12150_v20, %v11389_v27  ;;  %v12171_v8 = vld [vmem:[%s16151_s9 + $0x3f4] sm:$0xf]  ;;  %v12146_v6 = vld [vmem:[%s16151_s9 + $0x324] sm:$0xf0] }
 0x6d5   :  { %v7522_v33 = vunpack.c.l.b16 %v7097_v24  ;;  %v7004_v11 = vadd.f32 %v15328_v0, %v6984_v36  ;;  %v11295_v0 = vld [vmem:[%s16151_s9 + $0x2a8] sm:$0xf0]  ;;  %v6598_v24 = vadd.f32 %v6576_v59, %v6399_v54  ;;  %v11278_v53 = vor.u32 %v12126_v21, %v11277_v51  ;;  %v11383_v59 = vld [vmem:[%s16151_s9 + $0x338] sm:$0xf0]  ;;  %v12145_v3 = vld [vmem:[%s16151_s9 + $0x324] sm:$0xf] }
 0x6d6   :  { %7747 = vmatpush.bf16.msra.mxu0 %v11198_v61  ;;  %7761 = vmatpush.bf16.msra.mxu1 %v11202_v46  ;;  %v11298_v2 = vor.u32 %v12129_v34, %v11295_v0  ;;  %v11279_v46 = vld [vmem:[%s16151_s9 + $0x288] sm:$0xf0]  ;;  %v6401_v0 = vadd.f32 %v6400_v52, %v15270_v17  ;;  %v11386_v15 = vor.u32 %v12147_v47, %v11383_v59  ;;  %v12169_v49 = vld [vmem:[%s16151_s9 + $0x3e4] sm:$0xf]  ;;  %v11365_v21 = vld [vmem:[%s16151_s9 + $0x310] sm:$0xf] }
 0x6d7   :  { %v7523_v58 = vpack.c.b16 %v7522_v33, %v7521_v22  ;;  %v7020_v63 = vsub.f32 0.0, %v7004_v11  ;;  %7881 = vmatpush.bf16.msra.mxu2 %v11286_v39  ;;  %v11282_v1 = vor.u32 %v12125_v16, %v11279_v46  ;;  %v6792_v31 = vadd.f32 %v6770_v32, %v6598_v24  ;;  %v11381_v11 = vld [vmem:[%s16151_s9 + $0x330] sm:$0xf]  ;;  %v6772_v5 = vpop.f32.mrf.mxu2  ;;  %v11495_v32 = vld [vmem:[%s16151_s9 + $0x3f8] sm:$0xf0] }
 0x6d8   :  { %7894 = vmatpush.bf16.msra.mxu3 %v11298_v2  ;;  %v6599_v48 = vadd.f32 %v6578_v37, %v6401_v0  ;;  %v11487_v50 = vld [vmem:[%s16151_s9 + $0x3e8] sm:$0xf0]  ;;  %v12144_v16 = vld [vmem:[%s16151_s9 + $0x314] sm:$0xf0]  ;;  %v12143_v20 = vld [vmem:[%s16151_s9 + $0x314] sm:$0xf] }
 0x6d9   :  { %v12692_v60 = vpop.eup %12691  ;;  %v7046_v12 = vmul.f32 1.442695, %v7020_v63  ;;  %7613 = vmatmul.bf16.vlgmr.msrb.gmra.mxu2 %v7523_v58  ;;  %7627 = vmatmul.bf16.vlgmr.msrb.gmra.mxu3 %v7523_v58  ;;  %v11493_v58 = vld [vmem:[%s16151_s9 + $0x3f0] sm:$0xf]  ;;  %v12172_v63 = vld [vmem:[%s16151_s9 + $0x3f4] sm:$0xf0]  ;;  %v11490_v10 = vor.u32 %v12169_v49, %v11487_v50 }
 0x6da   :  { %8010 = vmatpush.bf16.msrb.mxu0 %v11414_v35  ;;  %8024 = vmatpush.bf16.msrb.mxu1 %v11418_v14  ;;  %v7067_v30 = vadd.f32 1.0, %v12692_v60  ;;  %v6961_v19 = vpop.f32.mrf.mxu3  ;;  %v12694_v61 = vpop.eup %12693  ;;  %v11394_v35 = vor.u32 %v12149_v42, %v11391_v41  ;;  %v12148_v14 = vld [vmem:[%s16151_s9 + $0x334] sm:$0xf0]  ;;  %v11494_v26 = vor.u32 %v12172_v63, %v11493_v58  ;;  %v11367_v52 = vld [vmem:[%s16151_s9 + $0x318] sm:$0xf0]  ;;  %v11366_v41 = vor.u32 %v12144_v16, %v11365_v21 }
 0x6db   :  { %12695 = vpow2.f32 %v7046_v12  ;;  %v6985_v38 = vadd.f32 %v6961_v19, %v6791_v18  ;;  %v7098_v22 = vpack.c.bf16 %v12694_v61, %v12694_v61  ;;  %7882 = vmatpush.bf16.msra.mxu2 %v11278_v53  ;;  %v11382_v17 = vor.u32 %v12148_v14, %v11381_v11  ;;  %v11373_v12 = vld [vmem:[%s16151_s9 + $0x320] sm:$0xf]  ;;  %v6581_v61 = vpop.f32.mrf.mxu1  ;;  %v12168_v53 = vld [vmem:[%s16151_s9 + $0x3d4] sm:$0xf0]  ;;  %v12142_v11 = vld [vmem:[%s16151_s9 + $0x304] sm:$0xf0] }
 0x6dc   :  { %12697 = vrcp.f32 %v7067_v30  ;;  %7895 = vmatpush.bf16.msra.mxu3 %v11290_v25  ;;  %v11498_v18 = vor.u32 %v12171_v8, %v11495_v32  ;;  %v11375_v30 = vld [vmem:[%s16151_s9 + $0x328] sm:$0xf0]  ;;  %v11485_v19 = vld [vmem:[%s16151_s9 + $0x3e0] sm:$0xf]  ;;  %v11374_v9 = vor.u32 %v12146_v6, %v11373_v12  ;;  %v11370_v37 = vor.u32 %v12143_v20, %v11367_v52  ;;  %v12141_v14 = vld [vmem:[%s16151_s9 + $0x304] sm:$0xf] }
 0x6dd   :  { %v7005_v40 = vadd.f32 %v15949_v62, %v6985_v38  ;;  %v11486_v25 = vor.u32 %v12170_v29, %v11485_v19  ;;  %v11461_v32 = vld [vmem:[%s16151_s9 + $0x3b0] sm:$0xf]  ;;  %v12163_v12 = vld [vmem:[%s16151_s9 + $0x3b4] sm:$0xf]  ;;  %v11463_v6 = vld [vmem:[%s16151_s9 + $0x3b8] sm:$0xf0] }
 0x6de   :  { %8011 = vmatpush.bf16.msrb.mxu0 %v11406_v57  ;;  %8025 = vmatpush.bf16.msrb.mxu1 %v11410_v44  ;;  %v7656_v57 = vunpack.c.l.b16 %v7098_v22  ;;  %v11466_v19 = vor.u32 %v12163_v12, %v11463_v6  ;;  %v11447_v20 = vld [vmem:[%s16151_s9 + $0x398] sm:$0xf0] }
 0x6df   :  { %v7021_v36 = vsub.f32 0.0, %v7005_v40  ;;  %8145 = vmatpush.bf16.msrb.mxu2 %v11494_v26  ;;  %v6403_v40 = vpop.f32.mrf.mxu0  ;;  %v6775_v42 = vpop.f32.mrf.mxu2 }
 0x6e0   :  { %7896 = vmatpush.bf16.msra.mxu3 %v11282_v1  ;;  %v12167_v1 = vld [vmem:[%s16151_s9 + $0x3d4] sm:$0xf] }
 0x6e1   :  { %v12696_v55 = vpop.eup %12695  ;;  %v7048_v33 = vmul.f32 1.442695, %v7021_v36  ;;  %v11477_v36 = vld [vmem:[%s16151_s9 + $0x3d0] sm:$0xf] }
 0x6e2   :  { %8012 = vmatpush.bf16.msrb.mxu0 %v11398_v23  ;;  %8026 = vmatpush.bf16.msrb.mxu1 %v11402_v28  ;;  %v12698_v56 = vpop.eup %12697  ;;  %v6964_v34 = vpop.f32.mrf.mxu3  ;;  %v7068_v2 = vadd.f32 1.0, %v12696_v55  ;;  %v11378_v23 = vor.u32 %v12145_v3, %v11375_v30  ;;  %v6793_v28 = vadd.f32 %v6772_v5, %v6599_v48  ;;  %v6404_v55 = vadd.f32 %v6403_v40, %v15276_v7  ;;  %v11359_v7 = vld [vmem:[%s16151_s9 + $0x308] sm:$0xf0]  ;;  %v11469_v5 = vld [vmem:[%s16151_s9 + $0x3c0] sm:$0xf] }
 0x6e3   :  { %v7099_v4 = vpack.c.bf16 %v12698_v56, %v12698_v56  ;;  %12699 = vpow2.f32 %v7048_v33  ;;  %v6986_v13 = vadd.f32 %v6964_v34, %v6792_v31  ;;  %8146 = vmatpush.bf16.msrb.mxu2 %v11486_v25  ;;  %v11357_v33 = vld [vmem:[%s16151_s9 + $0x300] sm:$0xf]  ;;  %v12166_v34 = vld [vmem:[%s16151_s9 + $0x3c4] sm:$0xf0]  ;;  %v11362_v63 = vor.u32 %v12141_v14, %v11359_v7  ;;  %v6583_v48 = vpop.f32.mrf.mxu1 }
 0x6e4   :  { %8159 = vmatpush.bf16.msrb.mxu3 %v11498_v18  ;;  %12701 = vrcp.f32 %v7068_v2  ;;  %v6600_v47 = vadd.f32 %v6581_v61, %v6404_v55  ;;  %v11470_v0 = vor.u32 %v12166_v34, %v11469_v5  ;;  %v11358_v58 = vor.u32 %v12142_v11, %v11357_v33  ;;  %v11445_v61 = vld [vmem:[%s16151_s9 + $0x390] sm:$0xf]  ;;  %v12157_v55 = vld [vmem:[%s16151_s9 + $0x384] sm:$0xf] }
 0x6e5   :  { %v7657_v44 = vunpack.c.l.b16 %v7099_v4  ;;  %v7006_v60 = vadd.f32 %v15949_v62, %v6986_v13  ;;  %v12165_v4 = vld [vmem:[%s16151_s9 + $0x3c4] sm:$0xf]  ;;  %v11471_v13 = vld [vmem:[%s16151_s9 + $0x3c8] sm:$0xf0] }
 0x6e6   :  { %8013 = vmatpush.bf16.msrb.mxu0 %v11390_v45  ;;  %8027 = vmatpush.bf16.msrb.mxu1 %v11394_v35  ;;  %v11478_v45 = vor.u32 %v12168_v53, %v11477_v36  ;;  %v11479_v35 = vld [vmem:[%s16151_s9 + $0x3d8] sm:$0xf0]  ;;  %v11474_v8 = vor.u32 %v12165_v4, %v11471_v13 }
 0x6e7   :  { %v7658_v38 = vpack.c.b16 %v7657_v44, %v7656_v57  ;;  %v7022_v39 = vsub.f32 0.0, %v7006_v60  ;;  %v11482_v22 = vor.u32 %v12167_v1, %v11479_v35  ;;  %v12164_v57 = vld [vmem:[%s16151_s9 + $0x3b4] sm:$0xf0]  ;;  %v6405_v29 = vpop.f32.mrf.mxu0  ;;  %v12158_v35 = vld [vmem:[%s16151_s9 + $0x384] sm:$0xf0] }
 0x6e8   :  { %8160 = vmatpush.bf16.msrb.mxu3 %v11490_v10  ;;  %8147 = vmatpush.bf16.msrb.mxu2 %v11478_v45  ;;  %v11462_v18 = vor.u32 %v12164_v57, %v11461_v32  ;;  %v12161_v10 = vld [vmem:[%s16151_s9 + $0x3a4] sm:$0xf]  ;;  %v11437_v45 = vld [vmem:[%s16151_s9 + $0x380] sm:$0xf] }
 0x6e9   :  { %v12700_v54 = vpop.eup %12699  ;;  %v7050_v51 = vmul.f32 1.442695, %v7022_v39  ;;  %7748 = vmatmul.bf16.vlgmr.msra.gmra.mxu0 %v7658_v38  ;;  %7762 = vmatmul.bf16.vlgmr.msra.gmra.mxu1 %v7658_v38  ;;  %v6406_v39 = vadd.f32 %v6405_v29, %v15289_v43  ;;  %v11455_v43 = vld [vmem:[%s16151_s9 + $0x3a8] sm:$0xf0]  ;;  %v11438_v11 = vor.u32 %v12158_v35, %v11437_v45 }
 0x6ea   :  { %8014 = vmatpush.bf16.msrb.mxu0 %v11382_v17  ;;  %8028 = vmatpush.bf16.msrb.mxu1 %v11386_v15  ;;  %v7069_v46 = vadd.f32 1.0, %v12700_v54  ;;  %v6966_v27 = vpop.f32.mrf.mxu3  ;;  %v12702_v56 = vpop.eup %12701  ;;  %v6794_v17 = vadd.f32 %v6775_v42, %v6600_v47  ;;  %v11458_v16 = vor.u32 %v12161_v10, %v11455_v43 }
 0x6eb   :  { %12703 = vpow2.f32 %v7050_v51  ;;  %v6987_v24 = vadd.f32 %v6966_v27, %v6793_v28  ;;  %v7100_v15 = vpack.c.bf16 %v12702_v56, %v12702_v56  ;;  %v6777_v54 = vpop.f32.mrf.mxu2  ;;  %v6601_v28 = vadd.f32 %v6583_v48, %v6406_v39  ;;  %v12159_v27 = vld [vmem:[%s16151_s9 + $0x394] sm:$0xf] }
 0x6ec   :  { %12705 = vrcp.f32 %v7069_v46  ;;  %8161 = vmatpush.bf16.msrb.mxu3 %v11482_v22  ;;  %8148 = vmatpush.bf16.msrb.mxu2 %v11470_v0  ;;  %v12160_v46 = vld [vmem:[%s16151_s9 + $0x394] sm:$0xf0] }
 0x6ed   :  { %v7007_v31 = vadd.f32 %v15949_v62, %v6987_v24  ;;  %v7791_v25 = vunpack.c.l.b16 %v7100_v15  ;;  %v6795_v24 = vadd.f32 %v6777_v54, %v6601_v28  ;;  %v11446_v42 = vor.u32 %v12160_v46, %v11445_v61 }
 0x6ee   :  { %8015 = vmatpush.bf16.msrb.mxu0 %v11374_v9  ;;  %8029 = vmatpush.bf16.msrb.mxu1 %v11378_v23  ;;  %v11453_v9 = vld [vmem:[%s16151_s9 + $0x3a0] sm:$0xf]  ;;  %v12162_v23 = vld [vmem:[%s16151_s9 + $0x3a4] sm:$0xf0] }
 0x6ef   :  { %v7023_v59 = vsub.f32 0.0, %v7007_v31  ;;  %v11454_v40 = vor.u32 %v12162_v23, %v11453_v9  ;;  %v11439_v31 = vld [vmem:[%s16151_s9 + $0x388] sm:$0xf0] }
 0x6f0   :  { %8162 = vmatpush.bf16.msrb.mxu3 %v11474_v8  ;;  %8149 = vmatpush.bf16.msrb.mxu2 %v11462_v18  ;;  %v11442_v56 = vor.u32 %v12157_v55, %v11439_v31 }
 0x6f1   :  { %v12704_v2 = vpop.eup %12703  ;;  %v7052_v26 = vmul.f32 1.442695, %v7023_v59 }
 0x6f2   :  { %8016 = vmatpush.bf16.msrb.mxu0 %v11366_v41  ;;  %8030 = vmatpush.bf16.msrb.mxu1 %v11370_v37  ;;  %v12706_v44 = vpop.eup %12705  ;;  %v6969_v60 = vpop.f32.mrf.mxu3  ;;  %v7070_v38 = vadd.f32 1.0, %v12704_v2  ;;  %v11450_v37 = vor.u32 %v12159_v27, %v11447_v20 }
 0x6f3   :  { %v7101_v3 = vpack.c.bf16 %v12706_v44, %v12706_v44  ;;  %12707 = vpow2.f32 %v7052_v26  ;;  %v6988_v30 = vadd.f32 %v6969_v60, %v6794_v17 }
 0x6f4   :  { %8163 = vmatpush.bf16.msrb.mxu3 %v11466_v19  ;;  %12709 = vrcp.f32 %v7070_v38  ;;  %8150 = vmatpush.bf16.msrb.mxu2 %v11454_v40 }
 0x6f5   :  { %v7792_v49 = vunpack.c.l.b16 %v7101_v3  ;;  %v7008_v50 = vadd.f32 %v15949_v62, %v6988_v30 }
 0x6f6   :  { %8017 = vmatpush.bf16.msrb.mxu0 %v11358_v58  ;;  %8031 = vmatpush.bf16.msrb.mxu1 %v11362_v63 }
 0x6f7   :  { %v7793_v51 = vpack.c.b16 %v7792_v49, %v7791_v25  ;;  %v7024_v21 = vsub.f32 0.0, %v7008_v50 }
 0x6f8   :  { %8164 = vmatpush.bf16.msrb.mxu3 %v11458_v16  ;;  %8151 = vmatpush.bf16.msrb.mxu2 %v11446_v42 }
 0x6f9   :  { %v12708_v52 = vpop.eup %12707  ;;  %v7054_v36 = vmul.f32 1.442695, %v7024_v21  ;;  %7883 = vmatmul.bf16.vlgmr.msra.gmra.mxu2 %v7793_v51  ;;  %7897 = vmatmul.bf16.vlgmr.msra.gmra.mxu3 %v7793_v51 }
 0x6fa   :  { %v7071_v53 = vadd.f32 1.0, %v12708_v52  ;;  %v6971_v1 = vpop.f32.mrf.mxu3  ;;  %v12710_v33 = vpop.eup %12709 }
 0x6fb   :  { %12711 = vpow2.f32 %v7054_v36  ;;  %v6989_v41 = vadd.f32 %v6971_v1, %v6795_v24  ;;  %v7102_v5 = vpack.c.bf16 %v12710_v33, %v12710_v33 }
 0x6fc   :  { %12713 = vrcp.f32 %v7071_v53  ;;  %8165 = vmatpush.bf16.msrb.mxu3 %v11450_v37  ;;  %8152 = vmatpush.bf16.msrb.mxu2 %v11438_v11  ;;  %v8177_v37 = vld [vmem:[%s16152_s10] sm:$0x3] }
 0x6fd   :  { %v7009_v22 = vadd.f32 %v15949_v62, %v6989_v41  ;;  %v7926_v4 = vunpack.c.l.b16 %v7102_v5  ;;  %v8179_v11 = vperm.slane %v8177_v37, 0 }
 0x6ff   :  { %v7025_v14 = vsub.f32 0.0, %v7009_v22 }
 0x700   :  { %8166 = vmatpush.bf16.msrb.mxu3 %v11442_v56 }
 0x701   :  { %v12712_v7 = vpop.eup %12711  ;;  %v7056_v34 = vmul.f32 1.442695, %v7025_v14  ;;  %v8180_v14 = vperm.slane %v8177_v37, 1 }
 0x702   :  { %v12714_v47 = vpop.eup %12713  ;;  %v7072_v0 = vadd.f32 1.0, %v12712_v7 }
 0x703   :  { %v7103_v59 = vpack.c.bf16 %v12714_v47, %v12714_v47  ;;  %12715 = vpow2.f32 %v7056_v34 }
 0x704   :  { %12717 = vrcp.f32 %v7072_v0 }
 0x705   :  { %v7927_v13 = vunpack.c.l.b16 %v7103_v59 }
 0x707   :  { %v7928_v58 = vpack.c.b16 %v7927_v13, %v7926_v4 }
 0x709   :  { %v12716_v62 = vpop.eup %12715  ;;  %8018 = vmatmul.bf16.vlgmr.msrb.gmra.mxu0 %v7928_v58  ;;  %8032 = vmatmul.bf16.vlgmr.msrb.gmra.mxu1 %v7928_v58 }
 0x70a   :  { %v7073_v63 = vadd.f32 1.0, %v12716_v62  ;;  %v12718_v8 = vpop.eup %12717 }
 0x70b   :  { %v7104_v2 = vpack.c.bf16 %v12718_v8, %v12718_v8 }
 0x70c   :  { %12719 = vrcp.f32 %v7073_v63 }
 0x70d   :  { %v8061_v26 = vunpack.c.l.b16 %v7104_v2 }
 0x712   :  { %v12720_v17 = vpop.eup %12719 }
 0x713   :  { %v7105_v15 = vpack.c.bf16 %v12720_v17, %v12720_v17 }
 0x715   :  { %v8062_v32 = vunpack.c.l.b16 %v7105_v15 }
 0x717   :  { %v8063_v57 = vpack.c.b16 %v8062_v32, %v8061_v26 }
 0x719   :  { %8153 = vmatmul.bf16.vlgmr.msrb.gmra.mxu2 %v8063_v57  ;;  %8167 = vmatmul.bf16.vlgmr.msrb.gmra.mxu3 %v8063_v57 }
 0x72c   :  { %v7348_v18 = vpop.f32.mrf.mxu2  ;;  %v7362_v12 = vpop.f32.mrf.mxu3 }
 0x734   :  { %v7350_v30 = vpop.f32.mrf.mxu2  ;;  %v7364_v19 = vpop.f32.mrf.mxu3 }
 0x736   :  { %v7234_v44 = vpop.f32.mrf.mxu0  ;;  %v7248_v60 = vpop.f32.mrf.mxu1 }
 0x737   :  { %v7349_v51 = vadd.f32 %v7348_v18, %v7234_v44  ;;  %v7363_v21 = vadd.f32 %v7362_v12, %v7248_v60 }
 0x73e   :  { %v7236_v6 = vpop.f32.mrf.mxu0  ;;  %v7250_v3 = vpop.f32.mrf.mxu1 }
 0x73f   :  { %v7351_v42 = vadd.f32 %v7350_v30, %v7236_v6  ;;  %v7365_v41 = vadd.f32 %v7364_v19, %v7250_v3 }
 0x746   :  { %v7479_v29 = vpop.f32.mrf.mxu0  ;;  %v7493_v48 = vpop.f32.mrf.mxu1 }
 0x747   :  { %v7498_v16 = vadd.f32 %v7479_v29, %v7349_v51  ;;  %v7499_v61 = vadd.f32 %v7493_v48, %v7363_v21 }
 0x74e   :  { %v7481_v25 = vpop.f32.mrf.mxu0  ;;  %v7495_v49 = vpop.f32.mrf.mxu1 }
 0x74f   :  { %v7500_v55 = vadd.f32 %v7481_v25, %v7351_v42  ;;  %v7501_v31 = vadd.f32 %v7495_v49, %v7365_v41 }
 0x75c   :  { %v7614_v38 = vpop.f32.mrf.mxu2  ;;  %v7628_v39 = vpop.f32.mrf.mxu3 }
 0x75d   :  { %v7633_v20 = vadd.f32 %v7614_v38, %v7498_v16  ;;  %v7634_v52 = vadd.f32 %v7628_v39, %v7499_v61 }
 0x764   :  { %v7616_v50 = vpop.f32.mrf.mxu2  ;;  %v7630_v9 = vpop.f32.mrf.mxu3 }
 0x765   :  { %v7635_v5 = vadd.f32 %v7616_v50, %v7500_v55  ;;  %v7636_v34 = vadd.f32 %v7630_v9, %v7501_v31 }
 0x766   :  { %v7749_v23 = vpop.f32.mrf.mxu0  ;;  %v7763_v10 = vpop.f32.mrf.mxu1 }
 0x767   :  { %v7768_v53 = vadd.f32 %v7749_v23, %v7633_v20  ;;  %v7769_v1 = vadd.f32 %v7763_v10, %v7634_v52 }
 0x76e   :  { %v7751_v43 = vpop.f32.mrf.mxu0  ;;  %v7765_v28 = vpop.f32.mrf.mxu1 }
 0x76f   :  { %v7770_v0 = vadd.f32 %v7751_v43, %v7635_v5  ;;  %v7771_v4 = vadd.f32 %v7765_v28, %v7636_v34 }
 0x77c   :  { %v7884_v54 = vpop.f32.mrf.mxu2  ;;  %v7898_v40 = vpop.f32.mrf.mxu3 }
 0x77d   :  { %v7903_v45 = vadd.f32 %v7884_v54, %v7768_v53  ;;  %v7904_v35 = vadd.f32 %v7898_v40, %v7769_v1 }
 0x784   :  { %v7886_v46 = vpop.f32.mrf.mxu2  ;;  %v7900_v27 = vpop.f32.mrf.mxu3 }
 0x785   :  { %v7905_v8 = vadd.f32 %v7886_v46, %v7770_v0  ;;  %v7906_v2 = vadd.f32 %v7900_v27, %v7771_v4 }
 0x786   :  { %v8019_v24 = vpop.f32.mrf.mxu0  ;;  %v8033_v36 = vpop.f32.mrf.mxu1 }
 0x787   :  { %v8038_v22 = vadd.f32 %v8019_v24, %v7903_v45  ;;  %v8039_v33 = vadd.f32 %v8033_v36, %v7904_v35 }
 0x78e   :  { %v8021_v62 = vpop.f32.mrf.mxu0  ;;  %v8035_v63 = vpop.f32.mrf.mxu1 }
 0x78f   :  { %v8040_v17 = vadd.f32 %v8021_v62, %v7905_v8  ;;  %v8041_v15 = vadd.f32 %v8035_v63, %v7906_v2 }
 0x79c   :  { %v8154_v56 = vpop.f32.mrf.mxu2  ;;  %v8168_v7 = vpop.f32.mrf.mxu3 }
 0x79d   :  { %v8173_v47 = vadd.f32 %v8154_v56, %v8038_v22  ;;  %v8174_v59 = vadd.f32 %v8168_v7, %v8039_v33 }
 0x79f   :  { %v8183_v13 = vadd.f32 %v8179_v11, %v8173_v47  ;;  %v8184_v58 = vadd.f32 %v8180_v14, %v8174_v59 }
 0x7a1   :  { %8187 = vst [vmem:[%s16153_s11] sm:$0xff] %v8183_v13 }
 0x7a2   :  { %8188 = vst [vmem:[%s16153_s11 + $0x8] sm:$0xff] %v8184_v58 }
 0x7a4   :  { %v8156_v26 = vpop.f32.mrf.mxu2  ;;  %v8170_v32 = vpop.f32.mrf.mxu3 }
 0x7a5   :  { %v8175_v57 = vadd.f32 %v8156_v26, %v8040_v17  ;;  %v8176_v44 = vadd.f32 %v8170_v32, %v8041_v15 }
 0x7a7   :  { %v8185_v60 = vadd.f32 %v8179_v11, %v8175_v57  ;;  %v8186_v18 = vadd.f32 %v8180_v14, %v8176_v44 }
 0x7a9   :  { %8189 = vst [vmem:[%s16153_s11 + $0x10] sm:$0xff] %v8185_v60 }
 0x7aa   :  { %8190 = vst [vmem:[%s16153_s11 + $0x18] sm:$0xff] %v8186_v18 }

</bundles_post_ra>
